<compile_context>
chip_gen: v6e
topology: v6e:2x2x1
jax: 0.10.0
libtpu: 0.0.40
codegen_flags: <defaults>
</compile_context>

<pallas_src>
import functools

import jax
import jax.numpy as jnp
import numpy as np
from jax.experimental import pallas as pl
from jax.experimental.pallas import tpu as pltpu


# ----------------------------------------------------------------------------
# small static helpers
# ----------------------------------------------------------------------------
def _round_up(x, m):
    return (x + m - 1) // m * m


def _row_block(n, target):
    """Largest multiple-of-8 divisor of n that is <= target (or n if small)."""
    if n <= target:
        return n
    start = target - (target % 8)
    for r in range(start, 7, -8):
        if n % r == 0:
            return r
    return n


# ----------------------------------------------------------------------------
# Kernel 1: Time2Vec + LSTM layer-0 input projection (row tiled, parallel)
#   out = x_emb @ Wx0  +  f(tau) @ Wt0  +  b0          -> (rows, 4*H_pad)
#   f(tau)[:, 0] = tau*w + b  (aperiodic), f(tau)[:, 1:] = sin(tau*w + b)
#   (the Time2Vec scale W is pre-folded into Wt0; layer-0 bias folded into b0)
# ----------------------------------------------------------------------------
def feature_proj_kernel(tau_ref, xemb_ref, w_t2v_ref, b_t2v_ref,
                        wx_ref, wt_ref, b0_ref, out_ref):
    tau = tau_ref[...]                                          # (R, 1)
    raw = tau * w_t2v_ref[...] + b_t2v_ref[...]                 # (R, T)
    col = jax.lax.broadcasted_iota(jnp.int32, raw.shape, 1)
    t2v = jnp.where(col >= 1, jnp.sin(raw), raw)                # no concat
    out_ref[...] = (
        jnp.dot(xemb_ref[...], wx_ref[...], preferred_element_type=jnp.float32)
        + jnp.dot(t2v, wt_ref[...], preferred_element_type=jnp.float32)
        + b0_ref[...])


def feature_input_proj(tau, x_emb, p):
    N = tau.shape[0]
    E = x_emb.shape[1]
    T = p["t2v_w"].shape[1]
    G = p["wx0"].shape[1]
    R = _row_block(N, 512)
    return pl.pallas_call(
        feature_proj_kernel,
        out_shape=jax.ShapeDtypeStruct((N, G), jnp.float32),
        grid=(N // R,),
        in_specs=[
            pl.BlockSpec((R, 1), lambda r: (r, 0)),
            pl.BlockSpec((R, E), lambda r: (r, 0)),
            pl.BlockSpec((1, T), lambda r: (0, 0)),
            pl.BlockSpec((1, T), lambda r: (0, 0)),
            pl.BlockSpec((E, G), lambda r: (0, 0)),
            pl.BlockSpec((T, G), lambda r: (0, 0)),
            pl.BlockSpec((1, G), lambda r: (0, 0)),
        ],
        out_specs=pl.BlockSpec((R, G), lambda r: (r, 0)),
        compiler_params=pltpu.CompilerParams(
            dimension_semantics=("parallel",)),
    )(tau, x_emb, p["t2v_w"], p["t2v_b"], p["wx0"], p["wt0"], p["b0"])


# ----------------------------------------------------------------------------
# Kernel 2: fused multi-layer LSTM (all layers, all timesteps in one call)
#   gates0:   (S, Bc, 4*H_pad)  layer-0 input gates (precomputed by kernel 1)
#   per layer l>=1: bulk input projection  h_seq @ W_ih_l + b_l  (one matmul),
#   recurrence keeps only h @ W_hh + gate nonlinearities per step.
#   Gate order is PyTorch's i, f, g, o; every gate slice is 128-lane aligned.
# ----------------------------------------------------------------------------
def fused_lstm_kernel(gates0_ref, mask_ref, whh_ref, wih_ref, b_ref, out_ref,
                      hseq_ref, gbuf_ref):
    S, Bc, G = gates0_ref.shape
    Hp = G // 4
    L = whh_ref.shape[0]

    def run_layer(read_g, write_h, whh):
        def step(t, carry):
            h, c = carry
            g = read_g(t) + jnp.dot(h, whh, preferred_element_type=jnp.float32)
            i = jax.nn.sigmoid(g[:, 0 * Hp:1 * Hp])
            f = jax.nn.sigmoid(g[:, 1 * Hp:2 * Hp])
            u = jnp.tanh(g[:, 2 * Hp:3 * Hp])
            o = jax.nn.sigmoid(g[:, 3 * Hp:4 * Hp])
            c = f * c + i * u
            h = o * jnp.tanh(c)
            # pack_padded/pad_packed: zero outputs at padded (trailing) steps
            write_h(t, h * mask_ref[t])
            return h, c

        zeros = jnp.zeros((Bc, Hp), jnp.float32)
        jax.lax.fori_loop(0, S, step, (zeros, zeros), unroll=True)

    for l in range(L):
        whh = whh_ref[l]                                        # (Hp, G)
        if l == 0:
            read_g = lambda t: gates0_ref[t]                    # noqa: E731
        else:
            # Hoisted bulk input projection for this layer: the previous
            # layer's full h sequence against W_ih in one MXU-friendly matmul.
            gbuf_ref[...] = (
                jnp.dot(hseq_ref[...], wih_ref[l - 1],
                        preferred_element_type=jnp.float32) + b_ref[l - 1])
            read_g = lambda t: gbuf_ref[                        # noqa: E731
                pl.ds(pl.multiple_of(t * Bc, Bc), Bc), :]
        if l == L - 1:
            def write_h(t, v):
                out_ref[t] = v
        else:
            def write_h(t, v):
                hseq_ref[pl.ds(pl.multiple_of(t * Bc, Bc), Bc), :] = v
        run_layer(read_g, write_h, whh)


def fused_lstm(gates0, mask, p):
    S, B_pad, G = gates0.shape
    Hp = G // 4
    L = p["whh"].shape[0]
    Lm1 = p["wih_rest"].shape[0]
    Bc = _row_block(B_pad, 64)
    return pl.pallas_call(
        fused_lstm_kernel,
        out_shape=jax.ShapeDtypeStruct((S, B_pad, Hp), jnp.float32),
        grid=(B_pad // Bc,),
        in_specs=[
            pl.BlockSpec((S, Bc, G), lambda b: (0, b, 0)),
            pl.BlockSpec((S, Bc, 1), lambda b: (0, b, 0)),
            pl.BlockSpec((L, Hp, G), lambda b: (0, 0, 0)),
            pl.BlockSpec((Lm1, Hp, G), lambda b: (0, 0, 0)),
            pl.BlockSpec((Lm1, 1, G), lambda b: (0, 0, 0)),
        ],
        out_specs=pl.BlockSpec((S, Bc, Hp), lambda b: (0, b, 0)),
        scratch_shapes=[
            pltpu.VMEM((S * Bc, Hp), jnp.float32),   # previous layer's h sequence
            pltpu.VMEM((S * Bc, G), jnp.float32),    # bulk input-projection gates
        ],
        compiler_params=pltpu.CompilerParams(
            dimension_semantics=("parallel",)),       # batch chunks -> 2 TCs on v7x
    )(gates0, mask, p["whh"], p["wih_rest"], p["b_rest"])


# ----------------------------------------------------------------------------
# Kernel 3: output heads, one lane-dense (rows, 128) output slab
#   cols [0, nb_events)  = hidden_to_events(X)
#   col  nb_events       = hidden_to_time(sigmoid(hidden_to_hidden_time(
#                                          sigmoid(cat(X, Yemb)))))
# ----------------------------------------------------------------------------
def head_kernel(x_ref, yemb_ref, w1x_ref, w1y_ref, b1_ref,
                we_slab_ref, w2_slab_ref, b_slab_ref, out_ref):
    x = x_ref[...]                                              # (R, H_pad)
    sx = jax.nn.sigmoid(x)
    sy = jax.nn.sigmoid(yemb_ref[...])                          # (R, E)
    h1 = jax.nn.sigmoid(
        jnp.dot(sx, w1x_ref[...], preferred_element_type=jnp.float32)
        + jnp.dot(sy, w1y_ref[...], preferred_element_type=jnp.float32)
        + b1_ref[...])                                          # (R, HT_pad)
    out_ref[...] = (
        jnp.dot(x, we_slab_ref[...], preferred_element_type=jnp.float32)
        + jnp.dot(h1, w2_slab_ref[...], preferred_element_type=jnp.float32)
        + b_slab_ref[...])


def heads(lstm_out, y_emb, p):
    N, Hp = lstm_out.shape
    E = y_emb.shape[1]
    HT = p["w1x"].shape[1]
    P = p["b_slab"].shape[1]
    R = _row_block(N, 512)
    return pl.pallas_call(
        head_kernel,
        out_shape=jax.ShapeDtypeStruct((N, P), jnp.float32),
        grid=(N // R,),
        in_specs=[
            pl.BlockSpec((R, Hp), lambda r: (r, 0)),
            pl.BlockSpec((R, E), lambda r: (r, 0)),
            pl.BlockSpec((Hp, HT), lambda r: (0, 0)),
            pl.BlockSpec((E, HT), lambda r: (0, 0)),
            pl.BlockSpec((1, HT), lambda r: (0, 0)),
            pl.BlockSpec((Hp, P), lambda r: (0, 0)),
            pl.BlockSpec((HT, P), lambda r: (0, 0)),
            pl.BlockSpec((1, P), lambda r: (0, 0)),
        ],
        out_specs=pl.BlockSpec((R, P), lambda r: (r, 0)),
        compiler_params=pltpu.CompilerParams(
            dimension_semantics=("parallel",)),
    )(lstm_out, y_emb, p["w1x"], p["w1y"], p["b1"],
      p["we_slab"], p["w2_slab"], p["b_slab"])


# ----------------------------------------------------------------------------
# Forward wrapper (embedding gathers and tiny reshapes/slices stay in XLA)
# ----------------------------------------------------------------------------
def event_lstm_forward(p, X, Y, Xt, X_lengths, *, nb_events):
    B, S = X.shape
    B_pad = _round_up(B, 8)                      # f32 sublane tile
    if B_pad != B:
        db = B_pad - B
        X = jnp.pad(X, ((0, db), (0, 0)))        # pad rows use index 0 (= <PAD>)
        Y = jnp.pad(Y, ((0, db), (0, 0)))
        Xt = jnp.pad(Xt, ((0, db), (0, 0)))
        X_lengths = jnp.pad(X_lengths, (0, db))

    N = S * B_pad
    emb = p["embedding"]
    # Embedding lookup has no clean Pallas equivalent at this size; gather is
    # left to XLA.  Transposed index matrices give time-major activations with
    # no large activation transposes.
    x_emb = jnp.take(emb, X.T.reshape(N), axis=0)               # (N, E)
    y_emb = jnp.take(emb, Y.T.reshape(N), axis=0)               # (N, E)
    tau = Xt.T.reshape(N, 1).astype(jnp.float32)

    gates0 = feature_input_proj(tau, x_emb, p)                  # (N, 4*H_pad)
    G = gates0.shape[1]

    # trailing-pad mask (matches pack_padded/pad_packed output semantics)
    mask = (jnp.arange(S)[:, None] < X_lengths[None, :]).astype(jnp.float32)
    mask = mask[:, :, None]                                     # (S, B_pad, 1)

    lstm_out = fused_lstm(gates0.reshape(S, B_pad, G), mask, p)  # (S, B_pad, H_pad)
    Hp = lstm_out.shape[-1]

    slab = heads(lstm_out.reshape(N, Hp), y_emb, p)             # (N, 128)
    slab = slab.reshape(S, B_pad, -1)
    y_hat = slab[:, :B, :nb_events].transpose(1, 0, 2)          # (B, S, nb_events)
    t_hat = slab[:, :B, nb_events:nb_events + 1].transpose(1, 0, 2)
    return y_hat, t_hat


# ----------------------------------------------------------------------------
# Parameters: module-shaped init + conversion into padded kernel layout
# ----------------------------------------------------------------------------
def init_raw_params(key, vocab_size, pad_idx, emb_dim, time_emb_dim, hidden,
                    nb_layers, nb_events):
    """Parameters in the PyTorch module's native shapes."""
    def nrm(k, shape):
        return 0.1 * jax.random.normal(k, shape, dtype=jnp.float32)

    ks = iter(jax.random.split(key, 12 + 4 * nb_layers))
    p = {}
    emb = nrm(next(ks), (vocab_size, emb_dim))
    p["embedding"] = emb.at[pad_idx].set(0.0)                   # padding_idx row = 0
    p["t2v_wap"] = nrm(next(ks), (1, 1))                        # Linear(1,1)
    p["t2v_bap"] = nrm(next(ks), (1,))
    p["t2v_wp"] = nrm(next(ks), (time_emb_dim - 1, 1))          # Linear(1,T-1)
    p["t2v_bp"] = nrm(next(ks), (time_emb_dim - 1,))
    p["t2v_W"] = nrm(next(ks), (time_emb_dim,))
    layers = []
    din = emb_dim + time_emb_dim
    for _ in range(nb_layers):
        layers.append({"w_ih": nrm(next(ks), (4 * hidden, din)),
                       "w_hh": nrm(next(ks), (4 * hidden, hidden)),
                       "b_ih": nrm(next(ks), (4 * hidden,)),
                       "b_hh": nrm(next(ks), (4 * hidden,))})
        din = hidden
    p["lstm"] = layers
    p["we"] = nrm(next(ks), (nb_events, hidden))                # hidden_to_events
    p["be"] = nrm(next(ks), (nb_events,))
    p["w1"] = nrm(next(ks), (100, hidden + emb_dim))            # hidden_to_hidden_time
    p["b1"] = nrm(next(ks), (100,))
    p["w2"] = nrm(next(ks), (1, 100))                           # hidden_to_time
    p["b2"] = nrm(next(ks), (1,))
    return p


def prepare_params(raw, hidden, emb_dim, time_emb_dim, nb_events):
    """Pad / transpose / fold module params into the kernel layout."""
    H = hidden
    Hp = _round_up(H, 128)           # lane-aligned gate blocks
    G = 4 * Hp
    E = emb_dim
    T = time_emb_dim
    ht = raw["w1"].shape[0]          # 100
    HT = _round_up(ht, 128)
    P = _round_up(nb_events + 1, 128)

    def gate_pad_cols(w_t):          # (rows, 4H) -> (rows, 4*Hp), per-gate aligned
        rows = w_t.shape[0]
        out = jnp.zeros((rows, G), jnp.float32)
        for g in range(4):
            out = out.at[:, g * Hp:g * Hp + H].set(w_t[:, g * H:(g + 1) * H])
        return out

    def pad_rows(w, rows):
        return jnp.zeros((rows, w.shape[1]), jnp.float32).at[:w.shape[0]].set(w)

    p = {"embedding": raw["embedding"]}

    # Time2Vec merged into a single (1, T) affine; scale W folded into wt0.
    p["t2v_w"] = jnp.concatenate(
        [raw["t2v_wap"].reshape(1, 1), raw["t2v_wp"].reshape(1, T - 1)], axis=1)
    p["t2v_b"] = jnp.concatenate(
        [raw["t2v_bap"].reshape(1, 1), raw["t2v_bp"].reshape(1, T - 1)], axis=1)

    l0 = raw["lstm"][0]
    wih0_t = gate_pad_cols(l0["w_ih"].T)                        # (E+T, G)
    p["wx0"] = wih0_t[:E]
    p["wt0"] = raw["t2v_W"].reshape(T, 1) * wih0_t[E:E + T]
    p["b0"] = gate_pad_cols((l0["b_ih"] + l0["b_hh"]).reshape(1, 4 * H))

    L = len(raw["lstm"])
    p["whh"] = jnp.stack(
        [pad_rows(gate_pad_cols(lyr["w_hh"].T), Hp) for lyr in raw["lstm"]])
    if L > 1:
        p["wih_rest"] = jnp.stack(
            [pad_rows(gate_pad_cols(lyr["w_ih"].T), Hp) for lyr in raw["lstm"][1:]])
        p["b_rest"] = jnp.stack(
            [gate_pad_cols((lyr["b_ih"] + lyr["b_hh"]).reshape(1, 4 * H))
             for lyr in raw["lstm"][1:]])
    else:
        p["wih_rest"] = jnp.zeros((1, Hp, G), jnp.float32)      # unused dummies
        p["b_rest"] = jnp.zeros((1, 1, G), jnp.float32)

    # Heads: split hidden_to_hidden_time into X / Y halves; fold events + time
    # projections into one lane-dense output slab.
    p["w1x"] = pad_rows(
        jnp.zeros((H, HT), jnp.float32).at[:, :ht].set(raw["w1"][:, :H].T), Hp)
    p["w1y"] = jnp.zeros((E, HT), jnp.float32).at[:, :ht].set(raw["w1"][:, H:].T)
    p["b1"] = jnp.zeros((1, HT), jnp.float32).at[:, :ht].set(raw["b1"])
    p["we_slab"] = jnp.zeros((Hp, P), jnp.float32).at[:H, :nb_events].set(raw["we"].T)
    p["w2_slab"] = jnp.zeros((HT, P), jnp.float32).at[:ht, nb_events].set(raw["w2"][0])
    p["b_slab"] = (jnp.zeros((1, P), jnp.float32)
                   .at[0, :nb_events].set(raw["be"])
                   .at[0, nb_events].set(raw["b2"][0]))
    return p


# ----------------------------------------------------------------------------
# Pure-JAX reference (module math, same trailing-pad masking semantics)
# ----------------------------------------------------------------------------
def reference_forward(raw, X, Y, Xt, X_lengths, hidden):
    B, S = X.shape
    H = hidden
    emb = raw["embedding"]
    xe = emb[X]                                                 # (B, S, E)
    ye = emb[Y]
    tau = Xt[..., None].astype(jnp.float32)
    tau_ap = tau * raw["t2v_wap"][0, 0] + raw["t2v_bap"][0]
    tau_p = jnp.sin(tau * raw["t2v_wp"][:, 0] + raw["t2v_bp"])
    t2v = jnp.concatenate([tau_ap, tau_p], axis=-1) * raw["t2v_W"]
    x = jnp.concatenate([xe, t2v], axis=-1)                     # (B, S, E+T)

    mask = (jnp.arange(S)[None, :] < X_lengths[:, None]).astype(jnp.float32)[..., None]
    h_in = x
    for lyr in raw["lstm"]:
        wih, whh = lyr["w_ih"], lyr["w_hh"]
        b = lyr["b_ih"] + lyr["b_hh"]
        h = jnp.zeros((B, H), jnp.float32)
        c = jnp.zeros((B, H), jnp.float32)
        outs = []
        for t in range(S):
            g = h_in[:, t] @ wih.T + h @ whh.T + b
            i = jax.nn.sigmoid(g[:, :H])
            f = jax.nn.sigmoid(g[:, H:2 * H])
            u = jnp.tanh(g[:, 2 * H:3 * H])
            o = jax.nn.sigmoid(g[:, 3 * H:])
            c = f * c + i * u
            h = o * jnp.tanh(c)
            outs.append(h * mask[:, t])
        h_in = jnp.stack(outs, axis=1)                          # (B, S, H)

    lstm_out = h_in.reshape(B * S, H)
    yf = ye.reshape(B * S, -1)
    y_hat = lstm_out @ raw["we"].T + raw["be"]
    z = jax.nn.sigmoid(jnp.concatenate([lstm_out, yf], axis=-1))
    h1 = jax.nn.sigmoid(z @ raw["w1"].T + raw["b1"])
    t_hat = h1 @ raw["w2"].T + raw["b2"]
    return y_hat.reshape(B, S, -1), t_hat.reshape(B, S, 1)


# ----------------------------------------------------------------------------
if __name__ == "__main__":
    vocab = {"<PAD>": 0, "a": 1, "b": 2, "c": 3, "d": 4, "e": 5, "f": 6, "g": 7}
    vocab_size = len(vocab)            # 8
    nb_events = vocab_size - 1         # 7
    pad_idx = vocab["<PAD>"]
    nb_layers = 2
    hidden = 32
    emb_dim = 3
    time_emb_dim = 10
    batch, seq = 4, 8

    key = jax.random.PRNGKey(0)
    kX, kY, kT, kP = jax.random.split(key, 4)
    X = jax.random.randint(kX, (batch, seq), 0, vocab_size, dtype=jnp.int32)
    Y = jax.random.randint(kY, (batch, seq), 0, vocab_size, dtype=jnp.int32)
    Xt = jax.random.uniform(kT, (batch, seq), dtype=jnp.float32)
    # max length == seq (required by the module's .view(batch, seq_len, ...)
    # after pad_packed_sequence); padding is trailing.
    X_lengths = jnp.array([8, 6, 8, 5], dtype=jnp.int32)

    raw = init_raw_params(kP, vocab_size, pad_idx, emb_dim, time_emb_dim,
                          hidden, nb_layers, nb_events)
    params = prepare_params(raw, hidden, emb_dim, time_emb_dim, nb_events)

    fwd = jax.jit(functools.partial(event_lstm_forward, nb_events=nb_events))
    y_hat, t_hat = fwd(params, X, Y, Xt, X_lengths)
    jax.block_until_ready((y_hat, t_hat))

    assert y_hat.shape == (batch, seq, nb_events)
    assert t_hat.shape == (batch, seq, 1)

    # correctness check against the pure-JAX reference
    y_ref, t_ref = reference_forward(raw, X, Y, Xt, X_lengths, hidden)
    np.testing.assert_allclose(np.asarray(y_hat), np.asarray(y_ref),
                               rtol=1e-2, atol=5e-3)
    np.testing.assert_allclose(np.asarray(t_hat), np.asarray(t_ref),
                               rtol=1e-2, atol=5e-3)

    print("KERNEL_OK")
</pallas_src>

<mosaic_0001>
module attributes {stable_mosaic.version = 11 : i64} {
  func.func @feature_proj_kernel(%arg0: i32, %arg1: memref<64x1xf32, #tpu.memory_space<vmem>>, %arg2: memref<64x3xf32, #tpu.memory_space<vmem>>, %arg3: memref<1x10xf32, #tpu.memory_space<vmem>>, %arg4: memref<1x10xf32, #tpu.memory_space<vmem>>, %arg5: memref<3x512xf32, #tpu.memory_space<vmem>>, %arg6: memref<10x512xf32, #tpu.memory_space<vmem>>, %arg7: memref<1x512xf32, #tpu.memory_space<vmem>>, %arg8: memref<64x512xf32, #tpu.memory_space<vmem>>) attributes {dimension_semantics = [#tpu.dimension_semantics<parallel>], iteration_bounds = array<i64: 1>, scalar_prefetch = 0 : i64, scratch_operands = 0 : i64, tpu.core_type = #tpu.core_type<tc>, window_params = [{transform_indices = @transform_0, window_bounds = array<i64: 64, 1>}, {transform_indices = @transform_1, window_bounds = array<i64: 64, 3>}, {pipeline_mode = #tpu.pipeline_mode<synchronous>, transform_indices = @transform_2, window_bounds = array<i64: 1, 10>}, {pipeline_mode = #tpu.pipeline_mode<synchronous>, transform_indices = @transform_3, window_bounds = array<i64: 1, 10>}, {pipeline_mode = #tpu.pipeline_mode<synchronous>, transform_indices = @transform_4, window_bounds = array<i64: 3, 512>}, {pipeline_mode = #tpu.pipeline_mode<synchronous>, transform_indices = @transform_5, window_bounds = array<i64: 10, 512>}, {pipeline_mode = #tpu.pipeline_mode<synchronous>, transform_indices = @transform_6, window_bounds = array<i64: 1, 512>}, {transform_indices = @transform_7, window_bounds = array<i64: 64, 512>}]} {
    %c0 = arith.constant 0 : index
    %c0_0 = arith.constant 0 : index
    %0 = vector.load %arg1[%c0, %c0_0] : memref<64x1xf32, #tpu.memory_space<vmem>>, vector<64x1xf32>
    %c0_1 = arith.constant 0 : index
    %c0_2 = arith.constant 0 : index
    %1 = vector.load %arg3[%c0_1, %c0_2] : memref<1x10xf32, #tpu.memory_space<vmem>>, vector<1x10xf32>
    %2 = vector.broadcast %0 : vector<64x1xf32> to vector<64x10xf32>
    %3 = vector.broadcast %1 : vector<1x10xf32> to vector<64x10xf32>
    %4 = arith.mulf %2, %3 : vector<64x10xf32>
    %c0_3 = arith.constant 0 : index
    %c0_4 = arith.constant 0 : index
    %5 = vector.load %arg4[%c0_3, %c0_4] : memref<1x10xf32, #tpu.memory_space<vmem>>, vector<1x10xf32>
    %6 = vector.broadcast %5 : vector<1x10xf32> to vector<64x10xf32>
    %7 = arith.addf %4, %6 : vector<64x10xf32>
    %8 = tpu.iota {dimensions = array<i32: 1>} : vector<64x10xi32>
    %c1_i32 = arith.constant 1 : i32
    %9 = vector.broadcast %c1_i32 : i32 to vector<64x10xi32>
    %10 = arith.cmpi sge, %8, %9 : vector<64x10xi32>
    %11 = math.sin %7 : vector<64x10xf32>
    %12 = arith.select %10, %11, %7 : vector<64x10xi1>, vector<64x10xf32>
    %c0_5 = arith.constant 0 : index
    %c0_6 = arith.constant 0 : index
    %13 = vector.load %arg2[%c0_5, %c0_6] : memref<64x3xf32, #tpu.memory_space<vmem>>, vector<64x3xf32>
    %c0_7 = arith.constant 0 : index
    %c0_8 = arith.constant 0 : index
    %14 = vector.load %arg5[%c0_7, %c0_8] : memref<3x512xf32, #tpu.memory_space<vmem>>, vector<3x512xf32>
    %cst = arith.constant dense<0.000000e+00> : vector<64x512xf32>
    %15 = tpu.matmul %13, %14, %cst {dimension_numbers = #tpu.dot_dimension_numbers<[1], [0], [0], [1], [0, 0, 1, 1], [], []>} : vector<64x3xf32>, vector<3x512xf32>, vector<64x512xf32> -> vector<64x512xf32>
    %c0_9 = arith.constant 0 : index
    %c0_10 = arith.constant 0 : index
    %16 = vector.load %arg6[%c0_9, %c0_10] : memref<10x512xf32, #tpu.memory_space<vmem>>, vector<10x512xf32>
    %cst_11 = arith.constant dense<0.000000e+00> : vector<64x512xf32>
    %17 = tpu.matmul %12, %16, %cst_11 {dimension_numbers = #tpu.dot_dimension_numbers<[1], [0], [0], [1], [0, 0, 1, 1], [], []>} : vector<64x10xf32>, vector<10x512xf32>, vector<64x512xf32> -> vector<64x512xf32>
    %18 = arith.addf %15, %17 : vector<64x512xf32>
    %c0_12 = arith.constant 0 : index
    %c0_13 = arith.constant 0 : index
    %19 = vector.load %arg7[%c0_12, %c0_13] : memref<1x512xf32, #tpu.memory_space<vmem>>, vector<1x512xf32>
    %20 = vector.broadcast %19 : vector<1x512xf32> to vector<64x512xf32>
    %21 = arith.addf %18, %20 : vector<64x512xf32>
    %c0_14 = arith.constant 0 : index
    %c0_15 = arith.constant 0 : index
    %22 = vector.load %arg8[%c0_14, %c0_15] : memref<64x512xf32, #tpu.memory_space<vmem>>, vector<64x512xf32>
    tpu.vector_store %arg8[%c0_14, %c0_15], %21 {strides = array<i32>} : memref<64x512xf32, #tpu.memory_space<vmem>>, vector<64x512xf32>,
    return
  }
  func.func @transform_0(%arg0: i32) -> (i32, i32) {
    %c0_i32 = arith.constant 0 : i32
    %c0_i32_0 = arith.constant 0 : i32
    return %arg0, %c0_i32 : i32, i32
  }
  func.func @transform_1(%arg0: i32) -> (i32, i32) {
    %c0_i32 = arith.constant 0 : i32
    %c0_i32_0 = arith.constant 0 : i32
    return %arg0, %c0_i32 : i32, i32
  }
  func.func @transform_2(%arg0: i32) -> (i32, i32) {
    %c0_i32 = arith.constant 0 : i32
    %c0_i32_0 = arith.constant 0 : i32
    %c0_i32_1 = arith.constant 0 : i32
    return %c0_i32, %c0_i32_0 : i32, i32
  }
  func.func @transform_3(%arg0: i32) -> (i32, i32) {
    %c0_i32 = arith.constant 0 : i32
    %c0_i32_0 = arith.constant 0 : i32
    %c0_i32_1 = arith.constant 0 : i32
    return %c0_i32, %c0_i32_0 : i32, i32
  }
  func.func @transform_4(%arg0: i32) -> (i32, i32) {
    %c0_i32 = arith.constant 0 : i32
    %c0_i32_0 = arith.constant 0 : i32
    %c0_i32_1 = arith.constant 0 : i32
    return %c0_i32, %c0_i32_0 : i32, i32
  }
  func.func @transform_5(%arg0: i32) -> (i32, i32) {
    %c0_i32 = arith.constant 0 : i32
    %c0_i32_0 = arith.constant 0 : i32
    %c0_i32_1 = arith.constant 0 : i32
    return %c0_i32, %c0_i32_0 : i32, i32
  }
  func.func @transform_6(%arg0: i32) -> (i32, i32) {
    %c0_i32 = arith.constant 0 : i32
    %c0_i32_0 = arith.constant 0 : i32
    %c0_i32_1 = arith.constant 0 : i32
    return %c0_i32, %c0_i32_0 : i32, i32
  }
  func.func @transform_7(%arg0: i32) -> (i32, i32) {
    %c0_i32 = arith.constant 0 : i32
    %c0_i32_0 = arith.constant 0 : i32
    return %arg0, %c0_i32 : i32, i32
  }
}

module attributes {stable_mosaic.version = 11 : i64} {
  func.func @head_kernel(%arg0: i32, %arg1: memref<64x128xf32, #tpu.memory_space<vmem>>, %arg2: memref<64x3xf32, #tpu.memory_space<vmem>>, %arg3: memref<128x128xf32, #tpu.memory_space<vmem>>, %arg4: memref<3x128xf32, #tpu.memory_space<vmem>>, %arg5: memref<1x128xf32, #tpu.memory_space<vmem>>, %arg6: memref<128x128xf32, #tpu.memory_space<vmem>>, %arg7: memref<128x128xf32, #tpu.memory_space<vmem>>, %arg8: memref<1x128xf32, #tpu.memory_space<vmem>>, %arg9: memref<64x128xf32, #tpu.memory_space<vmem>>) attributes {dimension_semantics = [#tpu.dimension_semantics<parallel>], iteration_bounds = array<i64: 1>, scalar_prefetch = 0 : i64, scratch_operands = 0 : i64, tpu.core_type = #tpu.core_type<tc>, window_params = [{transform_indices = @transform_0, window_bounds = array<i64: 64, 128>}, {transform_indices = @transform_1, window_bounds = array<i64: 64, 3>}, {pipeline_mode = #tpu.pipeline_mode<synchronous>, transform_indices = @transform_2, window_bounds = array<i64: 128, 128>}, {pipeline_mode = #tpu.pipeline_mode<synchronous>, transform_indices = @transform_3, window_bounds = array<i64: 3, 128>}, {pipeline_mode = #tpu.pipeline_mode<synchronous>, transform_indices = @transform_4, window_bounds = array<i64: 1, 128>}, {pipeline_mode = #tpu.pipeline_mode<synchronous>, transform_indices = @transform_5, window_bounds = array<i64: 128, 128>}, {pipeline_mode = #tpu.pipeline_mode<synchronous>, transform_indices = @transform_6, window_bounds = array<i64: 128, 128>}, {pipeline_mode = #tpu.pipeline_mode<synchronous>, transform_indices = @transform_7, window_bounds = array<i64: 1, 128>}, {transform_indices = @transform_8, window_bounds = array<i64: 64, 128>}]} {
    %c0 = arith.constant 0 : index
    %c0_0 = arith.constant 0 : index
    %0 = vector.load %arg1[%c0, %c0_0] : memref<64x128xf32, #tpu.memory_space<vmem>>, vector<64x128xf32>
    %1 = arith.negf %0 : vector<64x128xf32>
    %2 = math.exp %1 : vector<64x128xf32>
    %cst = arith.constant 1.000000e+00 : f32
    %3 = vector.broadcast %cst : f32 to vector<64x128xf32>
    %4 = arith.addf %3, %2 : vector<64x128xf32>
    %5 = arith.divf %3, %4 : vector<64x128xf32>
    %c0_1 = arith.constant 0 : index
    %c0_2 = arith.constant 0 : index
    %6 = vector.load %arg2[%c0_1, %c0_2] : memref<64x3xf32, #tpu.memory_space<vmem>>, vector<64x3xf32>
    %7 = arith.negf %6 : vector<64x3xf32>
    %8 = math.exp %7 : vector<64x3xf32>
    %cst_3 = arith.constant 1.000000e+00 : f32
    %9 = vector.broadcast %cst_3 : f32 to vector<64x3xf32>
    %10 = arith.addf %9, %8 : vector<64x3xf32>
    %11 = arith.divf %9, %10 : vector<64x3xf32>
    %c0_4 = arith.constant 0 : index
    %c0_5 = arith.constant 0 : index
    %12 = vector.load %arg3[%c0_4, %c0_5] : memref<128x128xf32, #tpu.memory_space<vmem>>, vector<128x128xf32>
    %cst_6 = arith.constant dense<0.000000e+00> : vector<64x128xf32>
    %13 = tpu.matmul %5, %12, %cst_6 {dimension_numbers = #tpu.dot_dimension_numbers<[1], [0], [0], [1], [0, 0, 1, 1], [], []>} : vector<64x128xf32>, vector<128x128xf32>, vector<64x128xf32> -> vector<64x128xf32>
    %c0_7 = arith.constant 0 : index
    %c0_8 = arith.constant 0 : index
    %14 = vector.load %arg4[%c0_7, %c0_8] : memref<3x128xf32, #tpu.memory_space<vmem>>, vector<3x128xf32>
    %cst_9 = arith.constant dense<0.000000e+00> : vector<64x128xf32>
    %15 = tpu.matmul %11, %14, %cst_9 {dimension_numbers = #tpu.dot_dimension_numbers<[1], [0], [0], [1], [0, 0, 1, 1], [], []>} : vector<64x3xf32>, vector<3x128xf32>, vector<64x128xf32> -> vector<64x128xf32>
    %16 = arith.addf %13, %15 : vector<64x128xf32>
    %c0_10 = arith.constant 0 : index
    %c0_11 = arith.constant 0 : index
    %17 = vector.load %arg5[%c0_10, %c0_11] : memref<1x128xf32, #tpu.memory_space<vmem>>, vector<1x128xf32>
    %18 = vector.broadcast %17 : vector<1x128xf32> to vector<64x128xf32>
    %19 = arith.addf %16, %18 : vector<64x128xf32>
    %20 = arith.negf %19 : vector<64x128xf32>
    %21 = math.exp %20 : vector<64x128xf32>
    %cst_12 = arith.constant 1.000000e+00 : f32
    %22 = vector.broadcast %cst_12 : f32 to vector<64x128xf32>
    %23 = arith.addf %22, %21 : vector<64x128xf32>
    %24 = arith.divf %22, %23 : vector<64x128xf32>
    %c0_13 = arith.constant 0 : index
    %c0_14 = arith.constant 0 : index
    %25 = vector.load %arg6[%c0_13, %c0_14] : memref<128x128xf32, #tpu.memory_space<vmem>>, vector<128x128xf32>
    %cst_15 = arith.constant dense<0.000000e+00> : vector<64x128xf32>
    %26 = tpu.matmul %0, %25, %cst_15 {dimension_numbers = #tpu.dot_dimension_numbers<[1], [0], [0], [1], [0, 0, 1, 1], [], []>} : vector<64x128xf32>, vector<128x128xf32>, vector<64x128xf32> -> vector<64x128xf32>
    %c0_16 = arith.constant 0 : index
    %c0_17 = arith.constant 0 : index
    %27 = vector.load %arg7[%c0_16, %c0_17] : memref<128x128xf32, #tpu.memory_space<vmem>>, vector<128x128xf32>
    %cst_18 = arith.constant dense<0.000000e+00> : vector<64x128xf32>
    %28 = tpu.matmul %24, %27, %cst_18 {dimension_numbers = #tpu.dot_dimension_numbers<[1], [0], [0], [1], [0, 0, 1, 1], [], []>} : vector<64x128xf32>, vector<128x128xf32>, vector<64x128xf32> -> vector<64x128xf32>
    %29 = arith.addf %26, %28 : vector<64x128xf32>
    %c0_19 = arith.constant 0 : index
    %c0_20 = arith.constant 0 : index
    %30 = vector.load %arg8[%c0_19, %c0_20] : memref<1x128xf32, #tpu.memory_space<vmem>>, vector<1x128xf32>
    %31 = vector.broadcast %30 : vector<1x128xf32> to vector<64x128xf32>
    %32 = arith.addf %29, %31 : vector<64x128xf32>
    %c0_21 = arith.constant 0 : index
    %c0_22 = arith.constant 0 : index
    %33 = vector.load %arg9[%c0_21, %c0_22] : memref<64x128xf32, #tpu.memory_space<vmem>>, vector<64x128xf32>
    tpu.vector_store %arg9[%c0_21, %c0_22], %32 {strides = array<i32>} : memref<64x128xf32, #tpu.memory_space<vmem>>, vector<64x128xf32>,
    return
  }
  func.func @transform_0(%arg0: i32) -> (i32, i32) {
    %c0_i32 = arith.constant 0 : i32
    %c0_i32_0 = arith.constant 0 : i32
    return %arg0, %c0_i32 : i32, i32
  }
  func.func @transform_1(%arg0: i32) -> (i32, i32) {
    %c0_i32 = arith.constant 0 : i32
    %c0_i32_0 = arith.constant 0 : i32
    return %arg0, %c0_i32 : i32, i32
  }
  func.func @transform_2(%arg0: i32) -> (i32, i32) {
    %c0_i32 = arith.constant 0 : i32
    %c0_i32_0 = arith.constant 0 : i32
    %c0_i32_1 = arith.constant 0 : i32
    return %c0_i32, %c0_i32_0 : i32, i32
  }
  func.func @transform_3(%arg0: i32) -> (i32, i32) {
    %c0_i32 = arith.constant 0 : i32
    %c0_i32_0 = arith.constant 0 : i32
    %c0_i32_1 = arith.constant 0 : i32
    return %c0_i32, %c0_i32_0 : i32, i32
  }
  func.func @transform_4(%arg0: i32) -> (i32, i32) {
    %c0_i32 = arith.constant 0 : i32
    %c0_i32_0 = arith.constant 0 : i32
    %c0_i32_1 = arith.constant 0 : i32
    return %c0_i32, %c0_i32_0 : i32, i32
  }
  func.func @transform_5(%arg0: i32) -> (i32, i32) {
    %c0_i32 = arith.constant 0 : i32
    %c0_i32_0 = arith.constant 0 : i32
    %c0_i32_1 = arith.constant 0 : i32
    return %c0_i32, %c0_i32_0 : i32, i32
  }
  func.func @transform_6(%arg0: i32) -> (i32, i32) {
    %c0_i32 = arith.constant 0 : i32
    %c0_i32_0 = arith.constant 0 : i32
    %c0_i32_1 = arith.constant 0 : i32
    return %c0_i32, %c0_i32_0 : i32, i32
  }
  func.func @transform_7(%arg0: i32) -> (i32, i32) {
    %c0_i32 = arith.constant 0 : i32
    %c0_i32_0 = arith.constant 0 : i32
    %c0_i32_1 = arith.constant 0 : i32
    return %c0_i32, %c0_i32_0 : i32, i32
  }
  func.func @transform_8(%arg0: i32) -> (i32, i32) {
    %c0_i32 = arith.constant 0 : i32
    %c0_i32_0 = arith.constant 0 : i32
    return %arg0, %c0_i32 : i32, i32
  }
}

module attributes {stable_mosaic.version = 11 : i64} {
  func.func @fused_lstm_kernel(%arg0: i32, %arg1: memref<8x8x512xf32, #tpu.memory_space<vmem>>, %arg2: memref<8x8x1xf32, #tpu.memory_space<vmem>>, %arg3: memref<2x128x512xf32, #tpu.memory_space<vmem>>, %arg4: memref<1x128x512xf32, #tpu.memory_space<vmem>>, %arg5: memref<1x1x512xf32, #tpu.memory_space<vmem>>, %arg6: memref<8x8x128xf32, #tpu.memory_space<vmem>>, %arg7: memref<64x128xf32, #tpu.memory_space<vmem>>, %arg8: memref<64x512xf32, #tpu.memory_space<vmem>>) attributes {dimension_semantics = [#tpu.dimension_semantics<parallel>], iteration_bounds = array<i64: 1>, scalar_prefetch = 0 : i64, scratch_operands = 2 : i64, tpu.core_type = #tpu.core_type<tc>, window_params = [{transform_indices = @transform_0, window_bounds = array<i64: 8, 8, 512>}, {transform_indices = @transform_1, window_bounds = array<i64: 8, 8, 1>}, {pipeline_mode = #tpu.pipeline_mode<synchronous>, transform_indices = @transform_2, window_bounds = array<i64: 2, 128, 512>}, {pipeline_mode = #tpu.pipeline_mode<synchronous>, transform_indices = @transform_3, window_bounds = array<i64: 1, 128, 512>}, {pipeline_mode = #tpu.pipeline_mode<synchronous>, transform_indices = @transform_4, window_bounds = array<i64: 1, 1, 512>}, {transform_indices = @transform_5, window_bounds = array<i64: 8, 8, 128>}]} {
    %c0 = arith.constant 0 : index
    %c0_0 = arith.constant 0 : index
    %c0_1 = arith.constant 0 : index
    %0 = vector.load %arg3[%c0, %c0_0, %c0_1] : memref<2x128x512xf32, #tpu.memory_space<vmem>>, vector<1x128x512xf32>
    %1 = vector.shape_cast %0 : vector<1x128x512xf32> to vector<128x512xf32>
    %cst = arith.constant 0.000000e+00 : f32
    %2 = vector.broadcast %cst : f32 to vector<8x128xf32>
    %c0_i32 = arith.constant 0 : i32
    %3 = arith.index_cast %c0_i32 : i32 to index
    %c0_2 = arith.constant 0 : index
    %c0_3 = arith.constant 0 : index
    %4 = vector.load %arg1[%3, %c0_2, %c0_3] : memref<8x8x512xf32, #tpu.memory_space<vmem>>, vector<1x8x512xf32>
    %5 = vector.shape_cast %4 : vector<1x8x512xf32> to vector<8x512xf32>
    %cst_4 = arith.constant dense<0.000000e+00> : vector<8x512xf32>
    %6 = tpu.matmul %2, %1, %cst_4 {dimension_numbers = #tpu.dot_dimension_numbers<[1], [0], [0], [1], [0, 0, 1, 1], [], []>} : vector<8x128xf32>, vector<128x512xf32>, vector<8x512xf32> -> vector<8x512xf32>
    %7 = arith.addf %5, %6 : vector<8x512xf32>
    %8 = vector.extract_strided_slice %7 {offsets = [0, 0], sizes = [8, 128], strides = [1, 1]} : vector<8x512xf32> to vector<8x128xf32>
    %9 = arith.negf %8 : vector<8x128xf32>
    %10 = math.exp %9 : vector<8x128xf32>
    %cst_5 = arith.constant 1.000000e+00 : f32
    %11 = vector.broadcast %cst_5 : f32 to vector<8x128xf32>
    %12 = arith.addf %11, %10 : vector<8x128xf32>
    %13 = arith.divf %11, %12 : vector<8x128xf32>
    %14 = vector.extract_strided_slice %7 {offsets = [0, 128], sizes = [8, 128], strides = [1, 1]} : vector<8x512xf32> to vector<8x128xf32>
    %15 = arith.negf %14 : vector<8x128xf32>
    %16 = math.exp %15 : vector<8x128xf32>
    %cst_6 = arith.constant 1.000000e+00 : f32
    %17 = vector.broadcast %cst_6 : f32 to vector<8x128xf32>
    %18 = arith.addf %17, %16 : vector<8x128xf32>
    %19 = arith.divf %17, %18 : vector<8x128xf32>
    %20 = vector.extract_strided_slice %7 {offsets = [0, 256], sizes = [8, 128], strides = [1, 1]} : vector<8x512xf32> to vector<8x128xf32>
    %21 = math.tanh %20 : vector<8x128xf32>
    %22 = vector.extract_strided_slice %7 {offsets = [0, 384], sizes = [8, 128], strides = [1, 1]} : vector<8x512xf32> to vector<8x128xf32>
    %23 = arith.negf %22 : vector<8x128xf32>
    %24 = math.exp %23 : vector<8x128xf32>
    %cst_7 = arith.constant 1.000000e+00 : f32
    %25 = vector.broadcast %cst_7 : f32 to vector<8x128xf32>
    %26 = arith.addf %25, %24 : vector<8x128xf32>
    %27 = arith.divf %25, %26 : vector<8x128xf32>
    %28 = arith.mulf %19, %2 : vector<8x128xf32>
    %29 = arith.mulf %13, %21 : vector<8x128xf32>
    %30 = arith.addf %28, %29 : vector<8x128xf32>
    %31 = math.tanh %30 : vector<8x128xf32>
    %32 = arith.mulf %27, %31 : vector<8x128xf32>
    %33 = arith.index_cast %c0_i32 : i32 to index
    %c0_8 = arith.constant 0 : index
    %c0_9 = arith.constant 0 : index
    %34 = vector.load %arg2[%33, %c0_8, %c0_9] : memref<8x8x1xf32, #tpu.memory_space<vmem>>, vector<1x8x1xf32>
    %35 = vector.shape_cast %34 : vector<1x8x1xf32> to vector<8x1xf32>
    %36 = vector.broadcast %35 : vector<8x1xf32> to vector<8x128xf32>
    %37 = arith.mulf %32, %36 : vector<8x128xf32>
    %c8_i32 = arith.constant 8 : i32
    %38 = arith.muli %c0_i32, %c8_i32 : i32
    %39 = tpu.assume_multiple %38, 8 : i32
    %40 = arith.index_cast %39 : i32 to index
    %c0_10 = arith.constant 0 : index
    %41 = vector.load %arg7[%40, %c0_10] : memref<64x128xf32, #tpu.memory_space<vmem>>, vector<8x128xf32>
    tpu.vector_store %arg7[%40, %c0_10], %37 {strides = array<i32>} : memref<64x128xf32, #tpu.memory_space<vmem>>, vector<8x128xf32>,
    %c1_i32 = arith.constant 1 : i32
    %42 = arith.index_cast %c1_i32 : i32 to index
    %c0_11 = arith.constant 0 : index
    %c0_12 = arith.constant 0 : index
    %43 = vector.load %arg1[%42, %c0_11, %c0_12] : memref<8x8x512xf32, #tpu.memory_space<vmem>>, vector<1x8x512xf32>
    %44 = vector.shape_cast %43 : vector<1x8x512xf32> to vector<8x512xf32>
    %cst_13 = arith.constant dense<0.000000e+00> : vector<8x512xf32>
    %45 = tpu.matmul %32, %1, %cst_13 {dimension_numbers = #tpu.dot_dimension_numbers<[1], [0], [0], [1], [0, 0, 1, 1], [], []>} : vector<8x128xf32>, vector<128x512xf32>, vector<8x512xf32> -> vector<8x512xf32>
    %46 = arith.addf %44, %45 : vector<8x512xf32>
    %47 = vector.extract_strided_slice %46 {offsets = [0, 0], sizes = [8, 128], strides = [1, 1]} : vector<8x512xf32> to vector<8x128xf32>
    %48 = arith.negf %47 : vector<8x128xf32>
    %49 = math.exp %48 : vector<8x128xf32>
    %cst_14 = arith.constant 1.000000e+00 : f32
    %50 = vector.broadcast %cst_14 : f32 to vector<8x128xf32>
    %51 = arith.addf %50, %49 : vector<8x128xf32>
    %52 = arith.divf %50, %51 : vector<8x128xf32>
    %53 = vector.extract_strided_slice %46 {offsets = [0, 128], sizes = [8, 128], strides = [1, 1]} : vector<8x512xf32> to vector<8x128xf32>
    %54 = arith.negf %53 : vector<8x128xf32>
    %55 = math.exp %54 : vector<8x128xf32>
    %cst_15 = arith.constant 1.000000e+00 : f32
    %56 = vector.broadcast %cst_15 : f32 to vector<8x128xf32>
    %57 = arith.addf %56, %55 : vector<8x128xf32>
    %58 = arith.divf %56, %57 : vector<8x128xf32>
    %59 = vector.extract_strided_slice %46 {offsets = [0, 256], sizes = [8, 128], strides = [1, 1]} : vector<8x512xf32> to vector<8x128xf32>
    %60 = math.tanh %59 : vector<8x128xf32>
    %61 = vector.extract_strided_slice %46 {offsets = [0, 384], sizes = [8, 128], strides = [1, 1]} : vector<8x512xf32> to vector<8x128xf32>
    %62 = arith.negf %61 : vector<8x128xf32>
    %63 = math.exp %62 : vector<8x128xf32>
    %cst_16 = arith.constant 1.000000e+00 : f32
    %64 = vector.broadcast %cst_16 : f32 to vector<8x128xf32>
    %65 = arith.addf %64, %63 : vector<8x128xf32>
    %66 = arith.divf %64, %65 : vector<8x128xf32>
    %67 = arith.mulf %58, %30 : vector<8x128xf32>
    %68 = arith.mulf %52, %60 : vector<8x128xf32>
    %69 = arith.addf %67, %68 : vector<8x128xf32>
    %70 = math.tanh %69 : vector<8x128xf32>
    %71 = arith.mulf %66, %70 : vector<8x128xf32>
    %72 = arith.index_cast %c1_i32 : i32 to index
    %c0_17 = arith.constant 0 : index
    %c0_18 = arith.constant 0 : index
    %73 = vector.load %arg2[%72, %c0_17, %c0_18] : memref<8x8x1xf32, #tpu.memory_space<vmem>>, vector<1x8x1xf32>
    %74 = vector.shape_cast %73 : vector<1x8x1xf32> to vector<8x1xf32>
    %75 = vector.broadcast %74 : vector<8x1xf32> to vector<8x128xf32>
    %76 = arith.mulf %71, %75 : vector<8x128xf32>
    %c8_i32_19 = arith.constant 8 : i32
    %77 = arith.muli %c1_i32, %c8_i32_19 : i32
    %78 = tpu.assume_multiple %77, 8 : i32
    %79 = arith.index_cast %78 : i32 to index
    %c0_20 = arith.constant 0 : index
    %80 = vector.load %arg7[%79, %c0_20] : memref<64x128xf32, #tpu.memory_space<vmem>>, vector<8x128xf32>
    tpu.vector_store %arg7[%79, %c0_20], %76 {strides = array<i32>} : memref<64x128xf32, #tpu.memory_space<vmem>>, vector<8x128xf32>,
    %c2_i32 = arith.constant 2 : i32
    %81 = arith.index_cast %c2_i32 : i32 to index
    %c0_21 = arith.constant 0 : index
    %c0_22 = arith.constant 0 : index
    %82 = vector.load %arg1[%81, %c0_21, %c0_22] : memref<8x8x512xf32, #tpu.memory_space<vmem>>, vector<1x8x512xf32>
    %83 = vector.shape_cast %82 : vector<1x8x512xf32> to vector<8x512xf32>
    %cst_23 = arith.constant dense<0.000000e+00> : vector<8x512xf32>
    %84 = tpu.matmul %71, %1, %cst_23 {dimension_numbers = #tpu.dot_dimension_numbers<[1], [0], [0], [1], [0, 0, 1, 1], [], []>} : vector<8x128xf32>, vector<128x512xf32>, vector<8x512xf32> -> vector<8x512xf32>
    %85 = arith.addf %83, %84 : vector<8x512xf32>
    %86 = vector.extract_strided_slice %85 {offsets = [0, 0], sizes = [8, 128], strides = [1, 1]} : vector<8x512xf32> to vector<8x128xf32>
    %87 = arith.negf %86 : vector<8x128xf32>
    %88 = math.exp %87 : vector<8x128xf32>
    %cst_24 = arith.constant 1.000000e+00 : f32
    %89 = vector.broadcast %cst_24 : f32 to vector<8x128xf32>
    %90 = arith.addf %89, %88 : vector<8x128xf32>
    %91 = arith.divf %89, %90 : vector<8x128xf32>
    %92 = vector.extract_strided_slice %85 {offsets = [0, 128], sizes = [8, 128], strides = [1, 1]} : vector<8x512xf32> to vector<8x128xf32>
    %93 = arith.negf %92 : vector<8x128xf32>
    %94 = math.exp %93 : vector<8x128xf32>
    %cst_25 = arith.constant 1.000000e+00 : f32
    %95 = vector.broadcast %cst_25 : f32 to vector<8x128xf32>
    %96 = arith.addf %95, %94 : vector<8x128xf32>
    %97 = arith.divf %95, %96 : vector<8x128xf32>
    %98 = vector.extract_strided_slice %85 {offsets = [0, 256], sizes = [8, 128], strides = [1, 1]} : vector<8x512xf32> to vector<8x128xf32>
    %99 = math.tanh %98 : vector<8x128xf32>
    %100 = vector.extract_strided_slice %85 {offsets = [0, 384], sizes = [8, 128], strides = [1, 1]} : vector<8x512xf32> to vector<8x128xf32>
    %101 = arith.negf %100 : vector<8x128xf32>
    %102 = math.exp %101 : vector<8x128xf32>
    %cst_26 = arith.constant 1.000000e+00 : f32
    %103 = vector.broadcast %cst_26 : f32 to vector<8x128xf32>
    %104 = arith.addf %103, %102 : vector<8x128xf32>
    %105 = arith.divf %103, %104 : vector<8x128xf32>
    %106 = arith.mulf %97, %69 : vector<8x128xf32>
    %107 = arith.mulf %91, %99 : vector<8x128xf32>
    %108 = arith.addf %106, %107 : vector<8x128xf32>
    %109 = math.tanh %108 : vector<8x128xf32>
    %110 = arith.mulf %105, %109 : vector<8x128xf32>
    %111 = arith.index_cast %c2_i32 : i32 to index
    %c0_27 = arith.constant 0 : index
    %c0_28 = arith.constant 0 : index
    %112 = vector.load %arg2[%111, %c0_27, %c0_28] : memref<8x8x1xf32, #tpu.memory_space<vmem>>, vector<1x8x1xf32>
    %113 = vector.shape_cast %112 : vector<1x8x1xf32> to vector<8x1xf32>
    %114 = vector.broadcast %113 : vector<8x1xf32> to vector<8x128xf32>
    %115 = arith.mulf %110, %114 : vector<8x128xf32>
    %c8_i32_29 = arith.constant 8 : i32
    %116 = arith.muli %c2_i32, %c8_i32_29 : i32
    %117 = tpu.assume_multiple %116, 8 : i32
    %118 = arith.index_cast %117 : i32 to index
    %c0_30 = arith.constant 0 : index
    %119 = vector.load %arg7[%118, %c0_30] : memref<64x128xf32, #tpu.memory_space<vmem>>, vector<8x128xf32>
    tpu.vector_store %arg7[%118, %c0_30], %115 {strides = array<i32>} : memref<64x128xf32, #tpu.memory_space<vmem>>, vector<8x128xf32>,
    %c3_i32 = arith.constant 3 : i32
    %120 = arith.index_cast %c3_i32 : i32 to index
    %c0_31 = arith.constant 0 : index
    %c0_32 = arith.constant 0 : index
    %121 = vector.load %arg1[%120, %c0_31, %c0_32] : memref<8x8x512xf32, #tpu.memory_space<vmem>>, vector<1x8x512xf32>
    %122 = vector.shape_cast %121 : vector<1x8x512xf32> to vector<8x512xf32>
    %cst_33 = arith.constant dense<0.000000e+00> : vector<8x512xf32>
    %123 = tpu.matmul %110, %1, %cst_33 {dimension_numbers = #tpu.dot_dimension_numbers<[1], [0], [0], [1], [0, 0, 1, 1], [], []>} : vector<8x128xf32>, vector<128x512xf32>, vector<8x512xf32> -> vector<8x512xf32>
    %124 = arith.addf %122, %123 : vector<8x512xf32>
    %125 = vector.extract_strided_slice %124 {offsets = [0, 0], sizes = [8, 128], strides = [1, 1]} : vector<8x512xf32> to vector<8x128xf32>
    %126 = arith.negf %125 : vector<8x128xf32>
    %127 = math.exp %126 : vector<8x128xf32>
    %cst_34 = arith.constant 1.000000e+00 : f32
    %128 = vector.broadcast %cst_34 : f32 to vector<8x128xf32>
    %129 = arith.addf %128, %127 : vector<8x128xf32>
    %130 = arith.divf %128, %129 : vector<8x128xf32>
    %131 = vector.extract_strided_slice %124 {offsets = [0, 128], sizes = [8, 128], strides = [1, 1]} : vector<8x512xf32> to vector<8x128xf32>
    %132 = arith.negf %131 : vector<8x128xf32>
    %133 = math.exp %132 : vector<8x128xf32>
    %cst_35 = arith.constant 1.000000e+00 : f32
    %134 = vector.broadcast %cst_35 : f32 to vector<8x128xf32>
    %135 = arith.addf %134, %133 : vector<8x128xf32>
    %136 = arith.divf %134, %135 : vector<8x128xf32>
    %137 = vector.extract_strided_slice %124 {offsets = [0, 256], sizes = [8, 128], strides = [1, 1]} : vector<8x512xf32> to vector<8x128xf32>
    %138 = math.tanh %137 : vector<8x128xf32>
    %139 = vector.extract_strided_slice %124 {offsets = [0, 384], sizes = [8, 128], strides = [1, 1]} : vector<8x512xf32> to vector<8x128xf32>
    %140 = arith.negf %139 : vector<8x128xf32>
    %141 = math.exp %140 : vector<8x128xf32>
    %cst_36 = arith.constant 1.000000e+00 : f32
    %142 = vector.broadcast %cst_36 : f32 to vector<8x128xf32>
    %143 = arith.addf %142, %141 : vector<8x128xf32>
    %144 = arith.divf %142, %143 : vector<8x128xf32>
    %145 = arith.mulf %136, %108 : vector<8x128xf32>
    %146 = arith.mulf %130, %138 : vector<8x128xf32>
    %147 = arith.addf %145, %146 : vector<8x128xf32>
    %148 = math.tanh %147 : vector<8x128xf32>
    %149 = arith.mulf %144, %148 : vector<8x128xf32>
    %150 = arith.index_cast %c3_i32 : i32 to index
    %c0_37 = arith.constant 0 : index
    %c0_38 = arith.constant 0 : index
    %151 = vector.load %arg2[%150, %c0_37, %c0_38] : memref<8x8x1xf32, #tpu.memory_space<vmem>>, vector<1x8x1xf32>
    %152 = vector.shape_cast %151 : vector<1x8x1xf32> to vector<8x1xf32>
    %153 = vector.broadcast %152 : vector<8x1xf32> to vector<8x128xf32>
    %154 = arith.mulf %149, %153 : vector<8x128xf32>
    %c8_i32_39 = arith.constant 8 : i32
    %155 = arith.muli %c3_i32, %c8_i32_39 : i32
    %156 = tpu.assume_multiple %155, 8 : i32
    %157 = arith.index_cast %156 : i32 to index
    %c0_40 = arith.constant 0 : index
    %158 = vector.load %arg7[%157, %c0_40] : memref<64x128xf32, #tpu.memory_space<vmem>>, vector<8x128xf32>
    tpu.vector_store %arg7[%157, %c0_40], %154 {strides = array<i32>} : memref<64x128xf32, #tpu.memory_space<vmem>>, vector<8x128xf32>,
    %c4_i32 = arith.constant 4 : i32
    %159 = arith.index_cast %c4_i32 : i32 to index
    %c0_41 = arith.constant 0 : index
    %c0_42 = arith.constant 0 : index
    %160 = vector.load %arg1[%159, %c0_41, %c0_42] : memref<8x8x512xf32, #tpu.memory_space<vmem>>, vector<1x8x512xf32>
    %161 = vector.shape_cast %160 : vector<1x8x512xf32> to vector<8x512xf32>
    %cst_43 = arith.constant dense<0.000000e+00> : vector<8x512xf32>
    %162 = tpu.matmul %149, %1, %cst_43 {dimension_numbers = #tpu.dot_dimension_numbers<[1], [0], [0], [1], [0, 0, 1, 1], [], []>} : vector<8x128xf32>, vector<128x512xf32>, vector<8x512xf32> -> vector<8x512xf32>
    %163 = arith.addf %161, %162 : vector<8x512xf32>
    %164 = vector.extract_strided_slice %163 {offsets = [0, 0], sizes = [8, 128], strides = [1, 1]} : vector<8x512xf32> to vector<8x128xf32>
    %165 = arith.negf %164 : vector<8x128xf32>
    %166 = math.exp %165 : vector<8x128xf32>
    %cst_44 = arith.constant 1.000000e+00 : f32
    %167 = vector.broadcast %cst_44 : f32 to vector<8x128xf32>
    %168 = arith.addf %167, %166 : vector<8x128xf32>
    %169 = arith.divf %167, %168 : vector<8x128xf32>
    %170 = vector.extract_strided_slice %163 {offsets = [0, 128], sizes = [8, 128], strides = [1, 1]} : vector<8x512xf32> to vector<8x128xf32>
    %171 = arith.negf %170 : vector<8x128xf32>
    %172 = math.exp %171 : vector<8x128xf32>
    %cst_45 = arith.constant 1.000000e+00 : f32
    %173 = vector.broadcast %cst_45 : f32 to vector<8x128xf32>
    %174 = arith.addf %173, %172 : vector<8x128xf32>
    %175 = arith.divf %173, %174 : vector<8x128xf32>
    %176 = vector.extract_strided_slice %163 {offsets = [0, 256], sizes = [8, 128], strides = [1, 1]} : vector<8x512xf32> to vector<8x128xf32>
    %177 = math.tanh %176 : vector<8x128xf32>
    %178 = vector.extract_strided_slice %163 {offsets = [0, 384], sizes = [8, 128], strides = [1, 1]} : vector<8x512xf32> to vector<8x128xf32>
    %179 = arith.negf %178 : vector<8x128xf32>
    %180 = math.exp %179 : vector<8x128xf32>
    %cst_46 = arith.constant 1.000000e+00 : f32
    %181 = vector.broadcast %cst_46 : f32 to vector<8x128xf32>
    %182 = arith.addf %181, %180 : vector<8x128xf32>
    %183 = arith.divf %181, %182 : vector<8x128xf32>
    %184 = arith.mulf %175, %147 : vector<8x128xf32>
    %185 = arith.mulf %169, %177 : vector<8x128xf32>
    %186 = arith.addf %184, %185 : vector<8x128xf32>
    %187 = math.tanh %186 : vector<8x128xf32>
    %188 = arith.mulf %183, %187 : vector<8x128xf32>
    %189 = arith.index_cast %c4_i32 : i32 to index
    %c0_47 = arith.constant 0 : index
    %c0_48 = arith.constant 0 : index
    %190 = vector.load %arg2[%189, %c0_47, %c0_48] : memref<8x8x1xf32, #tpu.memory_space<vmem>>, vector<1x8x1xf32>
    %191 = vector.shape_cast %190 : vector<1x8x1xf32> to vector<8x1xf32>
    %192 = vector.broadcast %191 : vector<8x1xf32> to vector<8x128xf32>
    %193 = arith.mulf %188, %192 : vector<8x128xf32>
    %c8_i32_49 = arith.constant 8 : i32
    %194 = arith.muli %c4_i32, %c8_i32_49 : i32
    %195 = tpu.assume_multiple %194, 8 : i32
    %196 = arith.index_cast %195 : i32 to index
    %c0_50 = arith.constant 0 : index
    %197 = vector.load %arg7[%196, %c0_50] : memref<64x128xf32, #tpu.memory_space<vmem>>, vector<8x128xf32>
    tpu.vector_store %arg7[%196, %c0_50], %193 {strides = array<i32>} : memref<64x128xf32, #tpu.memory_space<vmem>>, vector<8x128xf32>,
    %c5_i32 = arith.constant 5 : i32
    %198 = arith.index_cast %c5_i32 : i32 to index
    %c0_51 = arith.constant 0 : index
    %c0_52 = arith.constant 0 : index
    %199 = vector.load %arg1[%198, %c0_51, %c0_52] : memref<8x8x512xf32, #tpu.memory_space<vmem>>, vector<1x8x512xf32>
    %200 = vector.shape_cast %199 : vector<1x8x512xf32> to vector<8x512xf32>
    %cst_53 = arith.constant dense<0.000000e+00> : vector<8x512xf32>
    %201 = tpu.matmul %188, %1, %cst_53 {dimension_numbers = #tpu.dot_dimension_numbers<[1], [0], [0], [1], [0, 0, 1, 1], [], []>} : vector<8x128xf32>, vector<128x512xf32>, vector<8x512xf32> -> vector<8x512xf32>
    %202 = arith.addf %200, %201 : vector<8x512xf32>
    %203 = vector.extract_strided_slice %202 {offsets = [0, 0], sizes = [8, 128], strides = [1, 1]} : vector<8x512xf32> to vector<8x128xf32>
    %204 = arith.negf %203 : vector<8x128xf32>
    %205 = math.exp %204 : vector<8x128xf32>
    %cst_54 = arith.constant 1.000000e+00 : f32
    %206 = vector.broadcast %cst_54 : f32 to vector<8x128xf32>
    %207 = arith.addf %206, %205 : vector<8x128xf32>
    %208 = arith.divf %206, %207 : vector<8x128xf32>
    %209 = vector.extract_strided_slice %202 {offsets = [0, 128], sizes = [8, 128], strides = [1, 1]} : vector<8x512xf32> to vector<8x128xf32>
    %210 = arith.negf %209 : vector<8x128xf32>
    %211 = math.exp %210 : vector<8x128xf32>
    %cst_55 = arith.constant 1.000000e+00 : f32
    %212 = vector.broadcast %cst_55 : f32 to vector<8x128xf32>
    %213 = arith.addf %212, %211 : vector<8x128xf32>
    %214 = arith.divf %212, %213 : vector<8x128xf32>
    %215 = vector.extract_strided_slice %202 {offsets = [0, 256], sizes = [8, 128], strides = [1, 1]} : vector<8x512xf32> to vector<8x128xf32>
    %216 = math.tanh %215 : vector<8x128xf32>
    %217 = vector.extract_strided_slice %202 {offsets = [0, 384], sizes = [8, 128], strides = [1, 1]} : vector<8x512xf32> to vector<8x128xf32>
    %218 = arith.negf %217 : vector<8x128xf32>
    %219 = math.exp %218 : vector<8x128xf32>
    %cst_56 = arith.constant 1.000000e+00 : f32
    %220 = vector.broadcast %cst_56 : f32 to vector<8x128xf32>
    %221 = arith.addf %220, %219 : vector<8x128xf32>
    %222 = arith.divf %220, %221 : vector<8x128xf32>
    %223 = arith.mulf %214, %186 : vector<8x128xf32>
    %224 = arith.mulf %208, %216 : vector<8x128xf32>
    %225 = arith.addf %223, %224 : vector<8x128xf32>
    %226 = math.tanh %225 : vector<8x128xf32>
    %227 = arith.mulf %222, %226 : vector<8x128xf32>
    %228 = arith.index_cast %c5_i32 : i32 to index
    %c0_57 = arith.constant 0 : index
    %c0_58 = arith.constant 0 : index
    %229 = vector.load %arg2[%228, %c0_57, %c0_58] : memref<8x8x1xf32, #tpu.memory_space<vmem>>, vector<1x8x1xf32>
    %230 = vector.shape_cast %229 : vector<1x8x1xf32> to vector<8x1xf32>
    %231 = vector.broadcast %230 : vector<8x1xf32> to vector<8x128xf32>
    %232 = arith.mulf %227, %231 : vector<8x128xf32>
    %c8_i32_59 = arith.constant 8 : i32
    %233 = arith.muli %c5_i32, %c8_i32_59 : i32
    %234 = tpu.assume_multiple %233, 8 : i32
    %235 = arith.index_cast %234 : i32 to index
    %c0_60 = arith.constant 0 : index
    %236 = vector.load %arg7[%235, %c0_60] : memref<64x128xf32, #tpu.memory_space<vmem>>, vector<8x128xf32>
    tpu.vector_store %arg7[%235, %c0_60], %232 {strides = array<i32>} : memref<64x128xf32, #tpu.memory_space<vmem>>, vector<8x128xf32>,
    %c6_i32 = arith.constant 6 : i32
    %237 = arith.index_cast %c6_i32 : i32 to index
    %c0_61 = arith.constant 0 : index
    %c0_62 = arith.constant 0 : index
    %238 = vector.load %arg1[%237, %c0_61, %c0_62] : memref<8x8x512xf32, #tpu.memory_space<vmem>>, vector<1x8x512xf32>
    %239 = vector.shape_cast %238 : vector<1x8x512xf32> to vector<8x512xf32>
    %cst_63 = arith.constant dense<0.000000e+00> : vector<8x512xf32>
    %240 = tpu.matmul %227, %1, %cst_63 {dimension_numbers = #tpu.dot_dimension_numbers<[1], [0], [0], [1], [0, 0, 1, 1], [], []>} : vector<8x128xf32>, vector<128x512xf32>, vector<8x512xf32> -> vector<8x512xf32>
    %241 = arith.addf %239, %240 : vector<8x512xf32>
    %242 = vector.extract_strided_slice %241 {offsets = [0, 0], sizes = [8, 128], strides = [1, 1]} : vector<8x512xf32> to vector<8x128xf32>
    %243 = arith.negf %242 : vector<8x128xf32>
    %244 = math.exp %243 : vector<8x128xf32>
    %cst_64 = arith.constant 1.000000e+00 : f32
    %245 = vector.broadcast %cst_64 : f32 to vector<8x128xf32>
    %246 = arith.addf %245, %244 : vector<8x128xf32>
    %247 = arith.divf %245, %246 : vector<8x128xf32>
    %248 = vector.extract_strided_slice %241 {offsets = [0, 128], sizes = [8, 128], strides = [1, 1]} : vector<8x512xf32> to vector<8x128xf32>
    %249 = arith.negf %248 : vector<8x128xf32>
    %250 = math.exp %249 : vector<8x128xf32>
    %cst_65 = arith.constant 1.000000e+00 : f32
    %251 = vector.broadcast %cst_65 : f32 to vector<8x128xf32>
    %252 = arith.addf %251, %250 : vector<8x128xf32>
    %253 = arith.divf %251, %252 : vector<8x128xf32>
    %254 = vector.extract_strided_slice %241 {offsets = [0, 256], sizes = [8, 128], strides = [1, 1]} : vector<8x512xf32> to vector<8x128xf32>
    %255 = math.tanh %254 : vector<8x128xf32>
    %256 = vector.extract_strided_slice %241 {offsets = [0, 384], sizes = [8, 128], strides = [1, 1]} : vector<8x512xf32> to vector<8x128xf32>
    %257 = arith.negf %256 : vector<8x128xf32>
    %258 = math.exp %257 : vector<8x128xf32>
    %cst_66 = arith.constant 1.000000e+00 : f32
    %259 = vector.broadcast %cst_66 : f32 to vector<8x128xf32>
    %260 = arith.addf %259, %258 : vector<8x128xf32>
    %261 = arith.divf %259, %260 : vector<8x128xf32>
    %262 = arith.mulf %253, %225 : vector<8x128xf32>
    %263 = arith.mulf %247, %255 : vector<8x128xf32>
    %264 = arith.addf %262, %263 : vector<8x128xf32>
    %265 = math.tanh %264 : vector<8x128xf32>
    %266 = arith.mulf %261, %265 : vector<8x128xf32>
    %267 = arith.index_cast %c6_i32 : i32 to index
    %c0_67 = arith.constant 0 : index
    %c0_68 = arith.constant 0 : index
    %268 = vector.load %arg2[%267, %c0_67, %c0_68] : memref<8x8x1xf32, #tpu.memory_space<vmem>>, vector<1x8x1xf32>
    %269 = vector.shape_cast %268 : vector<1x8x1xf32> to vector<8x1xf32>
    %270 = vector.broadcast %269 : vector<8x1xf32> to vector<8x128xf32>
    %271 = arith.mulf %266, %270 : vector<8x128xf32>
    %c8_i32_69 = arith.constant 8 : i32
    %272 = arith.muli %c6_i32, %c8_i32_69 : i32
    %273 = tpu.assume_multiple %272, 8 : i32
    %274 = arith.index_cast %273 : i32 to index
    %c0_70 = arith.constant 0 : index
    %275 = vector.load %arg7[%274, %c0_70] : memref<64x128xf32, #tpu.memory_space<vmem>>, vector<8x128xf32>
    tpu.vector_store %arg7[%274, %c0_70], %271 {strides = array<i32>} : memref<64x128xf32, #tpu.memory_space<vmem>>, vector<8x128xf32>,
    %c7_i32 = arith.constant 7 : i32
    %276 = arith.index_cast %c7_i32 : i32 to index
    %c0_71 = arith.constant 0 : index
    %c0_72 = arith.constant 0 : index
    %277 = vector.load %arg1[%276, %c0_71, %c0_72] : memref<8x8x512xf32, #tpu.memory_space<vmem>>, vector<1x8x512xf32>
    %278 = vector.shape_cast %277 : vector<1x8x512xf32> to vector<8x512xf32>
    %cst_73 = arith.constant dense<0.000000e+00> : vector<8x512xf32>
    %279 = tpu.matmul %266, %1, %cst_73 {dimension_numbers = #tpu.dot_dimension_numbers<[1], [0], [0], [1], [0, 0, 1, 1], [], []>} : vector<8x128xf32>, vector<128x512xf32>, vector<8x512xf32> -> vector<8x512xf32>
    %280 = arith.addf %278, %279 : vector<8x512xf32>
    %281 = vector.extract_strided_slice %280 {offsets = [0, 0], sizes = [8, 128], strides = [1, 1]} : vector<8x512xf32> to vector<8x128xf32>
    %282 = arith.negf %281 : vector<8x128xf32>
    %283 = math.exp %282 : vector<8x128xf32>
    %cst_74 = arith.constant 1.000000e+00 : f32
    %284 = vector.broadcast %cst_74 : f32 to vector<8x128xf32>
    %285 = arith.addf %284, %283 : vector<8x128xf32>
    %286 = arith.divf %284, %285 : vector<8x128xf32>
    %287 = vector.extract_strided_slice %280 {offsets = [0, 128], sizes = [8, 128], strides = [1, 1]} : vector<8x512xf32> to vector<8x128xf32>
    %288 = arith.negf %287 : vector<8x128xf32>
    %289 = math.exp %288 : vector<8x128xf32>
    %cst_75 = arith.constant 1.000000e+00 : f32
    %290 = vector.broadcast %cst_75 : f32 to vector<8x128xf32>
    %291 = arith.addf %290, %289 : vector<8x128xf32>
    %292 = arith.divf %290, %291 : vector<8x128xf32>
    %293 = vector.extract_strided_slice %280 {offsets = [0, 256], sizes = [8, 128], strides = [1, 1]} : vector<8x512xf32> to vector<8x128xf32>
    %294 = math.tanh %293 : vector<8x128xf32>
    %295 = vector.extract_strided_slice %280 {offsets = [0, 384], sizes = [8, 128], strides = [1, 1]} : vector<8x512xf32> to vector<8x128xf32>
    %296 = arith.negf %295 : vector<8x128xf32>
    %297 = math.exp %296 : vector<8x128xf32>
    %cst_76 = arith.constant 1.000000e+00 : f32
    %298 = vector.broadcast %cst_76 : f32 to vector<8x128xf32>
    %299 = arith.addf %298, %297 : vector<8x128xf32>
    %300 = arith.divf %298, %299 : vector<8x128xf32>
    %301 = arith.mulf %292, %264 : vector<8x128xf32>
    %302 = arith.mulf %286, %294 : vector<8x128xf32>
    %303 = arith.addf %301, %302 : vector<8x128xf32>
    %304 = math.tanh %303 : vector<8x128xf32>
    %305 = arith.mulf %300, %304 : vector<8x128xf32>
    %306 = arith.index_cast %c7_i32 : i32 to index
    %c0_77 = arith.constant 0 : index
    %c0_78 = arith.constant 0 : index
    %307 = vector.load %arg2[%306, %c0_77, %c0_78] : memref<8x8x1xf32, #tpu.memory_space<vmem>>, vector<1x8x1xf32>
    %308 = vector.shape_cast %307 : vector<1x8x1xf32> to vector<8x1xf32>
    %309 = vector.broadcast %308 : vector<8x1xf32> to vector<8x128xf32>
    %310 = arith.mulf %305, %309 : vector<8x128xf32>
    %c8_i32_79 = arith.constant 8 : i32
    %311 = arith.muli %c7_i32, %c8_i32_79 : i32
    %312 = tpu.assume_multiple %311, 8 : i32
    %313 = arith.index_cast %312 : i32 to index
    %c0_80 = arith.constant 0 : index
    %314 = vector.load %arg7[%313, %c0_80] : memref<64x128xf32, #tpu.memory_space<vmem>>, vector<8x128xf32>
    tpu.vector_store %arg7[%313, %c0_80], %310 {strides = array<i32>} : memref<64x128xf32, #tpu.memory_space<vmem>>, vector<8x128xf32>,
    %c8_i32_81 = arith.constant 8 : i32
    %c1 = arith.constant 1 : index
    %c0_82 = arith.constant 0 : index
    %c0_83 = arith.constant 0 : index
    %315 = vector.load %arg3[%c1, %c0_82, %c0_83] : memref<2x128x512xf32, #tpu.memory_space<vmem>>, vector<1x128x512xf32>
    %316 = vector.shape_cast %315 : vector<1x128x512xf32> to vector<128x512xf32>
    %c0_84 = arith.constant 0 : index
    %c0_85 = arith.constant 0 : index
    %317 = vector.load %arg7[%c0_84, %c0_85] : memref<64x128xf32, #tpu.memory_space<vmem>>, vector<64x128xf32>
    %c0_86 = arith.constant 0 : index
    %c0_87 = arith.constant 0 : index
    %c0_88 = arith.constant 0 : index
    %318 = vector.load %arg4[%c0_86, %c0_87, %c0_88] : memref<1x128x512xf32, #tpu.memory_space<vmem>>, vector<1x128x512xf32>
    %319 = vector.shape_cast %318 : vector<1x128x512xf32> to vector<128x512xf32>
    %cst_89 = arith.constant dense<0.000000e+00> : vector<64x512xf32>
    %320 = tpu.matmul %317, %319, %cst_89 {dimension_numbers = #tpu.dot_dimension_numbers<[1], [0], [0], [1], [0, 0, 1, 1], [], []>} : vector<64x128xf32>, vector<128x512xf32>, vector<64x512xf32> -> vector<64x512xf32>
    %c0_90 = arith.constant 0 : index
    %c0_91 = arith.constant 0 : index
    %c0_92 = arith.constant 0 : index
    %321 = vector.load %arg5[%c0_90, %c0_91, %c0_92] : memref<1x1x512xf32, #tpu.memory_space<vmem>>, vector<1x1x512xf32>
    %322 = vector.shape_cast %321 : vector<1x1x512xf32> to vector<1x512xf32>
    %323 = vector.broadcast %322 : vector<1x512xf32> to vector<64x512xf32>
    %324 = arith.addf %320, %323 : vector<64x512xf32>
    %c0_93 = arith.constant 0 : index
    %c0_94 = arith.constant 0 : index
    %325 = vector.load %arg8[%c0_93, %c0_94] : memref<64x512xf32, #tpu.memory_space<vmem>>, vector<64x512xf32>
    tpu.vector_store %arg8[%c0_93, %c0_94], %324 {strides = array<i32>} : memref<64x512xf32, #tpu.memory_space<vmem>>, vector<64x512xf32>,
    %cst_95 = arith.constant 0.000000e+00 : f32
    %326 = vector.broadcast %cst_95 : f32 to vector<8x128xf32>
    %c0_i32_96 = arith.constant 0 : i32
    %c8_i32_97 = arith.constant 8 : i32
    %327 = arith.muli %c0_i32_96, %c8_i32_97 : i32
    %328 = tpu.assume_multiple %327, 8 : i32
    %329 = arith.index_cast %328 : i32 to index
    %c0_98 = arith.constant 0 : index
    %330 = vector.load %arg8[%329, %c0_98] : memref<64x512xf32, #tpu.memory_space<vmem>>, vector<8x512xf32>
    %cst_99 = arith.constant dense<0.000000e+00> : vector<8x512xf32>
    %331 = tpu.matmul %326, %316, %cst_99 {dimension_numbers = #tpu.dot_dimension_numbers<[1], [0], [0], [1], [0, 0, 1, 1], [], []>} : vector<8x128xf32>, vector<128x512xf32>, vector<8x512xf32> -> vector<8x512xf32>
    %332 = arith.addf %330, %331 : vector<8x512xf32>
    %333 = vector.extract_strided_slice %332 {offsets = [0, 0], sizes = [8, 128], strides = [1, 1]} : vector<8x512xf32> to vector<8x128xf32>
    %334 = arith.negf %333 : vector<8x128xf32>
    %335 = math.exp %334 : vector<8x128xf32>
    %cst_100 = arith.constant 1.000000e+00 : f32
    %336 = vector.broadcast %cst_100 : f32 to vector<8x128xf32>
    %337 = arith.addf %336, %335 : vector<8x128xf32>
    %338 = arith.divf %336, %337 : vector<8x128xf32>
    %339 = vector.extract_strided_slice %332 {offsets = [0, 128], sizes = [8, 128], strides = [1, 1]} : vector<8x512xf32> to vector<8x128xf32>
    %340 = arith.negf %339 : vector<8x128xf32>
    %341 = math.exp %340 : vector<8x128xf32>
    %cst_101 = arith.constant 1.000000e+00 : f32
    %342 = vector.broadcast %cst_101 : f32 to vector<8x128xf32>
    %343 = arith.addf %342, %341 : vector<8x128xf32>
    %344 = arith.divf %342, %343 : vector<8x128xf32>
    %345 = vector.extract_strided_slice %332 {offsets = [0, 256], sizes = [8, 128], strides = [1, 1]} : vector<8x512xf32> to vector<8x128xf32>
    %346 = math.tanh %345 : vector<8x128xf32>
    %347 = vector.extract_strided_slice %332 {offsets = [0, 384], sizes = [8, 128], strides = [1, 1]} : vector<8x512xf32> to vector<8x128xf32>
    %348 = arith.negf %347 : vector<8x128xf32>
    %349 = math.exp %348 : vector<8x128xf32>
    %cst_102 = arith.constant 1.000000e+00 : f32
    %350 = vector.broadcast %cst_102 : f32 to vector<8x128xf32>
    %351 = arith.addf %350, %349 : vector<8x128xf32>
    %352 = arith.divf %350, %351 : vector<8x128xf32>
    %353 = arith.mulf %344, %326 : vector<8x128xf32>
    %354 = arith.mulf %338, %346 : vector<8x128xf32>
    %355 = arith.addf %353, %354 : vector<8x128xf32>
    %356 = math.tanh %355 : vector<8x128xf32>
    %357 = arith.mulf %352, %356 : vector<8x128xf32>
    %358 = arith.index_cast %c0_i32_96 : i32 to index
    %c0_103 = arith.constant 0 : index
    %c0_104 = arith.constant 0 : index
    %359 = vector.load %arg2[%358, %c0_103, %c0_104] : memref<8x8x1xf32, #tpu.memory_space<vmem>>, vector<1x8x1xf32>
    %360 = vector.shape_cast %359 : vector<1x8x1xf32> to vector<8x1xf32>
    %361 = vector.broadcast %360 : vector<8x1xf32> to vector<8x128xf32>
    %362 = arith.mulf %357, %361 : vector<8x128xf32>
    %363 = arith.index_cast %c0_i32_96 : i32 to index
    %c0_105 = arith.constant 0 : index
    %c0_106 = arith.constant 0 : index
    %364 = vector.load %arg6[%363, %c0_105, %c0_106] : memref<8x8x128xf32, #tpu.memory_space<vmem>>, vector<1x8x128xf32>
    %365 = vector.shape_cast %364 : vector<1x8x128xf32> to vector<8x128xf32>
    %366 = vector.shape_cast %362 : vector<8x128xf32> to vector<1x8x128xf32>
    tpu.vector_store %arg6[%363, %c0_105, %c0_106], %366 {strides = array<i32>} : memref<8x8x128xf32, #tpu.memory_space<vmem>>, vector<1x8x128xf32>,
    %c1_i32_107 = arith.constant 1 : i32
    %c8_i32_108 = arith.constant 8 : i32
    %367 = arith.muli %c1_i32_107, %c8_i32_108 : i32
    %368 = tpu.assume_multiple %367, 8 : i32
    %369 = arith.index_cast %368 : i32 to index
    %c0_109 = arith.constant 0 : index
    %370 = vector.load %arg8[%369, %c0_109] : memref<64x512xf32, #tpu.memory_space<vmem>>, vector<8x512xf32>
    %cst_110 = arith.constant dense<0.000000e+00> : vector<8x512xf32>
    %371 = tpu.matmul %357, %316, %cst_110 {dimension_numbers = #tpu.dot_dimension_numbers<[1], [0], [0], [1], [0, 0, 1, 1], [], []>} : vector<8x128xf32>, vector<128x512xf32>, vector<8x512xf32> -> vector<8x512xf32>
    %372 = arith.addf %370, %371 : vector<8x512xf32>
    %373 = vector.extract_strided_slice %372 {offsets = [0, 0], sizes = [8, 128], strides = [1, 1]} : vector<8x512xf32> to vector<8x128xf32>
    %374 = arith.negf %373 : vector<8x128xf32>
    %375 = math.exp %374 : vector<8x128xf32>
    %cst_111 = arith.constant 1.000000e+00 : f32
    %376 = vector.broadcast %cst_111 : f32 to vector<8x128xf32>
    %377 = arith.addf %376, %375 : vector<8x128xf32>
    %378 = arith.divf %376, %377 : vector<8x128xf32>
    %379 = vector.extract_strided_slice %372 {offsets = [0, 128], sizes = [8, 128], strides = [1, 1]} : vector<8x512xf32> to vector<8x128xf32>
    %380 = arith.negf %379 : vector<8x128xf32>
    %381 = math.exp %380 : vector<8x128xf32>
    %cst_112 = arith.constant 1.000000e+00 : f32
    %382 = vector.broadcast %cst_112 : f32 to vector<8x128xf32>
    %383 = arith.addf %382, %381 : vector<8x128xf32>
    %384 = arith.divf %382, %383 : vector<8x128xf32>
    %385 = vector.extract_strided_slice %372 {offsets = [0, 256], sizes = [8, 128], strides = [1, 1]} : vector<8x512xf32> to vector<8x128xf32>
    %386 = math.tanh %385 : vector<8x128xf32>
    %387 = vector.extract_strided_slice %372 {offsets = [0, 384], sizes = [8, 128], strides = [1, 1]} : vector<8x512xf32> to vector<8x128xf32>
    %388 = arith.negf %387 : vector<8x128xf32>
    %389 = math.exp %388 : vector<8x128xf32>
    %cst_113 = arith.constant 1.000000e+00 : f32
    %390 = vector.broadcast %cst_113 : f32 to vector<8x128xf32>
    %391 = arith.addf %390, %389 : vector<8x128xf32>
    %392 = arith.divf %390, %391 : vector<8x128xf32>
    %393 = arith.mulf %384, %355 : vector<8x128xf32>
    %394 = arith.mulf %378, %386 : vector<8x128xf32>
    %395 = arith.addf %393, %394 : vector<8x128xf32>
    %396 = math.tanh %395 : vector<8x128xf32>
    %397 = arith.mulf %392, %396 : vector<8x128xf32>
    %398 = arith.index_cast %c1_i32_107 : i32 to index
    %c0_114 = arith.constant 0 : index
    %c0_115 = arith.constant 0 : index
    %399 = vector.load %arg2[%398, %c0_114, %c0_115] : memref<8x8x1xf32, #tpu.memory_space<vmem>>, vector<1x8x1xf32>
    %400 = vector.shape_cast %399 : vector<1x8x1xf32> to vector<8x1xf32>
    %401 = vector.broadcast %400 : vector<8x1xf32> to vector<8x128xf32>
    %402 = arith.mulf %397, %401 : vector<8x128xf32>
    %403 = arith.index_cast %c1_i32_107 : i32 to index
    %c0_116 = arith.constant 0 : index
    %c0_117 = arith.constant 0 : index
    %404 = vector.load %arg6[%403, %c0_116, %c0_117] : memref<8x8x128xf32, #tpu.memory_space<vmem>>, vector<1x8x128xf32>
    %405 = vector.shape_cast %404 : vector<1x8x128xf32> to vector<8x128xf32>
    %406 = vector.shape_cast %402 : vector<8x128xf32> to vector<1x8x128xf32>
    tpu.vector_store %arg6[%403, %c0_116, %c0_117], %406 {strides = array<i32>} : memref<8x8x128xf32, #tpu.memory_space<vmem>>, vector<1x8x128xf32>,
    %c2_i32_118 = arith.constant 2 : i32
    %c8_i32_119 = arith.constant 8 : i32
    %407 = arith.muli %c2_i32_118, %c8_i32_119 : i32
    %408 = tpu.assume_multiple %407, 8 : i32
    %409 = arith.index_cast %408 : i32 to index
    %c0_120 = arith.constant 0 : index
    %410 = vector.load %arg8[%409, %c0_120] : memref<64x512xf32, #tpu.memory_space<vmem>>, vector<8x512xf32>
    %cst_121 = arith.constant dense<0.000000e+00> : vector<8x512xf32>
    %411 = tpu.matmul %397, %316, %cst_121 {dimension_numbers = #tpu.dot_dimension_numbers<[1], [0], [0], [1], [0, 0, 1, 1], [], []>} : vector<8x128xf32>, vector<128x512xf32>, vector<8x512xf32> -> vector<8x512xf32>
    %412 = arith.addf %410, %411 : vector<8x512xf32>
    %413 = vector.extract_strided_slice %412 {offsets = [0, 0], sizes = [8, 128], strides = [1, 1]} : vector<8x512xf32> to vector<8x128xf32>
    %414 = arith.negf %413 : vector<8x128xf32>
    %415 = math.exp %414 : vector<8x128xf32>
    %cst_122 = arith.constant 1.000000e+00 : f32
    %416 = vector.broadcast %cst_122 : f32 to vector<8x128xf32>
    %417 = arith.addf %416, %415 : vector<8x128xf32>
    %418 = arith.divf %416, %417 : vector<8x128xf32>
    %419 = vector.extract_strided_slice %412 {offsets = [0, 128], sizes = [8, 128], strides = [1, 1]} : vector<8x512xf32> to vector<8x128xf32>
    %420 = arith.negf %419 : vector<8x128xf32>
    %421 = math.exp %420 : vector<8x128xf32>
    %cst_123 = arith.constant 1.000000e+00 : f32
    %422 = vector.broadcast %cst_123 : f32 to vector<8x128xf32>
    %423 = arith.addf %422, %421 : vector<8x128xf32>
    %424 = arith.divf %422, %423 : vector<8x128xf32>
    %425 = vector.extract_strided_slice %412 {offsets = [0, 256], sizes = [8, 128], strides = [1, 1]} : vector<8x512xf32> to vector<8x128xf32>
    %426 = math.tanh %425 : vector<8x128xf32>
    %427 = vector.extract_strided_slice %412 {offsets = [0, 384], sizes = [8, 128], strides = [1, 1]} : vector<8x512xf32> to vector<8x128xf32>
    %428 = arith.negf %427 : vector<8x128xf32>
    %429 = math.exp %428 : vector<8x128xf32>
    %cst_124 = arith.constant 1.000000e+00 : f32
    %430 = vector.broadcast %cst_124 : f32 to vector<8x128xf32>
    %431 = arith.addf %430, %429 : vector<8x128xf32>
    %432 = arith.divf %430, %431 : vector<8x128xf32>
    %433 = arith.mulf %424, %395 : vector<8x128xf32>
    %434 = arith.mulf %418, %426 : vector<8x128xf32>
    %435 = arith.addf %433, %434 : vector<8x128xf32>
    %436 = math.tanh %435 : vector<8x128xf32>
    %437 = arith.mulf %432, %436 : vector<8x128xf32>
    %438 = arith.index_cast %c2_i32_118 : i32 to index
    %c0_125 = arith.constant 0 : index
    %c0_126 = arith.constant 0 : index
    %439 = vector.load %arg2[%438, %c0_125, %c0_126] : memref<8x8x1xf32, #tpu.memory_space<vmem>>, vector<1x8x1xf32>
    %440 = vector.shape_cast %439 : vector<1x8x1xf32> to vector<8x1xf32>
    %441 = vector.broadcast %440 : vector<8x1xf32> to vector<8x128xf32>
    %442 = arith.mulf %437, %441 : vector<8x128xf32>
    %443 = arith.index_cast %c2_i32_118 : i32 to index
    %c0_127 = arith.constant 0 : index
    %c0_128 = arith.constant 0 : index
    %444 = vector.load %arg6[%443, %c0_127, %c0_128] : memref<8x8x128xf32, #tpu.memory_space<vmem>>, vector<1x8x128xf32>
    %445 = vector.shape_cast %444 : vector<1x8x128xf32> to vector<8x128xf32>
    %446 = vector.shape_cast %442 : vector<8x128xf32> to vector<1x8x128xf32>
    tpu.vector_store %arg6[%443, %c0_127, %c0_128], %446 {strides = array<i32>} : memref<8x8x128xf32, #tpu.memory_space<vmem>>, vector<1x8x128xf32>,
    %c3_i32_129 = arith.constant 3 : i32
    %c8_i32_130 = arith.constant 8 : i32
    %447 = arith.muli %c3_i32_129, %c8_i32_130 : i32
    %448 = tpu.assume_multiple %447, 8 : i32
    %449 = arith.index_cast %448 : i32 to index
    %c0_131 = arith.constant 0 : index
    %450 = vector.load %arg8[%449, %c0_131] : memref<64x512xf32, #tpu.memory_space<vmem>>, vector<8x512xf32>
    %cst_132 = arith.constant dense<0.000000e+00> : vector<8x512xf32>
    %451 = tpu.matmul %437, %316, %cst_132 {dimension_numbers = #tpu.dot_dimension_numbers<[1], [0], [0], [1], [0, 0, 1, 1], [], []>} : vector<8x128xf32>, vector<128x512xf32>, vector<8x512xf32> -> vector<8x512xf32>
    %452 = arith.addf %450, %451 : vector<8x512xf32>
    %453 = vector.extract_strided_slice %452 {offsets = [0, 0], sizes = [8, 128], strides = [1, 1]} : vector<8x512xf32> to vector<8x128xf32>
    %454 = arith.negf %453 : vector<8x128xf32>
    %455 = math.exp %454 : vector<8x128xf32>
    %cst_133 = arith.constant 1.000000e+00 : f32
    %456 = vector.broadcast %cst_133 : f32 to vector<8x128xf32>
    %457 = arith.addf %456, %455 : vector<8x128xf32>
    %458 = arith.divf %456, %457 : vector<8x128xf32>
    %459 = vector.extract_strided_slice %452 {offsets = [0, 128], sizes = [8, 128], strides = [1, 1]} : vector<8x512xf32> to vector<8x128xf32>
    %460 = arith.negf %459 : vector<8x128xf32>
    %461 = math.exp %460 : vector<8x128xf32>
    %cst_134 = arith.constant 1.000000e+00 : f32
    %462 = vector.broadcast %cst_134 : f32 to vector<8x128xf32>
    %463 = arith.addf %462, %461 : vector<8x128xf32>
    %464 = arith.divf %462, %463 : vector<8x128xf32>
    %465 = vector.extract_strided_slice %452 {offsets = [0, 256], sizes = [8, 128], strides = [1, 1]} : vector<8x512xf32> to vector<8x128xf32>
    %466 = math.tanh %465 : vector<8x128xf32>
    %467 = vector.extract_strided_slice %452 {offsets = [0, 384], sizes = [8, 128], strides = [1, 1]} : vector<8x512xf32> to vector<8x128xf32>
    %468 = arith.negf %467 : vector<8x128xf32>
    %469 = math.exp %468 : vector<8x128xf32>
    %cst_135 = arith.constant 1.000000e+00 : f32
    %470 = vector.broadcast %cst_135 : f32 to vector<8x128xf32>
    %471 = arith.addf %470, %469 : vector<8x128xf32>
    %472 = arith.divf %470, %471 : vector<8x128xf32>
    %473 = arith.mulf %464, %435 : vector<8x128xf32>
    %474 = arith.mulf %458, %466 : vector<8x128xf32>
    %475 = arith.addf %473, %474 : vector<8x128xf32>
    %476 = math.tanh %475 : vector<8x128xf32>
    %477 = arith.mulf %472, %476 : vector<8x128xf32>
    %478 = arith.index_cast %c3_i32_129 : i32 to index
    %c0_136 = arith.constant 0 : index
    %c0_137 = arith.constant 0 : index
    %479 = vector.load %arg2[%478, %c0_136, %c0_137] : memref<8x8x1xf32, #tpu.memory_space<vmem>>, vector<1x8x1xf32>
    %480 = vector.shape_cast %479 : vector<1x8x1xf32> to vector<8x1xf32>
    %481 = vector.broadcast %480 : vector<8x1xf32> to vector<8x128xf32>
    %482 = arith.mulf %477, %481 : vector<8x128xf32>
    %483 = arith.index_cast %c3_i32_129 : i32 to index
    %c0_138 = arith.constant 0 : index
    %c0_139 = arith.constant 0 : index
    %484 = vector.load %arg6[%483, %c0_138, %c0_139] : memref<8x8x128xf32, #tpu.memory_space<vmem>>, vector<1x8x128xf32>
    %485 = vector.shape_cast %484 : vector<1x8x128xf32> to vector<8x128xf32>
    %486 = vector.shape_cast %482 : vector<8x128xf32> to vector<1x8x128xf32>
    tpu.vector_store %arg6[%483, %c0_138, %c0_139], %486 {strides = array<i32>} : memref<8x8x128xf32, #tpu.memory_space<vmem>>, vector<1x8x128xf32>,
    %c4_i32_140 = arith.constant 4 : i32
    %c8_i32_141 = arith.constant 8 : i32
    %487 = arith.muli %c4_i32_140, %c8_i32_141 : i32
    %488 = tpu.assume_multiple %487, 8 : i32
    %489 = arith.index_cast %488 : i32 to index
    %c0_142 = arith.constant 0 : index
    %490 = vector.load %arg8[%489, %c0_142] : memref<64x512xf32, #tpu.memory_space<vmem>>, vector<8x512xf32>
    %cst_143 = arith.constant dense<0.000000e+00> : vector<8x512xf32>
    %491 = tpu.matmul %477, %316, %cst_143 {dimension_numbers = #tpu.dot_dimension_numbers<[1], [0], [0], [1], [0, 0, 1, 1], [], []>} : vector<8x128xf32>, vector<128x512xf32>, vector<8x512xf32> -> vector<8x512xf32>
    %492 = arith.addf %490, %491 : vector<8x512xf32>
    %493 = vector.extract_strided_slice %492 {offsets = [0, 0], sizes = [8, 128], strides = [1, 1]} : vector<8x512xf32> to vector<8x128xf32>
    %494 = arith.negf %493 : vector<8x128xf32>
    %495 = math.exp %494 : vector<8x128xf32>
    %cst_144 = arith.constant 1.000000e+00 : f32
    %496 = vector.broadcast %cst_144 : f32 to vector<8x128xf32>
    %497 = arith.addf %496, %495 : vector<8x128xf32>
    %498 = arith.divf %496, %497 : vector<8x128xf32>
    %499 = vector.extract_strided_slice %492 {offsets = [0, 128], sizes = [8, 128], strides = [1, 1]} : vector<8x512xf32> to vector<8x128xf32>
    %500 = arith.negf %499 : vector<8x128xf32>
    %501 = math.exp %500 : vector<8x128xf32>
    %cst_145 = arith.constant 1.000000e+00 : f32
    %502 = vector.broadcast %cst_145 : f32 to vector<8x128xf32>
    %503 = arith.addf %502, %501 : vector<8x128xf32>
    %504 = arith.divf %502, %503 : vector<8x128xf32>
    %505 = vector.extract_strided_slice %492 {offsets = [0, 256], sizes = [8, 128], strides = [1, 1]} : vector<8x512xf32> to vector<8x128xf32>
    %506 = math.tanh %505 : vector<8x128xf32>
    %507 = vector.extract_strided_slice %492 {offsets = [0, 384], sizes = [8, 128], strides = [1, 1]} : vector<8x512xf32> to vector<8x128xf32>
    %508 = arith.negf %507 : vector<8x128xf32>
    %509 = math.exp %508 : vector<8x128xf32>
    %cst_146 = arith.constant 1.000000e+00 : f32
    %510 = vector.broadcast %cst_146 : f32 to vector<8x128xf32>
    %511 = arith.addf %510, %509 : vector<8x128xf32>
    %512 = arith.divf %510, %511 : vector<8x128xf32>
    %513 = arith.mulf %504, %475 : vector<8x128xf32>
    %514 = arith.mulf %498, %506 : vector<8x128xf32>
    %515 = arith.addf %513, %514 : vector<8x128xf32>
    %516 = math.tanh %515 : vector<8x128xf32>
    %517 = arith.mulf %512, %516 : vector<8x128xf32>
    %518 = arith.index_cast %c4_i32_140 : i32 to index
    %c0_147 = arith.constant 0 : index
    %c0_148 = arith.constant 0 : index
    %519 = vector.load %arg2[%518, %c0_147, %c0_148] : memref<8x8x1xf32, #tpu.memory_space<vmem>>, vector<1x8x1xf32>
    %520 = vector.shape_cast %519 : vector<1x8x1xf32> to vector<8x1xf32>
    %521 = vector.broadcast %520 : vector<8x1xf32> to vector<8x128xf32>
    %522 = arith.mulf %517, %521 : vector<8x128xf32>
    %523 = arith.index_cast %c4_i32_140 : i32 to index
    %c0_149 = arith.constant 0 : index
    %c0_150 = arith.constant 0 : index
    %524 = vector.load %arg6[%523, %c0_149, %c0_150] : memref<8x8x128xf32, #tpu.memory_space<vmem>>, vector<1x8x128xf32>
    %525 = vector.shape_cast %524 : vector<1x8x128xf32> to vector<8x128xf32>
    %526 = vector.shape_cast %522 : vector<8x128xf32> to vector<1x8x128xf32>
    tpu.vector_store %arg6[%523, %c0_149, %c0_150], %526 {strides = array<i32>} : memref<8x8x128xf32, #tpu.memory_space<vmem>>, vector<1x8x128xf32>,
    %c5_i32_151 = arith.constant 5 : i32
    %c8_i32_152 = arith.constant 8 : i32
    %527 = arith.muli %c5_i32_151, %c8_i32_152 : i32
    %528 = tpu.assume_multiple %527, 8 : i32
    %529 = arith.index_cast %528 : i32 to index
    %c0_153 = arith.constant 0 : index
    %530 = vector.load %arg8[%529, %c0_153] : memref<64x512xf32, #tpu.memory_space<vmem>>, vector<8x512xf32>
    %cst_154 = arith.constant dense<0.000000e+00> : vector<8x512xf32>
    %531 = tpu.matmul %517, %316, %cst_154 {dimension_numbers = #tpu.dot_dimension_numbers<[1], [0], [0], [1], [0, 0, 1, 1], [], []>} : vector<8x128xf32>, vector<128x512xf32>, vector<8x512xf32> -> vector<8x512xf32>
    %532 = arith.addf %530, %531 : vector<8x512xf32>
    %533 = vector.extract_strided_slice %532 {offsets = [0, 0], sizes = [8, 128], strides = [1, 1]} : vector<8x512xf32> to vector<8x128xf32>
    %534 = arith.negf %533 : vector<8x128xf32>
    %535 = math.exp %534 : vector<8x128xf32>
    %cst_155 = arith.constant 1.000000e+00 : f32
    %536 = vector.broadcast %cst_155 : f32 to vector<8x128xf32>
    %537 = arith.addf %536, %535 : vector<8x128xf32>
    %538 = arith.divf %536, %537 : vector<8x128xf32>
    %539 = vector.extract_strided_slice %532 {offsets = [0, 128], sizes = [8, 128], strides = [1, 1]} : vector<8x512xf32> to vector<8x128xf32>
    %540 = arith.negf %539 : vector<8x128xf32>
    %541 = math.exp %540 : vector<8x128xf32>
    %cst_156 = arith.constant 1.000000e+00 : f32
    %542 = vector.broadcast %cst_156 : f32 to vector<8x128xf32>
    %543 = arith.addf %542, %541 : vector<8x128xf32>
    %544 = arith.divf %542, %543 : vector<8x128xf32>
    %545 = vector.extract_strided_slice %532 {offsets = [0, 256], sizes = [8, 128], strides = [1, 1]} : vector<8x512xf32> to vector<8x128xf32>
    %546 = math.tanh %545 : vector<8x128xf32>
    %547 = vector.extract_strided_slice %532 {offsets = [0, 384], sizes = [8, 128], strides = [1, 1]} : vector<8x512xf32> to vector<8x128xf32>
    %548 = arith.negf %547 : vector<8x128xf32>
    %549 = math.exp %548 : vector<8x128xf32>
    %cst_157 = arith.constant 1.000000e+00 : f32
    %550 = vector.broadcast %cst_157 : f32 to vector<8x128xf32>
    %551 = arith.addf %550, %549 : vector<8x128xf32>
    %552 = arith.divf %550, %551 : vector<8x128xf32>
    %553 = arith.mulf %544, %515 : vector<8x128xf32>
    %554 = arith.mulf %538, %546 : vector<8x128xf32>
    %555 = arith.addf %553, %554 : vector<8x128xf32>
    %556 = math.tanh %555 : vector<8x128xf32>
    %557 = arith.mulf %552, %556 : vector<8x128xf32>
    %558 = arith.index_cast %c5_i32_151 : i32 to index
    %c0_158 = arith.constant 0 : index
    %c0_159 = arith.constant 0 : index
    %559 = vector.load %arg2[%558, %c0_158, %c0_159] : memref<8x8x1xf32, #tpu.memory_space<vmem>>, vector<1x8x1xf32>
    %560 = vector.shape_cast %559 : vector<1x8x1xf32> to vector<8x1xf32>
    %561 = vector.broadcast %560 : vector<8x1xf32> to vector<8x128xf32>
    %562 = arith.mulf %557, %561 : vector<8x128xf32>
    %563 = arith.index_cast %c5_i32_151 : i32 to index
    %c0_160 = arith.constant 0 : index
    %c0_161 = arith.constant 0 : index
    %564 = vector.load %arg6[%563, %c0_160, %c0_161] : memref<8x8x128xf32, #tpu.memory_space<vmem>>, vector<1x8x128xf32>
    %565 = vector.shape_cast %564 : vector<1x8x128xf32> to vector<8x128xf32>
    %566 = vector.shape_cast %562 : vector<8x128xf32> to vector<1x8x128xf32>
    tpu.vector_store %arg6[%563, %c0_160, %c0_161], %566 {strides = array<i32>} : memref<8x8x128xf32, #tpu.memory_space<vmem>>, vector<1x8x128xf32>,
    %c6_i32_162 = arith.constant 6 : i32
    %c8_i32_163 = arith.constant 8 : i32
    %567 = arith.muli %c6_i32_162, %c8_i32_163 : i32
    %568 = tpu.assume_multiple %567, 8 : i32
    %569 = arith.index_cast %568 : i32 to index
    %c0_164 = arith.constant 0 : index
    %570 = vector.load %arg8[%569, %c0_164] : memref<64x512xf32, #tpu.memory_space<vmem>>, vector<8x512xf32>
    %cst_165 = arith.constant dense<0.000000e+00> : vector<8x512xf32>
    %571 = tpu.matmul %557, %316, %cst_165 {dimension_numbers = #tpu.dot_dimension_numbers<[1], [0], [0], [1], [0, 0, 1, 1], [], []>} : vector<8x128xf32>, vector<128x512xf32>, vector<8x512xf32> -> vector<8x512xf32>
    %572 = arith.addf %570, %571 : vector<8x512xf32>
    %573 = vector.extract_strided_slice %572 {offsets = [0, 0], sizes = [8, 128], strides = [1, 1]} : vector<8x512xf32> to vector<8x128xf32>
    %574 = arith.negf %573 : vector<8x128xf32>
    %575 = math.exp %574 : vector<8x128xf32>
    %cst_166 = arith.constant 1.000000e+00 : f32
    %576 = vector.broadcast %cst_166 : f32 to vector<8x128xf32>
    %577 = arith.addf %576, %575 : vector<8x128xf32>
    %578 = arith.divf %576, %577 : vector<8x128xf32>
    %579 = vector.extract_strided_slice %572 {offsets = [0, 128], sizes = [8, 128], strides = [1, 1]} : vector<8x512xf32> to vector<8x128xf32>
    %580 = arith.negf %579 : vector<8x128xf32>
    %581 = math.exp %580 : vector<8x128xf32>
    %cst_167 = arith.constant 1.000000e+00 : f32
    %582 = vector.broadcast %cst_167 : f32 to vector<8x128xf32>
    %583 = arith.addf %582, %581 : vector<8x128xf32>
    %584 = arith.divf %582, %583 : vector<8x128xf32>
    %585 = vector.extract_strided_slice %572 {offsets = [0, 256], sizes = [8, 128], strides = [1, 1]} : vector<8x512xf32> to vector<8x128xf32>
    %586 = math.tanh %585 : vector<8x128xf32>
    %587 = vector.extract_strided_slice %572 {offsets = [0, 384], sizes = [8, 128], strides = [1, 1]} : vector<8x512xf32> to vector<8x128xf32>
    %588 = arith.negf %587 : vector<8x128xf32>
    %589 = math.exp %588 : vector<8x128xf32>
    %cst_168 = arith.constant 1.000000e+00 : f32
    %590 = vector.broadcast %cst_168 : f32 to vector<8x128xf32>
    %591 = arith.addf %590, %589 : vector<8x128xf32>
    %592 = arith.divf %590, %591 : vector<8x128xf32>
    %593 = arith.mulf %584, %555 : vector<8x128xf32>
    %594 = arith.mulf %578, %586 : vector<8x128xf32>
    %595 = arith.addf %593, %594 : vector<8x128xf32>
    %596 = math.tanh %595 : vector<8x128xf32>
    %597 = arith.mulf %592, %596 : vector<8x128xf32>
    %598 = arith.index_cast %c6_i32_162 : i32 to index
    %c0_169 = arith.constant 0 : index
    %c0_170 = arith.constant 0 : index
    %599 = vector.load %arg2[%598, %c0_169, %c0_170] : memref<8x8x1xf32, #tpu.memory_space<vmem>>, vector<1x8x1xf32>
    %600 = vector.shape_cast %599 : vector<1x8x1xf32> to vector<8x1xf32>
    %601 = vector.broadcast %600 : vector<8x1xf32> to vector<8x128xf32>
    %602 = arith.mulf %597, %601 : vector<8x128xf32>
    %603 = arith.index_cast %c6_i32_162 : i32 to index
    %c0_171 = arith.constant 0 : index
    %c0_172 = arith.constant 0 : index
    %604 = vector.load %arg6[%603, %c0_171, %c0_172] : memref<8x8x128xf32, #tpu.memory_space<vmem>>, vector<1x8x128xf32>
    %605 = vector.shape_cast %604 : vector<1x8x128xf32> to vector<8x128xf32>
    %606 = vector.shape_cast %602 : vector<8x128xf32> to vector<1x8x128xf32>
    tpu.vector_store %arg6[%603, %c0_171, %c0_172], %606 {strides = array<i32>} : memref<8x8x128xf32, #tpu.memory_space<vmem>>, vector<1x8x128xf32>,
    %c7_i32_173 = arith.constant 7 : i32
    %c8_i32_174 = arith.constant 8 : i32
    %607 = arith.muli %c7_i32_173, %c8_i32_174 : i32
    %608 = tpu.assume_multiple %607, 8 : i32
    %609 = arith.index_cast %608 : i32 to index
    %c0_175 = arith.constant 0 : index
    %610 = vector.load %arg8[%609, %c0_175] : memref<64x512xf32, #tpu.memory_space<vmem>>, vector<8x512xf32>
    %cst_176 = arith.constant dense<0.000000e+00> : vector<8x512xf32>
    %611 = tpu.matmul %597, %316, %cst_176 {dimension_numbers = #tpu.dot_dimension_numbers<[1], [0], [0], [1], [0, 0, 1, 1], [], []>} : vector<8x128xf32>, vector<128x512xf32>, vector<8x512xf32> -> vector<8x512xf32>
    %612 = arith.addf %610, %611 : vector<8x512xf32>
    %613 = vector.extract_strided_slice %612 {offsets = [0, 0], sizes = [8, 128], strides = [1, 1]} : vector<8x512xf32> to vector<8x128xf32>
    %614 = arith.negf %613 : vector<8x128xf32>
    %615 = math.exp %614 : vector<8x128xf32>
    %cst_177 = arith.constant 1.000000e+00 : f32
    %616 = vector.broadcast %cst_177 : f32 to vector<8x128xf32>
    %617 = arith.addf %616, %615 : vector<8x128xf32>
    %618 = arith.divf %616, %617 : vector<8x128xf32>
    %619 = vector.extract_strided_slice %612 {offsets = [0, 128], sizes = [8, 128], strides = [1, 1]} : vector<8x512xf32> to vector<8x128xf32>
    %620 = arith.negf %619 : vector<8x128xf32>
    %621 = math.exp %620 : vector<8x128xf32>
    %cst_178 = arith.constant 1.000000e+00 : f32
    %622 = vector.broadcast %cst_178 : f32 to vector<8x128xf32>
    %623 = arith.addf %622, %621 : vector<8x128xf32>
    %624 = arith.divf %622, %623 : vector<8x128xf32>
    %625 = vector.extract_strided_slice %612 {offsets = [0, 256], sizes = [8, 128], strides = [1, 1]} : vector<8x512xf32> to vector<8x128xf32>
    %626 = math.tanh %625 : vector<8x128xf32>
    %627 = vector.extract_strided_slice %612 {offsets = [0, 384], sizes = [8, 128], strides = [1, 1]} : vector<8x512xf32> to vector<8x128xf32>
    %628 = arith.negf %627 : vector<8x128xf32>
    %629 = math.exp %628 : vector<8x128xf32>
    %cst_179 = arith.constant 1.000000e+00 : f32
    %630 = vector.broadcast %cst_179 : f32 to vector<8x128xf32>
    %631 = arith.addf %630, %629 : vector<8x128xf32>
    %632 = arith.divf %630, %631 : vector<8x128xf32>
    %633 = arith.mulf %624, %595 : vector<8x128xf32>
    %634 = arith.mulf %618, %626 : vector<8x128xf32>
    %635 = arith.addf %633, %634 : vector<8x128xf32>
    %636 = math.tanh %635 : vector<8x128xf32>
    %637 = arith.mulf %632, %636 : vector<8x128xf32>
    %638 = arith.index_cast %c7_i32_173 : i32 to index
    %c0_180 = arith.constant 0 : index
    %c0_181 = arith.constant 0 : index
    %639 = vector.load %arg2[%638, %c0_180, %c0_181] : memref<8x8x1xf32, #tpu.memory_space<vmem>>, vector<1x8x1xf32>
    %640 = vector.shape_cast %639 : vector<1x8x1xf32> to vector<8x1xf32>
    %641 = vector.broadcast %640 : vector<8x1xf32> to vector<8x128xf32>
    %642 = arith.mulf %637, %641 : vector<8x128xf32>
    %643 = arith.index_cast %c7_i32_173 : i32 to index
    %c0_182 = arith.constant 0 : index
    %c0_183 = arith.constant 0 : index
    %644 = vector.load %arg6[%643, %c0_182, %c0_183] : memref<8x8x128xf32, #tpu.memory_space<vmem>>, vector<1x8x128xf32>
    %645 = vector.shape_cast %644 : vector<1x8x128xf32> to vector<8x128xf32>
    %646 = vector.shape_cast %642 : vector<8x128xf32> to vector<1x8x128xf32>
    tpu.vector_store %arg6[%643, %c0_182, %c0_183], %646 {strides = array<i32>} : memref<8x8x128xf32, #tpu.memory_space<vmem>>, vector<1x8x128xf32>,
    %c8_i32_184 = arith.constant 8 : i32
    return
  }
  func.func @transform_0(%arg0: i32) -> (i32, i32, i32) {
    %c0_i32 = arith.constant 0 : i32
    %c0_i32_0 = arith.constant 0 : i32
    %c0_i32_1 = arith.constant 0 : i32
    return %c0_i32, %arg0, %c0_i32_0 : i32, i32, i32
  }
  func.func @transform_1(%arg0: i32) -> (i32, i32, i32) {
    %c0_i32 = arith.constant 0 : i32
    %c0_i32_0 = arith.constant 0 : i32
    %c0_i32_1 = arith.constant 0 : i32
    return %c0_i32, %arg0, %c0_i32_0 : i32, i32, i32
  }
  func.func @transform_2(%arg0: i32) -> (i32, i32, i32) {
    %c0_i32 = arith.constant 0 : i32
    %c0_i32_0 = arith.constant 0 : i32
    %c0_i32_1 = arith.constant 0 : i32
    %c0_i32_2 = arith.constant 0 : i32
    return %c0_i32, %c0_i32_0, %c0_i32_1 : i32, i32, i32
  }
  func.func @transform_3(%arg0: i32) -> (i32, i32, i32) {
    %c0_i32 = arith.constant 0 : i32
    %c0_i32_0 = arith.constant 0 : i32
    %c0_i32_1 = arith.constant 0 : i32
    %c0_i32_2 = arith.constant 0 : i32
    return %c0_i32, %c0_i32_0, %c0_i32_1 : i32, i32, i32
  }
  func.func @transform_4(%arg0: i32) -> (i32, i32, i32) {
    %c0_i32 = arith.constant 0 : i32
    %c0_i32_0 = arith.constant 0 : i32
    %c0_i32_1 = arith.constant 0 : i32
    %c0_i32_2 = arith.constant 0 : i32
    return %c0_i32, %c0_i32_0, %c0_i32_1 : i32, i32, i32
  }
  func.func @transform_5(%arg0: i32) -> (i32, i32, i32) {
    %c0_i32 = arith.constant 0 : i32
    %c0_i32_0 = arith.constant 0 : i32
    %c0_i32_1 = arith.constant 0 : i32
    return %c0_i32, %arg0, %c0_i32_0 : i32, i32, i32
  }
}

</mosaic_0001>

<bundles_post_ra>
// kernel: event_lstm_forward.3
= control target key start
LH: loop header
LB: loop body
LE: loop exit
PB: predicated region body
PF: predicated region fallthrough
CT: control target
= control target key end

     0   :  { %v1733_v0 = vmov 0   ;;  %vm990_vm0 = vcmask 1041408   ;;  %v1734_v12 = vmov 0.0   ;;  %vm1258_vm1 = vcmask 1042432   ;;  %s2992_s0 = inlined_call_operand.vmem [shape: f32[64,1], index: 0, kind: input, shape index: {}]   ;;  %s2993_s5 = inlined_call_operand.vmem [shape: f32[10,512], index: 5, kind: input, shape index: {}]   ;;  %s2994_s4 = inlined_call_operand.vmem [shape: f32[3,512], index: 4, kind: input, shape index: {}]   ;;  %s2995_s2 = inlined_call_operand.vmem [shape: f32[1,10], index: 2, kind: input, shape index: {}]   ;;  %s2996_s3 = inlined_call_operand.vmem [shape: f32[1,10], index: 3, kind: input, shape index: {}]   ;;  %s2997_s1 = inlined_call_operand.vmem [shape: f32[64,3], index: 1, kind: input, shape index: {}]   ;;  %s2998_s6 = inlined_call_operand.vmem [shape: f32[1,512], index: 6, kind: input, shape index: {}]   ;;  %s2999_s7 = inlined_call_operand.vmem [shape: f32[64,512], index: 7, kind: output, shape index: {}]  }
   0x1   :  { %1698 = vset.pattern.permute.xlu1 %v1733_v0  ;;  %1697 = vset.pattern.permute.xlu0 %v1733_v0  ;;  %v28_v1 = vld [vmem:[%s2992_s0 + $0x10] sm:$0xff]  ;;  %v26_v2 = vld [vmem:[%s2992_s0] sm:$0xff]  ;;  %v29_v3 = vld [vmem:[%s2992_s0 + $0x18] sm:$0xff] }
   0x2   :  { %47 = vperm.xlu1 %1698, %v28_v1   ;;  %37 = vperm.xlu0 %1697, %v26_v2   ;;  %v27_v4 = vld [vmem:[%s2992_s0 + $0x8] sm:$0xff]  ;;  %v30_v6 = vld [vmem:[%s2992_s0 + $0x20] sm:$0xff]  ;;  %v33_v7 = vld [vmem:[%s2992_s0 + $0x38] sm:$0xff] }
   0x3   :  { %v31_v5 = vld [vmem:[%s2992_s0 + $0x28] sm:$0xff]  ;;  %v32_v8 = vld [vmem:[%s2992_s0 + $0x30] sm:$0xff]  ;;  %v964_v10 = vld [vmem:[%s2993_s5 + $0x38] sm:$0x3]  ;;  %1067 = vmatprep.mubr.f32.mxu0 %v1734_v12  ;;  %1180 = vmatprep.mubr.f32.mxu1 %v1734_v12 }
   0x4   :  { %v962_v9 = vld [vmem:[%s2993_s5 + $0x28] sm:$0x3]  ;;  %v961_v11 = vld [vmem:[%s2993_s5 + $0x20] sm:$0x3]  ;;  %1627 = vmatprep.subr.msk.mxu1 %vm990_vm0, %v964_v10  ;;  %v963_v13 = vld [vmem:[%s2993_s5 + $0x30] sm:$0x3] }
   0x5   :  { %1617 = vmatprep.subr.msk.mxu0 %vm990_vm0, %v962_v9  ;;  %v958_v14 = vld [vmem:[%s2993_s5 + $0x8] sm:$0xff]  ;;  %v960_v15 = vld [vmem:[%s2993_s5 + $0x18] sm:$0xff]  ;;  %1628 = vmatpush1.msk.msra.mxu1 %vm990_vm0, %v963_v13  ;;  %v957_v16 = vld [vmem:[%s2993_s5] sm:$0xff]  ;;  %v1735_v10 = vmov 2475754826  }
   0x6   :  { %52 = vperm.xlu1 %1698, %v29_v3   ;;  %42 = vperm.xlu0 %1697, %v27_v4   ;;  %v959_v17 = vld [vmem:[%s2993_s5 + $0x10] sm:$0xff]  ;;  %v1834_v18 = vld [vmem:[%s2994_s4] sm:$0x77]  ;;  %v1841_v20 = vld [vmem:[%s2994_s4 + $0x8] sm:$0x77] }
   0x7   :  { %1618 = vmatpush1.msk.msra.mxu0 %vm990_vm0, %v961_v11  ;;  %1146 = vmatprep.subr.mxu1 %v960_v15  ;;  %v1231_v19 = vcombine.high %v1834_v18, %v1834_v18  ;;  %v1232_v21 = vcombine.high %v1841_v20, %v1841_v20  ;;  %v1583_v22 = vld [vmem:[%s2995_s2] ss:$0 sm:$0xff] }
   0x8   :  { %1033 = vmatprep.subr.mxu0 %v958_v14  ;;  %1147 = vmatpush1.msra.mxu1 %v959_v17  ;;  %v1584_v23 = vld [vmem:[%s2996_s3] ss:$0 sm:$0xff] }
   0x9   :  { %1034 = vmatpush1.msra.mxu0 %v957_v16  ;;  %1647 = vmatprep.subr.msk.mxu1 %vm1258_vm1, %v1232_v21 }
   0xa   :  { %62 = vperm.xlu1 %1698, %v31_v5   ;;  %57 = vperm.xlu0 %1697, %v30_v6   ;;  %v3000_v5 = vlaneseq }
   0xb   :  { %1637 = vmatprep.subr.msk.mxu0 %vm1258_vm1, %v1231_v19  ;;  %v1736_v19 = vmov 683565275  }
   0xc   :  { %v1879_v9 = vand.u32 127, %v3000_v5 }
   0xe   :  { %72 = vperm.xlu1 %1698, %v33_v7   ;;  %67 = vperm.xlu0 %1697, %v32_v8  }
  0x7d   :  { %v48_v24 = vpop.permute.xlu1 %47  ;;  %v38_v25 = vpop.permute.xlu0 %37 }
  0x7e   :  { %v83_v26 = vmul.f32 %v1583_v22, %v48_v24  ;;  %v81_v27 = vmul.f32 %v1583_v22, %v38_v25 }
  0x80   :  { %v1853_v28 = vadd.f32 %v1584_v23, %v83_v26  ;;  %v1855_v29 = vadd.f32 %v1584_v23, %v81_v27 }
  0x81   :  { %v53_v30 = vpop.permute.xlu1 %52  ;;  %v43_v31 = vpop.permute.xlu0 %42 }
  0x82   :  { %v110_v32 = vand.u32 2139095040, %v1855_v29  ;;  %v84_v33 = vmul.f32 %v1583_v22, %v53_v30  ;;  %v82_v34 = vmul.f32 %v1583_v22, %v43_v31  ;;  %v318_v35 = vand.u32 2139095040, %v1853_v28 }
  0x83   :  { %v107_v61 = vand.u32 2147483647, %v1855_v29  ;;  %v315_v16 = vand.u32 2147483647, %v1853_v28  ;;  %v1738_v30 = vmov 2102212464  }
  0x84   :  { %v111_v36 = vshrl.u32 %v110_v32, 23  ;;  %v1859_v37 = vadd.f32 %v1584_v23, %v84_v33  ;;  %v1861_v38 = vadd.f32 %v1584_v23, %v82_v34  ;;  %v319_v44 = vshrl.u32 %v318_v35, 23 }
  0x85   :  { %v63_v39 = vpop.permute.xlu1 %62  ;;  %v58_v40 = vpop.permute.xlu0 %57  ;;  %v114_v6 = vand.u32 8388607, %v107_v61 }
  0x86   :  { %v1585_v41 = vadd.s32 4294967169, %v111_v36  ;;  %v422_v42 = vand.u32 2139095040, %v1859_v37  ;;  %v214_v43 = vand.u32 2139095040, %v1861_v38  ;;  %v86_v45 = vmul.f32 %v1583_v22, %v63_v39 }
  0x87   :  { %v85_v46 = vmul.f32 %v1583_v22, %v58_v40  ;;  %v1593_v52 = vadd.s32 4294967169, %v319_v44  ;;  %v115_v15 = vor.u32 8388608, %v114_v6  ;;  %v1739_v39 = vmov 920167782  }
  0x88   :  { %v117_v47 = vadd.s32 1, %v1585_v41  ;;  %v215_v48 = vshrl.u32 %v214_v43, 23  ;;  %v423_v49 = vshrl.u32 %v422_v42, 23  ;;  %v1865_v50 = vadd.f32 %v1584_v23, %v86_v45 }
  0x89   :  { %v1867_v51 = vadd.f32 %v1584_v23, %v85_v46  ;;  %v73_v55 = vpop.permute.xlu1 %72  ;;  %v68_v56 = vpop.permute.xlu0 %67  ;;  %v325_v62 = vadd.s32 1, %v1593_v52  ;;  %v1740_v42 = vmov 1326507024   ;;  %v155_v46 = vshll.u32 %v115_v15, 8 }
  0x8a   :  { %vm118_vm2 = vcmp.gt.s32.totalorder %v117_v47, 0  ;;  %v1589_v54 = vadd.s32 4294967169, %v215_v48  ;;  %v1597_v58 = vadd.s32 4294967169, %v423_v49  ;;  %v88_v59 = vmul.f32 %v1583_v22, %v73_v55 }
  0x8b   :  { %v119_v53 = vsel %vm118_vm2, %v117_v47, 0  ;;  %v87_v60 = vmul.f32 %v1583_v22, %v68_v56  ;;  %v630_v0 = vand.u32 2139095040, %v1865_v50  ;;  %vm326_vm3 = vcmp.gt.s32.totalorder %v325_v62, 0 }
  0x8c   :  { %v121_v57 = vand.u32 31, %v119_v53  ;;  %v221_v63 = vadd.s32 1, %v1589_v54  ;;  %v1871_v1 = vadd.f32 %v1584_v23, %v88_v59  ;;  %v429_v4 = vadd.s32 1, %v1597_v58 }
  0x8d   :  { %v1873_v2 = vadd.f32 %v1584_v23, %v87_v60  ;;  %v631_v7 = vshrl.u32 %v630_v0, 23  ;;  %v526_v8 = vand.u32 2139095040, %v1867_v51  ;;  %v1882_v13 = vsel %vm326_vm3, %v325_v62, 0 }
  0x8e   :  { %v122_v3 = vsub.s32 32, %v121_v57  ;;  %vm222_vm4 = vcmp.gt.s32.totalorder %v221_v63, 0  ;;  %vm430_vm5 = vcmp.gt.s32.totalorder %v429_v4, 0  ;;  %v120_v17 = vshrl.u32 %v119_v53, 5 }
  0x8f   :  { %v223_v14 = vsel %vm222_vm4, %v221_v63, 0  ;;  %v124_v21 = vshll.u32 %v1736_v19, %v121_v57  ;;  %v127_v22 = vshll.u32 %v1735_v10, %v121_v57  ;;  %v1737_v23 = vmov 2131351028  }
  0x90   :  { %v125_v11 = vshrl.u32 %v1735_v10, %v122_v3  ;;  %v128_v24 = vshrl.u32 %v1737_v23, %v122_v3  ;;  %v1888_v25 = vsel %vm430_vm5, %v429_v4, 0  ;;  %v1605_v26 = vadd.s32 4294967169, %v631_v7 }
  0x91   :  { %v527_v27 = vshrl.u32 %v526_v8, 23  ;;  %v131_v31 = vshrl.u32 %v1738_v30, %v122_v3  ;;  %v1891_v32 = vand.u32 31, %v223_v14  ;;  %v130_v35 = vshll.u32 %v1737_v23, %v121_v57 }
  0x92   :  { %v126_v33 = vor.u32 %v125_v11, %v124_v21  ;;  %v129_v34 = vor.u32 %v128_v24, %v127_v22  ;;  %v133_v36 = vshll.u32 %v1738_v30, %v121_v57  ;;  %v134_v40 = vshrl.u32 %v1739_v39, %v122_v3 }
  0x93   :  { %v136_v41 = vshll.u32 %v1739_v39, %v121_v57  ;;  %v137_v43 = vshrl.u32 %v1740_v42, %v122_v3  ;;  %v1899_v44 = vand.u32 31, %v1882_v13  ;;  %v132_v45 = vor.u32 %v131_v31, %v130_v35 }
  0x94   :  { %v211_v47 = vand.u32 2147483647, %v1861_v38  ;;  %v1903_v48 = vand.u32 31, %v1888_v25  ;;  %v1601_v49 = vadd.s32 4294967169, %v527_v27  ;;  %v135_v52 = vor.u32 %v134_v40, %v133_v36 }
  0x95   :  { %v138_v53 = vor.u32 %v137_v43, %v136_v41  ;;  %v1905_v54 = vshrl.u32 %v223_v14, 5  ;;  %v1907_v55 = vadd.s32 1, %v1605_v26  ;;  %v123_v56 = vshrl.u32 %v1736_v19, %v122_v3 }
  0x96   :  { %vm139_vm6 = vcmp.lt.s32.totalorder %v120_v17, 1  ;;  %v226_v57 = vsub.s32 32, %v1891_v32  ;;  %vm140_vm7 = vcmp.lt.s32.totalorder %v120_v17, 2  ;;  %vm142_vm8 = vcmp.lt.s32.totalorder %v120_v17, 4 }
  0x97   :  { %v147_v58 = vsel %vm139_vm6, %v126_v33, %v129_v34  ;;  %vm141_vm9 = vcmp.lt.s32.totalorder %v120_v17, 3  ;;  %v143_v59 = vsel %vm139_vm6, %v123_v56, %v126_v33  ;;  %v144_v60 = vsel %vm142_vm8, %v132_v45, 2102212464 }
  0x98   :  { %v148_v62 = vsel %vm142_vm8, %v135_v52, 920167782  ;;  %v145_v63 = vsel %vm141_vm9, %v129_v34, %v144_v60  ;;  %v151_v4 = vsel %vm139_vm6, %v129_v34, %v132_v45  ;;  %v152_v6 = vsel %vm142_vm8, %v138_v53, 1326507024 }
  0x99   :  { %v149_v0 = vsel %vm141_vm9, %v132_v45, %v148_v62  ;;  %v533_v7 = vadd.s32 1, %v1601_v49  ;;  %v838_v8 = vand.u32 2139095040, %v1871_v1  ;;  %v153_v3 = vsel %vm141_vm9, %v135_v52, %v152_v6 }
  0x9a   :  { %v150_v11 = vsel %vm140_vm7, %v147_v58, %v149_v0  ;;  %v734_v14 = vand.u32 2139095040, %v1873_v2  ;;  %v154_v15 = vsel %vm140_vm7, %v151_v4, %v153_v3  ;;  %vm638_vm10 = vcmp.gt.s32.totalorder %v1907_v55, 0 }
  0x9b   :  { %v1915_v21 = vmul.u32.u64.low %v155_v46, %v150_v11  ;;  %v1916_v22 = vmul.u32.u64.high %v155_v46, %v150_v11, %v1915_v21  ;;  %v146_v24 = vsel %vm140_vm7, %v143_v59, %v145_v63  ;;  %v218_v31 = vand.u32 8388607, %v211_v47 }
  0x9c   :  { %v1921_v26 = vmul.u32.u64.low %v155_v46, %v154_v15  ;;  %v1922_v27 = vmul.u32.u64.high %v155_v46, %v154_v15, %v1921_v26  ;;  %v228_v33 = vshll.u32 %v1736_v19, %v1891_v32  ;;  %v229_v34 = vshrl.u32 %v1735_v10, %v226_v57 }
  0x9d   :  { %v231_v35 = vshll.u32 %v1735_v10, %v1891_v32  ;;  %v232_v36 = vshrl.u32 %v1737_v23, %v226_v57  ;;  %vm534_vm11 = vcmp.gt.s32.totalorder %v533_v7, 0  ;;  %v234_v17 = vshll.u32 %v1737_v23, %v1891_v32 }
  0x9e   :  { %v235_v40 = vshrl.u32 %v1738_v30, %v226_v57  ;;  %v237_v41 = vshll.u32 %v1738_v30, %v1891_v32  ;;  %v165_v43 = vadd.s32 1, %v1916_v22  ;;  %v230_v45 = vor.u32 %v229_v34, %v228_v33 }
  0x9f   :  { %v233_v49 = vor.u32 %v232_v36, %v231_v35  ;;  %v238_v52 = vshrl.u32 %v1739_v39, %v226_v57  ;;  %v162_v53 = vmul.u32 %v155_v46, %v146_v24  ;;  %vm164_vm12 = vc.u32 %v1922_v27, %v1915_v21 }
  0xa0   :  { %v219_v56 = vor.u32 8388608, %v218_v31  ;;  %v236_v58 = vor.u32 %v235_v40, %v234_v17  ;;  %v166_v59 = vsel %vm164_vm12, %v165_v43, %v1916_v22  ;;  %v240_v62 = vshll.u32 %v1739_v39, %v1891_v32 }
  0xa1   :  { %v239_v60 = vor.u32 %v238_v52, %v237_v41  ;;  %v241_v63 = vshrl.u32 %v1740_v42, %v226_v57  ;;  %v167_v0 = vadd.s32 %v166_v59, %v162_v53  ;;  %v227_v4 = vshrl.u32 %v1736_v19, %v226_v57 }
  0xa2   :  { %vm243_vm13 = vcmp.lt.s32.totalorder %v1905_v54, 1  ;;  %vm246_vm14 = vcmp.lt.s32.totalorder %v1905_v54, 4  ;;  %vm244_vm15 = vcmp.lt.s32.totalorder %v1905_v54, 2  ;;  %vm245_vm0 = vcmp.lt.s32.totalorder %v1905_v54, 3 }
  0xa3   :  { %v242_v46 = vor.u32 %v241_v63, %v240_v62  ;;  %v248_v6 = vsel %vm246_vm14, %v236_v58, 2102212464  ;;  %v251_v11 = vsel %vm243_vm13, %v230_v45, %v233_v49  ;;  %v168_v3 = vadd.s32 536870912, %v167_v0 }
  0xa4   :  { %v252_v15 = vsel %vm246_vm14, %v239_v60, 920167782  ;;  %v255_v22 = vsel %vm243_vm13, %v233_v49, %v236_v58  ;;  %v247_v32 = vsel %vm243_vm13, %v227_v4, %v230_v45  ;;  %v259_v31 = vshll.u32 %v219_v56, 8 }
  0xa5   :  { %v253_v24 = vsel %vm245_vm0, %v236_v58, %v252_v15  ;;  %v256_v26 = vsel %vm246_vm14, %v242_v46, 1326507024  ;;  %v1950_v33 = vshrl.u32 %v168_v3, 30  ;;  %v249_v57 = vsel %vm245_vm0, %v233_v49, %v248_v6 }
  0xa6   :  { %v254_v34 = vsel %vm244_vm15, %v251_v11, %v253_v24  ;;  %v257_v35 = vsel %vm245_vm0, %v239_v60, %v256_v26  ;;  %v639_v36 = vsel %vm638_vm10, %v1907_v55, 0  ;;  %v535_v43 = vsel %vm534_vm11, %v533_v7, 0 }
  0xa7   :  { %v258_v17 = vsel %vm244_vm15, %v255_v22, %v257_v35  ;;  %v1959_v40 = vmul.u32.u64.low %v259_v31, %v254_v34  ;;  %v1960_v41 = vmul.u32.u64.high %v259_v31, %v254_v34, %v1959_v40  ;;  %v170_v45 = vshll.u32 %v1950_v33, 30 }
  0xa8   :  { %v1965_v49 = vmul.u32.u64.low %v259_v31, %v258_v17  ;;  %v1966_v52 = vmul.u32.u64.high %v259_v31, %v258_v17, %v1965_v49  ;;  %v1969_v53 = vshrl.u32 %v1882_v13, 5  ;;  %v330_v56 = vsub.s32 32, %v1899_v44 }
  0xa9   :  { %v1973_v55 = vshrl.u32 %v1888_v25, 5  ;;  %v250_v58 = vsel %vm244_vm15, %v247_v32, %v249_v57  ;;  %v1978_v59 = vsub.s32 32, %v1903_v48  ;;  %v1982_v7 = vshrl.u32 %v838_v8, 23 }
  0xaa   :  { %v735_v60 = vshrl.u32 %v734_v14, 23  ;;  %v1984_v62 = vsub.s32 %v167_v0, %v170_v45  ;;  %v1986_v13 = vshrl.u32 %v639_v36, 5  ;;  %v1988_v63 = vand.u32 31, %v639_v36 }
  0xab   :  { %v1990_v4 = vshrl.u32 %v535_v43, 5  ;;  %v269_v25 = vadd.s32 1, %v1960_v41  ;;  %vm109_vm2 = vcmp.lt.s32.totalorder %v1855_v29, 0  ;;  %v266_v46 = vmul.u32 %v259_v31, %v250_v58 }
  0xac   :  { %v173_v54 = vsub.s32 0, %v1984_v62  ;;  %vm268_vm3 = vc.u32 %v1966_v52, %v1959_v40  ;;  %v332_v8 = vshll.u32 %v1736_v19, %v1899_v44  ;;  %v333_v0 = vshrl.u32 %v1735_v10, %v330_v56 }
  0xad   :  { %v270_v14 = vsel %vm268_vm3, %v269_v25, %v1960_v41  ;;  %v335_v6 = vshll.u32 %v1735_v10, %v1899_v44  ;;  %v336_v11 = vshrl.u32 %v1737_v23, %v330_v56  ;;  %v338_v22 = vshll.u32 %v1737_v23, %v1899_v44 }
  0xae   :  { %v1586_v3 = vmin.u32 %v173_v54, %v1984_v62  ;;  %v271_v15 = vadd.s32 %v270_v14, %v266_v46  ;;  %v339_v32 = vshrl.u32 %v1738_v30, %v330_v56  ;;  %v341_v24 = vshll.u32 %v1738_v30, %v1899_v44 }
  0xaf   :  { %v342_v26 = vshrl.u32 %v1739_v39, %v330_v56  ;;  %v344_v31 = vshll.u32 %v1739_v39, %v1899_v44  ;;  %v345_v57 = vshrl.u32 %v1740_v42, %v330_v56  ;;  %v2014_v34 = vand.u32 31, %v535_v43 }
  0xb0   :  { %v1609_v35 = vadd.s32 4294967169, %v735_v60  ;;  %v163_v36 = vadd.s32 %v1915_v21, %v1922_v27  ;;  %v175_v17 = vclz %v1586_v3  ;;  %v193_v41 = vsub.s32 4, %v1950_v33 }
  0xb1   :  { %v272_v45 = vadd.s32 536870912, %v271_v15  ;;  %v322_v49 = vand.u32 8388607, %v315_v16  ;;  %v343_v58 = vor.u32 %v342_v26, %v341_v24  ;;  %v334_v54 = vor.u32 %v333_v0, %v332_v8 }
  0xb2   :  { %v1587_v25 = vadd.s32 4294967294, %v175_v17  ;;  %v337_v46 = vor.u32 %v336_v11, %v335_v6  ;;  %v340_v44 = vor.u32 %v339_v32, %v338_v22  ;;  %vm2023_vm4 = vcmp.le.f32.partialorder %v107_v61, 0.7853982 }
  0xb3   :  { %v2027_v60 = vshrl.u32 %v272_v45, 30  ;;  %v346_v21 = vor.u32 %v345_v57, %v344_v31  ;;  %vm347_vm5 = vcmp.lt.s32.totalorder %v1969_v53, 1  ;;  %vm350_vm6 = vcmp.lt.s32.totalorder %v1969_v53, 4 }
  0xb4   :  { %vm1588_vm7 = vcmp.lt.s32.totalorder %v1587_v25, 0  ;;  %v331_v27 = vshrl.u32 %v1736_v19, %v330_v56  ;;  %vm349_vm8 = vcmp.lt.s32.totalorder %v1969_v53, 3  ;;  %v356_v8 = vsel %vm350_vm6, %v343_v58, 920167782 }
  0xb5   :  { %v178_v14 = vsel %vm1588_vm7, 0, %v1587_v25  ;;  %v194_v61 = vsel %vm109_vm2, %v193_v41, %v1950_v33  ;;  %v274_v0 = vshll.u32 %v2027_v60, 30  ;;  %v323_v6 = vor.u32 8388608, %v322_v49 }
  0xb6   :  { %v179_v11 = vsub.s32 32, %v178_v14  ;;  %v183_v3 = vsub.s32 4294967266, %v178_v14  ;;  %vm348_vm9 = vcmp.lt.s32.totalorder %v1969_v53, 2  ;;  %v355_v56 = vsel %vm347_vm5, %v334_v54, %v337_v46 }
  0xb7   :  { %v2042_v22 = vsub.s32 %v271_v15, %v274_v0  ;;  %v357_v32 = vsel %vm349_vm8, %v340_v44, %v356_v8  ;;  %v359_v24 = vsel %vm347_vm5, %v337_v46, %v340_v44  ;;  %v360_v33 = vsel %vm350_vm6, %v346_v21, 1326507024 }
  0xb8   :  { %v180_v26 = vshll.u32 %v1984_v62, %v178_v14  ;;  %v181_v31 = vshrl.u32 %v163_v36, %v179_v11  ;;  %v184_v57 = vadd.s32 127, %v183_v3  ;;  %v352_v17 = vsel %vm350_vm6, %v340_v44, 2102212464 }
  0xb9   :  { %v277_v41 = vsub.s32 0, %v2042_v22  ;;  %v358_v15 = vsel %vm348_vm9, %v355_v56, %v357_v32  ;;  %v361_v45 = vsel %vm349_vm8, %v343_v58, %v360_v33  ;;  %v363_v49 = vshll.u32 %v323_v6, 8 }
  0xba   :  { %v182_v25 = vor.u32 %v181_v31, %v180_v26  ;;  %v185_v8 = vshll.u32 %v184_v57, 23  ;;  %v351_v21 = vsel %vm347_vm5, %v331_v27, %v334_v54  ;;  %v362_v62 = vsel %vm348_vm9, %v359_v24, %v361_v45 }
  0xbb   :  { %v1590_v36 = vmin.u32 %v277_v41, %v2042_v22  ;;  %v353_v44 = vsel %vm349_vm8, %v337_v46, %v352_v17  ;;  %v2065_v14 = vmul.u32.u64.low %v363_v49, %v362_v62  ;;  %v2066_v0 = vmul.u32.u64.high %v363_v49, %v362_v62, %v2065_v14 }
  0xbc   :  { %v186_v11 = vor.u32 4788187, %v185_v8  ;;  %v196_v58 = vsel %vm2023_vm4, 0, %v194_v61  ;;  %v2070_v6 = vmul.u32.u64.low %v363_v49, %v358_v15  ;;  %v2071_v3 = vmul.u32.u64.high %v363_v49, %v358_v15, %v2070_v6 }
  0xbd   :  { %v2075_v54 = vsub.s32 32, %v1988_v63  ;;  %v2078_v27 = vsub.s32 32, %v2014_v34  ;;  %v2081_v56 = vadd.s32 4294967169, %v1982_v7  ;;  %v279_v46 = vclz %v1590_v36 }
  0xbe   :  { %v2083_v32 = vadd.s32 1, %v1609_v35  ;;  %v187_v24 = vand.u32 2147483647, %v186_v11  ;;  %v189_v33 = vcvt.s32.f32 %v182_v25  ;;  %v354_v61 = vsel %vm348_vm9, %v351_v21, %v353_v44 }
  0xbf   :  { %v200_v26 = vadd.s32 3, %v196_v58  ;;  %vm213_vm10 = vcmp.lt.s32.totalorder %v1861_v38, 0  ;;  %v1591_v31 = vadd.s32 4294967294, %v279_v46  ;;  %vm372_vm11 = vc.u32 %v2066_v0, %v2070_v6 }
  0xc0   :  { %v190_v57 = vmul.f32 %v189_v33, %v187_v24  ;;  %v267_v7 = vadd.s32 %v1959_v40, %v1966_v52  ;;  %v297_v17 = vsub.s32 4, %v2027_v60  ;;  %v373_v35 = vadd.s32 1, %v2071_v3 }
  0xc1   :  { %vm1592_vm12 = vcmp.lt.s32.totalorder %v1591_v31, 0  ;;  %v370_v41 = vmul.u32 %v363_v49, %v354_v61  ;;  %v419_v53 = vand.u32 2147483647, %v1859_v37  ;;  %v436_v15 = vshll.u32 %v1736_v19, %v1903_v48 }
  0xc2   :  { %v191_v45 = vxor.u32 2147483648, %v190_v57  ;;  %vm2099_vm13 = vcmp.le.f32.partialorder %v211_v47, 0.7853982  ;;  %v282_v8 = vsel %vm1592_vm12, 0, %v1591_v31  ;;  %v374_v40 = vsel %vm372_vm11, %v373_v35, %v2071_v3 }
  0xc3   :  { %v437_v52 = vshrl.u32 %v1735_v10, %v1978_v59  ;;  %v283_v21 = vsub.s32 32, %v282_v8  ;;  %v287_v49 = vsub.s32 4294967266, %v282_v8  ;;  %v375_v62 = vadd.s32 %v374_v40, %v370_v41 }
  0xc4   :  { %v439_v36 = vshll.u32 %v1735_v10, %v1903_v48  ;;  %v192_v44 = vsel %vm109_vm2, %v191_v45, %v190_v57  ;;  %v284_v47 = vshll.u32 %v2042_v22, %v282_v8  ;;  %v440_v14 = vshrl.u32 %v1737_v23, %v1978_v59 }
  0xc5   :  { %v442_v11 = vshll.u32 %v1737_v23, %v1903_v48  ;;  %v195_v58 = vsel %vm2023_vm4, %v1855_v29, %v192_v44  ;;  %v285_v3 = vshrl.u32 %v267_v7, %v283_v21  ;;  %v288_v46 = vadd.s32 127, %v287_v49 }
  0xc6   :  { %v376_v24 = vadd.s32 536870912, %v375_v62  ;;  %1701 = vcosq.f32 %v195_v58  ;;  %v443_v33 = vshrl.u32 %v1738_v30, %v1978_v59  ;;  %v445_v22 = vshll.u32 %v1738_v30, %v1903_v48 }
  0xc7   :  { %v446_v61 = vshrl.u32 %v1739_v39, %v1978_v59  ;;  %1703 = vsinq.f32 %v195_v58  ;;  %v286_v31 = vor.u32 %v285_v3, %v284_v47  ;;  %v289_v57 = vshll.u32 %v288_v46, 23 }
  0xc8   :  { %vm317_vm14 = vcmp.lt.s32.totalorder %v1853_v28, 0  ;;  %v377_v43 = vshrl.u32 %v376_v24, 30  ;;  %v298_v7 = vsel %vm213_vm10, %v297_v17, %v2027_v60  ;;  %v426_v35 = vand.u32 8388607, %v419_v53 }
  0xc9   :  { %v448_v41 = vshll.u32 %v1739_v39, %v1903_v48  ;;  %v449_v45 = vshrl.u32 %v1740_v42, %v1978_v59  ;;  %v2134_v8 = vand.u32 3, %v200_v26  ;;  %v290_v40 = vor.u32 4788187, %v289_v57 }
  0xca   :  { %v378_v21 = vshll.u32 %v377_v43, 30  ;;  %v438_v49 = vor.u32 %v437_v52, %v436_v15  ;;  %v441_v44 = vor.u32 %v440_v14, %v439_v36  ;;  %v444_v47 = vor.u32 %v443_v33, %v442_v11 }
  0xcb   :  { %v447_v58 = vor.u32 %v446_v61, %v445_v22  ;;  %v450_v3 = vor.u32 %v449_v45, %v448_v41  ;;  %v291_v46 = vand.u32 2147483647, %v290_v40  ;;  %v293_v60 = vcvt.s32.f32 %v286_v31 }
  0xcc   :  { %v300_v17 = vsel %vm2099_vm13, 0, %v298_v7  ;;  %v2138_v24 = vsub.s32 %v375_v62, %v378_v21  ;;  %v401_v48 = vsub.s32 4, %v377_v43  ;;  %v427_v5 = vor.u32 8388608, %v426_v35 }
  0xcd   :  { %v435_v26 = vshrl.u32 %v1736_v19, %v1978_v59  ;;  %vm451_vm15 = vcmp.lt.s32.totalorder %v1973_v55, 1  ;;  %vm206_vm0 = vcmp.eq.s32.totalorder %v2134_v8, 2  ;;  %v294_v15 = vmul.f32 %v293_v60, %v291_v46 }
  0xce   :  { %v381_v52 = vsub.s32 0, %v2138_v24  ;;  %vm453_vm2 = vcmp.lt.s32.totalorder %v1973_v55, 3  ;;  %vm454_vm3 = vcmp.lt.s32.totalorder %v1973_v55, 4  ;;  %vm203_vm4 = vcmp.eq.s32.totalorder %v2134_v8, 0 }
  0xcf   :  { %vm2150_vm5 = vcmp.le.f32.partialorder %v315_v16, 0.7853982  ;;  %v456_v59 = vsel %vm454_vm3, %v444_v47, 2102212464  ;;  %v459_v36 = vsel %vm451_vm15, %v438_v49, %v441_v44  ;;  %v460_v14 = vsel %vm454_vm3, %v447_v58, 920167782 }
  0xd0   :  { %v464_v11 = vsel %vm454_vm3, %v450_v3, 1326507024  ;;  %vm742_vm6 = vcmp.gt.s32.totalorder %v2083_v32, 0  ;;  %vm106_vm7 = vcmp.ge.s32.totalorder %v1879_v9, 1  ;;  %vm202_vm8 = vcmp.lt.s32.totalorder %v2134_v8, 2  ;;  %v949_v9 = vld [vmem:[%s2997_s1 + $0x10] sm:$0xff] }
  0xd1   :  { %v295_v33 = vxor.u32 2147483648, %v294_v15  ;;  %v1594_v22 = vmin.u32 %v381_v52, %v2138_v24  ;;  %v461_v16 = vsel %vm453_vm2, %v444_v47, %v460_v14  ;;  %v463_v61 = vsel %vm451_vm15, %v441_v44, %v444_v47 }
  0xd2   :  { %vm199_vm9 = vweird.f32 %v1855_v29  ;;  %vm965_vm11 = vcmask 80896   ;;  %v304_v31 = vadd.s32 3, %v300_v17  ;;  %v402_v57 = vsel %vm317_vm14, %v401_v48, %v377_v43 }
  0xd3   :  { %vm452_vm12 = vcmp.lt.s32.totalorder %v1973_v55, 2  ;;  %v465_v7 = vsel %vm453_vm2, %v447_v58, %v464_v11  ;;  %v296_v35 = vsel %vm213_vm10, %v295_v33, %v294_v15  ;;  %v383_v41 = vclz %v1594_v22  ;;  %v1702_v3 = vpop.eup %1701 }
  0xd4   :  { %v462_v45 = vsel %vm452_vm12, %v459_v36, %v461_v16  ;;  %v467_v40 = vshll.u32 %v427_v5, 8  ;;  %v299_v21 = vsel %vm2099_vm13, %v1861_v38, %v296_v35  ;;  %v455_v43 = vsel %vm451_vm15, %v435_v26, %v438_v49  ;;  %v1704_v5 = vpop.eup %1703 }
  0xd5   :  { %v457_v47 = vsel %vm453_vm2, %v441_v44, %v456_v59  ;;  %v466_v58 = vsel %vm452_vm12, %v463_v61, %v465_v7  ;;  %1705 = vcosq.f32 %v299_v21  ;;  %v1595_v46 = vadd.s32 4294967294, %v383_v41 }
  0xd6   :  { %v2183_v60 = vmul.u32.u64.low %v467_v40, %v466_v58  ;;  %v2184_v17 = vmul.u32.u64.high %v467_v40, %v466_v58, %v2183_v60  ;;  %v207_v48 = vxor.u32 2147483648, %v1702_v3  ;;  %1707 = vsinq.f32 %v299_v21 }
  0xd7   :  { %v2186_v25 = vmul.u32.u64.low %v467_v40, %v462_v45  ;;  %v2187_v15 = vmul.u32.u64.high %v467_v40, %v462_v45, %v2186_v25  ;;  %v204_v49 = vxor.u32 2147483648, %v1704_v5  ;;  %v2190_v26 = vand.u32 3, %v304_v31 }
  0xd8   :  { %vm1596_vm10 = vcmp.lt.s32.totalorder %v1595_v46, 0  ;;  %v458_v44 = vsel %vm452_vm12, %v455_v43, %v457_v47  ;;  %v208_v52 = vsel %vm206_vm0, %v207_v48, %v1704_v5  ;;  %v371_v59 = vadd.s32 %v2070_v6, %v2066_v0 }
  0xd9   :  { %v386_v36 = vsel %vm1596_vm10, 0, %v1595_v46  ;;  %v523_v14 = vand.u32 2147483647, %v1867_v51  ;;  %v205_v11 = vsel %vm203_vm4, %v1702_v3, %v204_v49  ;;  %v404_v16 = vsel %vm2150_vm5, 0, %v402_v57 }
  0xda   :  { %v387_v33 = vsub.s32 32, %v386_v36  ;;  %v391_v22 = vsub.s32 4294967266, %v386_v36  ;;  %v209_v55 = vsel %vm202_vm8, %v205_v11, %v208_v52  ;;  %v474_v61 = vmul.u32 %v467_v40, %v458_v44 }
  0xdb   :  { %vm476_vm13 = vc.u32 %v2184_v17, %v2186_v25  ;;  %v477_v0 = vadd.s32 1, %v2187_v15  ;;  %v210_v6 = vsel %vm199_vm9, nan, %v209_v55  ;;  %v388_v31 = vshll.u32 %v2138_v24, %v386_v36 }
  0xdc   :  { %v389_v7 = vshrl.u32 %v371_v59, %v387_v33  ;;  %v392_v35 = vadd.s32 127, %v391_v22  ;;  %v2214_v57 = vsel %vm742_vm6, %v2083_v32, 0  ;;  %v939_v8 = vsel %vm106_vm7, %v210_v6, %v1855_v29 }
  0xdd   :  { %v478_v41 = vsel %vm476_vm13, %v477_v0, %v2187_v15  ;;  %v2222_v45 = vand.u32 8388607, %v523_v14  ;;  %1619 = vmatmul.mubr.msk.f32.vlgmr.msra.gmra.mxu0 %vm965_vm11, %v939_v8  ;;  %1629 = vmatmul.mubr.msk.f32.vlgmr.msra.gmra.mxu1 %vm965_vm11, %v939_v8  ;;  %vm307_vm15 = vcmp.eq.s32.totalorder %v2190_v26, 0  ;;  %vm306_vm0 = vcmp.lt.s32.totalorder %v2190_v26, 2 }
  0xde   :  { %v390_v24 = vor.u32 %v389_v7, %v388_v31  ;;  %v393_v40 = vshll.u32 %v392_v35, 23  ;;  %v479_v32 = vadd.s32 %v478_v41, %v474_v61  ;;  %1638 = vmatpush1.msk.msra.mxu0 %vm1258_vm1, %v1834_v18  ;;  %1648 = vmatpush1.msk.msra.mxu1 %vm1258_vm1, %v1841_v20  ;;  %vm310_vm2 = vcmp.eq.s32.totalorder %v2190_v26, 2 }
  0xdf   :  { %v2233_v29 = vadd.s32 3, %v404_v16  ;;  %v541_v21 = vshrl.u32 %v1735_v10, %v2078_v27  ;;  %v544_v43 = vshrl.u32 %v1737_v23, %v2078_v27  ;;  %1073 = vmatprep.mubr.f32.mxu0 %v1734_v12  ;;  %1186 = vmatprep.mubr.f32.mxu1 %v1734_v12  ;;  %vm303_vm3 = vweird.f32 %v1861_v38 }
  0xe0   :  { %v394_v18 = vor.u32 4788187, %v393_v40  ;;  %v480_v20 = vadd.s32 536870912, %v479_v32  ;;  %v539_v47 = vshrl.u32 %v1736_v19, %v2078_v27  ;;  %v547_v58 = vshrl.u32 %v1738_v30, %v2078_v27 }
  0xe1   :  { %v531_v3 = vor.u32 8388608, %v2222_v45  ;;  %v540_v46 = vshll.u32 %v1736_v19, %v2014_v34  ;;  %v543_v60 = vshll.u32 %v1735_v10, %v2014_v34  ;;  %v550_v5 = vshrl.u32 %v1739_v39, %v2078_v27 }
  0xe2   :  { %v395_v48 = vand.u32 2147483647, %v394_v18  ;;  %v397_v15 = vcvt.s32.f32 %v390_v24  ;;  %vm421_vm1 = vcmp.lt.s32.totalorder %v1859_v37, 0  ;;  %v481_v49 = vshrl.u32 %v480_v20, 30  ;;  %v1706_v52 = vpop.eup %1705 }
  0xe3   :  { %v546_v44 = vshll.u32 %v1737_v23, %v2014_v34  ;;  %v542_v59 = vor.u32 %v541_v21, %v540_v46  ;;  %v545_v36 = vor.u32 %v544_v43, %v543_v60  ;;  %v549_v11 = vshll.u32 %v1738_v30, %v2014_v34  ;;  %v1708_v22 = vpop.eup %1707 }
  0xe4   :  { %v553_v33 = vshrl.u32 %v1740_v42, %v2078_v27  ;;  %v311_v16 = vxor.u32 2147483648, %v1706_v52  ;;  %v398_v55 = vmul.f32 %v397_v15, %v395_v48  ;;  %v482_v61 = vshll.u32 %v481_v49, 30 }
  0xe5   :  { %v548_v0 = vor.u32 %v547_v58, %v546_v44  ;;  %v308_v6 = vxor.u32 2147483648, %v1708_v22  ;;  %v551_v31 = vor.u32 %v550_v5, %v549_v11  ;;  %v552_v7 = vshll.u32 %v1739_v39, %v2014_v34 }
  0xe6   :  { %vm555_vm4 = vcmp.lt.s32.totalorder %v1990_v4, 1  ;;  %v312_v35 = vsel %vm310_vm2, %v311_v16, %v1708_v22  ;;  %v399_v8 = vxor.u32 2147483648, %v398_v55  ;;  %v2265_v41 = vsub.s32 %v479_v32, %v482_v61 }
  0xe7   :  { %vm557_vm6 = vcmp.lt.s32.totalorder %v1990_v4, 3  ;;  %v309_v27 = vsel %vm307_vm15, %v1706_v52, %v308_v6  ;;  %v505_v45 = vsub.s32 4, %v481_v49  ;;  %v554_v24 = vor.u32 %v553_v33, %v552_v7 }
  0xe8   :  { %vm558_vm8 = vcmp.lt.s32.totalorder %v1990_v4, 4  ;;  %v313_v34 = vsel %vm306_vm0, %v309_v27, %v312_v35  ;;  %v400_v40 = vsel %vm317_vm14, %v399_v8, %v398_v55  ;;  %v485_v21 = vsub.s32 0, %v2265_v41 }
  0xe9   :  { %v560_v32 = vsel %vm558_vm8, %v548_v0, 2102212464  ;;  %v314_v43 = vsel %vm303_vm3, nan, %v313_v34  ;;  %v403_v18 = vsel %vm2150_vm5, %v1853_v28, %v400_v40  ;;  %v559_v20 = vsel %vm555_vm4, %v539_v47, %v542_v59 }
  0xea   :  { %v564_v26 = vsel %vm558_vm8, %v551_v31, 920167782  ;;  %v940_v58 = vsel %vm106_vm7, %v314_v43, %v1861_v38  ;;  %1709 = vcosq.f32 %v403_v18  ;;  %v1598_v46 = vmin.u32 %v485_v21, %v2265_v41 }
  0xeb   :  { %v563_v60 = vsel %vm555_vm4, %v542_v59, %v545_v36  ;;  %1620 = vmatmul.mubr.msk.f32.gmra.mxu0 %vm965_vm11, %v940_v58  ;;  %1630 = vmatmul.mubr.msk.f32.gmra.mxu1 %vm965_vm11, %v940_v58  ;;  %1711 = vsinq.f32 %v403_v18  ;;  %v506_v62 = vsel %vm421_vm1, %v505_v45, %v481_v49  ;;  %v561_v47 = vsel %vm557_vm6, %v545_v36, %v560_v32 }
  0xec   :  { %v565_v38 = vsel %vm557_vm6, %v548_v0, %v564_v26  ;;  %1079 = vmatprep.mubr.f32.mxu0 %v1734_v12  ;;  %1192 = vmatprep.mubr.f32.mxu1 %v1734_v12  ;;  %vm2305_vm14 = vcmp.le.f32.partialorder %v419_v53, 0.7853982  ;;  %v487_v48 = vclz %v1598_v46  ;;  %vm556_vm5 = vcmp.lt.s32.totalorder %v1990_v4, 2 }
  0xed   :  { %v567_v15 = vsel %vm555_vm4, %v545_v36, %v548_v0  ;;  %v2313_v49 = vand.u32 3, %v2233_v29  ;;  %v566_v44 = vsel %vm556_vm5, %v563_v60, %v565_v38  ;;  %v568_v52 = vsel %vm558_vm8, %v554_v24, 1326507024 }
  0xee   :  { %v571_v59 = vshll.u32 %v531_v3, 8  ;;  %v1599_v11 = vadd.s32 4294967294, %v487_v48  ;;  %v508_v53 = vsel %vm2305_vm14, 0, %v506_v62  ;;  %v562_v33 = vsel %vm556_vm5, %v559_v20, %v561_v47 }
  0xef   :  { %v569_v22 = vsel %vm557_vm6, %v551_v31, %v568_v52  ;;  %v627_v29 = vand.u32 2147483647, %v1865_v50  ;;  %v2327_v36 = vadd.s32 1, %v2081_v56  ;;  %v2333_v6 = vand.u32 31, %v2214_v57 }
  0xf0   :  { %v570_v16 = vsel %vm556_vm5, %v567_v15, %v569_v22  ;;  %v2321_v55 = vmul.u32.u64.low %v571_v59, %v566_v44  ;;  %v2322_v61 = vmul.u32.u64.high %v571_v59, %v566_v44, %v2321_v55  ;;  %vm1600_vm9 = vcmp.lt.s32.totalorder %v1599_v11, 0 }
  0xf1   :  { %v2329_v3 = vmul.u32.u64.low %v571_v59, %v570_v16  ;;  %v2330_v0 = vmul.u32.u64.high %v571_v59, %v570_v16, %v2329_v3  ;;  %vm414_vm12 = vcmp.eq.s32.totalorder %v2313_v49, 2  ;;  %v475_v4 = vadd.s32 %v2186_v25, %v2184_v17 }
  0xf2   :  { %v490_v31 = vsel %vm1600_vm9, 0, %v1599_v11  ;;  %vm411_vm10 = vcmp.eq.s32.totalorder %v2313_v49, 0  ;;  %v2339_v8 = vadd.s32 3, %v508_v53  ;;  %v578_v56 = vmul.u32 %v571_v59, %v562_v33 }
  0xf3   :  { %v491_v7 = vsub.s32 32, %v490_v31  ;;  %v495_v35 = vsub.s32 4294967266, %v490_v31  ;;  %vm410_vm13 = vcmp.lt.s32.totalorder %v2313_v49, 2  ;;  %v492_v27 = vshll.u32 %v2265_v41, %v490_v31 }
  0xf4   :  { %v581_v45 = vadd.s32 1, %v2322_v61  ;;  %v2346_v24 = vand.u32 8388607, %v627_v29  ;;  %v645_v17 = vshrl.u32 %v1735_v10, %v2075_v54  ;;  %vm407_vm15 = vweird.f32 %v1853_v28 }
  0xf5   :  { %v493_v25 = vshrl.u32 %v475_v4, %v491_v7  ;;  %v496_v34 = vadd.s32 127, %v495_v35  ;;  %vm580_vm0 = vc.u32 %v2330_v0, %v2321_v55  ;;  %v648_v40 = vshrl.u32 %v1737_v23, %v2075_v54 }
  0xf6   :  { %v582_v41 = vsel %vm580_vm0, %v581_v45, %v2322_v61  ;;  %v643_v21 = vshrl.u32 %v1736_v19, %v2075_v54  ;;  %v644_v32 = vshll.u32 %v1736_v19, %v1988_v63  ;;  %v647_v43 = vshll.u32 %v1735_v10, %v1988_v63 }
  0xf7   :  { %v494_v18 = vor.u32 %v493_v25, %v492_v27  ;;  %v497_v20 = vshll.u32 %v496_v34, 23  ;;  %v583_v26 = vadd.s32 %v582_v41, %v578_v56  ;;  %v651_v58 = vshrl.u32 %v1738_v30, %v2075_v54  ;;  %v1710_v46 = vpop.eup %1709 }
  0xf8   :  { %vm525_vm2 = vcmp.lt.s32.totalorder %v1867_v51, 0  ;;  %v635_v60 = vor.u32 8388608, %v2346_v24  ;;  %v646_v62 = vor.u32 %v645_v17, %v644_v32  ;;  %v650_v47 = vshll.u32 %v1737_v23, %v1988_v63  ;;  %v1712_v48 = vpop.eup %1711 }
  0xf9   :  { %v654_v38 = vshrl.u32 %v1739_v39, %v2075_v54  ;;  %v415_v15 = vxor.u32 2147483648, %v1710_v46  ;;  %v498_v44 = vor.u32 4788187, %v497_v20  ;;  %v584_v52 = vadd.s32 536870912, %v583_v26 }
  0xfa   :  { %v649_v59 = vor.u32 %v648_v40, %v647_v43  ;;  %vm846_vm3 = vcmp.gt.s32.totalorder %v2327_v36, 0  ;;  %v412_v11 = vxor.u32 2147483648, %v1712_v48  ;;  %v652_v53 = vor.u32 %v651_v58, %v650_v47 }
  0xfb   :  { %v653_v33 = vshll.u32 %v1738_v30, %v1988_v63  ;;  %v657_v22 = vshrl.u32 %v1740_v42, %v2075_v54  ;;  %v416_v16 = vsel %vm414_vm12, %v415_v15, %v1712_v48  ;;  %v499_v61 = vand.u32 2147483647, %v498_v44 }
  0xfc   :  { %v501_v3 = vcvt.s32.f32 %v494_v18  ;;  %v585_v4 = vshrl.u32 %v584_v52, 30  ;;  %v413_v31 = vsel %vm411_vm10, %v1710_v46, %v412_v11  ;;  %v656_v35 = vshll.u32 %v1739_v39, %v1988_v63 }
  0xfd   :  { %v655_v7 = vor.u32 %v654_v38, %v653_v33  ;;  %vm662_vm4 = vcmp.lt.s32.totalorder %v1986_v13, 4  ;;  %v417_v56 = vsel %vm410_vm13, %v413_v31, %v416_v16  ;;  %vm659_vm6 = vcmp.lt.s32.totalorder %v1986_v13, 1 }
  0xfe   :  { %v502_v27 = vmul.f32 %v501_v3, %v499_v61  ;;  %v586_v54 = vshll.u32 %v585_v4, 30  ;;  %v609_v45 = vsub.s32 4, %v585_v4  ;;  %v418_v24 = vsel %vm407_vm15, nan, %v417_v56 }
  0xff   :  { %v658_v17 = vor.u32 %v657_v22, %v656_v35  ;;  %v664_v25 = vsel %vm662_vm4, %v652_v53, 2102212464  ;;  %v941_v63 = vsel %vm106_vm7, %v418_v24, %v1853_v28  ;;  %vm660_vm8 = vcmp.lt.s32.totalorder %v1986_v13, 2 }
 0x100   :  { %v503_v34 = vxor.u32 2147483648, %v502_v27  ;;  %v2392_v40 = vsub.s32 %v583_v26, %v586_v54  ;;  %1621 = vmatmul.mubr.msk.f32.gmra.mxu0 %vm965_vm11, %v941_v63  ;;  %1631 = vmatmul.mubr.msk.f32.gmra.mxu1 %vm965_vm11, %v941_v63  ;;  %vm661_vm5 = vcmp.lt.s32.totalorder %v1986_v13, 3  ;;  %v663_v49 = vsel %vm659_vm6, %v643_v21, %v646_v62 }
 0x101   :  { %v667_v41 = vsel %vm659_vm6, %v646_v62, %v649_v59  ;;  %v668_v28 = vsel %vm662_vm4, %v655_v7, 920167782  ;;  %1085 = vmatprep.mubr.f32.mxu0 %v1734_v12  ;;  %1198 = vmatprep.mubr.f32.mxu1 %v1734_v12  ;;  %v610_v18 = vsel %vm525_vm2, %v609_v45, %v585_v4  ;;  %v665_v21 = vsel %vm661_vm5, %v649_v59, %v664_v25 }
 0x102   :  { %v504_v32 = vsel %vm421_vm1, %v503_v34, %v502_v27  ;;  %v589_v43 = vsub.s32 0, %v2392_v40  ;;  %v669_v26 = vsel %vm661_vm5, %v652_v53, %v668_v28  ;;  %v672_v58 = vsel %vm662_vm4, %v658_v17, 1326507024 }
 0x103   :  { %v507_v20 = vsel %vm2305_vm14, %v1859_v37, %v504_v32  ;;  %v675_v46 = vshll.u32 %v635_v60, 8  ;;  %v670_v47 = vsel %vm660_vm8, %v667_v41, %v669_v26  ;;  %v671_v38 = vsel %vm659_vm6, %v649_v59, %v652_v53 }
 0x104   :  { %1713 = vcosq.f32 %v507_v20  ;;  %v1602_v62 = vmin.u32 %v589_v43, %v2392_v40  ;;  %v673_v5 = vsel %vm661_vm5, %v655_v7, %v672_v58  ;;  %v2434_v60 = vsel %vm846_vm3, %v2327_v36, 0 }
 0x105   :  { %1715 = vsinq.f32 %v507_v20  ;;  %v2427_v48 = vmul.u32.u64.low %v675_v46, %v670_v47  ;;  %v2428_v15 = vmul.u32.u64.high %v675_v46, %v670_v47, %v2427_v48  ;;  %v746_v44 = vsub.s32 32, %v2333_v6 }
 0x106   :  { %vm2439_vm1 = vcmp.le.f32.partialorder %v523_v14, 0.7853982  ;;  %v591_v59 = vclz %v1602_v62  ;;  %v2444_v11 = vand.u32 3, %v2339_v8  ;;  %v666_v33 = vsel %vm660_vm8, %v663_v49, %v665_v21 }
 0x107   :  { %v612_v53 = vsel %vm2439_vm1, 0, %v610_v18  ;;  %v674_v36 = vsel %vm660_vm8, %v671_v38, %v673_v5  ;;  %v731_v14 = vand.u32 2147483647, %v1873_v2  ;;  %v2457_v3 = vand.u32 31, %v2434_v60 }
 0x108   :  { %v1603_v22 = vadd.s32 4294967294, %v591_v59  ;;  %v2452_v16 = vmul.u32.u64.low %v675_v46, %v674_v36  ;;  %v2453_v61 = vmul.u32.u64.high %v675_v46, %v674_v36, %v2452_v16  ;;  %v2460_v8 = vshrl.u32 %v2214_v57, 5 }
 0x109   :  { %v685_v4 = vadd.s32 1, %v2428_v15  ;;  %vm518_vm9 = vcmp.eq.s32.totalorder %v2444_v11, 2  ;;  %v579_v13 = vadd.s32 %v2321_v55, %v2330_v0  ;;  %v2466_v7 = vadd.s32 3, %v612_v53 }
 0x10a   :  { %vm1604_vm14 = vcmp.lt.s32.totalorder %v1603_v22, 0  ;;  %v682_v35 = vmul.u32 %v675_v46, %v666_v33  ;;  %vm515_vm12 = vcmp.eq.s32.totalorder %v2444_v11, 0  ;;  %v2471_v57 = vand.u32 8388607, %v731_v14 }
 0x10b   :  { %v594_v31 = vsel %vm1604_vm14, 0, %v1603_v22  ;;  %v747_v54 = vshrl.u32 %v1736_v19, %v746_v44  ;;  %vm514_vm10 = vcmp.lt.s32.totalorder %v2444_v11, 2  ;;  %vm684_vm13 = vc.u32 %v2453_v61, %v2427_v48 }
 0x10c   :  { %v595_v56 = vsub.s32 32, %v594_v31  ;;  %v599_v27 = vsub.s32 4294967266, %v594_v31  ;;  %v748_v55 = vshll.u32 %v1736_v19, %v2333_v6  ;;  %v749_v0 = vshrl.u32 %v1735_v10, %v746_v44 }
 0x10d   :  { %v752_v45 = vshrl.u32 %v1737_v23, %v746_v44  ;;  %vm511_vm15 = vweird.f32 %v1859_v37  ;;  %v596_v24 = vshll.u32 %v2392_v40, %v594_v31  ;;  %v686_v63 = vsel %vm684_vm13, %v685_v4, %v2428_v15 }
 0x10e   :  { %v597_v17 = vshrl.u32 %v579_v13, %v595_v56  ;;  %v600_v25 = vadd.s32 127, %v599_v27  ;;  %v687_v34 = vadd.s32 %v686_v63, %v682_v35  ;;  %v751_v49 = vshll.u32 %v1735_v10, %v2333_v6 }
 0x10f   :  { %v755_v41 = vshrl.u32 %v1738_v30, %v746_v44  ;;  %v758_v28 = vshrl.u32 %v1739_v39, %v746_v44  ;;  %v739_v18 = vor.u32 8388608, %v2471_v57  ;;  %v757_v21 = vshll.u32 %v1738_v30, %v2333_v6 }
 0x110   :  { %v598_v32 = vor.u32 %v597_v17, %v596_v24  ;;  %v601_v43 = vshll.u32 %v600_v25, 23  ;;  %v688_v20 = vadd.s32 536870912, %v687_v34  ;;  %v750_v26 = vor.u32 %v749_v0, %v748_v55 }
 0x111   :  { %v1714_v40 = vpop.eup %1713  ;;  %v754_v58 = vshll.u32 %v1737_v23, %v2333_v6  ;;  %v761_v46 = vshrl.u32 %v1740_v42, %v746_v44  ;;  %v753_v5 = vor.u32 %v752_v45, %v751_v49  ;;  %v759_v15 = vor.u32 %v758_v28, %v757_v21 }
 0x112   :  { %v1716_v62 = vpop.eup %1715  ;;  %v519_v47 = vxor.u32 2147483648, %v1714_v40  ;;  %v602_v38 = vor.u32 4788187, %v601_v43  ;;  %v2494_v53 = vshrl.u32 %v688_v20, 30  ;;  %v760_v36 = vshll.u32 %v1739_v39, %v2333_v6 }
 0x113   :  { %v516_v59 = vxor.u32 2147483648, %v1716_v62  ;;  %v756_v33 = vor.u32 %v755_v41, %v754_v58  ;;  %v605_v4 = vcvt.s32.f32 %v598_v32  ;;  %vm763_vm0 = vcmp.lt.s32.totalorder %v2460_v8, 1 }
 0x114   :  { %v520_v22 = vsel %vm518_vm9, %v519_v47, %v1716_v62  ;;  %v603_v16 = vand.u32 2147483647, %v602_v38  ;;  %v690_v13 = vshll.u32 %v2494_v53, 30  ;;  %v762_v31 = vor.u32 %v761_v46, %v760_v36 }
 0x115   :  { %v517_v44 = vsel %vm515_vm12, %v1714_v40, %v516_v59  ;;  %vm766_vm3 = vcmp.lt.s32.totalorder %v2460_v8, 4  ;;  %vm764_vm4 = vcmp.lt.s32.totalorder %v2460_v8, 2  ;;  %vm765_vm6 = vcmp.lt.s32.totalorder %v2460_v8, 3 }
 0x116   :  { %v521_v35 = vsel %vm514_vm10, %v517_v44, %v520_v22  ;;  %v606_v56 = vmul.f32 %v605_v4, %v603_v16  ;;  %v772_v6 = vsel %vm766_vm3, %v759_v15, 920167782  ;;  %v2512_v57 = vsub.s32 %v687_v34, %v690_v13 }
 0x117   :  { %v522_v27 = vsel %vm511_vm15, nan, %v521_v35  ;;  %v768_v55 = vsel %vm766_vm3, %v756_v33, 2102212464  ;;  %v771_v45 = vsel %vm763_vm0, %v750_v26, %v753_v5  ;;  %v773_v24 = vsel %vm765_vm6, %v756_v33, %v772_v6 }
 0x118   :  { %v942_v11 = vsel %vm106_vm7, %v522_v27, %v1859_v37  ;;  %v607_v0 = vxor.u32 2147483648, %v606_v56  ;;  %v693_v17 = vsub.s32 0, %v2512_v57  ;;  %v767_v25 = vsel %vm763_vm0, %v747_v54, %v750_v26 }
 0x119   :  { %1622 = vmatmul.mubr.msk.f32.gmra.mxu0 %vm965_vm11, %v942_v11  ;;  %1632 = vmatmul.mubr.msk.f32.gmra.mxu1 %vm965_vm11, %v942_v11  ;;  %v775_v63 = vsel %vm763_vm0, %v753_v5, %v756_v33  ;;  %v776_v37 = vsel %vm766_vm3, %v762_v31, 1326507024  ;;  %v769_v49 = vsel %vm765_vm6, %v753_v5, %v768_v55  ;;  %v779_v54 = vshll.u32 %v739_v18, 8 }
 0x11a   :  { %1091 = vmatprep.mubr.f32.mxu0 %v1734_v12  ;;  %1204 = vmatprep.mubr.f32.mxu1 %v1734_v12  ;;  %v608_v34 = vsel %vm525_vm2, %v607_v0, %v606_v56  ;;  %v777_v41 = vsel %vm765_vm6, %v759_v15, %v776_v37  ;;  %v1606_v32 = vmin.u32 %v693_v17, %v2512_v57  ;;  %v850_v26 = vsub.s32 32, %v2457_v3 }
 0x11b   :  { %v611_v28 = vsel %vm2439_vm1, %v1867_v51, %v608_v34  ;;  %v774_v43 = vsel %vm764_vm4, %v771_v45, %v773_v24  ;;  %v778_v21 = vsel %vm764_vm4, %v775_v63, %v777_v41  ;;  %v770_v52 = vsel %vm764_vm4, %v767_v25, %v769_v49 }
 0x11c   :  { %1717 = vcosq.f32 %v611_v28  ;;  %v2549_v40 = vmul.u32.u64.low %v779_v54, %v778_v21  ;;  %v2550_v20 = vmul.u32.u64.high %v779_v54, %v778_v21, %v2549_v40  ;;  %v695_v18 = vclz %v1606_v32 }
 0x11d   :  { %1719 = vsinq.f32 %v611_v28  ;;  %v2555_v58 = vmul.u32.u64.low %v779_v54, %v774_v43  ;;  %v2556_v46 = vmul.u32.u64.high %v779_v54, %v774_v43, %v2555_v58  ;;  %v835_v62 = vand.u32 2147483647, %v1871_v1 }
 0x11e   :  { %v2561_v47 = vand.u32 3, %v2466_v7  ;;  %v1607_v38 = vadd.s32 4294967294, %v695_v18  ;;  %v2564_v5 = vshrl.u32 %v2434_v60, 5  ;;  %v683_v15 = vadd.s32 %v2427_v48, %v2453_v61 }
 0x11f   :  { %v713_v8 = vsub.s32 4, %v2494_v53  ;;  %v786_v59 = vmul.u32 %v779_v54, %v770_v52  ;;  %vm788_vm8 = vc.u32 %v2550_v20, %v2555_v58  ;;  %v789_v36 = vadd.s32 1, %v2556_v46 }
 0x120   :  { %vm1608_vm2 = vcmp.lt.s32.totalorder %v1607_v38, 0  ;;  %v2574_v7 = vand.u32 8388607, %v835_v62  ;;  %v851_v60 = vshrl.u32 %v1736_v19, %v850_v26  ;;  %vm622_vm5 = vcmp.eq.s32.totalorder %v2561_v47, 2 }
 0x121   :  { %v698_v33 = vsel %vm1608_vm2, 0, %v1607_v38  ;;  %v853_v61 = vshrl.u32 %v1735_v10, %v850_v26  ;;  %v856_v16 = vshrl.u32 %v1737_v23, %v850_v26  ;;  %vm619_vm1 = vcmp.eq.s32.totalorder %v2561_v47, 0 }
 0x122   :  { %v699_v22 = vsub.s32 32, %v698_v33  ;;  %v703_v48 = vsub.s32 4294967266, %v698_v33  ;;  %v700_v4 = vshll.u32 %v2512_v57, %v698_v33  ;;  %v790_v44 = vsel %vm788_vm8, %v789_v36, %v2556_v46 }
 0x123   :  { %v859_v13 = vshrl.u32 %v1738_v30, %v850_v26  ;;  %v861_v31 = vshll.u32 %v1738_v30, %v2457_v3  ;;  %vm618_vm14 = vcmp.lt.s32.totalorder %v2561_v47, 2  ;;  %v791_v6 = vadd.s32 %v790_v44, %v786_v59 }
 0x124   :  { %v701_v35 = vshrl.u32 %v683_v15, %v699_v22  ;;  %v704_v56 = vadd.s32 127, %v703_v48  ;;  %v862_v27 = vshrl.u32 %v1739_v39, %v850_v26  ;;  %vm615_vm9 = vweird.f32 %v1867_v51 }
 0x125   :  { %v843_v55 = vor.u32 8388608, %v2574_v7  ;;  %v852_v57 = vshll.u32 %v1736_v19, %v2457_v3  ;;  %v855_v11 = vshll.u32 %v1735_v10, %v2457_v3  ;;  %v858_v30 = vshll.u32 %v1737_v23, %v2457_v3 }
 0x126   :  { %v702_v0 = vor.u32 %v701_v35, %v700_v4  ;;  %v705_v45 = vshll.u32 %v704_v56, 23  ;;  %v792_v24 = vadd.s32 536870912, %v791_v6  ;;  %v863_v17 = vor.u32 %v862_v27, %v861_v31 }
 0x127   :  { %vm629_vm12 = vcmp.lt.s32.totalorder %v1865_v50, 0  ;;  %v854_v25 = vor.u32 %v853_v61, %v852_v57  ;;  %v857_v63 = vor.u32 %v856_v16, %v855_v11  ;;  %v860_v37 = vor.u32 %v859_v13, %v858_v30 }
 0x128   :  { %v865_v34 = vshrl.u32 %v1740_v42, %v850_v26  ;;  %v706_v41 = vor.u32 4788187, %v705_v45  ;;  %v2598_v19 = vshrl.u32 %v792_v24, 30  ;;  %v864_v10 = vshll.u32 %v1739_v39, %v2457_v3 }
 0x129   :  { %v1718_v49 = vpop.eup %1717  ;;  %vm870_vm10 = vcmp.lt.s32.totalorder %v2564_v5, 4  ;;  %vm867_vm13 = vcmp.lt.s32.totalorder %v2564_v5, 1  ;;  %vm869_vm15 = vcmp.lt.s32.totalorder %v2564_v5, 3  ;;  %v709_v43 = vcvt.s32.f32 %v702_v0 }
 0x12a   :  { %v1720_v23 = vpop.eup %1719  ;;  %v623_v54 = vxor.u32 2147483648, %v1718_v49  ;;  %v876_v28 = vsel %vm870_vm10, %v863_v17, 920167782  ;;  %v707_v42 = vand.u32 2147483647, %v706_v41  ;;  %v794_v21 = vshll.u32 %v2598_v19, 30 }
 0x12b   :  { %v620_v32 = vxor.u32 2147483648, %v1720_v23  ;;  %v866_v39 = vor.u32 %v865_v34, %v864_v10  ;;  %v875_v3 = vsel %vm867_vm13, %v854_v25, %v857_v63  ;;  %v877_v26 = vsel %vm869_vm15, %v860_v37, %v876_v28 }
 0x12c   :  { %v624_v40 = vsel %vm622_vm5, %v623_v54, %v1720_v23  ;;  %v710_v52 = vmul.f32 %v709_v43, %v707_v42  ;;  %v795_v46 = vsub.s32 %v791_v6, %v794_v21  ;;  %v872_v38 = vsel %vm870_vm10, %v860_v37, 2102212464 }
 0x12d   :  { %v621_v18 = vsel %vm619_vm1, %v1718_v49, %v620_v32  ;;  %vm868_vm0 = vcmp.lt.s32.totalorder %v2564_v5, 2  ;;  %v871_v59 = vsel %vm867_vm13, %v851_v60, %v854_v25  ;;  %v879_v33 = vsel %vm867_vm13, %v857_v63, %v860_v37 }
 0x12e   :  { %v625_v15 = vsel %vm618_vm14, %v621_v18, %v624_v40  ;;  %v711_v7 = vxor.u32 2147483648, %v710_v52  ;;  %v797_v22 = vsub.s32 0, %v795_v46  ;;  %v878_v48 = vsel %vm868_vm0, %v875_v3, %v877_v26 }
 0x12f   :  { %v626_v36 = vsel %vm615_vm9, nan, %v625_v15  ;;  %v873_v61 = vsel %vm869_vm15, %v857_v63, %v872_v38  ;;  %v880_v60 = vsel %vm870_vm10, %v866_v39, 1326507024  ;;  %v883_v16 = vshll.u32 %v843_v55, 8 }
 0x130   :  { %v943_v47 = vsel %vm106_vm7, %v626_v36, %v1867_v51  ;;  %vm2640_vm3 = vcmp.le.f32.partialorder %v627_v29, 0.7853982  ;;  %v712_v51 = vsel %vm629_vm12, %v711_v7, %v710_v52  ;;  %v1610_v44 = vmin.u32 %v797_v22, %v795_v46 }
 0x131   :  { %1623 = vmatmul.mubr.msk.f32.gmra.mxu0 %vm965_vm11, %v943_v47  ;;  %1633 = vmatmul.mubr.msk.f32.gmra.mxu1 %vm965_vm11, %v943_v47  ;;  %v881_v13 = vsel %vm869_vm15, %v863_v17, %v880_v60  ;;  %v715_v31 = vsel %vm2640_vm3, %v1865_v50, %v712_v51  ;;  %v2655_v35 = vmul.u32.u64.low %v883_v16, %v878_v48  ;;  %v2656_v56 = vmul.u32.u64.high %v883_v16, %v878_v48, %v2655_v35 }
 0x132   :  { %1097 = vmatprep.mubr.f32.mxu0 %v1734_v12  ;;  %1210 = vmatprep.mubr.f32.mxu1 %v1734_v12  ;;  %v882_v29 = vsel %vm868_vm0, %v879_v33, %v881_v13  ;;  %1721 = vcosq.f32 %v715_v31  ;;  %v799_v6 = vclz %v1610_v44  ;;  %v714_v27 = vsel %vm629_vm12, %v713_v8, %v2494_v53 }
 0x133   :  { %1723 = vsinq.f32 %v715_v31  ;;  %v2664_v55 = vmul.u32.u64.low %v883_v16, %v882_v29  ;;  %v2665_v57 = vmul.u32.u64.high %v883_v16, %v882_v29, %v2664_v55  ;;  %v874_v30 = vsel %vm868_vm0, %v871_v59, %v873_v61 }
 0x134   :  { %v1611_v11 = vadd.s32 4294967294, %v799_v6  ;;  %v893_v0 = vadd.s32 1, %v2656_v56  ;;  %v716_v45 = vsel %vm2640_vm3, 0, %v714_v27  ;;  %v890_v17 = vmul.u32 %v883_v16, %v874_v30 }
 0x135   :  { %vm892_vm6 = vc.u32 %v2665_v57, %v2655_v35  ;;  %v787_v53 = vadd.s32 %v2555_v58, %v2550_v20  ;;  %v720_v5 = vadd.s32 3, %v716_v45  ;;  %vm719_vm1 = vweird.f32 %v1865_v50 }
 0x136   :  { %vm1612_vm4 = vcmp.lt.s32.totalorder %v1611_v11, 0  ;;  %v894_v63 = vsel %vm892_vm6, %v893_v0, %v2656_v56  ;;  %vm733_vm14 = vcmp.lt.s32.totalorder %v1873_v2, 0  ;;  %v817_v36 = vsub.s32 4, %v2598_v19 }
 0x137   :  { %v802_v24 = vsel %vm1612_vm4, 0, %v1611_v11  ;;  %v895_v37 = vadd.s32 %v894_v63, %v890_v17  ;;  %v721_v28 = vand.u32 3, %v720_v5  ;;  %vm2688_vm9 = vcmp.le.f32.partialorder %v731_v14, 0.7853982 }
 0x138   :  { %v803_v8 = vsub.s32 32, %v802_v24  ;;  %v807_v25 = vsub.s32 4294967266, %v802_v24  ;;  %v804_v34 = vshll.u32 %v795_v46, %v802_v24  ;;  %v891_v51 = vadd.s32 %v2655_v35, %v2665_v57 }
 0x139   :  { %v896_v10 = vadd.s32 536870912, %v895_v37  ;;  %vm726_vm2 = vcmp.eq.s32.totalorder %v721_v28, 2  ;;  %vm723_vm8 = vcmp.eq.s32.totalorder %v721_v28, 0  ;;  %vm722_vm5 = vcmp.lt.s32.totalorder %v721_v28, 2 }
 0x13a   :  { %v805_v49 = vshrl.u32 %v787_v53, %v803_v8  ;;  %v808_v41 = vadd.s32 127, %v807_v25  ;;  %vm823_vm0 = vweird.f32 %v1873_v2  ;;  %vm837_vm3 = vcmp.lt.s32.totalorder %v1871_v1, 0 }
 0x13b   :  { %v2677_v32 = vshrl.u32 %v896_v10, 30  ;;  %vm836_vm4 = vcmp.le.f32.partialorder %v835_v62, 0.7853982 }
 0x13c   :  { %v806_v23 = vor.u32 %v805_v49, %v804_v34  ;;  %v809_v54 = vshll.u32 %v808_v41, 23 }
 0x13d   :  { %v898_v21 = vshll.u32 %v2677_v32, 30  ;;  %v921_v5 = vsub.s32 4, %v2677_v32 }
 0x13e   :  { %v810_v42 = vor.u32 4788187, %v809_v54  ;;  %v813_v39 = vcvt.s32.f32 %v806_v23 }
 0x13f   :  { %v1722_v43 = vpop.eup %1721  ;;  %v899_v26 = vsub.s32 %v895_v37, %v898_v21  ;;  %v922_v10 = vsel %vm837_vm3, %v921_v5, %v2677_v32 }
 0x140   :  { %v1724_v20 = vpop.eup %1723  ;;  %v727_v58 = vxor.u32 2147483648, %v1722_v43  ;;  %v811_v40 = vand.u32 2147483647, %v810_v42  ;;  %v924_v62 = vsel %vm836_vm4, 0, %v922_v10 }
 0x141   :  { %v724_v3 = vxor.u32 2147483648, %v1724_v20  ;;  %v901_v38 = vsub.s32 0, %v899_v26  ;;  %v928_v23 = vadd.s32 3, %v924_v62 }
 0x142   :  { %v728_v18 = vsel %vm726_vm2, %v727_v58, %v1724_v20  ;;  %v814_v52 = vmul.f32 %v813_v39, %v811_v40  ;;  %v947_v39 = vld [vmem:[%s2997_s1] sm:$0xff] }
 0x143   :  { %v725_v46 = vsel %vm723_vm8, %v1722_v43, %v724_v3  ;;  %v1614_v7 = vmin.u32 %v901_v38, %v899_v26  ;;  %v929_v54 = vand.u32 3, %v928_v23  ;;  %v950_v3 = vld [vmem:[%s2997_s1 + $0x18] sm:$0xff] }
 0x144   :  { %v729_v15 = vsel %vm722_vm5, %v725_v46, %v728_v18  ;;  %v815_v59 = vxor.u32 2147483648, %v814_v52  ;;  %vm927_vm5 = vweird.f32 %v1871_v1  ;;  %v952_v18 = vld [vmem:[%s2997_s1 + $0x28] sm:$0xff]  ;;  %v954_v46 = vld [vmem:[%s2997_s1 + $0x38] sm:$0xff] }
 0x145   :  { %v730_v33 = vsel %vm719_vm1, nan, %v729_v15  ;;  %v903_v60 = vclz %v1614_v7  ;;  %vm934_vm6 = vcmp.eq.s32.totalorder %v929_v54, 2  ;;  %vm931_vm2 = vcmp.eq.s32.totalorder %v929_v54, 0 }
 0x146   :  { %v944_v22 = vsel %vm106_vm7, %v730_v33, %v1865_v50  ;;  %v816_v47 = vsel %vm733_vm14, %v815_v59, %v814_v52  ;;  %v818_v50 = vsel %vm733_vm14, %v817_v36, %v2598_v19  ;;  %vm930_vm8 = vcmp.lt.s32.totalorder %v929_v54, 2  ;;  %v953_v52 = vld [vmem:[%s2997_s1 + $0x30] sm:$0xff] }
 0x147   :  { %1624 = vmatmul.mubr.msk.f32.gmra.mxu0 %vm965_vm11, %v944_v22  ;;  %1634 = vmatmul.mubr.msk.f32.gmra.mxu1 %vm965_vm11, %v944_v22  ;;  %v819_v61 = vsel %vm2688_vm9, %v1873_v2, %v816_v47  ;;  %v1615_v14 = vadd.s32 4294967294, %v903_v60  ;;  %v820_v16 = vsel %vm2688_vm9, 0, %v818_v50  ;;  %vm1233_vm1 = vcmask 23552  }
 0x148   :  { %1103 = vmatprep.mubr.f32.mxu0 %v1734_v12  ;;  %1216 = vmatprep.mubr.f32.mxu1 %v1734_v12  ;;  %1725 = vcosq.f32 %v819_v61  ;;  %v824_v31 = vadd.s32 3, %v820_v16 }
 0x149   :  { %1727 = vsinq.f32 %v819_v61  ;;  %vm1616_vm12 = vcmp.lt.s32.totalorder %v1615_v14, 0 }
 0x14a   :  { %v906_v4 = vsel %vm1616_vm12, 0, %v1615_v14  ;;  %v825_v11 = vand.u32 3, %v824_v31 }
 0x14b   :  { %v907_v44 = vsub.s32 32, %v906_v4  ;;  %v911_v13 = vsub.s32 4294967266, %v906_v4  ;;  %v908_v29 = vshll.u32 %v899_v26, %v906_v4  ;;  %v951_v26 = vld [vmem:[%s2997_s1 + $0x20] sm:$0xff] }
 0x14c   :  { %vm830_vm10 = vcmp.eq.s32.totalorder %v825_v11, 2  ;;  %vm827_vm13 = vcmp.eq.s32.totalorder %v825_v11, 0  ;;  %vm826_vm15 = vcmp.lt.s32.totalorder %v825_v11, 2 }
 0x14d   :  { %v909_v56 = vshrl.u32 %v891_v51, %v907_v44  ;;  %v912_v6 = vadd.s32 127, %v911_v13 }
 0x14f   :  { %v910_v27 = vor.u32 %v909_v56, %v908_v29  ;;  %v913_v55 = vshll.u32 %v912_v6, 23 }
 0x151   :  { %v914_v19 = vor.u32 4788187, %v913_v55  ;;  %v917_v45 = vcvt.s32.f32 %v910_v27 }
 0x153   :  { %v915_v0 = vand.u32 2147483647, %v914_v19  ;;  %v3015_v19 = vlaneseq }
 0x155   :  { %v1726_v30 = vpop.eup %1725  ;;  %v918_v8 = vmul.f32 %v917_v45, %v915_v0 }
 0x156   :  { %v1728_v24 = vpop.eup %1727  ;;  %v831_v17 = vxor.u32 2147483648, %v1726_v30 }
 0x157   :  { %v828_v53 = vxor.u32 2147483648, %v1728_v24  ;;  %v919_v25 = vxor.u32 2147483648, %v918_v8 }
 0x158   :  { %v832_v35 = vsel %vm830_vm10, %v831_v17, %v1728_v24 }
 0x159   :  { %v829_v57 = vsel %vm827_vm13, %v1726_v30, %v828_v53  ;;  %v920_v34 = vsel %vm837_vm3, %v919_v25, %v918_v8  ;;  %v1496_v30 = vshrl.u32 %v3015_v19, 7 }
 0x15a   :  { %v833_v63 = vsel %vm826_vm15, %v829_v57, %v832_v35  ;;  %v923_v41 = vsel %vm836_vm4, %v1871_v1, %v920_v34  ;;  %v1493_v35 = vld [vmem:[%s2998_s6] sm:$0xf] }
 0x15b   :  { %v834_v37 = vsel %vm823_vm0, nan, %v833_v63  ;;  %1729 = vcosq.f32 %v923_v41  ;;  %v1497_v24 = vsub.s32 0, %v1496_v30  ;;  %v1505_v17 = vsub.s32 2, %v1496_v30 }
 0x15c   :  { %v945_v49 = vsel %vm106_vm7, %v834_v37, %v1873_v2  ;;  %1731 = vsinq.f32 %v923_v41  ;;  %v1501_v57 = vsub.s32 1, %v1496_v30  ;;  %v1509_v25 = vsub.s32 3, %v1496_v30 }
 0x15d   :  { %1625 = vmatmul.mubr.msk.f32.gmra.mxu0 %vm965_vm11, %v945_v49  ;;  %1635 = vmatmul.mubr.msk.f32.gmra.mxu1 %vm965_vm11, %v945_v49  ;;  %v2832_v37 = vrot.slane %v1493_v35, %v1497_v24  ;;  %v2834_v34 = vrot.slane %v1493_v35, %v1505_v17 }
 0x15e   :  { %1109 = vmatprep.mubr.f32.mxu0 %v1734_v12  ;;  %1222 = vmatprep.mubr.f32.mxu1 %v1734_v12  ;;  %v2836_v23 = vrot.slane %v1493_v35, %v1501_v57  ;;  %v2838_v54 = vrot.slane %v1493_v35, %v1509_v25 }
 0x168   :  { %v1730_v28 = vpop.eup %1729 }
 0x169   :  { %v1732_v42 = vpop.eup %1731  ;;  %v935_v2 = vxor.u32 2147483648, %v1730_v28 }
 0x16a   :  { %v932_v43 = vxor.u32 2147483648, %v1732_v42 }
 0x16b   :  { %v936_v21 = vsel %vm934_vm6, %v935_v2, %v1732_v42 }
 0x16c   :  { %v933_v20 = vsel %vm931_vm2, %v1730_v28, %v932_v43 }
 0x16d   :  { %v937_v58 = vsel %vm930_vm8, %v933_v20, %v936_v21 }
 0x16e   :  { %v938_v40 = vsel %vm927_vm5, nan, %v937_v58 }
 0x16f   :  { %v946_v32 = vsel %vm106_vm7, %v938_v40, %v1871_v1  ;;  %v948_v1 = vld [vmem:[%s2997_s1 + $0x8] sm:$0xff] }
 0x170   :  { %1626 = vmatmul.mubr.msk.f32.gmra.mxu0 %vm965_vm11, %v946_v32  ;;  %1636 = vmatmul.mubr.msk.f32.gmra.mxu1 %vm965_vm11, %v946_v32 }
 0x171   :  { %1331 = vmatprep.mubr.f32.mxu0 %v1734_v12  ;;  %1444 = vmatprep.mubr.f32.mxu1 %v1734_v12 }
 0x174   :  { %1639 = vmatmul.mubr.msk.f32.vlgmr.msra.gmra.mxu0 %vm1233_vm1, %v947_v39  ;;  %1649 = vmatmul.mubr.msk.f32.vlgmr.msra.gmra.mxu1 %vm1233_vm1, %v947_v39 }
 0x175   :  { %1337 = vmatprep.mubr.f32.mxu0 %v1734_v12  ;;  %1450 = vmatprep.mubr.f32.mxu1 %v1734_v12 }
 0x178   :  { %1640 = vmatmul.mubr.msk.f32.gmra.mxu0 %vm1233_vm1, %v948_v1  ;;  %1650 = vmatmul.mubr.msk.f32.gmra.mxu1 %vm1233_vm1, %v948_v1 }
 0x179   :  { %1343 = vmatprep.mubr.f32.mxu0 %v1734_v12  ;;  %1456 = vmatprep.mubr.f32.mxu1 %v1734_v12 }
 0x17c   :  { %1641 = vmatmul.mubr.msk.f32.gmra.mxu0 %vm1233_vm1, %v949_v9  ;;  %1651 = vmatmul.mubr.msk.f32.gmra.mxu1 %vm1233_vm1, %v949_v9 }
 0x17d   :  { %1349 = vmatprep.mubr.f32.mxu0 %v1734_v12  ;;  %1462 = vmatprep.mubr.f32.mxu1 %v1734_v12 }
 0x180   :  { %1642 = vmatmul.mubr.msk.f32.gmra.mxu0 %vm1233_vm1, %v950_v3  ;;  %1652 = vmatmul.mubr.msk.f32.gmra.mxu1 %vm1233_vm1, %v950_v3 }
 0x181   :  { %1355 = vmatprep.mubr.f32.mxu0 %v1734_v12  ;;  %1468 = vmatprep.mubr.f32.mxu1 %v1734_v12 }
 0x184   :  { %1643 = vmatmul.mubr.msk.f32.gmra.mxu0 %vm1233_vm1, %v951_v26  ;;  %1653 = vmatmul.mubr.msk.f32.gmra.mxu1 %vm1233_vm1, %v951_v26 }
 0x185   :  { %1361 = vmatprep.mubr.f32.mxu0 %v1734_v12  ;;  %1474 = vmatprep.mubr.f32.mxu1 %v1734_v12 }
 0x188   :  { %1644 = vmatmul.mubr.msk.f32.gmra.mxu0 %vm1233_vm1, %v952_v18  ;;  %1654 = vmatmul.mubr.msk.f32.gmra.mxu1 %vm1233_vm1, %v952_v18 }
 0x189   :  { %1367 = vmatprep.mubr.f32.mxu0 %v1734_v12  ;;  %1480 = vmatprep.mubr.f32.mxu1 %v1734_v12 }
 0x18c   :  { %1645 = vmatmul.mubr.msk.f32.gmra.mxu0 %vm1233_vm1, %v953_v52  ;;  %1655 = vmatmul.mubr.msk.f32.gmra.mxu1 %vm1233_vm1, %v953_v52 }
 0x18d   :  { %1373 = vmatprep.mubr.f32.mxu0 %v1734_v12  ;;  %1486 = vmatprep.mubr.f32.mxu1 %v1734_v12 }
 0x190   :  { %1646 = vmatmul.mubr.msk.f32.gmra.mxu0 %vm1233_vm1, %v954_v46  ;;  %1656 = vmatmul.mubr.msk.f32.gmra.mxu1 %vm1233_vm1, %v954_v46 }
 0x19d   :  { %v1069_v38 = vpop.f32.mrf.mxu0  ;;  %v1182_v15 = vpop.f32.mrf.mxu1 }
 0x19f   :  { %v1071_v59 = vpop.f32.mrf.mxu0  ;;  %v1184_v33 = vpop.f32.mrf.mxu1 }
 0x1ab   :  { %v1075_v36 = vpop.f32.mrf.mxu0  ;;  %v1188_v7 = vpop.f32.mrf.mxu1 }
 0x1ad   :  { %v1077_v22 = vpop.f32.mrf.mxu0  ;;  %v1190_v48 = vpop.f32.mrf.mxu1 }
 0x1c0   :  { %v2780_v47 = vpop.f32.mrf.mxu0  ;;  %v2782_v61 = vpop.f32.mrf.mxu1 }
 0x1c2   :  { %v2784_v12 = vpop.f32.mrf.mxu0  ;;  %v2786_v60 = vpop.f32.mrf.mxu1 }
 0x1d9   :  { %v2788_v50 = vpop.f32.mrf.mxu0  ;;  %v2790_v14 = vpop.f32.mrf.mxu1 }
 0x1db   :  { %v2792_v16 = vpop.f32.mrf.mxu0  ;;  %v2794_v4 = vpop.f32.mrf.mxu1 }
 0x1f1   :  { %v2796_v51 = vpop.f32.mrf.mxu0  ;;  %v2798_v44 = vpop.f32.mrf.mxu1 }
 0x1f3   :  { %v2800_v13 = vpop.f32.mrf.mxu0  ;;  %v2802_v31 = vpop.f32.mrf.mxu1 }
 0x207   :  { %v2804_v29 = vpop.f32.mrf.mxu0  ;;  %v2806_v56 = vpop.f32.mrf.mxu1 }
 0x209   :  { %v2808_v6 = vpop.f32.mrf.mxu0  ;;  %v2810_v27 = vpop.f32.mrf.mxu1 }
 0x21d   :  { %v2812_v55 = vpop.f32.mrf.mxu0  ;;  %v2814_v11 = vpop.f32.mrf.mxu1 }
 0x21f   :  { %v2817_v0 = vpop.f32.mrf.mxu0  ;;  %v2819_v45 = vpop.f32.mrf.mxu1 }
 0x230   :  { %v2821_v53 = vpop.f32.mrf.mxu0  ;;  %v2823_v8 = vpop.f32.mrf.mxu1 }
 0x232   :  { %v2828_v63 = vpop.f32.mrf.mxu0  ;;  %v2830_v5 = vpop.f32.mrf.mxu1 }
 0x234   :  { %v1333_v49 = vpop.f32.mrf.mxu0  ;;  %v1446_v41 = vpop.f32.mrf.mxu1 }
 0x235   :  { %v1334_v10 = vadd.f32 %v1333_v49, %v1069_v38  ;;  %v1447_v62 = vadd.f32 %v1446_v41, %v1182_v15 }
 0x236   :  { %v1335_v28 = vpop.f32.mrf.mxu0  ;;  %v1448_v42 = vpop.f32.mrf.mxu1 }
 0x237   :  { %v1515_v2 = vadd.f32 %v2832_v37, %v1334_v10  ;;  %v1517_v43 = vadd.f32 %v2834_v34, %v1447_v62  ;;  %v1336_v21 = vadd.f32 %v1335_v28, %v1071_v59  ;;  %v1449_v20 = vadd.f32 %v1448_v42, %v1184_v33 }
 0x238   :  { %v1339_v58 = vpop.f32.mrf.mxu0  ;;  %v1452_v40 = vpop.f32.mrf.mxu1 }
 0x239   :  { %1547 = vst [vmem:[%s2999_s7] sm:$0xff] %v1515_v2  ;;  %1549 = vst [vmem:[%s2999_s7 + $0x10] sm:$0xff] %v1517_v43  ;;  %v1516_v32 = vadd.f32 %v2836_v23, %v1336_v21  ;;  %v1518_v39 = vadd.f32 %v2838_v54, %v1449_v20  ;;  %v1340_v1 = vadd.f32 %v1339_v58, %v1075_v36 }
 0x23a   :  { %v1453_v9 = vadd.f32 %v1452_v40, %v1188_v7  ;;  %v1341_v3 = vpop.f32.mrf.mxu0  ;;  %v1454_v26 = vpop.f32.mrf.mxu1 }
 0x23b   :  { %1548 = vst [vmem:[%s2999_s7 + $0x8] sm:$0xff] %v1516_v32  ;;  %1550 = vst [vmem:[%s2999_s7 + $0x18] sm:$0xff] %v1518_v39  ;;  %v1519_v18 = vadd.f32 %v2832_v37, %v1340_v1  ;;  %v1342_v46 = vadd.f32 %v1341_v3, %v1077_v22  ;;  %v1455_v38 = vadd.f32 %v1454_v26, %v1190_v48 }
 0x23c   :  { %v1521_v52 = vadd.f32 %v2834_v34, %v1453_v9  ;;  %v1345_v15 = vpop.f32.mrf.mxu0  ;;  %v1458_v59 = vpop.f32.mrf.mxu1 }
 0x23d   :  { %1551 = vst [vmem:[%s2999_s7 + $0x20] sm:$0xff] %v1519_v18  ;;  %v1520_v33 = vadd.f32 %v2836_v23, %v1342_v46  ;;  %v1522_v36 = vadd.f32 %v2838_v54, %v1455_v38  ;;  %v1346_v7 = vadd.f32 %v1345_v15, %v2780_v47  ;;  %v1459_v19 = vadd.f32 %v1458_v59, %v2782_v61 }
 0x23e   :  { %1553 = vst [vmem:[%s2999_s7 + $0x30] sm:$0xff] %v1521_v52  ;;  %v1347_v22 = vpop.f32.mrf.mxu0  ;;  %v1460_v48 = vpop.f32.mrf.mxu1 }
 0x23f   :  { %1552 = vst [vmem:[%s2999_s7 + $0x28] sm:$0xff] %v1520_v33  ;;  %1554 = vst [vmem:[%s2999_s7 + $0x38] sm:$0xff] %v1522_v36  ;;  %v1523_v30 = vadd.f32 %v2832_v37, %v1346_v7  ;;  %v1525_v24 = vadd.f32 %v2834_v34, %v1459_v19  ;;  %v1348_v17 = vadd.f32 %v1347_v22, %v2784_v12 }
 0x240   :  { %v1461_v47 = vadd.f32 %v1460_v48, %v2786_v60  ;;  %v1351_v35 = vpop.f32.mrf.mxu0  ;;  %v1464_v61 = vpop.f32.mrf.mxu1 }
 0x241   :  { %1555 = vst [vmem:[%s2999_s7 + $0x40] sm:$0xff] %v1523_v30  ;;  %1557 = vst [vmem:[%s2999_s7 + $0x50] sm:$0xff] %v1525_v24  ;;  %v1524_v57 = vadd.f32 %v2836_v23, %v1348_v17  ;;  %v1352_v49 = vadd.f32 %v1351_v35, %v2788_v50  ;;  %v1465_v12 = vadd.f32 %v1464_v61, %v2790_v14 }
 0x242   :  { %v1526_v25 = vadd.f32 %v2838_v54, %v1461_v47  ;;  %v1353_v41 = vpop.f32.mrf.mxu0  ;;  %v1466_v60 = vpop.f32.mrf.mxu1 }
 0x243   :  { %1556 = vst [vmem:[%s2999_s7 + $0x48] sm:$0xff] %v1524_v57  ;;  %v1527_v10 = vadd.f32 %v2832_v37, %v1352_v49  ;;  %v1529_v62 = vadd.f32 %v2834_v34, %v1465_v12  ;;  %v1354_v28 = vadd.f32 %v1353_v41, %v2792_v16  ;;  %v1467_v50 = vadd.f32 %v1466_v60, %v2794_v4 }
 0x244   :  { %1558 = vst [vmem:[%s2999_s7 + $0x58] sm:$0xff] %v1526_v25  ;;  %v1357_v42 = vpop.f32.mrf.mxu0  ;;  %v1470_v14 = vpop.f32.mrf.mxu1 }
 0x245   :  { %1559 = vst [vmem:[%s2999_s7 + $0x60] sm:$0xff] %v1527_v10  ;;  %1561 = vst [vmem:[%s2999_s7 + $0x70] sm:$0xff] %v1529_v62  ;;  %v1528_v2 = vadd.f32 %v2836_v23, %v1354_v28  ;;  %v1530_v43 = vadd.f32 %v2838_v54, %v1467_v50  ;;  %v1358_v21 = vadd.f32 %v1357_v42, %v2796_v51 }
 0x246   :  { %v1471_v16 = vadd.f32 %v1470_v14, %v2798_v44  ;;  %v1359_v20 = vpop.f32.mrf.mxu0  ;;  %v1472_v4 = vpop.f32.mrf.mxu1 }
 0x247   :  { %1560 = vst [vmem:[%s2999_s7 + $0x68] sm:$0xff] %v1528_v2  ;;  %1562 = vst [vmem:[%s2999_s7 + $0x78] sm:$0xff] %v1530_v43  ;;  %v1531_v58 = vadd.f32 %v2832_v37, %v1358_v21  ;;  %v1360_v32 = vadd.f32 %v1359_v20, %v2800_v13  ;;  %v1473_v51 = vadd.f32 %v1472_v4, %v2802_v31 }
 0x248   :  { %v1533_v40 = vadd.f32 %v2834_v34, %v1471_v16  ;;  %v1363_v39 = vpop.f32.mrf.mxu0  ;;  %v1476_v44 = vpop.f32.mrf.mxu1 }
 0x249   :  { %1563 = vst [vmem:[%s2999_s7 + $0x80] sm:$0xff] %v1531_v58  ;;  %v1532_v1 = vadd.f32 %v2836_v23, %v1360_v32  ;;  %v1534_v9 = vadd.f32 %v2838_v54, %v1473_v51  ;;  %v1364_v3 = vadd.f32 %v1363_v39, %v2804_v29  ;;  %v1477_v13 = vadd.f32 %v1476_v44, %v2806_v56 }
 0x24a   :  { %1565 = vst [vmem:[%s2999_s7 + $0x90] sm:$0xff] %v1533_v40  ;;  %v1365_v26 = vpop.f32.mrf.mxu0  ;;  %v1478_v31 = vpop.f32.mrf.mxu1 }
 0x24b   :  { %1564 = vst [vmem:[%s2999_s7 + $0x88] sm:$0xff] %v1532_v1  ;;  %1566 = vst [vmem:[%s2999_s7 + $0x98] sm:$0xff] %v1534_v9  ;;  %v1535_v18 = vadd.f32 %v2832_v37, %v1364_v3  ;;  %v1537_v52 = vadd.f32 %v2834_v34, %v1477_v13  ;;  %v1366_v46 = vadd.f32 %v1365_v26, %v2808_v6 }
 0x24c   :  { %v1479_v29 = vadd.f32 %v1478_v31, %v2810_v27  ;;  %v1369_v38 = vpop.f32.mrf.mxu0  ;;  %v1482_v56 = vpop.f32.mrf.mxu1 }
 0x24d   :  { %1567 = vst [vmem:[%s2999_s7 + $0xa0] sm:$0xff] %v1535_v18  ;;  %1569 = vst [vmem:[%s2999_s7 + $0xb0] sm:$0xff] %v1537_v52  ;;  %v1536_v15 = vadd.f32 %v2836_v23, %v1366_v46  ;;  %v1370_v33 = vadd.f32 %v1369_v38, %v2812_v55  ;;  %v1483_v6 = vadd.f32 %v1482_v56, %v2814_v11 }
 0x24e   :  { %v1538_v59 = vadd.f32 %v2838_v54, %v1479_v29  ;;  %v1371_v36 = vpop.f32.mrf.mxu0  ;;  %v1484_v27 = vpop.f32.mrf.mxu1 }
 0x24f   :  { %1568 = vst [vmem:[%s2999_s7 + $0xa8] sm:$0xff] %v1536_v15  ;;  %v1539_v7 = vadd.f32 %v2832_v37, %v1370_v33  ;;  %v1541_v19 = vadd.f32 %v2834_v34, %v1483_v6  ;;  %v1372_v22 = vadd.f32 %v1371_v36, %v2817_v0  ;;  %v1485_v55 = vadd.f32 %v1484_v27, %v2819_v45 }
 0x250   :  { %1570 = vst [vmem:[%s2999_s7 + $0xb8] sm:$0xff] %v1538_v59  ;;  %v1375_v48 = vpop.f32.mrf.mxu0  ;;  %v1488_v11 = vpop.f32.mrf.mxu1 }
 0x251   :  { %1571 = vst [vmem:[%s2999_s7 + $0xc0] sm:$0xff] %v1539_v7  ;;  %1573 = vst [vmem:[%s2999_s7 + $0xd0] sm:$0xff] %v1541_v19  ;;  %v1540_v30 = vadd.f32 %v2836_v23, %v1372_v22  ;;  %v1542_v24 = vadd.f32 %v2838_v54, %v1485_v55  ;;  %v1376_v17 = vadd.f32 %v1375_v48, %v2821_v53 }
 0x252   :  { %v1489_v0 = vadd.f32 %v1488_v11, %v2823_v8  ;;  %v1377_v47 = vpop.f32.mrf.mxu0  ;;  %v1490_v45 = vpop.f32.mrf.mxu1 }
 0x253   :  { %1572 = vst [vmem:[%s2999_s7 + $0xc8] sm:$0xff] %v1540_v30  ;;  %1574 = vst [vmem:[%s2999_s7 + $0xd8] sm:$0xff] %v1542_v24  ;;  %v1543_v35 = vadd.f32 %v2832_v37, %v1376_v17  ;;  %v1378_v57 = vadd.f32 %v1377_v47, %v2828_v63  ;;  %v1491_v53 = vadd.f32 %v1490_v45, %v2830_v5 }
 0x254   :  { %v1545_v61 = vadd.f32 %v2834_v34, %v1489_v0 }
 0x255   :  { %1575 = vst [vmem:[%s2999_s7 + $0xe0] sm:$0xff] %v1543_v35  ;;  %v1544_v8 = vadd.f32 %v2836_v23, %v1378_v57  ;;  %v1546_v25 = vadd.f32 %v2838_v54, %v1491_v53 }
 0x256   :  { %1577 = vst [vmem:[%s2999_s7 + $0xf0] sm:$0xff] %v1545_v61 }
 0x257   :  { %1576 = vst [vmem:[%s2999_s7 + $0xe8] sm:$0xff] %v1544_v8  ;;  %1578 = vst [vmem:[%s2999_s7 + $0xf8] sm:$0xff] %v1546_v25 }

// kernel: event_lstm_forward.5
= control target key start
LH: loop header
LB: loop body
LE: loop exit
PB: predicated region body
PF: predicated region fallthrough
CT: control target
= control target key end

     0   :  { %vm183_vm0 = vcmask 1042432   ;;  %vm158_vm1 = vcmask 23552   ;;  %s1525_s2 = inlined_call_operand.vmem [shape: f32[128,128], index: 2, kind: input, shape index: {}]   ;;  %s1526_s3 = inlined_call_operand.vmem [shape: f32[3,128], index: 3, kind: input, shape index: {}]   ;;  %s1527_s1 = inlined_call_operand.vmem [shape: f32[64,3], index: 1, kind: input, shape index: {}]   ;;  %s1528_s0 = inlined_call_operand.vmem [shape: f32[64,128], index: 0, kind: input, shape index: {}]   ;;  %s1529_s6 = inlined_call_operand.vmem [shape: f32[128,128], index: 6, kind: input, shape index: {}]   ;;  %s1530_s5 = inlined_call_operand.vmem [shape: f32[128,128], index: 5, kind: input, shape index: {}]   ;;  %s1531_s4 = inlined_call_operand.vmem [shape: f32[1,128], index: 4, kind: input, shape index: {}]   ;;  %s1532_s7 = inlined_call_operand.vmem [shape: f32[1,128], index: 7, kind: input, shape index: {}]   ;;  %s1533_s8 = inlined_call_operand.vmem [shape: f32[64,128], index: 8, kind: output, shape index: {}]  }
   0x1   :  { %v156_v0 = vld [vmem:[%s1525_s2 + $0x78] sm:$0xff]  ;;  %v155_v1 = vld [vmem:[%s1525_s2 + $0x70] sm:$0xff]  ;;  %v154_v2 = vld [vmem:[%s1525_s2 + $0x68] sm:$0xff] }
   0x2   :  { %859 = vmatprep.subr.mxu1 %v156_v0  ;;  %v153_v3 = vld [vmem:[%s1525_s2 + $0x60] sm:$0xff]  ;;  %v152_v4 = vld [vmem:[%s1525_s2 + $0x58] sm:$0xff]  ;;  %v86_v7 = vld [vmem:[%s1527_s1 + $0x8] sm:$0xff] }
   0x3   :  { %860 = vmatpush3.msra.mxu1 %v156_v0  ;;  %v157_v5 = vld [vmem:[%s1526_s3] sm:$0x7]  ;;  %v87_v8 = vld [vmem:[%s1527_s1 + $0x10] sm:$0xff]  ;;  %v88_v9 = vld [vmem:[%s1527_s1 + $0x18] sm:$0xff]  ;;  %v738_v14 = vmul.f32 -1.442695, %v86_v7 }
   0x4   :  { %861 = vmatprep.subr.mxu1 %v155_v1  ;;  %v85_v6 = vld [vmem:[%s1527_s1] sm:$0xff]  ;;  %845 = vmatprep.subr.msk.mxu0 %vm183_vm0, %v157_v5  ;;  %v90_v12 = vld [vmem:[%s1527_s1 + $0x28] sm:$0xff]  ;;  %v91_v13 = vld [vmem:[%s1527_s1 + $0x30] sm:$0xff]  ;;  %v739_v17 = vmul.f32 -1.442695, %v87_v8 }
   0x5   :  { %862 = vmatpush3.msra.mxu1 %v155_v1  ;;  %v737_v10 = vmul.f32 -1.442695, %v85_v6  ;;  %846 = vmatpush3.msk.msra.mxu0 %vm183_vm0, %v157_v5  ;;  %v89_v11 = vld [vmem:[%s1527_s1 + $0x20] sm:$0xff]  ;;  %v151_v15 = vld [vmem:[%s1525_s2 + $0x50] sm:$0xff]  ;;  %v92_v16 = vld [vmem:[%s1527_s1 + $0x38] sm:$0xff] }
   0x6   :  { %863 = vmatprep.subr.mxu1 %v154_v2  ;;  %v740_v18 = vmul.f32 -1.442695, %v88_v9  ;;  %v741_v19 = vmul.f32 -1.442695, %v89_v11  ;;  %v742_v20 = vmul.f32 -1.442695, %v90_v12 }
   0x7   :  { %864 = vmatpush3.msra.mxu1 %v154_v2  ;;  %1023 = vpow2.f32 %v737_v10  ;;  %v1212_v21 = vld [vmem:[%s1528_s0] sm:$0xff]  ;;  %v150_v22 = vld [vmem:[%s1525_s2 + $0x48] sm:$0xff]  ;;  %v743_v23 = vmul.f32 -1.442695, %v91_v13  ;;  %v744_v25 = vmul.f32 -1.442695, %v92_v16 }
   0x8   :  { %865 = vmatprep.subr.mxu1 %v153_v3  ;;  %1025 = vpow2.f32 %v738_v14  ;;  %v1220_v24 = vld [vmem:[%s1528_s0 + $0x8] sm:$0xff]  ;;  %v1225_v26 = vld [vmem:[%s1528_s0 + $0x10] sm:$0xff]  ;;  %v149_v27 = vld [vmem:[%s1525_s2 + $0x40] sm:$0xff]  ;;  %v729_v28 = vmul.f32 -1.442695, %v1212_v21 }
   0x9   :  { %866 = vmatpush3.msra.mxu1 %v153_v3  ;;  %1027 = vpow2.f32 %v739_v17  ;;  %v1234_v29 = vld [vmem:[%s1528_s0 + $0x18] sm:$0xff]  ;;  %v730_v30 = vmul.f32 -1.442695, %v1220_v24  ;;  %v1240_v31 = vld [vmem:[%s1528_s0 + $0x20] sm:$0xff]  ;;  %v731_v33 = vmul.f32 -1.442695, %v1225_v26 }
   0xa   :  { %867 = vmatprep.subr.mxu1 %v152_v4  ;;  %1029 = vpow2.f32 %v740_v18  ;;  %v148_v32 = vld [vmem:[%s1525_s2 + $0x38] sm:$0xff]  ;;  %v1249_v34 = vld [vmem:[%s1528_s0 + $0x28] sm:$0xff]  ;;  %v732_v35 = vmul.f32 -1.442695, %v1234_v29  ;;  %v1255_v36 = vld [vmem:[%s1528_s0 + $0x30] sm:$0xff] }
   0xb   :  { %868 = vmatpush3.msra.mxu1 %v152_v4  ;;  %1031 = vpow2.f32 %v741_v19  ;;  %v147_v37 = vld [vmem:[%s1525_s2 + $0x30] sm:$0xff]  ;;  %v733_v38 = vmul.f32 -1.442695, %v1240_v31  ;;  %v1264_v39 = vld [vmem:[%s1528_s0 + $0x38] sm:$0xff]  ;;  %v734_v40 = vmul.f32 -1.442695, %v1249_v34 }
   0xc   :  { %869 = vmatprep.subr.mxu1 %v151_v15  ;;  %1033 = vpow2.f32 %v742_v20  ;;  %v146_v41 = vld [vmem:[%s1525_s2 + $0x28] sm:$0xff]  ;;  %v735_v42 = vmul.f32 -1.442695, %v1255_v36  ;;  %v736_v43 = vmul.f32 -1.442695, %v1264_v39  ;;  %v145_v44 = vld [vmem:[%s1525_s2 + $0x20] sm:$0xff] }
   0xd   :  { %870 = vmatpush3.msra.mxu1 %v151_v15  ;;  %1035 = vpow2.f32 %v743_v23  ;;  %v144_v47 = vld [vmem:[%s1525_s2 + $0x18] sm:$0xff]  ;;  %v143_v52 = vld [vmem:[%s1525_s2 + $0x10] sm:$0xff]  ;;  %v142_v57 = vld [vmem:[%s1525_s2 + $0x8] sm:$0xff] }
   0xe   :  { %871 = vmatprep.subr.mxu1 %v150_v22  ;;  %1037 = vpow2.f32 %v744_v25  ;;  %v141_v62 = vld [vmem:[%s1525_s2] sm:$0xff] }
   0xf   :  { %872 = vmatpush3.msra.mxu1 %v150_v22  ;;  %1039 = vpow2.f32 %v729_v28 }
  0x10   :  { %873 = vmatprep.subr.mxu1 %v149_v27  ;;  %1041 = vpow2.f32 %v730_v30 }
  0x11   :  { %874 = vmatpush3.msra.mxu1 %v149_v27  ;;  %1043 = vpow2.f32 %v731_v33 }
  0x12   :  { %875 = vmatprep.subr.mxu1 %v148_v32  ;;  %1045 = vpow2.f32 %v732_v35 }
  0x13   :  { %876 = vmatpush3.msra.mxu1 %v148_v32  ;;  %1047 = vpow2.f32 %v733_v38 }
  0x14   :  { %877 = vmatprep.subr.mxu1 %v147_v37  ;;  %v1024_v45 = vpop.eup %1023  ;;  %1049 = vpow2.f32 %v734_v40 }
  0x15   :  { %878 = vmatpush3.msra.mxu1 %v147_v37  ;;  %v1026_v46 = vpop.eup %1025  ;;  %v117_v48 = vadd.f32 1.0, %v1024_v45  ;;  %1051 = vpow2.f32 %v735_v42  ;;  %v490_v42 = vld [vmem:[%s1529_s6 + $0x70] sm:$0xff] }
  0x16   :  { %879 = vmatprep.subr.mxu1 %v146_v41  ;;  %v1028_v49 = vpop.eup %1027  ;;  %v118_v50 = vadd.f32 1.0, %v1026_v46  ;;  %1053 = vpow2.f32 %v736_v43  ;;  %v489_v43 = vld [vmem:[%s1529_s6 + $0x68] sm:$0xff]  ;;  %v486_v45 = vld [vmem:[%s1529_s6 + $0x50] sm:$0xff] }
  0x17   :  { %880 = vmatpush3.msra.mxu1 %v146_v41  ;;  %v1030_v51 = vpop.eup %1029  ;;  %v119_v53 = vadd.f32 1.0, %v1028_v49  ;;  %1055 = vrcp.f32 %v117_v48  ;;  %v491_v41 = vld [vmem:[%s1529_s6 + $0x78] sm:$0xff]  ;;  %v485_v46 = vld [vmem:[%s1529_s6 + $0x48] sm:$0xff] }
  0x18   :  { %881 = vmatprep.subr.mxu1 %v145_v44  ;;  %v1032_v54 = vpop.eup %1031  ;;  %v120_v55 = vadd.f32 1.0, %v1030_v51  ;;  %1057 = vrcp.f32 %v118_v50  ;;  %903 = vmatprep.subr.mxu0 %v491_v41  ;;  %v1323_v48 = vld [vmem:[%s1530_s5 + $0x78] sm:$0xff]  ;;  %v1333_v50 = vld [vmem:[%s1530_s5 + $0x70] sm:$0xff] }
  0x19   :  { %882 = vmatpush3.msra.mxu1 %v145_v44  ;;  %v1034_v56 = vpop.eup %1033  ;;  %v121_v58 = vadd.f32 1.0, %v1032_v54  ;;  %1059 = vrcp.f32 %v119_v53  ;;  %v487_v44 = vld [vmem:[%s1529_s6 + $0x58] sm:$0xff]  ;;  %v482_v51 = vld [vmem:[%s1529_s6 + $0x30] sm:$0xff]  ;;  %v481_v53 = vld [vmem:[%s1529_s6 + $0x28] sm:$0xff] }
  0x1a   :  { %883 = vmatprep.subr.mxu1 %v144_v47  ;;  %v1036_v59 = vpop.eup %1035  ;;  %v122_v60 = vadd.f32 1.0, %v1034_v56  ;;  %1061 = vrcp.f32 %v120_v55  ;;  %v483_v49 = vld [vmem:[%s1529_s6 + $0x38] sm:$0xff]  ;;  %v1353_v54 = vld [vmem:[%s1530_s5 + $0x60] sm:$0xff] }
  0x1b   :  { %884 = vmatpush3.msra.mxu1 %v144_v47  ;;  %v1038_v61 = vpop.eup %1037  ;;  %v123_v63 = vadd.f32 1.0, %v1036_v59  ;;  %1063 = vrcp.f32 %v121_v58  ;;  %v484_v47 = vld [vmem:[%s1529_s6 + $0x40] sm:$0xff]  ;;  %v1363_v56 = vld [vmem:[%s1530_s5 + $0x58] sm:$0xff]  ;;  %v1373_v58 = vld [vmem:[%s1530_s5 + $0x50] sm:$0xff] }
  0x1c   :  { %885 = vmatprep.subr.mxu1 %v143_v52  ;;  %v1040_v0 = vpop.eup %1039  ;;  %v124_v1 = vadd.f32 1.0, %v1038_v61  ;;  %1065 = vrcp.f32 %v122_v60  ;;  %v480_v55 = vld [vmem:[%s1529_s6 + $0x20] sm:$0xff]  ;;  %v478_v59 = vld [vmem:[%s1529_s6 + $0x10] sm:$0xff]  ;;  %v1383_v60 = vld [vmem:[%s1530_s5 + $0x48] sm:$0xff] }
  0x1d   :  { %886 = vmatpush3.msra.mxu1 %v143_v52  ;;  %v1042_v2 = vpop.eup %1041  ;;  %1067 = vrcp.f32 %v123_v63  ;;  %v61_v3 = vadd.f32 1.0, %v1040_v0  ;;  %v1343_v52 = vld [vmem:[%s1530_s5 + $0x68] sm:$0xff]  ;;  %v476_v63 = vld [vmem:[%s1529_s6] sm:$0xff]  ;;  %v1403_v0 = vld [vmem:[%s1530_s5 + $0x38] sm:$0xff] }
  0x1e   :  { %887 = vmatprep.subr.mxu1 %v142_v57  ;;  %v1044_v4 = vpop.eup %1043  ;;  %1069 = vrcp.f32 %v124_v1  ;;  %v62_v5 = vadd.f32 1.0, %v1042_v2  ;;  %v477_v61 = vld [vmem:[%s1529_s6 + $0x8] sm:$0xff]  ;;  %v1411_v1 = vld [vmem:[%s1530_s5 + $0x30] sm:$0xff] }
  0x1f   :  { %888 = vmatpush3.msra.mxu1 %v142_v57  ;;  %v1046_v6 = vpop.eup %1045  ;;  %1071 = vrcp.f32 %v61_v3  ;;  %v63_v7 = vadd.f32 1.0, %v1044_v4  ;;  %v479_v57 = vld [vmem:[%s1529_s6 + $0x18] sm:$0xff]  ;;  %v1418_v2 = vld [vmem:[%s1530_s5 + $0x28] sm:$0xff]  ;;  %v1425_v3 = vld [vmem:[%s1530_s5 + $0x20] sm:$0xff] }
  0x20   :  { %889 = vmatprep.subr.mxu1 %v141_v62  ;;  %v1048_v8 = vpop.eup %1047  ;;  %1073 = vrcp.f32 %v62_v5  ;;  %v64_v9 = vadd.f32 1.0, %v1046_v6  ;;  %v1432_v4 = vld [vmem:[%s1530_s5 + $0x18] sm:$0xff]  ;;  %v1439_v5 = vld [vmem:[%s1530_s5 + $0x10] sm:$0xff]  ;;  %v1446_v6 = vld [vmem:[%s1530_s5 + $0x8] sm:$0xff] }
  0x21   :  { %890 = vmatpush3.msra.mxu1 %v141_v62  ;;  %v1050_v10 = vpop.eup %1049  ;;  %1075 = vrcp.f32 %v63_v7  ;;  %v65_v11 = vadd.f32 1.0, %v1048_v8  ;;  %v1393_v62 = vld [vmem:[%s1530_s5 + $0x40] sm:$0xff] }
  0x22   :  { %v1052_v12 = vpop.eup %1051  ;;  %1077 = vrcp.f32 %v64_v9  ;;  %v66_v13 = vadd.f32 1.0, %v1050_v10  ;;  %991 = vmatprep.subr.mxu1 %v1323_v48  ;;  %v1453_v7 = vld [vmem:[%s1530_s5] sm:$0xff] }
  0x23   :  { %v1054_v14 = vpop.eup %1053  ;;  %1079 = vrcp.f32 %v65_v11  ;;  %v67_v15 = vadd.f32 1.0, %v1052_v12 }
  0x24   :  { %v1056_v16 = vpop.eup %1055  ;;  %1081 = vrcp.f32 %v66_v13  ;;  %v68_v19 = vadd.f32 1.0, %v1054_v14  ;;  %v754_v13 = vld [vmem:[%s1531_s4] ss:$0 sm:$0xff] }
  0x25   :  { %v1058_v17 = vpop.eup %1057  ;;  %847 = vmatprep.mubr.msk.f32.mxu0 %vm158_vm1, %v1056_v16  ;;  %1083 = vrcp.f32 %v67_v15 }
  0x26   :  { %v1060_v18 = vpop.eup %1059  ;;  %848 = vmatmul.mubr.msk.f32.vlgmr.msra.gmra.mxu0 %vm158_vm1, %v1058_v17  ;;  %1085 = vrcp.f32 %v68_v19 }
  0x27   :  { %v1062_v20 = vpop.eup %1061  ;;  %850 = vmatprep.mubr.msk.f32.mxu0 %vm158_vm1, %v1060_v18  ;;  %904 = vmatpush3.msra.mxu0 %v491_v41 }
  0x28   :  { %v1064_v22 = vpop.eup %1063  ;;  %905 = vmatprep.subr.mxu0 %v490_v42 }
  0x29   :  { %v1066_v23 = vpop.eup %1065  ;;  %906 = vmatpush3.msra.mxu0 %v490_v42 }
  0x2a   :  { %v1068_v25 = vpop.eup %1067  ;;  %851 = vmatmul.mubr.msk.f32.gmra.mxu0 %vm158_vm1, %v1062_v20  ;;  %907 = vmatprep.subr.mxu0 %v489_v43 }
  0x2b   :  { %v1070_v27 = vpop.eup %1069  ;;  %853 = vmatprep.mubr.msk.f32.mxu0 %vm158_vm1, %v1064_v22  ;;  %908 = vmatpush3.msra.mxu0 %v489_v43 }
  0x2c   :  { %v1072_v28 = vpop.eup %1071 }
  0x2d   :  { %v1074_v30 = vpop.eup %1073  ;;  %891 = vmatprep.mubr.f32.mxu1 %v1072_v28 }
  0x2e   :  { %v1076_v32 = vpop.eup %1075  ;;  %892 = vmatmul.mubr.f32.vlgmr.msra.gmra.mxu1 %v1074_v30  ;;  %854 = vmatmul.mubr.msk.f32.gmra.mxu0 %vm158_vm1, %v1066_v23 }
  0x2f   :  { %v1078_v33 = vpop.eup %1077  ;;  %894 = vmatprep.mubr.f32.mxu1 %v1076_v32  ;;  %856 = vmatprep.mubr.msk.f32.mxu0 %vm158_vm1, %v1068_v25 }
  0x30   :  { %v1080_v35 = vpop.eup %1079  ;;  %1007 = vmatpush3.msra.mxu1 %v1323_v48 }
  0x31   :  { %v1082_v37 = vpop.eup %1081  ;;  %992 = vmatprep.subr.mxu1 %v1333_v50 }
  0x32   :  { %895 = vmatmul.mubr.f32.gmra.mxu1 %v1078_v33  ;;  %857 = vmatmul.mubr.msk.f32.gmra.mxu0 %vm158_vm1, %v1070_v27  ;;  %v1084_v38 = vpop.eup %1083 }
  0x33   :  { %897 = vmatprep.mubr.f32.mxu1 %v1080_v35  ;;  %v1086_v40 = vpop.eup %1085  ;;  %1008 = vmatpush3.msra.mxu1 %v1333_v50 }
  0x34   :  { %993 = vmatprep.subr.mxu1 %v1343_v52 }
  0x35   :  { %1009 = vmatpush3.msra.mxu1 %v1343_v52 }
  0x36   :  { %898 = vmatmul.mubr.f32.gmra.mxu1 %v1082_v37  ;;  %994 = vmatprep.subr.mxu1 %v1353_v54 }
  0x37   :  { %900 = vmatprep.mubr.f32.mxu1 %v1084_v38  ;;  %1010 = vmatpush3.msra.mxu1 %v1353_v54 }
  0x38   :  { %995 = vmatprep.subr.mxu1 %v1363_v56 }
  0x39   :  { %1011 = vmatpush3.msra.mxu1 %v1363_v56 }
  0x3a   :  { %901 = vmatmul.mubr.f32.gmra.mxu1 %v1086_v40  ;;  %996 = vmatprep.subr.mxu1 %v1373_v58 }
  0x3b   :  { %982 = vmatprep.mubr.f32.mxu1 %v1225_v26  ;;  %v488_v26 = vld [vmem:[%s1529_s6 + $0x60] sm:$0xff]  ;;  %1012 = vmatpush3.msra.mxu1 %v1373_v58 }
  0x3c   :  { %909 = vmatprep.subr.mxu0 %v488_v26  ;;  %997 = vmatprep.subr.mxu1 %v1383_v60 }
  0x3d   :  { %910 = vmatpush3.msra.mxu0 %v488_v26  ;;  %1013 = vmatpush3.msra.mxu1 %v1383_v60 }
  0x3e   :  { %911 = vmatprep.subr.mxu0 %v487_v44  ;;  %998 = vmatprep.subr.mxu1 %v1393_v62 }
  0x3f   :  { %912 = vmatpush3.msra.mxu0 %v487_v44  ;;  %1014 = vmatpush3.msra.mxu1 %v1393_v62 }
  0x40   :  { %913 = vmatprep.subr.mxu0 %v486_v45  ;;  %999 = vmatprep.subr.mxu1 %v1403_v0 }
  0x41   :  { %914 = vmatpush3.msra.mxu0 %v486_v45  ;;  %1015 = vmatpush3.msra.mxu1 %v1403_v0 }
  0x42   :  { %915 = vmatprep.subr.mxu0 %v485_v46  ;;  %1000 = vmatprep.subr.mxu1 %v1411_v1 }
  0x43   :  { %916 = vmatpush3.msra.mxu0 %v485_v46  ;;  %1016 = vmatpush3.msra.mxu1 %v1411_v1 }
  0x44   :  { %917 = vmatprep.subr.mxu0 %v484_v47  ;;  %1001 = vmatprep.subr.mxu1 %v1418_v2 }
  0x45   :  { %918 = vmatpush3.msra.mxu0 %v484_v47  ;;  %1017 = vmatpush3.msra.mxu1 %v1418_v2 }
  0x46   :  { %919 = vmatprep.subr.mxu0 %v483_v49  ;;  %1002 = vmatprep.subr.mxu1 %v1425_v3 }
  0x47   :  { %920 = vmatpush3.msra.mxu0 %v483_v49  ;;  %1018 = vmatpush3.msra.mxu1 %v1425_v3 }
  0x48   :  { %921 = vmatprep.subr.mxu0 %v482_v51  ;;  %1003 = vmatprep.subr.mxu1 %v1432_v4 }
  0x49   :  { %922 = vmatpush3.msra.mxu0 %v482_v51  ;;  %1019 = vmatpush3.msra.mxu1 %v1432_v4 }
  0x4a   :  { %923 = vmatprep.subr.mxu0 %v481_v53  ;;  %1004 = vmatprep.subr.mxu1 %v1439_v5 }
  0x4b   :  { %924 = vmatpush3.msra.mxu0 %v481_v53  ;;  %1020 = vmatpush3.msra.mxu1 %v1439_v5 }
  0x4c   :  { %925 = vmatprep.subr.mxu0 %v480_v55  ;;  %1005 = vmatprep.subr.mxu1 %v1446_v6 }
  0x4d   :  { %926 = vmatpush3.msra.mxu0 %v480_v55  ;;  %1021 = vmatpush3.msra.mxu1 %v1446_v6 }
  0x4e   :  { %927 = vmatprep.subr.mxu0 %v479_v57  ;;  %1006 = vmatprep.subr.mxu1 %v1453_v7 }
  0x4f   :  { %928 = vmatpush3.msra.mxu0 %v479_v57  ;;  %1022 = vmatpush3.msra.mxu1 %v1453_v7 }
  0x50   :  { %929 = vmatprep.subr.mxu0 %v478_v59  ;;  %983 = vmatmul.mubr.f32.vlgmr.msra.gmra.mxu1 %v1234_v29 }
  0x51   :  { %930 = vmatpush3.msra.mxu0 %v478_v59  ;;  %985 = vmatprep.mubr.f32.mxu1 %v1240_v31 }
  0x52   :  { %931 = vmatprep.subr.mxu0 %v477_v61 }
  0x53   :  { %932 = vmatpush3.msra.mxu0 %v477_v61 }
  0x54   :  { %933 = vmatprep.subr.mxu0 %v476_v63  ;;  %986 = vmatmul.mubr.f32.gmra.mxu1 %v1249_v34 }
  0x55   :  { %934 = vmatpush3.msra.mxu0 %v476_v63  ;;  %988 = vmatprep.mubr.f32.mxu1 %v1255_v36 }
  0x56   :  { %947 = vmatprep.subr.mxu0 %v1323_v48 }
  0x58   :  { %989 = vmatmul.mubr.f32.gmra.mxu1 %v1264_v39 }
  0xe6   :  { %v849_v8 = vpop.f32.mrf.mxu0 }
  0xe8   :  { %v253_v9 = vpop.f32.mrf.mxu0 }
  0xea   :  { %v852_v10 = vpop.f32.mrf.mxu0 }
  0xec   :  { %v263_v11 = vpop.f32.mrf.mxu0 }
  0xee   :  { %v893_v12 = vpop.f32.mrf.mxu1  ;;  %v855_v14 = vpop.f32.mrf.mxu0 }
  0xef   :  { %v364_v15 = vadd.f32 %v893_v12, %v849_v8 }
  0xf0   :  { %v358_v29 = vpop.f32.mrf.mxu1  ;;  %v273_v34 = vpop.f32.mrf.mxu0 }
  0xf1   :  { %v405_v16 = vadd.f32 %v754_v13, %v364_v15  ;;  %v359_v31 = vadd.f32 %v358_v29, %v253_v9 }
  0xf2   :  { %v896_v17 = vpop.f32.mrf.mxu1  ;;  %v858_v27 = vpop.f32.mrf.mxu0 }
  0xf3   :  { %v756_v18 = vmul.f32 -1.442695, %v405_v16  ;;  %v404_v36 = vadd.f32 %v754_v13, %v359_v31  ;;  %v374_v19 = vadd.f32 %v896_v17, %v852_v10 }
  0xf4   :  { %v368_v39 = vpop.f32.mrf.mxu1  ;;  %v283_v41 = vpop.f32.mrf.mxu0 }
  0xf5   :  { %1087 = vpow2.f32 %v756_v18  ;;  %v755_v20 = vmul.f32 -1.442695, %v404_v36  ;;  %v407_v22 = vadd.f32 %v754_v13, %v374_v19  ;;  %v369_v23 = vadd.f32 %v368_v39, %v263_v11 }
  0xf6   :  { %v899_v25 = vpop.f32.mrf.mxu1 }
  0xf7   :  { %1089 = vpow2.f32 %v755_v20  ;;  %v758_v28 = vmul.f32 -1.442695, %v407_v22  ;;  %v406_v30 = vadd.f32 %v754_v13, %v369_v23  ;;  %v384_v32 = vadd.f32 %v899_v25, %v855_v14 }
  0xf8   :  { %v378_v33 = vpop.f32.mrf.mxu1 }
  0xf9   :  { %1091 = vpow2.f32 %v758_v28  ;;  %v757_v35 = vmul.f32 -1.442695, %v406_v30  ;;  %v409_v37 = vadd.f32 %v754_v13, %v384_v32  ;;  %v379_v38 = vadd.f32 %v378_v33, %v273_v34 }
  0xfa   :  { %v902_v40 = vpop.f32.mrf.mxu1 }
  0xfb   :  { %1093 = vpow2.f32 %v757_v35  ;;  %v760_v42 = vmul.f32 -1.442695, %v409_v37  ;;  %v408_v43 = vadd.f32 %v754_v13, %v379_v38  ;;  %v394_v26 = vadd.f32 %v902_v40, %v858_v27 }
  0xfc   :  { %v388_v44 = vpop.f32.mrf.mxu1 }
  0xfd   :  { %1095 = vpow2.f32 %v760_v42  ;;  %v759_v45 = vmul.f32 -1.442695, %v408_v43  ;;  %v411_v46 = vadd.f32 %v754_v13, %v394_v26  ;;  %v389_v47 = vadd.f32 %v388_v44, %v283_v41 }
  0xff   :  { %1097 = vpow2.f32 %v759_v45  ;;  %v762_v49 = vmul.f32 -1.442695, %v411_v46  ;;  %v410_v51 = vadd.f32 %v754_v13, %v389_v47 }
 0x101   :  { %1099 = vpow2.f32 %v762_v49  ;;  %v761_v53 = vmul.f32 -1.442695, %v410_v51 }
 0x102   :  { %v1088_v55 = vpop.eup %1087 }
 0x103   :  { %1101 = vpow2.f32 %v761_v53  ;;  %v437_v59 = vadd.f32 1.0, %v1088_v55 }
 0x104   :  { %v1090_v57 = vpop.eup %1089 }
 0x105   :  { %v436_v61 = vadd.f32 1.0, %v1090_v57 }
 0x106   :  { %v1092_v63 = vpop.eup %1091 }
 0x107   :  { %1103 = vrcp.f32 %v436_v61  ;;  %v439_v8 = vadd.f32 1.0, %v1092_v63 }
 0x108   :  { %v1094_v9 = vpop.eup %1093  ;;  %1105 = vrcp.f32 %v437_v59 }
 0x109   :  { %v438_v10 = vadd.f32 1.0, %v1094_v9  ;;  %1107 = vrcp.f32 %v439_v8 }
 0x10a   :  { %v1096_v11 = vpop.eup %1095 }
 0x10b   :  { %1109 = vrcp.f32 %v438_v10  ;;  %v441_v12 = vadd.f32 1.0, %v1096_v11 }
 0x10c   :  { %v1098_v14 = vpop.eup %1097 }
 0x10d   :  { %v440_v15 = vadd.f32 1.0, %v1098_v14  ;;  %1111 = vrcp.f32 %v441_v12 }
 0x10e   :  { %v1100_v13 = vpop.eup %1099 }
 0x10f   :  { %1113 = vrcp.f32 %v440_v15  ;;  %v443_v29 = vadd.f32 1.0, %v1100_v13 }
 0x110   :  { %v1102_v16 = vpop.eup %1101 }
 0x111   :  { %v442_v31 = vadd.f32 1.0, %v1102_v16  ;;  %1115 = vrcp.f32 %v443_v29 }
 0x113   :  { %1117 = vrcp.f32 %v442_v31 }
 0x114   :  { %v1104_v17 = vpop.eup %1103 }
 0x115   :  { %v1106_v34 = vpop.eup %1105  ;;  %935 = vmatprep.mubr.f32.mxu0 %v1104_v17 }
 0x116   :  { %936 = vmatmul.mubr.f32.vlgmr.msra.gmra.mxu0 %v1106_v34  ;;  %v1108_v18 = vpop.eup %1107 }
 0x117   :  { %948 = vmatpush3.msra.mxu0 %v1323_v48 }
 0x118   :  { %v1110_v36 = vpop.eup %1109  ;;  %949 = vmatprep.subr.mxu0 %v1333_v50 }
 0x119   :  { %950 = vmatpush3.msra.mxu0 %v1333_v50  ;;  %938 = vmatprep.mubr.f32.mxu0 %v1110_v36 }
 0x11a   :  { %951 = vmatprep.subr.mxu0 %v1343_v52  ;;  %939 = vmatmul.mubr.f32.gmra.mxu0 %v1108_v18  ;;  %v1112_v19 = vpop.eup %1111 }
 0x11b   :  { %952 = vmatpush3.msra.mxu0 %v1343_v52 }
 0x11c   :  { %v1114_v39 = vpop.eup %1113  ;;  %953 = vmatprep.subr.mxu0 %v1353_v54 }
 0x11d   :  { %954 = vmatpush3.msra.mxu0 %v1353_v54  ;;  %941 = vmatprep.mubr.f32.mxu0 %v1114_v39 }
 0x11e   :  { %955 = vmatprep.subr.mxu0 %v1363_v56  ;;  %942 = vmatmul.mubr.f32.gmra.mxu0 %v1112_v19  ;;  %v1116_v48 = vpop.eup %1115 }
 0x11f   :  { %956 = vmatpush3.msra.mxu0 %v1363_v56 }
 0x120   :  { %v1118_v50 = vpop.eup %1117  ;;  %957 = vmatprep.subr.mxu0 %v1373_v58 }
 0x121   :  { %958 = vmatpush3.msra.mxu0 %v1373_v58  ;;  %944 = vmatprep.mubr.f32.mxu0 %v1118_v50 }
 0x122   :  { %959 = vmatprep.subr.mxu0 %v1383_v60  ;;  %945 = vmatmul.mubr.f32.gmra.mxu0 %v1116_v48 }
 0x123   :  { %960 = vmatpush3.msra.mxu0 %v1383_v60  ;;  %979 = vmatprep.mubr.f32.mxu0 %v1212_v21  ;;  %v984_v21 = vpop.f32.mrf.mxu1 }
 0x124   :  { %961 = vmatprep.subr.mxu0 %v1393_v62 }
 0x125   :  { %962 = vmatpush3.msra.mxu0 %v1393_v62  ;;  %v673_v52 = vpop.f32.mrf.mxu1  ;;  %v763_v62 = vld [vmem:[%s1532_s7] ss:$0 sm:$0xff] }
 0x126   :  { %963 = vmatprep.subr.mxu0 %v1403_v0 }
 0x127   :  { %964 = vmatpush3.msra.mxu0 %v1403_v0  ;;  %v987_v56 = vpop.f32.mrf.mxu1 }
 0x128   :  { %965 = vmatprep.subr.mxu0 %v1411_v1 }
 0x129   :  { %966 = vmatpush3.msra.mxu0 %v1411_v1  ;;  %v683_v0 = vpop.f32.mrf.mxu1 }
 0x12a   :  { %967 = vmatprep.subr.mxu0 %v1418_v2 }
 0x12b   :  { %968 = vmatpush3.msra.mxu0 %v1418_v2 }
 0x12c   :  { %969 = vmatprep.subr.mxu0 %v1425_v3 }
 0x12d   :  { %970 = vmatpush3.msra.mxu0 %v1425_v3 }
 0x12e   :  { %971 = vmatprep.subr.mxu0 %v1432_v4 }
 0x12f   :  { %972 = vmatpush3.msra.mxu0 %v1432_v4 }
 0x130   :  { %973 = vmatprep.subr.mxu0 %v1439_v5 }
 0x131   :  { %974 = vmatpush3.msra.mxu0 %v1439_v5 }
 0x132   :  { %975 = vmatprep.subr.mxu0 %v1446_v6 }
 0x133   :  { %976 = vmatpush3.msra.mxu0 %v1446_v6  ;;  %v990_v6 = vpop.f32.mrf.mxu1 }
 0x134   :  { %977 = vmatprep.subr.mxu0 %v1453_v7 }
 0x135   :  { %978 = vmatpush3.msra.mxu0 %v1453_v7  ;;  %v693_v27 = vpop.f32.mrf.mxu1 }
 0x136   :  { %980 = vmatmul.mubr.f32.vlgmr.msra.gmra.mxu0 %v1220_v24 }
 0x1d6   :  { %v937_v54 = vpop.f32.mrf.mxu0 }
 0x1d8   :  { %v558_v58 = vpop.f32.mrf.mxu0 }
 0x1da   :  { %v940_v60 = vpop.f32.mrf.mxu0 }
 0x1db   :  { %v679_v1 = vadd.f32 %v984_v21, %v940_v60 }
 0x1dc   :  { %v568_v2 = vpop.f32.mrf.mxu0 }
 0x1dd   :  { %v712_v3 = vadd.f32 %v763_v62, %v679_v1  ;;  %v674_v4 = vadd.f32 %v673_v52, %v568_v2 }
 0x1de   :  { %v943_v5 = vpop.f32.mrf.mxu0 }
 0x1df   :  { %720 = vst [vmem:[%s1533_s8 + $0x18] sm:$0xff] %v712_v3  ;;  %v711_v24 = vadd.f32 %v763_v62, %v674_v4  ;;  %v689_v7 = vadd.f32 %v987_v56, %v943_v5 }
 0x1e0   :  { %v578_v20 = vpop.f32.mrf.mxu0 }
 0x1e1   :  { %719 = vst [vmem:[%s1533_s8 + $0x10] sm:$0xff] %v711_v24  ;;  %v714_v22 = vadd.f32 %v763_v62, %v689_v7  ;;  %v684_v23 = vadd.f32 %v683_v0, %v578_v20 }
 0x1e2   :  { %v946_v25 = vpop.f32.mrf.mxu0 }
 0x1e3   :  { %722 = vst [vmem:[%s1533_s8 + $0x28] sm:$0xff] %v714_v22  ;;  %v713_v28 = vadd.f32 %v763_v62, %v684_v23  ;;  %v699_v30 = vadd.f32 %v990_v6, %v946_v25 }
 0x1e4   :  { %v588_v32 = vpop.f32.mrf.mxu0 }
 0x1e5   :  { %721 = vst [vmem:[%s1533_s8 + $0x20] sm:$0xff] %v713_v28  ;;  %v716_v33 = vadd.f32 %v763_v62, %v699_v30  ;;  %v694_v35 = vadd.f32 %v693_v27, %v588_v32 }
 0x1e7   :  { %724 = vst [vmem:[%s1533_s8 + $0x38] sm:$0xff] %v716_v33  ;;  %v715_v37 = vadd.f32 %v763_v62, %v694_v35 }
 0x1e9   :  { %723 = vst [vmem:[%s1533_s8 + $0x30] sm:$0xff] %v715_v37 }
 0x1f6   :  { %v981_v38 = vpop.f32.mrf.mxu0 }
 0x1f7   :  { %v669_v40 = vadd.f32 %v981_v38, %v937_v54 }
 0x1f8   :  { %v663_v41 = vpop.f32.mrf.mxu0 }
 0x1f9   :  { %v710_v42 = vadd.f32 %v763_v62, %v669_v40  ;;  %v664_v43 = vadd.f32 %v663_v41, %v558_v58 }
 0x1fb   :  { %718 = vst [vmem:[%s1533_s8 + $0x8] sm:$0xff] %v710_v42  ;;  %v709_v26 = vadd.f32 %v763_v62, %v664_v43 }
 0x1fd   :  { %717 = vst [vmem:[%s1533_s8] sm:$0xff] %v709_v26 }

// kernel: event_lstm_forward.4
= control target key start
LH: loop header
LB: loop body
LE: loop exit
PB: predicated region body
PF: predicated region fallthrough
CT: control target
= control target key end

     0   :  { %10 = vsyncpa [#allocation5], 0  ;;  %s4065_s18 = smov [#allocation4]   ;;  %s6841_s0 = inlined_call_operand.vmem [shape: f32[8,8,512], index: 0, kind: input, shape index: {}]   ;;  %s6842_s1 = inlined_call_operand.vmem [shape: f32[8,8,1], index: 1, kind: input, shape index: {}]   ;;  %s6843_s2 = inlined_call_operand.vmem [shape: f32[2,128,512], index: 2, kind: input, shape index: {}]   ;;  %s6844_s3 = inlined_call_operand.hbm [shape: f32[1,128,512], index: 3, kind: input, shape index: {}]   ;;  %s6845_s4 = inlined_call_operand.vmem [shape: f32[1,1,512], index: 4, kind: input, shape index: {}]   ;;  %s6846_s5 = inlined_call_operand.vmem [shape: f32[8,8,128], index: 5, kind: output, shape index: {}]  }
   0x1   :  { %s22_s19 = sshll.u32 %s4065_s18, 4  ;;  %s23_s19 = int_to_ptr.vmem [resolvable:$true] %s22_s19 }
   0x2   :  { %s4051_s20 = scalar_lea.vmem %s23_s19, 8192  ;;  %p4056_p1 = scmp.lt.s32.totalorder %s23_s19, %s23_s19 }
   0x3   :  { %p4052_p0 = scmp.ne.s32.totalorder %s23_s19, %s4051_s20  ;;  %p4057_p2 = scmp.lt.s32.totalorder %s4051_s20, %s4051_s20 }
   0x5   :  { %p4058_p3 = por %p4057_p2, %p4056_p1 }
   0x7   :  { %p4059_p4 = pnand %p4058_p3, %p4052_p0 }
   0x9   :  { %4062 = shalt.err (!%p4059_p4)
}
   0xa   :  { %s4066_s21 = smov 512   ;;  %s4067_s22 = smov 32  }
   0xb   :  { %28 = dma.hbm_to_vmem [thread:$0]  %s6844_s3, 8192, %s23_s19, [#allocation5], %s4066_s21, %s4066_s21, %s4067_s22  }
   0xc   :  { %4063 = dma.done.wait [#allocation5], 8192  }
   0xd   :  { %4064 = vsyncadd [#allocation5], 4294959104  ;;  %v6851_v0 = vmov 0.0   ;;  %v4069_v1 = vmov 0   ;;  %v4108_v2 = vld [vmem:[%s6843_s2 + $0x1e8] sm:$0xff]  ;;  %v4113_v3 = vld [vmem:[%s6843_s2 + $0x1e0] sm:$0xff] }
   0xe   :  { %166 = vmatprep.mubr.f32.mxu0 %v6851_v0  ;;  %237 = vmatprep.mubr.f32.mxu1 %v6851_v0  ;;  %7033 = vst [vmem:[#allocation7_spill] sm:$0xff] %v4108_v2  ;;  %v4118_v4 = vld [vmem:[%s6843_s2 + $0x1c8] sm:$0xff]  ;;  %v4124_v5 = vld [vmem:[%s6843_s2 + $0x1c0] sm:$0xff]  ;;  %v4153_v10 = vld [vmem:[%s6843_s2 + $0x1f8] sm:$0xff] }
   0xf   :  { %3657 = vset.pattern.permute.xlu0 %v4069_v1  ;;  %3658 = vset.pattern.permute.xlu1 %v4069_v1  ;;  %v4130_v6 = vld [vmem:[%s6843_s2 + $0x1a8] sm:$0xff]  ;;  %v4136_v7 = vld [vmem:[%s6843_s2 + $0x1a0] sm:$0xff]  ;;  %7034 = vst [vmem:[#allocation8_spill] sm:$0xff] %v4153_v10  ;;  %v4165_v12 = vld [vmem:[%s6843_s2 + $0x1f0] sm:$0xff] }
  0x10   :  { %102 = vmatprep.subr.mxu0 %v4108_v2  ;;  %v4142_v8 = vld [vmem:[%s6843_s2 + $0x188] sm:$0xff]  ;;  %v4148_v9 = vld [vmem:[%s6843_s2 + $0x180] sm:$0xff]  ;;  %173 = vmatprep.subr.mxu1 %v4153_v10  ;;  %v4177_v14 = vld [vmem:[%s6843_s2 + $0x1d8] sm:$0xff] }
  0x11   :  { %103 = vmatpush1.msra.mxu0 %v4113_v3  ;;  %v4159_v11 = vld [vmem:[%s6843_s2 + $0x168] sm:$0xff]  ;;  %v4171_v13 = vld [vmem:[%s6843_s2 + $0x160] sm:$0xff]  ;;  %174 = vmatpush1.msra.mxu1 %v4165_v12  ;;  %v4182_v15 = vld [vmem:[%s6843_s2 + $0x1d0] sm:$0xff] }
  0x12   :  { %104 = vmatprep.subr.mxu0 %v4118_v4  ;;  %v4188_v16 = vld [vmem:[%s6843_s2 + $0x148] sm:$0xff]  ;;  %175 = vmatprep.subr.mxu1 %v4177_v14  ;;  %v4194_v17 = vld [vmem:[%s6843_s2 + $0x1b8] sm:$0xff]  ;;  %v4200_v18 = vld [vmem:[%s6843_s2 + $0x140] sm:$0xff] }
  0x13   :  { %105 = vmatpush1.msra.mxu0 %v4124_v5  ;;  %176 = vmatpush1.msra.mxu1 %v4182_v15  ;;  %v4206_v19 = vld [vmem:[%s6843_s2 + $0x1b0] sm:$0xff]  ;;  %v4211_v20 = vld [vmem:[%s6843_s2 + $0x198] sm:$0xff]  ;;  %v4217_v21 = vld [vmem:[%s6843_s2 + $0x128] sm:$0xff] }
  0x14   :  { %106 = vmatprep.subr.mxu0 %v4130_v6  ;;  %177 = vmatprep.subr.mxu1 %v4194_v17  ;;  %v4223_v22 = vld [vmem:[%s6843_s2 + $0x190] sm:$0xff]  ;;  %v4229_v23 = vld [vmem:[%s6843_s2 + $0x120] sm:$0xff]  ;;  %v4235_v24 = vld [vmem:[%s6843_s2 + $0x178] sm:$0xff] }
  0x15   :  { %107 = vmatpush1.msra.mxu0 %v4136_v7  ;;  %178 = vmatpush1.msra.mxu1 %v4206_v19  ;;  %v4241_v25 = vld [vmem:[%s6843_s2 + $0x108] sm:$0xff]  ;;  %v4247_v26 = vld [vmem:[%s6843_s2 + $0x170] sm:$0xff]  ;;  %v4253_v27 = vld [vmem:[%s6843_s2 + $0x100] sm:$0xff] }
  0x16   :  { %108 = vmatprep.subr.mxu0 %v4142_v8  ;;  %179 = vmatprep.subr.mxu1 %v4211_v20  ;;  %v4259_v28 = vld [vmem:[%s6843_s2 + $0x158] sm:$0xff]  ;;  %v4265_v29 = vld [vmem:[%s6843_s2 + $0xe8] sm:$0xff]  ;;  %v4271_v30 = vld [vmem:[%s6843_s2 + $0x150] sm:$0xff] }
  0x17   :  { %109 = vmatpush1.msra.mxu0 %v4148_v9  ;;  %180 = vmatpush1.msra.mxu1 %v4223_v22  ;;  %v4277_v31 = vld [vmem:[%s6843_s2 + $0xe0] sm:$0xff]  ;;  %v4283_v32 = vld [vmem:[%s6843_s2 + $0x138] sm:$0xff]  ;;  %v4289_v33 = vld [vmem:[%s6843_s2 + $0xc8] sm:$0xff] }
  0x18   :  { %110 = vmatprep.subr.mxu0 %v4159_v11  ;;  %181 = vmatprep.subr.mxu1 %v4235_v24  ;;  %v4295_v34 = vld [vmem:[%s6843_s2 + $0x130] sm:$0xff]  ;;  %v4301_v35 = vld [vmem:[%s6843_s2 + $0xc0] sm:$0xff]  ;;  %v4307_v36 = vld [vmem:[%s6843_s2 + $0x118] sm:$0xff] }
  0x19   :  { %111 = vmatpush1.msra.mxu0 %v4171_v13  ;;  %182 = vmatpush1.msra.mxu1 %v4247_v26  ;;  %v4313_v37 = vld [vmem:[%s6843_s2 + $0xa8] sm:$0xff]  ;;  %v4319_v38 = vld [vmem:[%s6843_s2 + $0x110] sm:$0xff]  ;;  %v4325_v39 = vld [vmem:[%s6843_s2 + $0xa0] sm:$0xff] }
  0x1a   :  { %112 = vmatprep.subr.mxu0 %v4188_v16  ;;  %183 = vmatprep.subr.mxu1 %v4259_v28  ;;  %v4331_v40 = vld [vmem:[%s6843_s2 + $0xf8] sm:$0xff]  ;;  %v4337_v41 = vld [vmem:[%s6843_s2 + $0x88] sm:$0xff]  ;;  %v4343_v42 = vld [vmem:[%s6843_s2 + $0xf0] sm:$0xff] }
  0x1b   :  { %113 = vmatpush1.msra.mxu0 %v4200_v18  ;;  %184 = vmatpush1.msra.mxu1 %v4271_v30  ;;  %v4349_v43 = vld [vmem:[%s6843_s2 + $0x80] sm:$0xff]  ;;  %v4355_v44 = vld [vmem:[%s6843_s2 + $0xd8] sm:$0xff]  ;;  %v4361_v45 = vld [vmem:[%s6843_s2 + $0x68] sm:$0xff] }
  0x1c   :  { %114 = vmatprep.subr.mxu0 %v4217_v21  ;;  %185 = vmatprep.subr.mxu1 %v4283_v32  ;;  %7035 = vst [vmem:[#allocation9_spill] sm:$0xff] %v4361_v45  ;;  %v4367_v46 = vld [vmem:[%s6843_s2 + $0xd0] sm:$0xff]  ;;  %v4373_v47 = vld [vmem:[%s6843_s2 + $0x60] sm:$0xff]  ;;  %v4379_v48 = vld [vmem:[%s6843_s2 + $0xb8] sm:$0xff] }
  0x1d   :  { %115 = vmatpush1.msra.mxu0 %v4229_v23  ;;  %186 = vmatpush1.msra.mxu1 %v4295_v34  ;;  %7036 = vst [vmem:[#allocation10_spill] sm:$0xff] %v4373_v47  ;;  %v4385_v49 = vld [vmem:[%s6843_s2 + $0x48] sm:$0xff]  ;;  %v4391_v50 = vld [vmem:[%s6843_s2 + $0xb0] sm:$0xff]  ;;  %v4397_v51 = vld [vmem:[%s6843_s2 + $0x40] sm:$0xff] }
  0x1e   :  { %116 = vmatprep.subr.mxu0 %v4241_v25  ;;  %187 = vmatprep.subr.mxu1 %v4307_v36  ;;  %7037 = vst [vmem:[#allocation11_spill] sm:$0xff] %v4385_v49  ;;  %7038 = vst [vmem:[#allocation12_spill] sm:$0xff] %v4397_v51  ;;  %v4403_v52 = vld [vmem:[%s6843_s2 + $0x98] sm:$0xff]  ;;  %v4409_v53 = vld [vmem:[%s6843_s2 + $0x28] sm:$0xff] }
  0x1f   :  { %117 = vmatpush1.msra.mxu0 %v4253_v27  ;;  %188 = vmatpush1.msra.mxu1 %v4319_v38  ;;  %7039 = vst [vmem:[#allocation13_spill] sm:$0xff] %v4409_v53  ;;  %v4415_v54 = vld [vmem:[%s6843_s2 + $0x90] sm:$0xff]  ;;  %v4421_v55 = vld [vmem:[%s6843_s2 + $0x20] sm:$0xff]  ;;  %v4427_v56 = vld [vmem:[%s6843_s2 + $0x78] sm:$0xff] }
  0x20   :  { %118 = vmatprep.subr.mxu0 %v4265_v29  ;;  %189 = vmatprep.subr.mxu1 %v4331_v40  ;;  %7040 = vst [vmem:[#allocation14_spill] sm:$0xff] %v4415_v54  ;;  %7041 = vst [vmem:[#allocation15_spill] sm:$0xff] %v4421_v55  ;;  %v4433_v57 = vld [vmem:[%s6843_s2 + $0x8] sm:$0xff]  ;;  %v4439_v58 = vld [vmem:[%s6843_s2 + $0x70] sm:$0xff] }
  0x21   :  { %119 = vmatpush1.msra.mxu0 %v4277_v31  ;;  %190 = vmatpush1.msra.mxu1 %v4343_v42  ;;  %7042 = vst [vmem:[#allocation16_spill] sm:$0xff] %v4427_v56  ;;  %7043 = vst [vmem:[#allocation17_spill] sm:$0xff] %v4433_v57  ;;  %v4445_v59 = vld [vmem:[%s6843_s2] sm:$0xff]  ;;  %v4451_v60 = vld [vmem:[%s6843_s2 + $0x58] sm:$0xff] }
  0x22   :  { %120 = vmatprep.subr.mxu0 %v4289_v33  ;;  %191 = vmatprep.subr.mxu1 %v4355_v44  ;;  %7044 = vst [vmem:[#allocation18_spill] sm:$0xff] %v4439_v58  ;;  %7045 = vst [vmem:[#allocation19_spill] sm:$0xff] %v4445_v59  ;;  %v4458_v61 = vld [vmem:[%s6843_s2 + $0x50] sm:$0xff]  ;;  %v4465_v62 = vld [vmem:[%s6843_s2 + $0x38] sm:$0xff] }
  0x23   :  { %121 = vmatpush1.msra.mxu0 %v4301_v35  ;;  %192 = vmatpush1.msra.mxu1 %v4367_v46  ;;  %7046 = vst [vmem:[#allocation20_spill] sm:$0xff] %v4451_v60  ;;  %7047 = vst [vmem:[#allocation21_spill] sm:$0xff] %v4458_v61  ;;  %v272_v63 = vld [vmem:[%s6842_s1] sm:$0xff]  ;;  %v4475_v1 = vld [vmem:[%s6843_s2 + $0x30] sm:$0xff] }
  0x24   :  { %122 = vmatprep.subr.mxu0 %v4313_v37  ;;  %193 = vmatprep.subr.mxu1 %v4379_v48  ;;  %7048 = vst [vmem:[#allocation22_spill] sm:$0xff] %v4465_v62  ;;  %7049 = vst [vmem:[#allocation23_spill] sm:$0xff] %v4475_v1 }
  0x25   :  { %123 = vmatpush1.msra.mxu0 %v4325_v39  ;;  %194 = vmatpush1.msra.mxu1 %v4391_v50 }
  0x26   :  { %124 = vmatprep.subr.mxu0 %v4337_v41  ;;  %195 = vmatprep.subr.mxu1 %v4403_v52 }
  0x27   :  { %125 = vmatpush1.msra.mxu0 %v4349_v43  ;;  %196 = vmatpush1.msra.mxu1 %v4415_v54 }
  0x28   :  { %126 = vmatprep.subr.mxu0 %v4361_v45  ;;  %197 = vmatprep.subr.mxu1 %v4427_v56 }
  0x29   :  { %127 = vmatpush1.msra.mxu0 %v4373_v47  ;;  %198 = vmatpush1.msra.mxu1 %v4439_v58 }
  0x2a   :  { %128 = vmatprep.subr.mxu0 %v4385_v49  ;;  %199 = vmatprep.subr.mxu1 %v4451_v60 }
  0x2b   :  { %129 = vmatpush1.msra.mxu0 %v4397_v51  ;;  %200 = vmatpush1.msra.mxu1 %v4458_v61 }
  0x2c   :  { %130 = vmatprep.subr.mxu0 %v4409_v53  ;;  %201 = vmatprep.subr.mxu1 %v4465_v62 }
  0x2d   :  { %131 = vmatpush1.msra.mxu0 %v4421_v55  ;;  %275 = vperm.xlu0 %3657, %v272_v63   ;;  %v7052_v63 = vld [vmem:[#allocation17_spill] sm:$0xff] }
  0x2e   :  { %132 = vmatprep.subr.mxu0 %v4433_v57  ;;  %v4482_v57 = vld [vmem:[%s6843_s2 + $0x18] sm:$0xff]  ;;  %202 = vmatpush1.msra.mxu1 %v4475_v1 }
  0x2f   :  { %133 = vmatpush1.msra.mxu0 %v4445_v59  ;;  %7050 = vst [vmem:[#allocation24_spill] sm:$0xff] %v4482_v57  ;;  %v4488_v59 = vld [vmem:[%s6843_s2 + $0x10] sm:$0xff]  ;;  %203 = vmatprep.subr.mxu1 %v4482_v57 }
  0x30   :  { %167 = vmatmul.mubr.f32.vlgmr.msra.gmra.mxu0 %v6851_v0  ;;  %7051 = vst [vmem:[#allocation25_spill] sm:$0xff] %v4488_v59  ;;  %285 = vmatprep.subr.mxu0 %v4108_v2 }
  0x31   :  { %286 = vmatpush1.msra.mxu0 %v4113_v3  ;;  %204 = vmatpush1.msra.mxu1 %v4488_v59 }
  0x32   :  { %287 = vmatprep.subr.mxu0 %v4118_v4  ;;  %238 = vmatmul.mubr.f32.vlgmr.msra.gmra.mxu1 %v6851_v0  ;;  %v7053_v0 = vld [vmem:[#allocation19_spill] sm:$0xff] }
  0x33   :  { %356 = vmatprep.subr.mxu1 %v4153_v10  ;;  %288 = vmatpush1.msra.mxu0 %v4124_v5 }
  0x34   :  { %357 = vmatpush1.msra.mxu1 %v4165_v12  ;;  %289 = vmatprep.subr.mxu0 %v4130_v6 }
  0x35   :  { %358 = vmatprep.subr.mxu1 %v4177_v14  ;;  %290 = vmatpush1.msra.mxu0 %v4136_v7 }
  0x36   :  { %359 = vmatpush1.msra.mxu1 %v4182_v15  ;;  %291 = vmatprep.subr.mxu0 %v4142_v8 }
  0x37   :  { %360 = vmatprep.subr.mxu1 %v4194_v17  ;;  %292 = vmatpush1.msra.mxu0 %v4148_v9 }
  0x38   :  { %361 = vmatpush1.msra.mxu1 %v4206_v19  ;;  %293 = vmatprep.subr.mxu0 %v4159_v11 }
  0x39   :  { %362 = vmatprep.subr.mxu1 %v4211_v20  ;;  %294 = vmatpush1.msra.mxu0 %v4171_v13 }
  0x3a   :  { %363 = vmatpush1.msra.mxu1 %v4223_v22  ;;  %295 = vmatprep.subr.mxu0 %v4188_v16 }
  0x3b   :  { %364 = vmatprep.subr.mxu1 %v4235_v24  ;;  %296 = vmatpush1.msra.mxu0 %v4200_v18 }
  0x3c   :  { %365 = vmatpush1.msra.mxu1 %v4247_v26  ;;  %297 = vmatprep.subr.mxu0 %v4217_v21 }
  0x3d   :  { %366 = vmatprep.subr.mxu1 %v4259_v28  ;;  %298 = vmatpush1.msra.mxu0 %v4229_v23 }
  0x3e   :  { %367 = vmatpush1.msra.mxu1 %v4271_v30  ;;  %299 = vmatprep.subr.mxu0 %v4241_v25 }
  0x3f   :  { %368 = vmatprep.subr.mxu1 %v4283_v32  ;;  %300 = vmatpush1.msra.mxu0 %v4253_v27 }
  0x40   :  { %369 = vmatpush1.msra.mxu1 %v4295_v34  ;;  %301 = vmatprep.subr.mxu0 %v4265_v29 }
  0x41   :  { %370 = vmatprep.subr.mxu1 %v4307_v36  ;;  %302 = vmatpush1.msra.mxu0 %v4277_v31 }
  0x42   :  { %371 = vmatpush1.msra.mxu1 %v4319_v38  ;;  %303 = vmatprep.subr.mxu0 %v4289_v33 }
  0x43   :  { %372 = vmatprep.subr.mxu1 %v4331_v40  ;;  %304 = vmatpush1.msra.mxu0 %v4301_v35 }
  0x44   :  { %373 = vmatpush1.msra.mxu1 %v4343_v42  ;;  %305 = vmatprep.subr.mxu0 %v4313_v37 }
  0x45   :  { %374 = vmatprep.subr.mxu1 %v4355_v44  ;;  %306 = vmatpush1.msra.mxu0 %v4325_v39 }
  0x46   :  { %375 = vmatpush1.msra.mxu1 %v4367_v46  ;;  %307 = vmatprep.subr.mxu0 %v4337_v41 }
  0x47   :  { %376 = vmatprep.subr.mxu1 %v4379_v48  ;;  %308 = vmatpush1.msra.mxu0 %v4349_v43 }
  0x48   :  { %377 = vmatpush1.msra.mxu1 %v4391_v50  ;;  %309 = vmatprep.subr.mxu0 %v4361_v45 }
  0x49   :  { %378 = vmatprep.subr.mxu1 %v4403_v52  ;;  %310 = vmatpush1.msra.mxu0 %v4373_v47 }
  0x4a   :  { %379 = vmatpush1.msra.mxu1 %v4415_v54  ;;  %311 = vmatprep.subr.mxu0 %v4385_v49  ;;  %v7054_v49 = vmov 0.0  }
  0x4b   :  { %380 = vmatprep.subr.mxu1 %v4427_v56  ;;  %312 = vmatpush1.msra.mxu0 %v4397_v51 }
  0x4c   :  { %381 = vmatpush1.msra.mxu1 %v4439_v58  ;;  %313 = vmatprep.subr.mxu0 %v4409_v53 }
  0x4d   :  { %382 = vmatprep.subr.mxu1 %v4451_v60  ;;  %314 = vmatpush1.msra.mxu0 %v4421_v55 }
  0x4e   :  { %383 = vmatpush1.msra.mxu1 %v4458_v61  ;;  %315 = vmatprep.subr.mxu0 %v7052_v63  ;;  %v3501_v63 = vld [vmem:[%s6842_s1 + $0x8] sm:$0xff]  ;;  %v100_v61 = vld [vmem:[%s6841_s0 + $0x10] sm:$0xff] }
  0x4f   :  { %384 = vmatprep.subr.mxu1 %v4465_v62  ;;  %316 = vmatpush1.msra.mxu0 %v7053_v0  ;;  %v98_v0 = vld [vmem:[%s6841_s0] sm:$0xff] }
  0x50   :  { %385 = vmatpush1.msra.mxu1 %v4475_v1  ;;  %349 = vmatprep.mubr.f32.mxu0 %v7054_v49 }
  0x51   :  { %386 = vmatprep.subr.mxu1 %v4482_v57  ;;  %420 = vmatprep.mubr.f32.mxu1 %v7054_v49 }
  0x52   :  { %387 = vmatpush1.msra.mxu1 %v4488_v59  ;;  %470 = vmatprep.subr.mxu0 %v4108_v2  ;;  %v99_v59 = vld [vmem:[%s6841_s0 + $0x8] sm:$0xff] }
  0x53   :  { %541 = vmatprep.subr.mxu1 %v4153_v10  ;;  %459 = vperm.xlu0 %3657, %v3501_v63   ;;  %v101_v63 = vld [vmem:[%s6841_s0 + $0x18] sm:$0xff] }
  0xf0   :  { %v168_v57 = vpop.f32.mrf.mxu0 }
  0xf1   :  { %v244_v1 = vadd.f32 %v168_v57, %v98_v0 }
  0xf2   :  { %v170_v49 = vpop.f32.mrf.mxu0  ;;  %v239_v62 = vpop.f32.mrf.mxu1 }
  0xf3   :  { %v3491_v55 = vmul.f32 -1.442695, %v244_v1  ;;  %v245_v2 = vadd.f32 %v170_v49, %v99_v59  ;;  %v246_v60 = vadd.f32 %v239_v62, %v100_v61  ;;  %v7060_v61 = vld [vmem:[#allocation18_spill] sm:$0xff]  ;;  %v7061_v62 = vld [vmem:[#allocation11_spill] sm:$0xff] }
  0xf4   :  { %v241_v53 = vpop.f32.mrf.mxu1 }
  0xf5   :  { %3659 = vpow2.f32 %v3491_v55  ;;  %v3492_v10 = vmul.f32 -1.442695, %v245_v2  ;;  %v247_v51 = vadd.f32 %v241_v53, %v101_v63  ;;  %v7062_v63 = vld [vmem:[#allocation20_spill] sm:$0xff] }
  0xf7   :  { %3661 = vpow2.f32 %v3492_v10  ;;  %v3493_v58 = vmul.f32 -1.442695, %v247_v51 }
  0xf8   :  { %3663 = vtanh.f32 %v246_v60 }
  0xf9   :  { %3665 = vpow2.f32 %v3493_v58  ;;  %v7059_v58 = vld [vmem:[#allocation10_spill] sm:$0xff] }
 0x102   :  { %v3660_v0 = vpop.eup %3659 }
 0x103   :  { %v251_v57 = vadd.f32 1.0, %v3660_v0  ;;  %v7063_v0 = vld [vmem:[#allocation12_spill] sm:$0xff] }
 0x104   :  { %v3662_v49 = vpop.eup %3661 }
 0x105   :  { %3667 = vrcp.f32 %v251_v57  ;;  %v257_v2 = vadd.f32 1.0, %v3662_v49  ;;  %v3664_v10 = vpop.eup %3663  ;;  %v7064_v57 = vld [vmem:[#allocation21_spill] sm:$0xff] }
 0x106   :  { %v3666_v55 = vpop.eup %3665  ;;  %v7065_v49 = vld [vmem:[#allocation13_spill] sm:$0xff] }
 0x107   :  { %3669 = vrcp.f32 %v257_v2  ;;  %v264_v47 = vadd.f32 1.0, %v3666_v55  ;;  %v7066_v2 = vld [vmem:[#allocation22_spill] sm:$0xff]  ;;  %v7068_v55 = vld [vmem:[#allocation23_spill] sm:$0xff] }
 0x109   :  { %3671 = vrcp.f32 %v264_v47  ;;  %v7057_v47 = vld [vmem:[#allocation9_spill] sm:$0xff] }
 0x112   :  { %v3668_v59 = vpop.eup %3667 }
 0x113   :  { %v268_v45 = vmul.f32 %v3668_v59, %v3664_v10  ;;  %v7067_v10 = vld [vmem:[#allocation15_spill] sm:$0xff]  ;;  %v7069_v59 = vld [vmem:[#allocation17_spill] sm:$0xff] }
 0x114   :  { %v3670_v1 = vpop.eup %3669 }
 0x115   :  { %v267_v56 = vmul.f32 0.0, %v3670_v1  ;;  %v7070_v1 = vld [vmem:[#allocation24_spill] sm:$0xff] }
 0x116   :  { %v3672_v51 = vpop.eup %3671 }
 0x117   :  { %v4577_v54 = vadd.f32 %v268_v45, %v267_v56  ;;  %v7056_v45 = vld [vmem:[#allocation14_spill] sm:$0xff]  ;;  %v7058_v56 = vld [vmem:[#allocation16_spill] sm:$0xff] }
 0x119   :  { %3673 = vtanh.f32 %v4577_v54 }
 0x126   :  { %v3674_v53 = vpop.eup %3673 }
 0x127   :  { %v4580_v60 = vmul.f32 %v3674_v53, %v3672_v51  ;;  %v7071_v51 = vld [vmem:[#allocation19_spill] sm:$0xff]  ;;  %v7072_v53 = vmov 0.0  }
 0x129   :  { %7055 = vst [vmem:[#allocation26_spill] sm:$0xff] %v4580_v60  ;;  %350 = vmatmul.mubr.f32.vlgmr.msra.gmra.mxu0 %v4580_v60  ;;  %421 = vmatmul.mubr.f32.vlgmr.msra.gmra.mxu1 %v4580_v60  ;;  %v7073_v60 = vld [vmem:[#allocation25_spill] sm:$0xff] }
 0x12a   :  { %471 = vmatpush1.msra.mxu0 %v4113_v3  ;;  %542 = vmatpush1.msra.mxu1 %v4165_v12 }
 0x12b   :  { %472 = vmatprep.subr.mxu0 %v4118_v4  ;;  %543 = vmatprep.subr.mxu1 %v4177_v14 }
 0x12c   :  { %473 = vmatpush1.msra.mxu0 %v4124_v5  ;;  %544 = vmatpush1.msra.mxu1 %v4182_v15 }
 0x12d   :  { %474 = vmatprep.subr.mxu0 %v4130_v6  ;;  %545 = vmatprep.subr.mxu1 %v4194_v17 }
 0x12e   :  { %475 = vmatpush1.msra.mxu0 %v4136_v7  ;;  %546 = vmatpush1.msra.mxu1 %v4206_v19 }
 0x12f   :  { %476 = vmatprep.subr.mxu0 %v4142_v8  ;;  %547 = vmatprep.subr.mxu1 %v4211_v20 }
 0x130   :  { %477 = vmatpush1.msra.mxu0 %v4148_v9  ;;  %548 = vmatpush1.msra.mxu1 %v4223_v22 }
 0x131   :  { %478 = vmatprep.subr.mxu0 %v4159_v11  ;;  %549 = vmatprep.subr.mxu1 %v4235_v24 }
 0x132   :  { %479 = vmatpush1.msra.mxu0 %v4171_v13  ;;  %550 = vmatpush1.msra.mxu1 %v4247_v26 }
 0x133   :  { %480 = vmatprep.subr.mxu0 %v4188_v16  ;;  %551 = vmatprep.subr.mxu1 %v4259_v28 }
 0x134   :  { %481 = vmatpush1.msra.mxu0 %v4200_v18  ;;  %552 = vmatpush1.msra.mxu1 %v4271_v30 }
 0x135   :  { %482 = vmatprep.subr.mxu0 %v4217_v21  ;;  %553 = vmatprep.subr.mxu1 %v4283_v32 }
 0x136   :  { %483 = vmatpush1.msra.mxu0 %v4229_v23  ;;  %554 = vmatpush1.msra.mxu1 %v4295_v34 }
 0x137   :  { %484 = vmatprep.subr.mxu0 %v4241_v25  ;;  %555 = vmatprep.subr.mxu1 %v4307_v36 }
 0x138   :  { %485 = vmatpush1.msra.mxu0 %v4253_v27  ;;  %556 = vmatpush1.msra.mxu1 %v4319_v38 }
 0x139   :  { %486 = vmatprep.subr.mxu0 %v4265_v29  ;;  %557 = vmatprep.subr.mxu1 %v4331_v40 }
 0x13a   :  { %487 = vmatpush1.msra.mxu0 %v4277_v31  ;;  %558 = vmatpush1.msra.mxu1 %v4343_v42 }
 0x13b   :  { %488 = vmatprep.subr.mxu0 %v4289_v33  ;;  %559 = vmatprep.subr.mxu1 %v4355_v44 }
 0x13c   :  { %489 = vmatpush1.msra.mxu0 %v4301_v35  ;;  %560 = vmatpush1.msra.mxu1 %v4367_v46 }
 0x13d   :  { %490 = vmatprep.subr.mxu0 %v4313_v37  ;;  %561 = vmatprep.subr.mxu1 %v4379_v48 }
 0x13e   :  { %491 = vmatpush1.msra.mxu0 %v4325_v39  ;;  %562 = vmatpush1.msra.mxu1 %v4391_v50 }
 0x13f   :  { %492 = vmatprep.subr.mxu0 %v4337_v41  ;;  %563 = vmatprep.subr.mxu1 %v4403_v52 }
 0x140   :  { %493 = vmatpush1.msra.mxu0 %v4349_v43  ;;  %564 = vmatpush1.msra.mxu1 %v7056_v45 }
 0x141   :  { %494 = vmatprep.subr.mxu0 %v7057_v47  ;;  %565 = vmatprep.subr.mxu1 %v7058_v56 }
 0x142   :  { %495 = vmatpush1.msra.mxu0 %v7059_v58  ;;  %566 = vmatpush1.msra.mxu1 %v7060_v61 }
 0x143   :  { %496 = vmatprep.subr.mxu0 %v7061_v62  ;;  %567 = vmatprep.subr.mxu1 %v7062_v63  ;;  %v3496_v62 = vld [vmem:[%s6841_s0 + $0x30] sm:$0xff] }
 0x144   :  { %497 = vmatpush1.msra.mxu0 %v7063_v0  ;;  %568 = vmatpush1.msra.mxu1 %v7064_v57  ;;  %v7074_v57 = vld [vmem:[#allocation7_spill] sm:$0xff] }
 0x145   :  { %498 = vmatprep.subr.mxu0 %v7065_v49  ;;  %569 = vmatprep.subr.mxu1 %v7066_v2  ;;  %v7075_v49 = vld [vmem:[#allocation8_spill] sm:$0xff] }
 0x146   :  { %499 = vmatpush1.msra.mxu0 %v7067_v10  ;;  %570 = vmatpush1.msra.mxu1 %v7068_v55  ;;  %v3509_v55 = vld [vmem:[%s6842_s1 + $0x10] sm:$0xff] }
 0x147   :  { %500 = vmatprep.subr.mxu0 %v7069_v59  ;;  %571 = vmatprep.subr.mxu1 %v7070_v1  ;;  %v3494_v1 = vld [vmem:[%s6841_s0 + $0x20] sm:$0xff] }
 0x148   :  { %501 = vmatpush1.msra.mxu0 %v7071_v51  ;;  %534 = vmatprep.mubr.f32.mxu0 %v7072_v53 }
 0x149   :  { %572 = vmatpush1.msra.mxu1 %v7073_v60  ;;  %605 = vmatprep.mubr.f32.mxu1 %v7072_v53  ;;  %v3495_v60 = vld [vmem:[%s6841_s0 + $0x28] sm:$0xff] }
 0x14a   :  { %655 = vmatprep.subr.mxu0 %v7074_v57  ;;  %726 = vmatprep.subr.mxu1 %v7075_v49 }
 0x14b   :  { %644 = vperm.xlu1 %3658, %v3509_v55   ;;  %v3497_v55 = vld [vmem:[%s6841_s0 + $0x38] sm:$0xff] }
 0x1e9   :  { %v351_v51 = vpop.f32.mrf.mxu0  ;;  %v422_v49 = vpop.f32.mrf.mxu1 }
 0x1ea   :  { %v427_v59 = vadd.f32 %v3494_v1, %v351_v51  ;;  %v429_v1 = vadd.f32 %v3496_v62, %v422_v49  ;;  %v7080_v49 = vld [vmem:[#allocation18_spill] sm:$0xff] }
 0x1eb   :  { %v353_v53 = vpop.f32.mrf.mxu0  ;;  %v424_v0 = vpop.f32.mrf.mxu1 }
 0x1ec   :  { %v3498_v10 = vmul.f32 -1.442695, %v427_v59  ;;  %v428_v57 = vadd.f32 %v3495_v60, %v353_v53  ;;  %v430_v63 = vadd.f32 %v3497_v55, %v424_v0 }
 0x1ee   :  { %3675 = vpow2.f32 %v3498_v10  ;;  %v3499_v2 = vmul.f32 -1.442695, %v428_v57  ;;  %v3500_v61 = vmul.f32 -1.442695, %v430_v63  ;;  %v7079_v63 = vld [vmem:[#allocation10_spill] sm:$0xff] }
 0x1f0   :  { %3677 = vpow2.f32 %v3499_v2 }
 0x1f1   :  { %3679 = vpow2.f32 %v3500_v61 }
 0x1fb   :  { %v3676_v58 = vpop.eup %3675 }
 0x1fc   :  { %v434_v51 = vadd.f32 1.0, %v3676_v58 }
 0x1fd   :  { %v3678_v59 = vpop.eup %3677 }
 0x1fe   :  { %3681 = vrcp.f32 %v434_v51  ;;  %v440_v60 = vadd.f32 1.0, %v3678_v59  ;;  %v3680_v57 = vpop.eup %3679  ;;  %v7082_v51 = vld [vmem:[#allocation20_spill] sm:$0xff] }
 0x1ff   :  { %3683 = vtanh.f32 %v429_v1  ;;  %v447_v56 = vadd.f32 1.0, %v3680_v57  ;;  %v7081_v1 = vld [vmem:[#allocation11_spill] sm:$0xff]  ;;  %v7083_v59 = vld [vmem:[#allocation12_spill] sm:$0xff]  ;;  %v7085_v57 = vld [vmem:[#allocation13_spill] sm:$0xff] }
 0x200   :  { %3685 = vrcp.f32 %v440_v60  ;;  %v7084_v60 = vld [vmem:[#allocation21_spill] sm:$0xff] }
 0x201   :  { %3687 = vrcp.f32 %v447_v56  ;;  %v7078_v56 = vld [vmem:[#allocation16_spill] sm:$0xff] }
 0x20b   :  { %v3682_v2 = vpop.eup %3681 }
 0x20c   :  { %v3684_v10 = vpop.eup %3683 }
 0x20d   :  { %v3686_v53 = vpop.eup %3685  ;;  %v451_v0 = vmul.f32 %v3684_v10, %v3682_v2  ;;  %v7086_v2 = vld [vmem:[#allocation22_spill] sm:$0xff]  ;;  %v7087_v10 = vld [vmem:[#allocation15_spill] sm:$0xff] }
 0x20e   :  { %v450_v55 = vmul.f32 %v3686_v53, %v4577_v54  ;;  %v3688_v58 = vpop.eup %3687  ;;  %v7077_v54 = vld [vmem:[#allocation9_spill] sm:$0xff]  ;;  %v7088_v53 = vld [vmem:[#allocation23_spill] sm:$0xff] }
 0x210   :  { %v4666_v47 = vadd.f32 %v451_v0, %v450_v55  ;;  %v7089_v0 = vld [vmem:[#allocation17_spill] sm:$0xff]  ;;  %v7090_v55 = vld [vmem:[#allocation24_spill] sm:$0xff] }
 0x212   :  { %3689 = vtanh.f32 %v4666_v47 }
 0x21f   :  { %v3690_v62 = vpop.eup %3689 }
 0x220   :  { %v4669_v61 = vmul.f32 %v3690_v62, %v3688_v58  ;;  %v7091_v58 = vld [vmem:[#allocation19_spill] sm:$0xff]  ;;  %v7092_v62 = vmov 0.0  }
 0x222   :  { %7076 = vst [vmem:[#allocation14_spill] sm:$0xff] %v4669_v61  ;;  %535 = vmatmul.mubr.f32.vlgmr.msra.gmra.mxu0 %v4669_v61  ;;  %606 = vmatmul.mubr.f32.vlgmr.msra.gmra.mxu1 %v4669_v61  ;;  %v7093_v61 = vld [vmem:[#allocation25_spill] sm:$0xff] }
 0x223   :  { %656 = vmatpush1.msra.mxu0 %v4113_v3  ;;  %727 = vmatpush1.msra.mxu1 %v4165_v12 }
 0x224   :  { %657 = vmatprep.subr.mxu0 %v4118_v4  ;;  %728 = vmatprep.subr.mxu1 %v4177_v14 }
 0x225   :  { %658 = vmatpush1.msra.mxu0 %v4124_v5  ;;  %729 = vmatpush1.msra.mxu1 %v4182_v15 }
 0x226   :  { %659 = vmatprep.subr.mxu0 %v4130_v6  ;;  %730 = vmatprep.subr.mxu1 %v4194_v17 }
 0x227   :  { %660 = vmatpush1.msra.mxu0 %v4136_v7  ;;  %731 = vmatpush1.msra.mxu1 %v4206_v19 }
 0x228   :  { %661 = vmatprep.subr.mxu0 %v4142_v8  ;;  %732 = vmatprep.subr.mxu1 %v4211_v20 }
 0x229   :  { %662 = vmatpush1.msra.mxu0 %v4148_v9  ;;  %733 = vmatpush1.msra.mxu1 %v4223_v22 }
 0x22a   :  { %663 = vmatprep.subr.mxu0 %v4159_v11  ;;  %734 = vmatprep.subr.mxu1 %v4235_v24 }
 0x22b   :  { %664 = vmatpush1.msra.mxu0 %v4171_v13  ;;  %735 = vmatpush1.msra.mxu1 %v4247_v26 }
 0x22c   :  { %665 = vmatprep.subr.mxu0 %v4188_v16  ;;  %736 = vmatprep.subr.mxu1 %v4259_v28 }
 0x22d   :  { %666 = vmatpush1.msra.mxu0 %v4200_v18  ;;  %737 = vmatpush1.msra.mxu1 %v4271_v30 }
 0x22e   :  { %667 = vmatprep.subr.mxu0 %v4217_v21  ;;  %738 = vmatprep.subr.mxu1 %v4283_v32 }
 0x22f   :  { %668 = vmatpush1.msra.mxu0 %v4229_v23  ;;  %739 = vmatpush1.msra.mxu1 %v4295_v34 }
 0x230   :  { %669 = vmatprep.subr.mxu0 %v4241_v25  ;;  %740 = vmatprep.subr.mxu1 %v4307_v36 }
 0x231   :  { %670 = vmatpush1.msra.mxu0 %v4253_v27  ;;  %741 = vmatpush1.msra.mxu1 %v4319_v38 }
 0x232   :  { %671 = vmatprep.subr.mxu0 %v4265_v29  ;;  %742 = vmatprep.subr.mxu1 %v4331_v40 }
 0x233   :  { %672 = vmatpush1.msra.mxu0 %v4277_v31  ;;  %743 = vmatpush1.msra.mxu1 %v4343_v42 }
 0x234   :  { %673 = vmatprep.subr.mxu0 %v4289_v33  ;;  %744 = vmatprep.subr.mxu1 %v4355_v44 }
 0x235   :  { %674 = vmatpush1.msra.mxu0 %v4301_v35  ;;  %745 = vmatpush1.msra.mxu1 %v4367_v46 }
 0x236   :  { %675 = vmatprep.subr.mxu0 %v4313_v37  ;;  %746 = vmatprep.subr.mxu1 %v4379_v48 }
 0x237   :  { %676 = vmatpush1.msra.mxu0 %v4325_v39  ;;  %747 = vmatpush1.msra.mxu1 %v4391_v50 }
 0x238   :  { %677 = vmatprep.subr.mxu0 %v4337_v41  ;;  %748 = vmatprep.subr.mxu1 %v4403_v52 }
 0x239   :  { %678 = vmatpush1.msra.mxu0 %v4349_v43  ;;  %749 = vmatpush1.msra.mxu1 %v7056_v45 }
 0x23a   :  { %679 = vmatprep.subr.mxu0 %v7077_v54  ;;  %750 = vmatprep.subr.mxu1 %v7078_v56 }
 0x23b   :  { %680 = vmatpush1.msra.mxu0 %v7079_v63  ;;  %751 = vmatpush1.msra.mxu1 %v7080_v49 }
 0x23c   :  { %681 = vmatprep.subr.mxu0 %v7081_v1  ;;  %752 = vmatprep.subr.mxu1 %v7082_v51  ;;  %v3504_v1 = vld [vmem:[%s6841_s0 + $0x50] sm:$0xff] }
 0x23d   :  { %682 = vmatpush1.msra.mxu0 %v7083_v59  ;;  %753 = vmatpush1.msra.mxu1 %v7084_v60  ;;  %v7094_v60 = vld [vmem:[#allocation7_spill] sm:$0xff] }
 0x23e   :  { %683 = vmatprep.subr.mxu0 %v7085_v57  ;;  %754 = vmatprep.subr.mxu1 %v7086_v2  ;;  %v7095_v57 = vld [vmem:[#allocation8_spill] sm:$0xff] }
 0x23f   :  { %684 = vmatpush1.msra.mxu0 %v7087_v10  ;;  %755 = vmatpush1.msra.mxu1 %v7088_v53  ;;  %v3517_v53 = vld [vmem:[%s6842_s1 + $0x18] sm:$0xff] }
 0x240   :  { %685 = vmatprep.subr.mxu0 %v7089_v0  ;;  %756 = vmatprep.subr.mxu1 %v7090_v55  ;;  %v3502_v55 = vld [vmem:[%s6841_s0 + $0x40] sm:$0xff] }
 0x241   :  { %686 = vmatpush1.msra.mxu0 %v7091_v58  ;;  %719 = vmatprep.mubr.f32.mxu0 %v7092_v62 }
 0x242   :  { %757 = vmatpush1.msra.mxu1 %v7093_v61  ;;  %790 = vmatprep.mubr.f32.mxu1 %v7092_v62  ;;  %v3503_v61 = vld [vmem:[%s6841_s0 + $0x48] sm:$0xff] }
 0x243   :  { %840 = vmatprep.subr.mxu0 %v7094_v60  ;;  %911 = vmatprep.subr.mxu1 %v7095_v57 }
 0x244   :  { %829 = vperm.xlu1 %3658, %v3517_v53   ;;  %v3505_v53 = vld [vmem:[%s6841_s0 + $0x58] sm:$0xff] }
 0x2e2   :  { %v536_v58 = vpop.f32.mrf.mxu0  ;;  %v607_v57 = vpop.f32.mrf.mxu1 }
 0x2e3   :  { %v612_v0 = vadd.f32 %v3502_v55, %v536_v58  ;;  %v614_v55 = vadd.f32 %v3504_v1, %v607_v57 }
 0x2e4   :  { %v538_v62 = vpop.f32.mrf.mxu0  ;;  %v609_v59 = vpop.f32.mrf.mxu1 }
 0x2e5   :  { %v3506_v10 = vmul.f32 -1.442695, %v612_v0  ;;  %v613_v60 = vadd.f32 %v3503_v61, %v538_v62  ;;  %v615_v51 = vadd.f32 %v3505_v53, %v609_v59 }
 0x2e7   :  { %3691 = vpow2.f32 %v3506_v10  ;;  %v3507_v2 = vmul.f32 -1.442695, %v613_v60  ;;  %v3508_v49 = vmul.f32 -1.442695, %v615_v51 }
 0x2e9   :  { %3693 = vpow2.f32 %v3507_v2 }
 0x2ea   :  { %3695 = vpow2.f32 %v3508_v49 }
 0x2f4   :  { %v3692_v63 = vpop.eup %3691 }
 0x2f5   :  { %v619_v58 = vadd.f32 1.0, %v3692_v63 }
 0x2f6   :  { %v3694_v0 = vpop.eup %3693 }
 0x2f7   :  { %3697 = vrcp.f32 %v619_v58  ;;  %v625_v61 = vadd.f32 1.0, %v3694_v0  ;;  %v3696_v2 = vpop.eup %3695  ;;  %v4874_v58 = vld [vmem:[%s6843_s2 + $0x1c8] sm:$0xff]  ;;  %v4880_v0 = vld [vmem:[%s6843_s2 + $0x1d8] sm:$0xff] }
 0x2f8   :  { %3699 = vtanh.f32 %v614_v55  ;;  %v632_v56 = vadd.f32 1.0, %v3696_v2  ;;  %v4862_v55 = vld [vmem:[%s6843_s2 + $0x1e0] sm:$0xff]  ;;  %v4892_v2 = vld [vmem:[%s6843_s2 + $0x1d0] sm:$0xff] }
 0x2f9   :  { %3701 = vrcp.f32 %v625_v61  ;;  %v4886_v61 = vld [vmem:[%s6843_s2 + $0x1c0] sm:$0xff] }
 0x2fa   :  { %3703 = vrcp.f32 %v632_v56 }
 0x304   :  { %v3698_v10 = vpop.eup %3697 }
 0x305   :  { %v3700_v62 = vpop.eup %3699 }
 0x306   :  { %v3702_v60 = vpop.eup %3701  ;;  %v636_v59 = vmul.f32 %v3700_v62, %v3698_v10  ;;  %v4898_v10 = vld [vmem:[%s6843_s2 + $0x1a8] sm:$0xff]  ;;  %v4904_v62 = vld [vmem:[%s6843_s2 + $0x1b8] sm:$0xff] }
 0x307   :  { %v635_v53 = vmul.f32 %v3702_v60, %v4666_v47  ;;  %v3704_v63 = vpop.eup %3703  ;;  %v4910_v60 = vld [vmem:[%s6843_s2 + $0x1a0] sm:$0xff] }
 0x309   :  { %v4755_v54 = vadd.f32 %v636_v59, %v635_v53  ;;  %v4916_v59 = vld [vmem:[%s6843_s2 + $0x1b0] sm:$0xff]  ;;  %v4922_v53 = vld [vmem:[%s6843_s2 + $0x188] sm:$0xff] }
 0x30b   :  { %3705 = vtanh.f32 %v4755_v54 }
 0x318   :  { %v3706_v1 = vpop.eup %3705 }
 0x319   :  { %v4758_v49 = vmul.f32 %v3706_v1, %v3704_v63  ;;  %v4928_v63 = vld [vmem:[%s6843_s2 + $0x198] sm:$0xff]  ;;  %v4934_v1 = vld [vmem:[%s6843_s2 + $0x180] sm:$0xff] }
 0x31b   :  { %7096 = vst [vmem:[#allocation7_spill] sm:$0xff] %v4758_v49  ;;  %720 = vmatmul.mubr.f32.vlgmr.msra.gmra.mxu0 %v4758_v49  ;;  %791 = vmatmul.mubr.f32.vlgmr.msra.gmra.mxu1 %v4758_v49 }
 0x31c   :  { %841 = vmatpush1.msra.mxu0 %v4113_v3  ;;  %912 = vmatpush1.msra.mxu1 %v4165_v12  ;;  %v7097_v3 = vld [vmem:[#allocation9_spill] sm:$0xff] }
 0x31d   :  { %842 = vmatprep.subr.mxu0 %v4118_v4  ;;  %913 = vmatprep.subr.mxu1 %v4177_v14  ;;  %v7098_v4 = vld [vmem:[#allocation16_spill] sm:$0xff]  ;;  %v7105_v12 = vld [vmem:[#allocation13_spill] sm:$0xff]  ;;  %v7107_v14 = vld [vmem:[#allocation15_spill] sm:$0xff] }
 0x31e   :  { %843 = vmatpush1.msra.mxu0 %v4124_v5  ;;  %914 = vmatpush1.msra.mxu1 %v4182_v15  ;;  %v7099_v5 = vld [vmem:[#allocation10_spill] sm:$0xff]  ;;  %v7108_v15 = vld [vmem:[#allocation23_spill] sm:$0xff] }
 0x31f   :  { %844 = vmatprep.subr.mxu0 %v4130_v6  ;;  %915 = vmatprep.subr.mxu1 %v4194_v17  ;;  %v7100_v6 = vld [vmem:[#allocation18_spill] sm:$0xff]  ;;  %v7110_v17 = vld [vmem:[#allocation24_spill] sm:$0xff] }
 0x320   :  { %845 = vmatpush1.msra.mxu0 %v4136_v7  ;;  %916 = vmatpush1.msra.mxu1 %v4206_v19  ;;  %v7101_v7 = vld [vmem:[#allocation11_spill] sm:$0xff]  ;;  %v7112_v19 = vmov 0.0  }
 0x321   :  { %846 = vmatprep.subr.mxu0 %v4142_v8  ;;  %917 = vmatprep.subr.mxu1 %v4211_v20  ;;  %v7102_v8 = vld [vmem:[#allocation20_spill] sm:$0xff]  ;;  %v7113_v20 = vld [vmem:[#allocation25_spill] sm:$0xff] }
 0x322   :  { %847 = vmatpush1.msra.mxu0 %v4148_v9  ;;  %918 = vmatpush1.msra.mxu1 %v4223_v22  ;;  %v7103_v9 = vld [vmem:[#allocation12_spill] sm:$0xff] }
 0x323   :  { %848 = vmatprep.subr.mxu0 %v4159_v11  ;;  %919 = vmatprep.subr.mxu1 %v4235_v24  ;;  %v7104_v11 = vld [vmem:[#allocation21_spill] sm:$0xff]  ;;  %v7115_v22 = vld [vmem:[#allocation8_spill] sm:$0xff]  ;;  %v3510_v24 = vld [vmem:[%s6841_s0 + $0x60] sm:$0xff] }
 0x324   :  { %849 = vmatpush1.msra.mxu0 %v4171_v13  ;;  %920 = vmatpush1.msra.mxu1 %v4247_v26  ;;  %v7106_v13 = vld [vmem:[#allocation22_spill] sm:$0xff]  ;;  %v3511_v26 = vld [vmem:[%s6841_s0 + $0x68] sm:$0xff] }
 0x325   :  { %850 = vmatprep.subr.mxu0 %v4188_v16  ;;  %921 = vmatprep.subr.mxu1 %v4259_v28  ;;  %v7109_v16 = vld [vmem:[#allocation17_spill] sm:$0xff] }
 0x326   :  { %851 = vmatpush1.msra.mxu0 %v4200_v18  ;;  %922 = vmatpush1.msra.mxu1 %v4271_v30  ;;  %v7111_v18 = vld [vmem:[#allocation19_spill] sm:$0xff] }
 0x327   :  { %852 = vmatprep.subr.mxu0 %v4217_v21  ;;  %923 = vmatprep.subr.mxu1 %v4283_v32  ;;  %v4829_v21 = vld [vmem:[%s6843_s2 + $0x1e8] sm:$0xff] }
 0x328   :  { %853 = vmatpush1.msra.mxu0 %v4229_v23  ;;  %924 = vmatpush1.msra.mxu1 %v4295_v34  ;;  %7114 = vst [vmem:[#allocation9_spill] sm:$0xff] %v4829_v21  ;;  %v4836_v23 = vld [vmem:[%s6842_s1 + $0x20] sm:$0xff] }
 0x329   :  { %854 = vmatprep.subr.mxu0 %v4241_v25  ;;  %925 = vmatprep.subr.mxu1 %v4307_v36  ;;  %7116 = vst [vmem:[#allocation16_spill] sm:$0xff] %v4836_v23  ;;  %v3512_v36 = vld [vmem:[%s6841_s0 + $0x70] sm:$0xff] }
 0x32a   :  { %855 = vmatpush1.msra.mxu0 %v4253_v27  ;;  %926 = vmatpush1.msra.mxu1 %v4319_v38 }
 0x32b   :  { %856 = vmatprep.subr.mxu0 %v4265_v29  ;;  %927 = vmatprep.subr.mxu1 %v4331_v40 }
 0x32c   :  { %857 = vmatpush1.msra.mxu0 %v4277_v31  ;;  %928 = vmatpush1.msra.mxu1 %v4343_v42 }
 0x32d   :  { %858 = vmatprep.subr.mxu0 %v4289_v33  ;;  %929 = vmatprep.subr.mxu1 %v4355_v44  ;;  %v3513_v33 = vld [vmem:[%s6841_s0 + $0x78] sm:$0xff] }
 0x32e   :  { %859 = vmatpush1.msra.mxu0 %v4301_v35  ;;  %930 = vmatpush1.msra.mxu1 %v4367_v46 }
 0x32f   :  { %860 = vmatprep.subr.mxu0 %v4313_v37  ;;  %931 = vmatprep.subr.mxu1 %v4379_v48 }
 0x330   :  { %861 = vmatpush1.msra.mxu0 %v4325_v39  ;;  %932 = vmatpush1.msra.mxu1 %v4391_v50 }
 0x331   :  { %862 = vmatprep.subr.mxu0 %v4337_v41  ;;  %933 = vmatprep.subr.mxu1 %v4403_v52 }
 0x332   :  { %863 = vmatpush1.msra.mxu0 %v4349_v43  ;;  %934 = vmatpush1.msra.mxu1 %v7056_v45 }
 0x333   :  { %864 = vmatprep.subr.mxu0 %v7097_v3  ;;  %935 = vmatprep.subr.mxu1 %v7098_v4  ;;  %v4940_v3 = vld [vmem:[%s6843_s2 + $0x190] sm:$0xff] }
 0x334   :  { %865 = vmatpush1.msra.mxu0 %v7099_v5  ;;  %936 = vmatpush1.msra.mxu1 %v7100_v6  ;;  %v4946_v5 = vld [vmem:[%s6843_s2 + $0x168] sm:$0xff] }
 0x335   :  { %866 = vmatprep.subr.mxu0 %v7101_v7  ;;  %937 = vmatprep.subr.mxu1 %v7102_v8  ;;  %v4952_v7 = vld [vmem:[%s6843_s2 + $0x178] sm:$0xff] }
 0x336   :  { %867 = vmatpush1.msra.mxu0 %v7103_v9  ;;  %938 = vmatpush1.msra.mxu1 %v7104_v11  ;;  %v4958_v9 = vld [vmem:[%s6843_s2 + $0x160] sm:$0xff] }
 0x337   :  { %868 = vmatprep.subr.mxu0 %v7105_v12  ;;  %939 = vmatprep.subr.mxu1 %v7106_v13  ;;  %v4964_v12 = vld [vmem:[%s6843_s2 + $0x170] sm:$0xff] }
 0x338   :  { %869 = vmatpush1.msra.mxu0 %v7107_v14  ;;  %940 = vmatpush1.msra.mxu1 %v7108_v15  ;;  %v4970_v14 = vld [vmem:[%s6843_s2 + $0x148] sm:$0xff] }
 0x339   :  { %870 = vmatprep.subr.mxu0 %v7109_v16  ;;  %941 = vmatprep.subr.mxu1 %v7110_v17  ;;  %v4976_v16 = vld [vmem:[%s6843_s2 + $0x158] sm:$0xff] }
 0x33a   :  { %871 = vmatpush1.msra.mxu0 %v7111_v18  ;;  %904 = vmatprep.mubr.f32.mxu0 %v7112_v19  ;;  %v4982_v18 = vld [vmem:[%s6843_s2 + $0x140] sm:$0xff] }
 0x33b   :  { %942 = vmatpush1.msra.mxu1 %v7113_v20  ;;  %975 = vmatprep.mubr.f32.mxu1 %v7112_v19 }
 0x33c   :  { %1025 = vmatprep.subr.mxu0 %v4829_v21  ;;  %1096 = vmatprep.subr.mxu1 %v7115_v22  ;;  %v4988_v22 = vld [vmem:[%s6843_s2 + $0x150] sm:$0xff] }
 0x33d   :  { %1014 = vperm.xlu0 %3657, %v4836_v23  }
 0x3db   :  { %v721_v25 = vpop.f32.mrf.mxu0  ;;  %v792_v31 = vpop.f32.mrf.mxu1 }
 0x3dc   :  { %v797_v27 = vadd.f32 %v3510_v24, %v721_v25  ;;  %v799_v39 = vadd.f32 %v3512_v36, %v792_v31  ;;  %v4994_v24 = vld [vmem:[%s6843_s2 + $0x128] sm:$0xff]  ;;  %v5000_v25 = vld [vmem:[%s6843_s2 + $0x138] sm:$0xff]  ;;  %v5036_v31 = vld [vmem:[%s6843_s2 + $0x110] sm:$0xff] }
 0x3dd   :  { %v723_v28 = vpop.f32.mrf.mxu0  ;;  %v794_v34 = vpop.f32.mrf.mxu1  ;;  %v5066_v36 = vld [vmem:[%s6843_s2 + $0xc8] sm:$0xff] }
 0x3de   :  { %v3514_v29 = vmul.f32 -1.442695, %v797_v27  ;;  %v798_v30 = vadd.f32 %v3511_v26, %v723_v28  ;;  %v800_v35 = vadd.f32 %v3513_v33, %v794_v34  ;;  %v5006_v26 = vld [vmem:[%s6843_s2 + $0x120] sm:$0xff]  ;;  %v5012_v27 = vld [vmem:[%s6843_s2 + $0x130] sm:$0xff]  ;;  %v5018_v28 = vld [vmem:[%s6843_s2 + $0x108] sm:$0xff] }
 0x3df   :  { %v5048_v33 = vld [vmem:[%s6843_s2 + $0xf8] sm:$0xff]  ;;  %v5054_v34 = vld [vmem:[%s6843_s2 + $0xe0] sm:$0xff] }
 0x3e0   :  { %3707 = vpow2.f32 %v3514_v29  ;;  %v3515_v32 = vmul.f32 -1.442695, %v798_v30  ;;  %v3516_v37 = vmul.f32 -1.442695, %v800_v35  ;;  %v5024_v29 = vld [vmem:[%s6843_s2 + $0x118] sm:$0xff]  ;;  %v5030_v30 = vld [vmem:[%s6843_s2 + $0x100] sm:$0xff] }
 0x3e1   :  { %v5060_v35 = vld [vmem:[%s6843_s2 + $0xf0] sm:$0xff] }
 0x3e2   :  { %3709 = vpow2.f32 %v3515_v32  ;;  %v5042_v32 = vld [vmem:[%s6843_s2 + $0xe8] sm:$0xff] }
 0x3e3   :  { %3711 = vpow2.f32 %v3516_v37  ;;  %v5072_v37 = vld [vmem:[%s6843_s2 + $0xd8] sm:$0xff] }
 0x3ed   :  { %v3708_v38 = vpop.eup %3707 }
 0x3ee   :  { %v804_v40 = vadd.f32 1.0, %v3708_v38  ;;  %v5078_v38 = vld [vmem:[%s6843_s2 + $0xc0] sm:$0xff] }
 0x3ef   :  { %v3710_v41 = vpop.eup %3709 }
 0x3f0   :  { %3713 = vrcp.f32 %v804_v40  ;;  %v810_v42 = vadd.f32 1.0, %v3710_v41  ;;  %v3712_v43 = vpop.eup %3711  ;;  %v5090_v40 = vld [vmem:[%s6843_s2 + $0xa8] sm:$0xff]  ;;  %v5096_v41 = vld [vmem:[%s6843_s2 + $0xb8] sm:$0xff] }
 0x3f1   :  { %3715 = vtanh.f32 %v799_v39  ;;  %v817_v50 = vadd.f32 1.0, %v3712_v43  ;;  %v5084_v39 = vld [vmem:[%s6843_s2 + $0xd0] sm:$0xff] }
 0x3f2   :  { %3717 = vrcp.f32 %v810_v42  ;;  %v5102_v42 = vld [vmem:[%s6843_s2 + $0xa0] sm:$0xff]  ;;  %v5108_v43 = vld [vmem:[%s6843_s2 + $0xb0] sm:$0xff] }
 0x3f3   :  { %3719 = vrcp.f32 %v817_v50  ;;  %v5132_v50 = vld [vmem:[%s6843_s2 + $0x90] sm:$0xff] }
 0x3fd   :  { %v3714_v44 = vpop.eup %3713 }
 0x3fe   :  { %v3716_v46 = vpop.eup %3715 }
 0x3ff   :  { %v3718_v48 = vpop.eup %3717  ;;  %v821_v52 = vmul.f32 %v3716_v46, %v3714_v44  ;;  %v5114_v44 = vld [vmem:[%s6843_s2 + $0x88] sm:$0xff]  ;;  %v5120_v46 = vld [vmem:[%s6843_s2 + $0x98] sm:$0xff] }
 0x400   :  { %v820_v45 = vmul.f32 %v3718_v48, %v4755_v54  ;;  %v3720_v56 = vpop.eup %3719  ;;  %v4868_v54 = vld [vmem:[%s6843_s2 + $0x1f0] sm:$0xff]  ;;  %v5126_v48 = vld [vmem:[%s6843_s2 + $0x80] sm:$0xff] }
 0x402   :  { %v4852_v47 = vadd.f32 %v821_v52, %v820_v45  ;;  %v5138_v52 = vld [vmem:[%s6843_s2 + $0x68] sm:$0xff]  ;;  %v5145_v45 = vld [vmem:[%s6843_s2 + $0x60] sm:$0xff] }
 0x403   :  { %7118 = vst [vmem:[#allocation18_spill] sm:$0xff] %v5138_v52  ;;  %7119 = vst [vmem:[#allocation11_spill] sm:$0xff] %v5145_v45 }
 0x404   :  { %3721 = vtanh.f32 %v4852_v47 }
 0x411   :  { %v3722_v51 = vpop.eup %3721 }
 0x412   :  { %v4855_v57 = vmul.f32 %v3722_v51, %v3720_v56  ;;  %v5152_v56 = vld [vmem:[%s6843_s2 + $0x48] sm:$0xff] }
 0x413   :  { %7120 = vst [vmem:[#allocation20_spill] sm:$0xff] %v5152_v56 }
 0x414   :  { %7117 = vst [vmem:[#allocation10_spill] sm:$0xff] %v4855_v57  ;;  %905 = vmatmul.mubr.f32.vlgmr.msra.gmra.mxu0 %v4855_v57  ;;  %976 = vmatmul.mubr.f32.vlgmr.msra.gmra.mxu1 %v4855_v57  ;;  %v3519_v57 = vld [vmem:[%s6841_s0 + $0x88] sm:$0xff] }
 0x415   :  { %1026 = vmatpush1.msra.mxu0 %v4862_v55  ;;  %1097 = vmatpush1.msra.mxu1 %v4868_v54 }
 0x416   :  { %1027 = vmatprep.subr.mxu0 %v4874_v58  ;;  %1098 = vmatprep.subr.mxu1 %v4880_v0 }
 0x417   :  { %1028 = vmatpush1.msra.mxu0 %v4886_v61  ;;  %1099 = vmatpush1.msra.mxu1 %v4892_v2 }
 0x418   :  { %1029 = vmatprep.subr.mxu0 %v4898_v10  ;;  %1100 = vmatprep.subr.mxu1 %v4904_v62 }
 0x419   :  { %1030 = vmatpush1.msra.mxu0 %v4910_v60  ;;  %1101 = vmatpush1.msra.mxu1 %v4916_v59 }
 0x41a   :  { %1031 = vmatprep.subr.mxu0 %v4922_v53  ;;  %1102 = vmatprep.subr.mxu1 %v4928_v63 }
 0x41b   :  { %1032 = vmatpush1.msra.mxu0 %v4934_v1  ;;  %1103 = vmatpush1.msra.mxu1 %v4940_v3 }
 0x41c   :  { %1033 = vmatprep.subr.mxu0 %v4946_v5  ;;  %1104 = vmatprep.subr.mxu1 %v4952_v7 }
 0x41d   :  { %1034 = vmatpush1.msra.mxu0 %v4958_v9  ;;  %1105 = vmatpush1.msra.mxu1 %v4964_v12 }
 0x41e   :  { %1035 = vmatprep.subr.mxu0 %v4970_v14  ;;  %1106 = vmatprep.subr.mxu1 %v4976_v16 }
 0x41f   :  { %1036 = vmatpush1.msra.mxu0 %v4982_v18  ;;  %1107 = vmatpush1.msra.mxu1 %v4988_v22 }
 0x420   :  { %1037 = vmatprep.subr.mxu0 %v4994_v24  ;;  %1108 = vmatprep.subr.mxu1 %v5000_v25 }
 0x421   :  { %1038 = vmatpush1.msra.mxu0 %v5006_v26  ;;  %1109 = vmatpush1.msra.mxu1 %v5012_v27 }
 0x422   :  { %1039 = vmatprep.subr.mxu0 %v5018_v28  ;;  %1110 = vmatprep.subr.mxu1 %v5024_v29 }
 0x423   :  { %1040 = vmatpush1.msra.mxu0 %v5030_v30  ;;  %1111 = vmatpush1.msra.mxu1 %v5036_v31 }
 0x424   :  { %1041 = vmatprep.subr.mxu0 %v5042_v32  ;;  %1112 = vmatprep.subr.mxu1 %v5048_v33 }
 0x425   :  { %1042 = vmatpush1.msra.mxu0 %v5054_v34  ;;  %1113 = vmatpush1.msra.mxu1 %v5060_v35 }
 0x426   :  { %1043 = vmatprep.subr.mxu0 %v5066_v36  ;;  %1114 = vmatprep.subr.mxu1 %v5072_v37 }
 0x427   :  { %1044 = vmatpush1.msra.mxu0 %v5078_v38  ;;  %1115 = vmatpush1.msra.mxu1 %v5084_v39 }
 0x428   :  { %1045 = vmatprep.subr.mxu0 %v5090_v40  ;;  %1116 = vmatprep.subr.mxu1 %v5096_v41 }
 0x429   :  { %1046 = vmatpush1.msra.mxu0 %v5102_v42  ;;  %1117 = vmatpush1.msra.mxu1 %v5108_v43 }
 0x42a   :  { %1047 = vmatprep.subr.mxu0 %v5114_v44  ;;  %1118 = vmatprep.subr.mxu1 %v5120_v46 }
 0x42b   :  { %1048 = vmatpush1.msra.mxu0 %v5126_v48  ;;  %1119 = vmatpush1.msra.mxu1 %v5132_v50 }
 0x42c   :  { %1049 = vmatprep.subr.mxu0 %v5138_v52  ;;  %1120 = vmatprep.subr.mxu1 %v7098_v4  ;;  %v5159_v4 = vld [vmem:[%s6843_s2 + $0x40] sm:$0xff] }
 0x42d   :  { %1050 = vmatpush1.msra.mxu0 %v5145_v45  ;;  %1121 = vmatpush1.msra.mxu1 %v7100_v6  ;;  %7121 = vst [vmem:[#allocation12_spill] sm:$0xff] %v5159_v4  ;;  %v5166_v6 = vld [vmem:[%s6843_s2 + $0x28] sm:$0xff] }
 0x42e   :  { %1051 = vmatprep.subr.mxu0 %v5152_v56  ;;  %1122 = vmatprep.subr.mxu1 %v7102_v8  ;;  %7122 = vst [vmem:[#allocation21_spill] sm:$0xff] %v5166_v6  ;;  %v5173_v8 = vld [vmem:[%s6843_s2 + $0x20] sm:$0xff] }
 0x42f   :  { %1052 = vmatpush1.msra.mxu0 %v5159_v4  ;;  %1123 = vmatpush1.msra.mxu1 %v7104_v11  ;;  %7123 = vst [vmem:[#allocation13_spill] sm:$0xff] %v5173_v8  ;;  %v5180_v11 = vld [vmem:[%s6843_s2 + $0x8] sm:$0xff] }
 0x430   :  { %1053 = vmatprep.subr.mxu0 %v5166_v6  ;;  %1124 = vmatprep.subr.mxu1 %v7106_v13  ;;  %7124 = vst [vmem:[#allocation22_spill] sm:$0xff] %v5180_v11  ;;  %v5187_v13 = vld [vmem:[%s6843_s2] sm:$0xff]  ;;  %v3520_v6 = vld [vmem:[%s6841_s0 + $0x90] sm:$0xff] }
 0x431   :  { %1054 = vmatpush1.msra.mxu0 %v5173_v8  ;;  %1125 = vmatpush1.msra.mxu1 %v7108_v15  ;;  %7125 = vst [vmem:[#allocation15_spill] sm:$0xff] %v5187_v13  ;;  %v5197_v15 = vld [vmem:[%s6843_s2 + $0x1f8] sm:$0xff] }
 0x432   :  { %1055 = vmatprep.subr.mxu0 %v5180_v11  ;;  %1126 = vmatprep.subr.mxu1 %v7110_v17  ;;  %7126 = vst [vmem:[#allocation23_spill] sm:$0xff] %v5197_v15  ;;  %v5203_v17 = vld [vmem:[%s6842_s1 + $0x28] sm:$0xff] }
 0x433   :  { %1056 = vmatpush1.msra.mxu0 %v5187_v13  ;;  %1089 = vmatprep.mubr.f32.mxu0 %v7112_v19  ;;  %7127 = vst [vmem:[#allocation17_spill] sm:$0xff] %v5203_v17 }
 0x434   :  { %1127 = vmatpush1.msra.mxu1 %v7113_v20  ;;  %1160 = vmatprep.mubr.f32.mxu1 %v7112_v19  ;;  %v3518_v20 = vld [vmem:[%s6841_s0 + $0x80] sm:$0xff] }
 0x435   :  { %1210 = vmatprep.subr.mxu0 %v4829_v21  ;;  %1281 = vmatprep.subr.mxu1 %v5197_v15 }
 0x436   :  { %1199 = vperm.xlu1 %3658, %v5203_v17   ;;  %v3521_v17 = vld [vmem:[%s6841_s0 + $0x98] sm:$0xff] }
 0x4d4   :  { %v906_v51 = vpop.f32.mrf.mxu0  ;;  %v977_v19 = vpop.f32.mrf.mxu1 }
 0x4d5   :  { %v982_v49 = vadd.f32 %v3518_v20, %v906_v51  ;;  %v984_v20 = vadd.f32 %v3520_v6, %v977_v19  ;;  %v7131_v6 = vld [vmem:[#allocation11_spill] sm:$0xff] }
 0x4d6   :  { %v908_v23 = vpop.f32.mrf.mxu0  ;;  %v979_v11 = vpop.f32.mrf.mxu1 }
 0x4d7   :  { %v3522_v21 = vmul.f32 -1.442695, %v982_v49  ;;  %v983_v15 = vadd.f32 %v3519_v57, %v908_v23  ;;  %v985_v8 = vadd.f32 %v3521_v17, %v979_v11 }
 0x4d9   :  { %3723 = vpow2.f32 %v3522_v21  ;;  %v3523_v13 = vmul.f32 -1.442695, %v983_v15  ;;  %v3524_v4 = vmul.f32 -1.442695, %v985_v8  ;;  %v5283_v8 = vld [vmem:[%s6843_s2 + $0x70] sm:$0xff] }
 0x4da   :  { %7132 = vst [vmem:[#allocation25_spill] sm:$0xff] %v5283_v8 }
 0x4db   :  { %3725 = vpow2.f32 %v3523_v13 }
 0x4dc   :  { %3727 = vpow2.f32 %v3524_v4 }
 0x4e6   :  { %v3724_v56 = vpop.eup %3723 }
 0x4e7   :  { %v989_v51 = vadd.f32 1.0, %v3724_v56 }
 0x4e8   :  { %v3726_v49 = vpop.eup %3725 }
 0x4e9   :  { %3729 = vrcp.f32 %v989_v51  ;;  %v995_v21 = vadd.f32 1.0, %v3726_v49  ;;  %v3728_v23 = vpop.eup %3727  ;;  %v5290_v51 = vld [vmem:[%s6843_s2 + $0x58] sm:$0xff]  ;;  %v7135_v49 = vld [vmem:[#allocation12_spill] sm:$0xff] }
 0x4ea   :  { %3731 = vtanh.f32 %v984_v20  ;;  %v1002_v45 = vadd.f32 1.0, %v3728_v23  ;;  %v7133_v20 = vld [vmem:[#allocation20_spill] sm:$0xff]  ;;  %7134 = vst [vmem:[#allocation8_spill] sm:$0xff] %v5290_v51  ;;  %v7137_v23 = vld [vmem:[#allocation21_spill] sm:$0xff] }
 0x4eb   :  { %3733 = vrcp.f32 %v995_v21  ;;  %v5297_v21 = vld [vmem:[%s6843_s2 + $0x50] sm:$0xff] }
 0x4ec   :  { %3735 = vrcp.f32 %v1002_v45  ;;  %v5276_v45 = vld [vmem:[%s6843_s2 + $0x78] sm:$0xff]  ;;  %7136 = vst [vmem:[#allocation27_spill] sm:$0xff] %v5297_v21 }
 0x4ed   :  { %7130 = vst [vmem:[#allocation19_spill] sm:$0xff] %v5276_v45 }
 0x4f6   :  { %v3730_v57 = vpop.eup %3729 }
 0x4f7   :  { %v3732_v13 = vpop.eup %3731 }
 0x4f8   :  { %v3734_v15 = vpop.eup %3733  ;;  %v1006_v11 = vmul.f32 %v3732_v13, %v3730_v57  ;;  %v5304_v57 = vld [vmem:[%s6843_s2 + $0x38] sm:$0xff]  ;;  %v7139_v13 = vld [vmem:[#allocation13_spill] sm:$0xff] }
 0x4f9   :  { %v1005_v17 = vmul.f32 %v3734_v15, %v4852_v47  ;;  %v3736_v19 = vpop.eup %3735  ;;  %v7129_v47 = vld [vmem:[#allocation18_spill] sm:$0xff]  ;;  %7138 = vst [vmem:[#allocation28_spill] sm:$0xff] %v5304_v57  ;;  %v5311_v15 = vld [vmem:[%s6843_s2 + $0x30] sm:$0xff] }
 0x4fa   :  { %7140 = vst [vmem:[#allocation29_spill] sm:$0xff] %v5311_v15 }
 0x4fb   :  { %v5219_v52 = vadd.f32 %v1006_v11, %v1005_v17  ;;  %v7141_v11 = vld [vmem:[#allocation22_spill] sm:$0xff] }
 0x4fc   :  { %v5318_v17 = vld [vmem:[%s6843_s2 + $0x18] sm:$0xff] }
 0x4fd   :  { %3737 = vtanh.f32 %v5219_v52  ;;  %7142 = vst [vmem:[#allocation30_spill] sm:$0xff] %v5318_v17 }
 0x50a   :  { %v3738_v56 = vpop.eup %3737 }
 0x50b   :  { %v5222_v4 = vmul.f32 %v3738_v56, %v3736_v19  ;;  %v7143_v19 = vld [vmem:[#allocation15_spill] sm:$0xff]  ;;  %v7144_v56 = vmov 0.0  }
 0x50d   :  { %7128 = vst [vmem:[#allocation24_spill] sm:$0xff] %v5222_v4  ;;  %1090 = vmatmul.mubr.f32.vlgmr.msra.gmra.mxu0 %v5222_v4  ;;  %1161 = vmatmul.mubr.f32.vlgmr.msra.gmra.mxu1 %v5222_v4  ;;  %v5326_v4 = vld [vmem:[%s6843_s2 + $0x10] sm:$0xff] }
 0x50e   :  { %1211 = vmatpush1.msra.mxu0 %v4862_v55  ;;  %1282 = vmatpush1.msra.mxu1 %v4868_v54  ;;  %7145 = vst [vmem:[#allocation31_spill] sm:$0xff] %v5326_v4 }
 0x50f   :  { %1212 = vmatprep.subr.mxu0 %v4874_v58  ;;  %1283 = vmatprep.subr.mxu1 %v4880_v0 }
 0x510   :  { %1213 = vmatpush1.msra.mxu0 %v4886_v61  ;;  %1284 = vmatpush1.msra.mxu1 %v4892_v2 }
 0x511   :  { %1214 = vmatprep.subr.mxu0 %v4898_v10  ;;  %1285 = vmatprep.subr.mxu1 %v4904_v62 }
 0x512   :  { %1215 = vmatpush1.msra.mxu0 %v4910_v60  ;;  %1286 = vmatpush1.msra.mxu1 %v4916_v59 }
 0x513   :  { %1216 = vmatprep.subr.mxu0 %v4922_v53  ;;  %1287 = vmatprep.subr.mxu1 %v4928_v63 }
 0x514   :  { %1217 = vmatpush1.msra.mxu0 %v4934_v1  ;;  %1288 = vmatpush1.msra.mxu1 %v4940_v3 }
 0x515   :  { %1218 = vmatprep.subr.mxu0 %v4946_v5  ;;  %1289 = vmatprep.subr.mxu1 %v4952_v7 }
 0x516   :  { %1219 = vmatpush1.msra.mxu0 %v4958_v9  ;;  %1290 = vmatpush1.msra.mxu1 %v4964_v12 }
 0x517   :  { %1220 = vmatprep.subr.mxu0 %v4970_v14  ;;  %1291 = vmatprep.subr.mxu1 %v4976_v16 }
 0x518   :  { %1221 = vmatpush1.msra.mxu0 %v4982_v18  ;;  %1292 = vmatpush1.msra.mxu1 %v4988_v22 }
 0x519   :  { %1222 = vmatprep.subr.mxu0 %v4994_v24  ;;  %1293 = vmatprep.subr.mxu1 %v5000_v25 }
 0x51a   :  { %1223 = vmatpush1.msra.mxu0 %v5006_v26  ;;  %1294 = vmatpush1.msra.mxu1 %v5012_v27 }
 0x51b   :  { %1224 = vmatprep.subr.mxu0 %v5018_v28  ;;  %1295 = vmatprep.subr.mxu1 %v5024_v29 }
 0x51c   :  { %1225 = vmatpush1.msra.mxu0 %v5030_v30  ;;  %1296 = vmatpush1.msra.mxu1 %v5036_v31 }
 0x51d   :  { %1226 = vmatprep.subr.mxu0 %v5042_v32  ;;  %1297 = vmatprep.subr.mxu1 %v5048_v33 }
 0x51e   :  { %1227 = vmatpush1.msra.mxu0 %v5054_v34  ;;  %1298 = vmatpush1.msra.mxu1 %v5060_v35 }
 0x51f   :  { %1228 = vmatprep.subr.mxu0 %v5066_v36  ;;  %1299 = vmatprep.subr.mxu1 %v5072_v37 }
 0x520   :  { %1229 = vmatpush1.msra.mxu0 %v5078_v38  ;;  %1300 = vmatpush1.msra.mxu1 %v5084_v39 }
 0x521   :  { %1230 = vmatprep.subr.mxu0 %v5090_v40  ;;  %1301 = vmatprep.subr.mxu1 %v5096_v41 }
 0x522   :  { %1231 = vmatpush1.msra.mxu0 %v5102_v42  ;;  %1302 = vmatpush1.msra.mxu1 %v5108_v43 }
 0x523   :  { %1232 = vmatprep.subr.mxu0 %v5114_v44  ;;  %1303 = vmatprep.subr.mxu1 %v5120_v46 }
 0x524   :  { %1233 = vmatpush1.msra.mxu0 %v5126_v48  ;;  %1304 = vmatpush1.msra.mxu1 %v5132_v50 }
 0x525   :  { %1234 = vmatprep.subr.mxu0 %v7129_v47  ;;  %1305 = vmatprep.subr.mxu1 %v5276_v45 }
 0x526   :  { %1235 = vmatpush1.msra.mxu0 %v7131_v6  ;;  %1306 = vmatpush1.msra.mxu1 %v5283_v8 }
 0x527   :  { %1236 = vmatprep.subr.mxu0 %v7133_v20  ;;  %1307 = vmatprep.subr.mxu1 %v5290_v51  ;;  %v3528_v20 = vld [vmem:[%s6841_s0 + $0xb0] sm:$0xff] }
 0x528   :  { %1237 = vmatpush1.msra.mxu0 %v7135_v49  ;;  %1308 = vmatpush1.msra.mxu1 %v5297_v21 }
 0x529   :  { %1238 = vmatprep.subr.mxu0 %v7137_v23  ;;  %1309 = vmatprep.subr.mxu1 %v5304_v57 }
 0x52a   :  { %1239 = vmatpush1.msra.mxu0 %v7139_v13  ;;  %1310 = vmatpush1.msra.mxu1 %v5311_v15  ;;  %v7147_v15 = vld [vmem:[#allocation23_spill] sm:$0xff] }
 0x52b   :  { %1240 = vmatprep.subr.mxu0 %v7141_v11  ;;  %1311 = vmatprep.subr.mxu1 %v5318_v17  ;;  %v7146_v11 = vld [vmem:[#allocation9_spill] sm:$0xff] }
 0x52c   :  { %1241 = vmatpush1.msra.mxu0 %v7143_v19  ;;  %1274 = vmatprep.mubr.f32.mxu0 %v7144_v56  ;;  %v5335_v17 = vld [vmem:[%s6842_s1 + $0x30] sm:$0xff]  ;;  %v3526_v19 = vld [vmem:[%s6841_s0 + $0xa0] sm:$0xff] }
 0x52d   :  { %1312 = vmatpush1.msra.mxu1 %v5326_v4  ;;  %1345 = vmatprep.mubr.f32.mxu1 %v7144_v56  ;;  %7148 = vst [vmem:[#allocation9_spill] sm:$0xff] %v5335_v17  ;;  %v3527_v56 = vld [vmem:[%s6841_s0 + $0xa8] sm:$0xff] }
 0x52e   :  { %1395 = vmatprep.subr.mxu0 %v7146_v11  ;;  %1466 = vmatprep.subr.mxu1 %v7147_v15 }
 0x52f   :  { %1384 = vperm.xlu0 %3657, %v5335_v17   ;;  %v3529_v17 = vld [vmem:[%s6841_s0 + $0xb8] sm:$0xff] }
 0x5cd   :  { %v1091_v13 = vpop.f32.mrf.mxu0  ;;  %v1162_v23 = vpop.f32.mrf.mxu1 }
 0x5ce   :  { %v1167_v4 = vadd.f32 %v3526_v19, %v1091_v13  ;;  %v1169_v13 = vadd.f32 %v3528_v20, %v1162_v23 }
 0x5cf   :  { %v1093_v11 = vpop.f32.mrf.mxu0  ;;  %v1164_v49 = vpop.f32.mrf.mxu1 }
 0x5d0   :  { %v3530_v57 = vmul.f32 -1.442695, %v1167_v4  ;;  %v1168_v15 = vadd.f32 %v3527_v56, %v1093_v11  ;;  %v1170_v51 = vadd.f32 %v3529_v17, %v1164_v49 }
 0x5d2   :  { %3739 = vpow2.f32 %v3530_v57  ;;  %v3531_v21 = vmul.f32 -1.442695, %v1168_v15  ;;  %v3532_v8 = vmul.f32 -1.442695, %v1170_v51 }
 0x5d4   :  { %3741 = vpow2.f32 %v3531_v21 }
 0x5d5   :  { %3743 = vpow2.f32 %v3532_v8 }
 0x5df   :  { %v3740_v6 = vpop.eup %3739 }
 0x5e0   :  { %v1174_v19 = vadd.f32 1.0, %v3740_v6 }
 0x5e1   :  { %v3742_v4 = vpop.eup %3741 }
 0x5e2   :  { %3745 = vrcp.f32 %v1174_v19  ;;  %v1180_v57 = vadd.f32 1.0, %v3742_v4  ;;  %v3744_v21 = vpop.eup %3743 }
 0x5e3   :  { %3747 = vtanh.f32 %v1169_v13  ;;  %v1187_v45 = vadd.f32 1.0, %v3744_v21 }
 0x5e4   :  { %3749 = vrcp.f32 %v1180_v57 }
 0x5e5   :  { %3751 = vrcp.f32 %v1187_v45 }
 0x5ef   :  { %v3746_v56 = vpop.eup %3745 }
 0x5f0   :  { %v3748_v11 = vpop.eup %3747 }
 0x5f1   :  { %v3750_v15 = vpop.eup %3749  ;;  %v1191_v49 = vmul.f32 %v3748_v11, %v3746_v56 }
 0x5f2   :  { %v1190_v17 = vmul.f32 %v3750_v15, %v5219_v52  ;;  %v3752_v6 = vpop.eup %3751  ;;  %v1708_v15 = vld [vmem:[#allocation4 + $0x1e0] sm:$0xff] }
 0x5f4   :  { %v5351_v47 = vadd.f32 %v1191_v49, %v1190_v17  ;;  %v1710_v49 = vld [vmem:[#allocation4 + $0x1f0] sm:$0xff]  ;;  %v1705_v17 = vld [vmem:[#allocation4 + $0x1c8] sm:$0xff] }
 0x5f6   :  { %3753 = vtanh.f32 %v5351_v47 }
 0x603   :  { %v3754_v20 = vpop.eup %3753 }
 0x604   :  { %v5354_v8 = vmul.f32 %v3754_v20, %v3752_v6  ;;  %v1707_v6 = vld [vmem:[#allocation4 + $0x1d8] sm:$0xff]  ;;  %v1704_v20 = vld [vmem:[#allocation4 + $0x1c0] sm:$0xff] }
 0x606   :  { %1275 = vmatmul.mubr.f32.vlgmr.msra.gmra.mxu0 %v5354_v8  ;;  %1346 = vmatmul.mubr.f32.vlgmr.msra.gmra.mxu1 %v5354_v8 }
 0x607   :  { %1396 = vmatpush1.msra.mxu0 %v4862_v55  ;;  %1467 = vmatpush1.msra.mxu1 %v4868_v54  ;;  %v7149_v55 = vld [vmem:[#allocation18_spill] sm:$0xff]  ;;  %v7150_v54 = vld [vmem:[#allocation19_spill] sm:$0xff] }
 0x608   :  { %1397 = vmatprep.subr.mxu0 %v4874_v58  ;;  %1468 = vmatprep.subr.mxu1 %v4880_v0  ;;  %v7151_v58 = vld [vmem:[#allocation11_spill] sm:$0xff]  ;;  %v7152_v0 = vld [vmem:[#allocation25_spill] sm:$0xff] }
 0x609   :  { %1398 = vmatpush1.msra.mxu0 %v4886_v61  ;;  %1469 = vmatpush1.msra.mxu1 %v4892_v2  ;;  %v7153_v61 = vld [vmem:[#allocation20_spill] sm:$0xff] }
 0x60a   :  { %1399 = vmatprep.subr.mxu0 %v4898_v10  ;;  %1470 = vmatprep.subr.mxu1 %v4904_v62  ;;  %v7154_v2 = vld [vmem:[#allocation8_spill] sm:$0xff]  ;;  %v7156_v62 = vld [vmem:[#allocation27_spill] sm:$0xff] }
 0x60b   :  { %1400 = vmatpush1.msra.mxu0 %v4910_v60  ;;  %1471 = vmatpush1.msra.mxu1 %v4916_v59  ;;  %v7155_v10 = vld [vmem:[#allocation12_spill] sm:$0xff]  ;;  %v7157_v60 = vld [vmem:[#allocation21_spill] sm:$0xff] }
 0x60c   :  { %1401 = vmatprep.subr.mxu0 %v4922_v53  ;;  %1472 = vmatprep.subr.mxu1 %v4928_v63  ;;  %v7158_v59 = vld [vmem:[#allocation28_spill] sm:$0xff]  ;;  %v7159_v53 = vld [vmem:[#allocation13_spill] sm:$0xff] }
 0x60d   :  { %1402 = vmatpush1.msra.mxu0 %v4934_v1  ;;  %1473 = vmatpush1.msra.mxu1 %v4940_v3  ;;  %v7160_v63 = vld [vmem:[#allocation29_spill] sm:$0xff]  ;;  %v7161_v1 = vld [vmem:[#allocation22_spill] sm:$0xff] }
 0x60e   :  { %1403 = vmatprep.subr.mxu0 %v4946_v5  ;;  %1474 = vmatprep.subr.mxu1 %v4952_v7  ;;  %v7162_v3 = vld [vmem:[#allocation30_spill] sm:$0xff]  ;;  %v7163_v5 = vld [vmem:[#allocation15_spill] sm:$0xff] }
 0x60f   :  { %1404 = vmatpush1.msra.mxu0 %v4958_v9  ;;  %1475 = vmatpush1.msra.mxu1 %v4964_v12  ;;  %v7164_v7 = vld [vmem:[#allocation31_spill] sm:$0xff]  ;;  %v7165_v9 = vmov 0.0   ;;  %v1709_v12 = vld [vmem:[#allocation4 + $0x1e8] sm:$0xff] }
 0x610   :  { %1405 = vmatprep.subr.mxu0 %v4970_v14  ;;  %1476 = vmatprep.subr.mxu1 %v4976_v16  ;;  %v1711_v14 = vld [vmem:[#allocation4 + $0x1f8] sm:$0xff]  ;;  %v2169_v16 = vld [vmem:[%s6842_s1] sm:$0xff] }
 0x611   :  { %1406 = vmatpush1.msra.mxu0 %v4982_v18  ;;  %1477 = vmatpush1.msra.mxu1 %v4988_v22  ;;  %v3549_v18 = vld [vmem:[%s6842_s1 + $0x38] sm:$0xff]  ;;  %v3625_v22 = vld [vmem:[%s6842_s1 + $0x10] sm:$0xff] }
 0x612   :  { %1407 = vmatprep.subr.mxu0 %v4994_v24  ;;  %1478 = vmatprep.subr.mxu1 %v5000_v25  ;;  %v3620_v24 = vld [vmem:[%s6842_s1 + $0x8] sm:$0xff]  ;;  %v3630_v25 = vld [vmem:[%s6842_s1 + $0x18] sm:$0xff] }
 0x613   :  { %1408 = vmatpush1.msra.mxu0 %v5006_v26  ;;  %1479 = vmatpush1.msra.mxu1 %v5012_v27  ;;  %v7166_v26 = vld [vmem:[#allocation16_spill] sm:$0xff]  ;;  %v3534_v27 = vld [vmem:[%s6841_s0 + $0xc0] sm:$0xff] }
 0x614   :  { %1409 = vmatprep.subr.mxu0 %v5018_v28  ;;  %1480 = vmatprep.subr.mxu1 %v5024_v29  ;;  %v7167_v28 = vld [vmem:[#allocation9_spill] sm:$0xff] }
 0x615   :  { %1410 = vmatpush1.msra.mxu0 %v5030_v30  ;;  %1481 = vmatpush1.msra.mxu1 %v5036_v31  ;;  %v7168_v29 = vld [vmem:[#allocation17_spill] sm:$0xff]  ;;  %v3535_v31 = vld [vmem:[%s6841_s0 + $0xc8] sm:$0xff] }
 0x616   :  { %1411 = vmatprep.subr.mxu0 %v5042_v32  ;;  %1482 = vmatprep.subr.mxu1 %v5048_v33 }
 0x617   :  { %1412 = vmatpush1.msra.mxu0 %v5054_v34  ;;  %1483 = vmatpush1.msra.mxu1 %v5060_v35 }
 0x618   :  { %1413 = vmatprep.subr.mxu0 %v5066_v36  ;;  %1484 = vmatprep.subr.mxu1 %v5072_v37 }
 0x619   :  { %1414 = vmatpush1.msra.mxu0 %v5078_v38  ;;  %1485 = vmatpush1.msra.mxu1 %v5084_v39  ;;  %v3537_v38 = vld [vmem:[%s6841_s0 + $0xd8] sm:$0xff] }
 0x61a   :  { %1415 = vmatprep.subr.mxu0 %v5090_v40  ;;  %1486 = vmatprep.subr.mxu1 %v5096_v41  ;;  %v3536_v41 = vld [vmem:[%s6841_s0 + $0xd0] sm:$0xff] }
 0x61b   :  { %1416 = vmatpush1.msra.mxu0 %v5102_v42  ;;  %1487 = vmatpush1.msra.mxu1 %v5108_v43 }
 0x61c   :  { %1417 = vmatprep.subr.mxu0 %v5114_v44  ;;  %1488 = vmatprep.subr.mxu1 %v5120_v46 }
 0x61d   :  { %1418 = vmatpush1.msra.mxu0 %v5126_v48  ;;  %1489 = vmatpush1.msra.mxu1 %v5132_v50 }
 0x61e   :  { %1419 = vmatprep.subr.mxu0 %v7149_v55  ;;  %1490 = vmatprep.subr.mxu1 %v7150_v54  ;;  %v1706_v55 = vld [vmem:[#allocation4 + $0x1d0] sm:$0xff]  ;;  %v1703_v54 = vld [vmem:[#allocation4 + $0x1b8] sm:$0xff] }
 0x61f   :  { %1420 = vmatpush1.msra.mxu0 %v7151_v58  ;;  %1491 = vmatpush1.msra.mxu1 %v7152_v0  ;;  %v1700_v58 = vld [vmem:[#allocation4 + $0x1a0] sm:$0xff]  ;;  %v1702_v0 = vld [vmem:[#allocation4 + $0x1b0] sm:$0xff] }
 0x620   :  { %1421 = vmatprep.subr.mxu0 %v7153_v61  ;;  %1492 = vmatprep.subr.mxu1 %v7154_v2  ;;  %v1697_v61 = vld [vmem:[#allocation4 + $0x188] sm:$0xff]  ;;  %v1699_v2 = vld [vmem:[#allocation4 + $0x198] sm:$0xff] }
 0x621   :  { %1422 = vmatpush1.msra.mxu0 %v7155_v10  ;;  %1493 = vmatpush1.msra.mxu1 %v7156_v62  ;;  %v1696_v10 = vld [vmem:[#allocation4 + $0x180] sm:$0xff]  ;;  %v1698_v62 = vld [vmem:[#allocation4 + $0x190] sm:$0xff] }
 0x622   :  { %1423 = vmatprep.subr.mxu0 %v7157_v60  ;;  %1494 = vmatprep.subr.mxu1 %v7158_v59  ;;  %v1693_v60 = vld [vmem:[#allocation4 + $0x168] sm:$0xff]  ;;  %v1695_v59 = vld [vmem:[#allocation4 + $0x178] sm:$0xff] }
 0x623   :  { %1424 = vmatpush1.msra.mxu0 %v7159_v53  ;;  %1495 = vmatpush1.msra.mxu1 %v7160_v63  ;;  %v1692_v53 = vld [vmem:[#allocation4 + $0x160] sm:$0xff]  ;;  %v1694_v63 = vld [vmem:[#allocation4 + $0x170] sm:$0xff] }
 0x624   :  { %1425 = vmatprep.subr.mxu0 %v7161_v1  ;;  %1496 = vmatprep.subr.mxu1 %v7162_v3  ;;  %v1689_v1 = vld [vmem:[#allocation4 + $0x148] sm:$0xff]  ;;  %v1691_v3 = vld [vmem:[#allocation4 + $0x158] sm:$0xff] }
 0x625   :  { %1426 = vmatpush1.msra.mxu0 %v7163_v5  ;;  %1497 = vmatpush1.msra.mxu1 %v7164_v7  ;;  %v1688_v5 = vld [vmem:[#allocation4 + $0x140] sm:$0xff]  ;;  %v1690_v7 = vld [vmem:[#allocation4 + $0x150] sm:$0xff] }
 0x626   :  { %1459 = vmatprep.mubr.f32.mxu0 %v7165_v9  ;;  %1530 = vmatprep.mubr.f32.mxu1 %v7165_v9 }
 0x627   :  { %1734 = vmatprep.subr.mxu0 %v1709_v12  ;;  %1847 = vmatprep.subr.mxu1 %v1711_v14  ;;  %v1685_v12 = vld [vmem:[#allocation4 + $0x128] sm:$0xff]  ;;  %v1687_v14 = vld [vmem:[#allocation4 + $0x138] sm:$0xff] }
 0x628   :  { %2172 = vperm.xlu0 %3657, %v2169_v16   ;;  %1569 = vperm.xlu1 %3658, %v3549_v18   ;;  %v1684_v16 = vld [vmem:[#allocation4 + $0x120] sm:$0xff] }
 0x62c   :  { %2543 = vperm.xlu0 %3657, %v3625_v22   ;;  %2357 = vperm.xlu1 %3658, %v3620_v24   ;;  %v1681_v22 = vld [vmem:[#allocation4 + $0x108] sm:$0xff]  ;;  %v1683_v24 = vld [vmem:[#allocation4 + $0x118] sm:$0xff] }
 0x630   :  { %2915 = vperm.xlu0 %3657, %v7166_v26   ;;  %2729 = vperm.xlu1 %3658, %v3630_v25   ;;  %v1680_v25 = vld [vmem:[#allocation4 + $0x100] sm:$0xff]  ;;  %v1682_v26 = vld [vmem:[#allocation4 + $0x110] sm:$0xff] }
 0x634   :  { %3287 = vperm.xlu0 %3657, %v7167_v28   ;;  %3101 = vperm.xlu1 %3658, %v7168_v29   ;;  %v1679_v28 = vld [vmem:[#allocation4 + $0xf8] sm:$0xff]  ;;  %v1676_v29 = vld [vmem:[#allocation4 + $0xe0] sm:$0xff] }
 0x638   :  { %3473 = vperm.xlu1 %3658, %v3549_v18   ;;  %v1686_v18 = vld [vmem:[#allocation4 + $0x130] sm:$0xff] }
 0x6c6   :  { %v1276_v30 = vpop.f32.mrf.mxu0  ;;  %v1347_v36 = vpop.f32.mrf.mxu1 }
 0x6c7   :  { %v1352_v32 = vadd.f32 %v3534_v27, %v1276_v30  ;;  %v1354_v44 = vadd.f32 %v3536_v41, %v1347_v36  ;;  %v1677_v27 = vld [vmem:[#allocation4 + $0xe8] sm:$0xff]  ;;  %v1678_v30 = vld [vmem:[#allocation4 + $0xf0] sm:$0xff]  ;;  %v1671_v36 = vld [vmem:[#allocation4 + $0xb8] sm:$0xff] }
 0x6c8   :  { %v1278_v33 = vpop.f32.mrf.mxu0  ;;  %v1349_v39 = vpop.f32.mrf.mxu1  ;;  %v1664_v41 = vld [vmem:[#allocation4 + $0x80] sm:$0xff] }
 0x6c9   :  { %v3538_v34 = vmul.f32 -1.442695, %v1352_v32  ;;  %v1353_v35 = vadd.f32 %v3535_v31, %v1278_v33  ;;  %v1355_v40 = vadd.f32 %v3537_v38, %v1349_v39  ;;  %v1673_v31 = vld [vmem:[#allocation4 + $0xc8] sm:$0xff]  ;;  %v1675_v32 = vld [vmem:[#allocation4 + $0xd8] sm:$0xff]  ;;  %v1672_v33 = vld [vmem:[#allocation4 + $0xc0] sm:$0xff] }
 0x6ca   :  { %v1670_v38 = vld [vmem:[#allocation4 + $0xb0] sm:$0xff]  ;;  %v1665_v39 = vld [vmem:[#allocation4 + $0x88] sm:$0xff] }
 0x6cb   :  { %3755 = vpow2.f32 %v3538_v34  ;;  %v3539_v37 = vmul.f32 -1.442695, %v1353_v35  ;;  %v3540_v42 = vmul.f32 -1.442695, %v1355_v40  ;;  %v1674_v34 = vld [vmem:[#allocation4 + $0xd0] sm:$0xff]  ;;  %v1669_v35 = vld [vmem:[#allocation4 + $0xa8] sm:$0xff] }
 0x6cc   :  { %v1667_v40 = vld [vmem:[#allocation4 + $0x98] sm:$0xff] }
 0x6cd   :  { %3757 = vpow2.f32 %v3539_v37  ;;  %v1668_v37 = vld [vmem:[#allocation4 + $0xa0] sm:$0xff] }
 0x6ce   :  { %3759 = vpow2.f32 %v3540_v42  ;;  %v1666_v42 = vld [vmem:[#allocation4 + $0x90] sm:$0xff] }
 0x6d8   :  { %v3756_v43 = vpop.eup %3755 }
 0x6d9   :  { %v1359_v46 = vadd.f32 1.0, %v3756_v43  ;;  %v1661_v43 = vld [vmem:[#allocation4 + $0x68] sm:$0xff] }
 0x6da   :  { %v3758_v48 = vpop.eup %3757 }
 0x6db   :  { %3761 = vrcp.f32 %v1359_v46  ;;  %v1365_v50 = vadd.f32 1.0, %v3758_v48  ;;  %v3760_v52 = vpop.eup %3759  ;;  %v1660_v46 = vld [vmem:[#allocation4 + $0x60] sm:$0xff]  ;;  %v1662_v48 = vld [vmem:[#allocation4 + $0x70] sm:$0xff] }
 0x6dc   :  { %3763 = vtanh.f32 %v1354_v44  ;;  %v1372_v13 = vadd.f32 1.0, %v3760_v52  ;;  %v1663_v44 = vld [vmem:[#allocation4 + $0x78] sm:$0xff] }
 0x6dd   :  { %3765 = vrcp.f32 %v1365_v50  ;;  %v1657_v50 = vld [vmem:[#allocation4 + $0x48] sm:$0xff]  ;;  %v1659_v52 = vld [vmem:[#allocation4 + $0x58] sm:$0xff] }
 0x6de   :  { %3767 = vrcp.f32 %v1372_v13  ;;  %v1655_v13 = vld [vmem:[#allocation4 + $0x38] sm:$0xff] }
 0x6e8   :  { %v3762_v45 = vpop.eup %3761 }
 0x6e9   :  { %v3764_v51 = vpop.eup %3763 }
 0x6ea   :  { %v3766_v23 = vpop.eup %3765  ;;  %v1376_v19 = vmul.f32 %v3764_v51, %v3762_v45  ;;  %v1656_v45 = vld [vmem:[#allocation4 + $0x40] sm:$0xff]  ;;  %v1658_v51 = vld [vmem:[#allocation4 + $0x50] sm:$0xff] }
 0x6eb   :  { %v1375_v4 = vmul.f32 %v3766_v23, %v5351_v47  ;;  %v3768_v21 = vpop.eup %3767  ;;  %v1701_v47 = vld [vmem:[#allocation4 + $0x1a8] sm:$0xff] }
 0x6ec   :  { %v1653_v23 = vld [vmem:[#allocation4 + $0x28] sm:$0xff] }
 0x6ed   :  { %v5453_v57 = vadd.f32 %v1376_v19, %v1375_v4  ;;  %v1652_v19 = vld [vmem:[#allocation4 + $0x20] sm:$0xff]  ;;  %v1654_v4 = vld [vmem:[#allocation4 + $0x30] sm:$0xff] }
 0x6ef   :  { %3769 = vtanh.f32 %v5453_v57 }
 0x6fc   :  { %v3770_v56 = vpop.eup %3769 }
 0x6fd   :  { %v5456_v11 = vmul.f32 %v3770_v56, %v3768_v21  ;;  %v1649_v21 = vld [vmem:[#allocation4 + $0x8] sm:$0xff]  ;;  %v1651_v56 = vld [vmem:[#allocation4 + $0x18] sm:$0xff] }
 0x6ff   :  { %1460 = vmatmul.mubr.f32.vlgmr.msra.gmra.mxu0 %v5456_v11  ;;  %1531 = vmatmul.mubr.f32.vlgmr.msra.gmra.mxu1 %v5456_v11 }
 0x700   :  { %1735 = vmatpush1.msra.mxu0 %v1708_v15  ;;  %1848 = vmatpush1.msra.mxu1 %v1710_v49  ;;  %v276_v15 = vpop.permute.xlu0 %275  ;;  %v1648_v49 = vld [vmem:[#allocation4] sm:$0xff] }
 0x701   :  { %1736 = vmatprep.subr.mxu0 %v1705_v17  ;;  %1849 = vmatprep.subr.mxu1 %v1707_v6  ;;  %v1650_v17 = vld [vmem:[#allocation4 + $0x10] sm:$0xff]  ;;  %v7169_v6 = vld [vmem:[#allocation26_spill] sm:$0xff] }
 0x702   :  { %1737 = vmatpush1.msra.mxu0 %v1704_v20  ;;  %1850 = vmatpush1.msra.mxu1 %v1706_v55  ;;  %v278_v20 = vmul.f32 %v276_v15, %v7169_v6  ;;  %v5731_v15 = vld [vmem:[%s6843_s2 + $0x2b8] sm:$0xff]  ;;  %v5749_v6 = vld [vmem:[%s6843_s2 + $0x288] sm:$0xff] }
 0x703   :  { %1738 = vmatprep.subr.mxu0 %v1701_v47  ;;  %1851 = vmatprep.subr.mxu1 %v1703_v54  ;;  %v7170_v47 = vld [vmem:[#allocation14_spill] sm:$0xff]  ;;  %7177 = vst [vmem:[#allocation11_spill] sm:$0xff] %v5749_v6 }
 0x704   :  { %1739 = vmatpush1.msra.mxu0 %v1700_v58  ;;  %1852 = vmatpush1.msra.mxu1 %v1702_v0  ;;  %v460_v55 = vpop.permute.xlu0 %459  ;;  %v645_v58 = vpop.permute.xlu1 %644  ;;  %v7171_v0 = vld [vmem:[#allocation7_spill] sm:$0xff] }
 0x705   :  { %1740 = vmatprep.subr.mxu0 %v1697_v61  ;;  %1853 = vmatprep.subr.mxu1 %v1699_v2  ;;  %v462_v54 = vmul.f32 %v460_v55, %v7170_v47  ;;  %v647_v61 = vmul.f32 %v645_v58, %v7171_v0  ;;  %v5761_v55 = vld [vmem:[%s6843_s2 + $0x280] sm:$0xff]  ;;  %v5767_v47 = vld [vmem:[%s6843_s2 + $0x290] sm:$0xff]  ;;  %v5779_v58 = vld [vmem:[%s6843_s2 + $0x278] sm:$0xff] }
 0x706   :  { %1741 = vmatpush1.msra.mxu0 %v1696_v10  ;;  %1854 = vmatpush1.msra.mxu1 %v1698_v62  ;;  %v7172_v10 = vld [vmem:[#allocation10_spill] sm:$0xff]  ;;  %7179 = vst [vmem:[#allocation20_spill] sm:$0xff] %v5761_v55  ;;  %7180 = vst [vmem:[#allocation8_spill] sm:$0xff] %v5767_v47  ;;  %v5785_v0 = vld [vmem:[%s6843_s2 + $0x260] sm:$0xff] }
 0x707   :  { %1742 = vmatprep.subr.mxu0 %v1693_v60  ;;  %1855 = vmatprep.subr.mxu1 %v1695_v59  ;;  %v7173_v59 = vld [vmem:[#allocation24_spill] sm:$0xff]  ;;  %7182 = vst [vmem:[#allocation27_spill] sm:$0xff] %v5779_v58  ;;  %7183 = vst [vmem:[#allocation21_spill] sm:$0xff] %v5785_v0 }
 0x708   :  { %1743 = vmatpush1.msra.mxu0 %v1692_v53  ;;  %1856 = vmatpush1.msra.mxu1 %v1694_v63  ;;  %v830_v2 = vpop.permute.xlu1 %829  ;;  %v1015_v60 = vpop.permute.xlu0 %1014 }
 0x709   :  { %1744 = vmatprep.subr.mxu0 %v1689_v1  ;;  %1857 = vmatprep.subr.mxu1 %v1691_v3  ;;  %v832_v62 = vmul.f32 %v830_v2, %v7172_v10  ;;  %v1017_v53 = vmul.f32 %v1015_v60, %v7173_v59  ;;  %v5797_v2 = vld [vmem:[%s6843_s2 + $0x248] sm:$0xff]  ;;  %v5803_v10 = vld [vmem:[%s6843_s2 + $0x258] sm:$0xff]  ;;  %v5815_v60 = vld [vmem:[%s6843_s2 + $0x250] sm:$0xff] }
 0x70a   :  { %1745 = vmatpush1.msra.mxu0 %v1688_v5  ;;  %1858 = vmatpush1.msra.mxu1 %v1690_v7  ;;  %v5486_v7 = vld [vmem:[%s6843_s2 + $0x3e8] sm:$0xff]  ;;  %7185 = vst [vmem:[#allocation13_spill] sm:$0xff] %v5797_v2  ;;  %7186 = vst [vmem:[#allocation29_spill] sm:$0xff] %v5803_v10 }
 0x70b   :  { %1746 = vmatprep.subr.mxu0 %v1685_v12  ;;  %1859 = vmatprep.subr.mxu1 %v1687_v14  ;;  %7174 = vst [vmem:[#allocation23_spill] sm:$0xff] %v5486_v7  ;;  %v5503_v12 = vld [vmem:[%s6843_s2 + $0x3f0] sm:$0xff]  ;;  %v5509_v14 = vld [vmem:[%s6843_s2 + $0x3c8] sm:$0xff]  ;;  %7188 = vst [vmem:[#allocation30_spill] sm:$0xff] %v5815_v60 }
 0x70c   :  { %1747 = vmatpush1.msra.mxu0 %v1684_v16  ;;  %1860 = vmatpush1.msra.mxu1 %v1686_v18  ;;  %v1200_v63 = vpop.permute.xlu1 %1199  ;;  %v1385_v3 = vpop.permute.xlu0 %1384  ;;  %v5515_v16 = vld [vmem:[%s6843_s2 + $0x3d8] sm:$0xff]  ;;  %v5521_v18 = vld [vmem:[%s6843_s2 + $0x3c0] sm:$0xff]  ;;  %v5821_v59 = vld [vmem:[%s6843_s2 + $0x228] sm:$0xff] }
 0x70d   :  { %1748 = vmatprep.subr.mxu0 %v1681_v22  ;;  %1861 = vmatprep.subr.mxu1 %v1683_v24  ;;  %v1202_v1 = vmul.f32 %v1200_v63, %v5354_v8  ;;  %v1387_v5 = vmul.f32 %v1385_v3, %v5456_v11  ;;  %v5491_v8 = vld [vmem:[%s6843_s2 + $0x3f8] sm:$0xff]  ;;  %v5497_v11 = vld [vmem:[%s6843_s2 + $0x3e0] sm:$0xff]  ;;  %v5527_v22 = vld [vmem:[%s6843_s2 + $0x3d0] sm:$0xff]  ;;  %7189 = vst [vmem:[#allocation15_spill] sm:$0xff] %v5821_v59 }
 0x70e   :  { %1749 = vmatpush1.msra.mxu0 %v1680_v25  ;;  %1862 = vmatpush1.msra.mxu1 %v1682_v26  ;;  %7175 = vst [vmem:[#allocation18_spill] sm:$0xff] %v5491_v8  ;;  %v5533_v24 = vld [vmem:[%s6843_s2 + $0x3a8] sm:$0xff]  ;;  %v5539_v25 = vld [vmem:[%s6843_s2 + $0x3b8] sm:$0xff]  ;;  %v5545_v26 = vld [vmem:[%s6843_s2 + $0x3a0] sm:$0xff] }
 0x70f   :  { %1750 = vmatprep.subr.mxu0 %v1677_v27  ;;  %1863 = vmatprep.subr.mxu1 %v1679_v28  ;;  %v5551_v27 = vld [vmem:[%s6843_s2 + $0x3b0] sm:$0xff]  ;;  %v5557_v28 = vld [vmem:[%s6843_s2 + $0x388] sm:$0xff]  ;;  %v5832_v63 = vld [vmem:[%s6843_s2 + $0x238] sm:$0xff] }
 0x710   :  { %1751 = vmatpush1.msra.mxu0 %v1676_v29  ;;  %1864 = vmatpush1.msra.mxu1 %v1678_v30  ;;  %v5563_v29 = vld [vmem:[%s6843_s2 + $0x398] sm:$0xff]  ;;  %v5569_v30 = vld [vmem:[%s6843_s2 + $0x380] sm:$0xff]  ;;  %7191 = vst [vmem:[#allocation16_spill] sm:$0xff] %v5832_v63  ;;  %v5844_v3 = vld [vmem:[%s6843_s2 + $0x230] sm:$0xff] }
 0x711   :  { %1752 = vmatprep.subr.mxu0 %v1673_v31  ;;  %1865 = vmatprep.subr.mxu1 %v1675_v32  ;;  %v5575_v31 = vld [vmem:[%s6843_s2 + $0x390] sm:$0xff]  ;;  %v5581_v32 = vld [vmem:[%s6843_s2 + $0x368] sm:$0xff]  ;;  %7193 = vst [vmem:[#allocation17_spill] sm:$0xff] %v5844_v3 }
 0x712   :  { %1753 = vmatpush1.msra.mxu0 %v1672_v33  ;;  %1866 = vmatpush1.msra.mxu1 %v1674_v34  ;;  %v5587_v33 = vld [vmem:[%s6843_s2 + $0x378] sm:$0xff]  ;;  %v5593_v34 = vld [vmem:[%s6843_s2 + $0x360] sm:$0xff] }
 0x713   :  { %1754 = vmatprep.subr.mxu0 %v1669_v35  ;;  %1867 = vmatprep.subr.mxu1 %v1671_v36  ;;  %v5599_v35 = vld [vmem:[%s6843_s2 + $0x370] sm:$0xff]  ;;  %v5605_v36 = vld [vmem:[%s6843_s2 + $0x348] sm:$0xff] }
 0x714   :  { %1755 = vmatpush1.msra.mxu0 %v1668_v37  ;;  %1868 = vmatpush1.msra.mxu1 %v1670_v38  ;;  %v5611_v37 = vld [vmem:[%s6843_s2 + $0x358] sm:$0xff]  ;;  %v5617_v38 = vld [vmem:[%s6843_s2 + $0x340] sm:$0xff] }
 0x715   :  { %1756 = vmatprep.subr.mxu0 %v1665_v39  ;;  %1869 = vmatprep.subr.mxu1 %v1667_v40  ;;  %v5623_v39 = vld [vmem:[%s6843_s2 + $0x350] sm:$0xff]  ;;  %v5629_v40 = vld [vmem:[%s6843_s2 + $0x328] sm:$0xff] }
 0x716   :  { %1757 = vmatpush1.msra.mxu0 %v1664_v41  ;;  %1870 = vmatpush1.msra.mxu1 %v1666_v42  ;;  %v5635_v41 = vld [vmem:[%s6843_s2 + $0x338] sm:$0xff]  ;;  %v5641_v42 = vld [vmem:[%s6843_s2 + $0x320] sm:$0xff] }
 0x717   :  { %1758 = vmatprep.subr.mxu0 %v1661_v43  ;;  %1871 = vmatprep.subr.mxu1 %v1663_v44  ;;  %v5647_v43 = vld [vmem:[%s6843_s2 + $0x330] sm:$0xff]  ;;  %v5653_v44 = vld [vmem:[%s6843_s2 + $0x308] sm:$0xff] }
 0x718   :  { %1759 = vmatpush1.msra.mxu0 %v1660_v46  ;;  %1872 = vmatpush1.msra.mxu1 %v1662_v48  ;;  %v5659_v46 = vld [vmem:[%s6843_s2 + $0x318] sm:$0xff]  ;;  %v5665_v48 = vld [vmem:[%s6843_s2 + $0x300] sm:$0xff] }
 0x719   :  { %1760 = vmatprep.subr.mxu0 %v1657_v50  ;;  %1873 = vmatprep.subr.mxu1 %v1659_v52  ;;  %v5671_v50 = vld [vmem:[%s6843_s2 + $0x310] sm:$0xff]  ;;  %v5677_v52 = vld [vmem:[%s6843_s2 + $0x2e8] sm:$0xff] }
 0x71a   :  { %1761 = vmatpush1.msra.mxu0 %v1656_v45  ;;  %1874 = vmatpush1.msra.mxu1 %v1658_v51  ;;  %v5683_v45 = vld [vmem:[%s6843_s2 + $0x2f8] sm:$0xff]  ;;  %v5689_v51 = vld [vmem:[%s6843_s2 + $0x2e0] sm:$0xff] }
 0x71b   :  { %1762 = vmatprep.subr.mxu0 %v1653_v23  ;;  %1875 = vmatprep.subr.mxu1 %v1655_v13  ;;  %v5695_v23 = vld [vmem:[%s6843_s2 + $0x2f0] sm:$0xff]  ;;  %v5701_v13 = vld [vmem:[%s6843_s2 + $0x2c8] sm:$0xff] }
 0x71c   :  { %1763 = vmatpush1.msra.mxu0 %v1652_v19  ;;  %1876 = vmatpush1.msra.mxu1 %v1654_v4  ;;  %v5707_v19 = vld [vmem:[%s6843_s2 + $0x2d8] sm:$0xff]  ;;  %v5713_v4 = vld [vmem:[%s6843_s2 + $0x2c0] sm:$0xff] }
 0x71d   :  { %1764 = vmatprep.subr.mxu0 %v1649_v21  ;;  %1877 = vmatprep.subr.mxu1 %v1651_v56  ;;  %v5719_v21 = vld [vmem:[%s6843_s2 + $0x2d0] sm:$0xff]  ;;  %v5725_v56 = vld [vmem:[%s6843_s2 + $0x2a8] sm:$0xff] }
 0x71e   :  { %1765 = vmatpush1.msra.mxu0 %v1648_v49  ;;  %1798 = vmatprep.mubr.f32.mxu0 %v7165_v9  ;;  %v5737_v49 = vld [vmem:[%s6843_s2 + $0x2a0] sm:$0xff] }
 0x71f   :  { %1878 = vmatpush1.msra.mxu1 %v1650_v17  ;;  %1911 = vmatprep.mubr.f32.mxu1 %v7165_v9  ;;  %v5743_v17 = vld [vmem:[%s6843_s2 + $0x2b0] sm:$0xff] }
 0x720   :  { %1799 = vmatmul.mubr.f32.vlgmr.msra.gmra.mxu0 %v278_v20  ;;  %1912 = vmatmul.mubr.f32.vlgmr.msra.gmra.mxu1 %v278_v20  ;;  %7176 = vst [vmem:[#allocation19_spill] sm:$0xff] %v5743_v17  ;;  %v5755_v20 = vld [vmem:[%s6843_s2 + $0x298] sm:$0xff] }
 0x721   :  { %1804 = vmatprep.mubr.f32.mxu0 %v7165_v9  ;;  %1917 = vmatprep.mubr.f32.mxu1 %v7165_v9  ;;  %7178 = vst [vmem:[#allocation25_spill] sm:$0xff] %v5755_v20 }
 0x722   :  { %1999 = vmatprep.subr.mxu0 %v5486_v7  ;;  %2070 = vmatprep.subr.mxu1 %v5491_v8 }
 0x723   :  { %2000 = vmatpush1.msra.mxu0 %v5497_v11  ;;  %2071 = vmatpush1.msra.mxu1 %v5503_v12 }
 0x724   :  { %1805 = vmatmul.mubr.f32.gmra.mxu0 %v462_v54  ;;  %1918 = vmatmul.mubr.f32.gmra.mxu1 %v462_v54  ;;  %v5773_v54 = vld [vmem:[%s6843_s2 + $0x268] sm:$0xff] }
 0x725   :  { %1810 = vmatprep.mubr.f32.mxu0 %v7165_v9  ;;  %1923 = vmatprep.mubr.f32.mxu1 %v7165_v9  ;;  %7181 = vst [vmem:[#allocation12_spill] sm:$0xff] %v5773_v54 }
 0x726   :  { %2001 = vmatprep.subr.mxu0 %v5509_v14  ;;  %2072 = vmatprep.subr.mxu1 %v5515_v16 }
 0x727   :  { %2002 = vmatpush1.msra.mxu0 %v5521_v18  ;;  %2073 = vmatpush1.msra.mxu1 %v5527_v22 }
 0x728   :  { %1811 = vmatmul.mubr.f32.gmra.mxu0 %v647_v61  ;;  %1924 = vmatmul.mubr.f32.gmra.mxu1 %v647_v61  ;;  %v5791_v61 = vld [vmem:[%s6843_s2 + $0x270] sm:$0xff] }
 0x729   :  { %1816 = vmatprep.mubr.f32.mxu0 %v7165_v9  ;;  %1929 = vmatprep.mubr.f32.mxu1 %v7165_v9  ;;  %7184 = vst [vmem:[#allocation28_spill] sm:$0xff] %v5791_v61 }
 0x72a   :  { %2003 = vmatprep.subr.mxu0 %v5533_v24  ;;  %2074 = vmatprep.subr.mxu1 %v5539_v25 }
 0x72b   :  { %2004 = vmatpush1.msra.mxu0 %v5545_v26  ;;  %2075 = vmatpush1.msra.mxu1 %v5551_v27 }
 0x72c   :  { %1817 = vmatmul.mubr.f32.gmra.mxu0 %v832_v62  ;;  %1930 = vmatmul.mubr.f32.gmra.mxu1 %v832_v62  ;;  %v5809_v62 = vld [vmem:[%s6843_s2 + $0x240] sm:$0xff] }
 0x72d   :  { %1822 = vmatprep.mubr.f32.mxu0 %v7165_v9  ;;  %1935 = vmatprep.mubr.f32.mxu1 %v7165_v9  ;;  %7187 = vst [vmem:[#allocation22_spill] sm:$0xff] %v5809_v62 }
 0x72e   :  { %2005 = vmatprep.subr.mxu0 %v5557_v28  ;;  %2076 = vmatprep.subr.mxu1 %v5563_v29 }
 0x72f   :  { %2006 = vmatpush1.msra.mxu0 %v5569_v30  ;;  %2077 = vmatpush1.msra.mxu1 %v5575_v31 }
 0x730   :  { %1823 = vmatmul.mubr.f32.gmra.mxu0 %v1017_v53  ;;  %1936 = vmatmul.mubr.f32.gmra.mxu1 %v1017_v53  ;;  %v5827_v53 = vld [vmem:[%s6843_s2 + $0x220] sm:$0xff] }
 0x731   :  { %1828 = vmatprep.mubr.f32.mxu0 %v7165_v9  ;;  %1941 = vmatprep.mubr.f32.mxu1 %v7165_v9  ;;  %7190 = vst [vmem:[#allocation31_spill] sm:$0xff] %v5827_v53 }
 0x732   :  { %2007 = vmatprep.subr.mxu0 %v5581_v32  ;;  %2078 = vmatprep.subr.mxu1 %v5587_v33 }
 0x733   :  { %2008 = vmatpush1.msra.mxu0 %v5593_v34  ;;  %2079 = vmatpush1.msra.mxu1 %v5599_v35 }
 0x734   :  { %1829 = vmatmul.mubr.f32.gmra.mxu0 %v1202_v1  ;;  %1942 = vmatmul.mubr.f32.gmra.mxu1 %v1202_v1  ;;  %v5839_v1 = vld [vmem:[%s6843_s2 + $0x208] sm:$0xff] }
 0x735   :  { %1834 = vmatprep.mubr.f32.mxu0 %v7165_v9  ;;  %1947 = vmatprep.mubr.f32.mxu1 %v7165_v9  ;;  %7192 = vst [vmem:[#allocation9_spill] sm:$0xff] %v5839_v1 }
 0x736   :  { %2009 = vmatprep.subr.mxu0 %v5605_v36  ;;  %2080 = vmatprep.subr.mxu1 %v5611_v37 }
 0x737   :  { %2010 = vmatpush1.msra.mxu0 %v5617_v38  ;;  %2081 = vmatpush1.msra.mxu1 %v5623_v39 }
 0x738   :  { %1835 = vmatmul.mubr.f32.gmra.mxu0 %v1387_v5  ;;  %1948 = vmatmul.mubr.f32.gmra.mxu1 %v1387_v5  ;;  %v5849_v5 = vld [vmem:[%s6843_s2 + $0x200] sm:$0xff] }
 0x739   :  { %1840 = vmatprep.mubr.f32.mxu0 %v7165_v9  ;;  %1953 = vmatprep.mubr.f32.mxu1 %v7165_v9  ;;  %7194 = vst [vmem:[#allocation26_spill] sm:$0xff] %v5849_v5 }
 0x73a   :  { %2011 = vmatprep.subr.mxu0 %v5629_v40  ;;  %2082 = vmatprep.subr.mxu1 %v5635_v41 }
 0x73b   :  { %2012 = vmatpush1.msra.mxu0 %v5641_v42  ;;  %2083 = vmatpush1.msra.mxu1 %v5647_v43 }
 0x73c   :  { %2013 = vmatprep.subr.mxu0 %v5653_v44  ;;  %2084 = vmatprep.subr.mxu1 %v5659_v46 }
 0x73d   :  { %2014 = vmatpush1.msra.mxu0 %v5665_v48  ;;  %2085 = vmatpush1.msra.mxu1 %v5671_v50 }
 0x73e   :  { %2015 = vmatprep.subr.mxu0 %v5677_v52  ;;  %2086 = vmatprep.subr.mxu1 %v5683_v45 }
 0x73f   :  { %2016 = vmatpush1.msra.mxu0 %v5689_v51  ;;  %2087 = vmatpush1.msra.mxu1 %v5695_v23 }
 0x740   :  { %2017 = vmatprep.subr.mxu0 %v5701_v13  ;;  %2088 = vmatprep.subr.mxu1 %v5707_v19 }
 0x741   :  { %2018 = vmatpush1.msra.mxu0 %v5713_v4  ;;  %2089 = vmatpush1.msra.mxu1 %v5719_v21 }
 0x742   :  { %2019 = vmatprep.subr.mxu0 %v5725_v56  ;;  %2090 = vmatprep.subr.mxu1 %v5731_v15 }
 0x743   :  { %2020 = vmatpush1.msra.mxu0 %v5737_v49  ;;  %2091 = vmatpush1.msra.mxu1 %v5743_v17 }
 0x744   :  { %2021 = vmatprep.subr.mxu0 %v5749_v6  ;;  %2092 = vmatprep.subr.mxu1 %v5755_v20 }
 0x745   :  { %2022 = vmatpush1.msra.mxu0 %v5761_v55  ;;  %2093 = vmatpush1.msra.mxu1 %v5767_v47 }
 0x746   :  { %2023 = vmatprep.subr.mxu0 %v5773_v54  ;;  %2094 = vmatprep.subr.mxu1 %v5779_v58 }
 0x747   :  { %2024 = vmatpush1.msra.mxu0 %v5785_v0  ;;  %2095 = vmatpush1.msra.mxu1 %v5791_v61  ;;  %v3544_v61 = vld [vmem:[%s6841_s0 + $0xf0] sm:$0xff] }
 0x748   :  { %2025 = vmatprep.subr.mxu0 %v5797_v2  ;;  %2096 = vmatprep.subr.mxu1 %v5803_v10 }
 0x749   :  { %2026 = vmatpush1.msra.mxu0 %v5809_v62  ;;  %2097 = vmatpush1.msra.mxu1 %v5815_v60  ;;  %v3543_v60 = vld [vmem:[%s6841_s0 + $0xe8] sm:$0xff] }
 0x74a   :  { %2027 = vmatprep.subr.mxu0 %v5821_v59  ;;  %2098 = vmatprep.subr.mxu1 %v5832_v63  ;;  %v5856_v63 = vld [vmem:[%s6843_s2 + $0x218] sm:$0xff]  ;;  %v5861_v59 = vld [vmem:[%s6843_s2 + $0x210] sm:$0xff] }
 0x74b   :  { %2028 = vmatpush1.msra.mxu0 %v5827_v53  ;;  %2099 = vmatpush1.msra.mxu1 %v5844_v3  ;;  %7195 = vst [vmem:[#allocation14_spill] sm:$0xff] %v5856_v63  ;;  %7196 = vst [vmem:[#allocation7_spill] sm:$0xff] %v5861_v59  ;;  %v3542_v3 = vld [vmem:[%s6841_s0 + $0xe0] sm:$0xff] }
 0x74c   :  { %2029 = vmatprep.subr.mxu0 %v5839_v1  ;;  %2100 = vmatprep.subr.mxu1 %v5856_v63 }
 0x74d   :  { %2030 = vmatpush1.msra.mxu0 %v5849_v5  ;;  %2101 = vmatpush1.msra.mxu1 %v5861_v59 }
 0x74e   :  { %2184 = vmatprep.subr.mxu0 %v5486_v7  ;;  %2255 = vmatprep.subr.mxu1 %v5491_v8  ;;  %v3545_v8 = vld [vmem:[%s6841_s0 + $0xf8] sm:$0xff] }
 0x7bf   :  { %v1461_v53 = vpop.f32.mrf.mxu0  ;;  %v1532_v5 = vpop.f32.mrf.mxu1 }
 0x7c0   :  { %v1537_v1 = vadd.f32 %v3542_v3, %v1461_v53  ;;  %v1539_v53 = vadd.f32 %v3544_v61, %v1532_v5  ;;  %v1570_v5 = vpop.permute.xlu1 %1569 }
 0x7c1   :  { %v1463_v62 = vpop.f32.mrf.mxu0  ;;  %v1534_v7 = vpop.f32.mrf.mxu1 }
 0x7c2   :  { %v3546_v63 = vmul.f32 -1.442695, %v1537_v1  ;;  %v1538_v10 = vadd.f32 %v3543_v60, %v1463_v62  ;;  %v1540_v2 = vadd.f32 %v3545_v8, %v1534_v7 }
 0x7c4   :  { %3771 = vpow2.f32 %v3546_v63  ;;  %v3547_v59 = vmul.f32 -1.442695, %v1538_v10  ;;  %v3548_v0 = vmul.f32 -1.442695, %v1540_v2 }
 0x7c6   :  { %3773 = vpow2.f32 %v3547_v59 }
 0x7c7   :  { %3775 = vpow2.f32 %v3548_v0 }
 0x7d1   :  { %v3772_v58 = vpop.eup %3771 }
 0x7d2   :  { %v1544_v3 = vadd.f32 1.0, %v3772_v58 }
 0x7d3   :  { %v3774_v1 = vpop.eup %3773 }
 0x7d4   :  { %3777 = vrcp.f32 %v1544_v3  ;;  %v1550_v62 = vadd.f32 1.0, %v3774_v1  ;;  %v3776_v10 = vpop.eup %3775  ;;  %v7201_v3 = vld [vmem:[#allocation28_spill] sm:$0xff]  ;;  %v7202_v1 = vld [vmem:[#allocation13_spill] sm:$0xff] }
 0x7d5   :  { %3779 = vtanh.f32 %v1539_v53  ;;  %v1557_v54 = vadd.f32 1.0, %v3776_v10  ;;  %v7200_v53 = vld [vmem:[#allocation21_spill] sm:$0xff]  ;;  %v7204_v10 = vld [vmem:[#allocation22_spill] sm:$0xff] }
 0x7d6   :  { %3781 = vrcp.f32 %v1550_v62  ;;  %v7203_v62 = vld [vmem:[#allocation29_spill] sm:$0xff] }
 0x7d7   :  { %3783 = vrcp.f32 %v1557_v54  ;;  %v7199_v54 = vld [vmem:[#allocation27_spill] sm:$0xff] }
 0x7e1   :  { %v3778_v60 = vpop.eup %3777 }
 0x7e2   :  { %v3780_v59 = vpop.eup %3779 }
 0x7e3   :  { %v3782_v63 = vpop.eup %3781  ;;  %v1561_v7 = vmul.f32 %v3780_v59, %v3778_v60  ;;  %v7205_v60 = vld [vmem:[#allocation30_spill] sm:$0xff]  ;;  %v7206_v59 = vld [vmem:[#allocation15_spill] sm:$0xff] }
 0x7e4   :  { %v1560_v8 = vmul.f32 %v3782_v63, %v5453_v57  ;;  %v3784_v2 = vpop.eup %3783  ;;  %v7197_v57 = vld [vmem:[#allocation8_spill] sm:$0xff] }
 0x7e5   :  { %v7207_v63 = vld [vmem:[#allocation16_spill] sm:$0xff] }
 0x7e6   :  { %v1562_v47 = vadd.f32 %v1561_v7, %v1560_v8  ;;  %v7208_v7 = vld [vmem:[#allocation31_spill] sm:$0xff]  ;;  %v7209_v8 = vld [vmem:[#allocation17_spill] sm:$0xff] }
 0x7e8   :  { %3785 = vtanh.f32 %v1562_v47  ;;  %v7198_v47 = vld [vmem:[#allocation12_spill] sm:$0xff] }
 0x7f5   :  { %v3786_v61 = vpop.eup %3785 }
 0x7f6   :  { %v1564_v58 = vmul.f32 %v3786_v61, %v3784_v2  ;;  %v7210_v2 = vld [vmem:[#allocation9_spill] sm:$0xff]  ;;  %v7211_v61 = vld [vmem:[#allocation14_spill] sm:$0xff] }
 0x7f8   :  { %v1572_v0 = vmul.f32 %v1570_v5, %v1564_v58  ;;  %v7212_v58 = vld [vmem:[#allocation26_spill] sm:$0xff]  ;;  %v7213_v5 = vld [vmem:[#allocation7_spill] sm:$0xff] }
 0x7fa   :  { %1841 = vmatmul.mubr.f32.gmra.mxu0 %v1572_v0  ;;  %1954 = vmatmul.mubr.f32.gmra.mxu1 %v1572_v0  ;;  %v7214_v0 = vld [vmem:[#allocation23_spill] sm:$0xff] }
 0x7fb   :  { %2063 = vmatprep.mubr.f32.mxu0 %v7165_v9  ;;  %2134 = vmatprep.mubr.f32.mxu1 %v7165_v9 }
 0x7fe   :  { %2064 = vmatmul.mubr.f32.vlgmr.msra.gmra.mxu0 %v7165_v9  ;;  %2135 = vmatmul.mubr.f32.vlgmr.msra.gmra.mxu1 %v7165_v9 }
 0x7ff   :  { %2185 = vmatpush1.msra.mxu0 %v5497_v11  ;;  %2256 = vmatpush1.msra.mxu1 %v5503_v12 }
 0x800   :  { %2186 = vmatprep.subr.mxu0 %v5509_v14  ;;  %2257 = vmatprep.subr.mxu1 %v5515_v16 }
 0x801   :  { %2187 = vmatpush1.msra.mxu0 %v5521_v18  ;;  %2258 = vmatpush1.msra.mxu1 %v5527_v22 }
 0x802   :  { %2188 = vmatprep.subr.mxu0 %v5533_v24  ;;  %2259 = vmatprep.subr.mxu1 %v5539_v25 }
 0x803   :  { %2189 = vmatpush1.msra.mxu0 %v5545_v26  ;;  %2260 = vmatpush1.msra.mxu1 %v5551_v27 }
 0x804   :  { %2190 = vmatprep.subr.mxu0 %v5557_v28  ;;  %2261 = vmatprep.subr.mxu1 %v5563_v29 }
 0x805   :  { %2191 = vmatpush1.msra.mxu0 %v5569_v30  ;;  %2262 = vmatpush1.msra.mxu1 %v5575_v31 }
 0x806   :  { %2192 = vmatprep.subr.mxu0 %v5581_v32  ;;  %2263 = vmatprep.subr.mxu1 %v5587_v33 }
 0x807   :  { %2193 = vmatpush1.msra.mxu0 %v5593_v34  ;;  %2264 = vmatpush1.msra.mxu1 %v5599_v35 }
 0x808   :  { %2194 = vmatprep.subr.mxu0 %v5605_v36  ;;  %2265 = vmatprep.subr.mxu1 %v5611_v37 }
 0x809   :  { %2195 = vmatpush1.msra.mxu0 %v5617_v38  ;;  %2266 = vmatpush1.msra.mxu1 %v5623_v39 }
 0x80a   :  { %2196 = vmatprep.subr.mxu0 %v5629_v40  ;;  %2267 = vmatprep.subr.mxu1 %v5635_v41 }
 0x80b   :  { %2197 = vmatpush1.msra.mxu0 %v5641_v42  ;;  %2268 = vmatpush1.msra.mxu1 %v5647_v43 }
 0x80c   :  { %2198 = vmatprep.subr.mxu0 %v5653_v44  ;;  %2269 = vmatprep.subr.mxu1 %v5659_v46 }
 0x80d   :  { %2199 = vmatpush1.msra.mxu0 %v5665_v48  ;;  %2270 = vmatpush1.msra.mxu1 %v5671_v50 }
 0x80e   :  { %2200 = vmatprep.subr.mxu0 %v5677_v52  ;;  %2271 = vmatprep.subr.mxu1 %v5683_v45 }
 0x80f   :  { %2201 = vmatpush1.msra.mxu0 %v5689_v51  ;;  %2272 = vmatpush1.msra.mxu1 %v5695_v23 }
 0x810   :  { %2202 = vmatprep.subr.mxu0 %v5701_v13  ;;  %2273 = vmatprep.subr.mxu1 %v5707_v19 }
 0x811   :  { %2203 = vmatpush1.msra.mxu0 %v5713_v4  ;;  %2274 = vmatpush1.msra.mxu1 %v5719_v21 }
 0x812   :  { %2204 = vmatprep.subr.mxu0 %v5725_v56  ;;  %2275 = vmatprep.subr.mxu1 %v5731_v15 }
 0x813   :  { %2205 = vmatpush1.msra.mxu0 %v5737_v49  ;;  %2276 = vmatpush1.msra.mxu1 %v5743_v17 }
 0x814   :  { %2206 = vmatprep.subr.mxu0 %v5749_v6  ;;  %2277 = vmatprep.subr.mxu1 %v5755_v20 }
 0x815   :  { %2207 = vmatpush1.msra.mxu0 %v5761_v55  ;;  %2278 = vmatpush1.msra.mxu1 %v7197_v57 }
 0x816   :  { %2208 = vmatprep.subr.mxu0 %v7198_v47  ;;  %2279 = vmatprep.subr.mxu1 %v7199_v54 }
 0x817   :  { %2209 = vmatpush1.msra.mxu0 %v7200_v53  ;;  %2280 = vmatpush1.msra.mxu1 %v7201_v3 }
 0x818   :  { %2210 = vmatprep.subr.mxu0 %v7202_v1  ;;  %2281 = vmatprep.subr.mxu1 %v7203_v62 }
 0x819   :  { %2211 = vmatpush1.msra.mxu0 %v7204_v10  ;;  %2282 = vmatpush1.msra.mxu1 %v7205_v60 }
 0x81a   :  { %2212 = vmatprep.subr.mxu0 %v7206_v59  ;;  %2283 = vmatprep.subr.mxu1 %v7207_v63  ;;  %v7215_v59 = vld [vmem:[#allocation18_spill] sm:$0xff]  ;;  %v1800_v63 = vpop.f32.mrf.mxu0 }
 0x81b   :  { %2213 = vmatpush1.msra.mxu0 %v7208_v7  ;;  %2284 = vmatpush1.msra.mxu1 %v7209_v8  ;;  %v1913_v7 = vpop.f32.mrf.mxu1 }
 0x81c   :  { %2214 = vmatprep.subr.mxu0 %v7210_v2  ;;  %2285 = vmatprep.subr.mxu1 %v7211_v61  ;;  %v1802_v60 = vpop.f32.mrf.mxu0 }
 0x81d   :  { %2215 = vmatpush1.msra.mxu0 %v7212_v58  ;;  %2248 = vmatprep.mubr.f32.mxu0 %v7165_v9  ;;  %v1915_v8 = vpop.f32.mrf.mxu1 }
 0x81e   :  { %2286 = vmatpush1.msra.mxu1 %v7213_v5  ;;  %2319 = vmatprep.mubr.f32.mxu1 %v7165_v9  ;;  %v5952_v10 = vpop.f32.mrf.mxu0 }
 0x81f   :  { %2370 = vmatprep.subr.mxu0 %v7214_v0  ;;  %2441 = vmatprep.subr.mxu1 %v7215_v59  ;;  %7216 = vst [vmem:[#allocation10_spill] sm:$0xff] %v5952_v10  ;;  %v5954_v2 = vpop.f32.mrf.mxu1 }
 0x820   :  { %7217 = vst [vmem:[#allocation24_spill] sm:$0xff] %v5954_v2  ;;  %v5956_v61 = vpop.f32.mrf.mxu0 }
 0x821   :  { %7218 = vst [vmem:[#allocation32_spill] sm:$0xff] %v5956_v61  ;;  %v5958_v58 = vpop.f32.mrf.mxu1 }
 0x822   :  { %7219 = vst [vmem:[#allocation33_spill] sm:$0xff] %v5958_v58  ;;  %v5960_v62 = vpop.f32.mrf.mxu0 }
 0x823   :  { %7220 = vst [vmem:[#allocation34_spill] sm:$0xff] %v5960_v62  ;;  %v5962_v5 = vpop.f32.mrf.mxu1 }
 0x824   :  { %7221 = vst [vmem:[#allocation35_spill] sm:$0xff] %v5962_v5  ;;  %v5964_v9 = vpop.f32.mrf.mxu0 }
 0x825   :  { %7222 = vst [vmem:[#allocation36_spill] sm:$0xff] %v5964_v9  ;;  %v5966_v0 = vpop.f32.mrf.mxu1  ;;  %v1714_v9 = vlaneseq }
 0x826   :  { %7223 = vst [vmem:[#allocation37_spill] sm:$0xff] %v5966_v0  ;;  %v5968_v59 = vpop.f32.mrf.mxu0 }
 0x827   :  { %7224 = vst [vmem:[#allocation38_spill] sm:$0xff] %v5968_v59  ;;  %v5970_v1 = vpop.f32.mrf.mxu1 }
 0x828   :  { %7225 = vst [vmem:[#allocation39_spill] sm:$0xff] %v5970_v1  ;;  %v5972_v3 = vpop.f32.mrf.mxu0  ;;  %v1715_v1 = vshrl.u32 %v1714_v9, 7 }
 0x829   :  { %7226 = vst [vmem:[#allocation40_spill] sm:$0xff] %v5972_v3  ;;  %v5974_v10 = vpop.f32.mrf.mxu1 }
 0x82a   :  { %7227 = vst [vmem:[#allocation41_spill] sm:$0xff] %v5974_v10  ;;  %v5976_v2 = vpop.f32.mrf.mxu0  ;;  %v1716_v10 = vsub.s32 0, %v1715_v1 }
 0x82b   :  { %7228 = vst [vmem:[#allocation42_spill] sm:$0xff] %v5976_v2  ;;  %v5978_v61 = vpop.f32.mrf.mxu1 }
 0x82c   :  { %7229 = vst [vmem:[#allocation43_spill] sm:$0xff] %v5978_v61  ;;  %v5980_v58 = vpop.f32.mrf.mxu0  ;;  %v1712_v61 = vld [vmem:[%s6845_s4] sm:$0xf] }
 0x82d   :  { %7230 = vst [vmem:[#allocation44_spill] sm:$0xff] %v5980_v58  ;;  %v5982_v62 = vpop.f32.mrf.mxu1 }
 0x82e   :  { %7231 = vst [vmem:[#allocation45_spill] sm:$0xff] %v5982_v62  ;;  %v5984_v5 = vpop.f32.mrf.mxu0  ;;  %v1720_v62 = vsub.s32 1, %v1715_v1 }
 0x82f   :  { %7232 = vst [vmem:[#allocation46_spill] sm:$0xff] %v5984_v5  ;;  %v5986_v0 = vpop.f32.mrf.mxu1  ;;  %v6001_v5 = vrot.slane %v1712_v61, %v1716_v10  ;;  %v1728_v10 = vsub.s32 3, %v1715_v1 }
 0x830   :  { %7233 = vst [vmem:[#allocation47_spill] sm:$0xff] %v5986_v0  ;;  %v5988_v59 = vpop.f32.mrf.mxu0  ;;  %v6007_v9 = vrot.slane %v1712_v61, %v1720_v62 }
 0x831   :  { %7234 = vst [vmem:[#allocation48_spill] sm:$0xff] %v5988_v59  ;;  %v5990_v53 = vpop.f32.mrf.mxu1  ;;  %7239 = vst [vmem:[#allocation53_spill] sm:$0xff] %v6001_v5  ;;  %v6017_v6 = vrot.slane %v1712_v61, %v1728_v10 }
 0x832   :  { %7235 = vst [vmem:[#allocation49_spill] sm:$0xff] %v5990_v53  ;;  %v5992_v3 = vpop.f32.mrf.mxu0  ;;  %7242 = vst [vmem:[#allocation56_spill] sm:$0xff] %v6007_v9  ;;  %v1803_v47 = vadd.f32 %v1802_v60, %v6007_v9 }
 0x833   :  { %7236 = vst [vmem:[#allocation50_spill] sm:$0xff] %v5992_v3  ;;  %v5994_v2 = vpop.f32.mrf.mxu1 }
 0x834   :  { %7237 = vst [vmem:[#allocation51_spill] sm:$0xff] %v5994_v2  ;;  %v5999_v58 = vpop.f32.mrf.mxu0  ;;  %v1801_v2 = vadd.f32 %v1800_v63, %v6001_v5  ;;  %v1916_v63 = vadd.f32 %v1915_v8, %v6017_v6 }
 0x835   :  { %7238 = vst [vmem:[#allocation52_spill] sm:$0xff] %v5999_v58  ;;  %v6003_v0 = vpop.f32.mrf.mxu1 }
 0x836   :  { %7240 = vst [vmem:[#allocation54_spill] sm:$0xff] %v6003_v0 }
 0x8ba   :  { %v6005_v59 = vpop.f32.mrf.mxu0  ;;  %v6009_v53 = vpop.f32.mrf.mxu1 }
 0x8bb   :  { %7241 = vst [vmem:[#allocation55_spill] sm:$0xff] %v6005_v59  ;;  %7243 = vst [vmem:[#allocation57_spill] sm:$0xff] %v6009_v53  ;;  %v1724_v53 = vsub.s32 2, %v1715_v1 }
 0x8bc   :  { %v6011_v3 = vpop.f32.mrf.mxu0  ;;  %v6015_v57 = vpop.f32.mrf.mxu1 }
 0x8bd   :  { %7244 = vst [vmem:[#allocation58_spill] sm:$0xff] %v6011_v3  ;;  %7245 = vst [vmem:[#allocation59_spill] sm:$0xff] %v6015_v57  ;;  %v6020_v5 = vrot.slane %v1712_v61, %v1724_v53 }
 0x8be   :  { %v2065_v54 = vpop.f32.mrf.mxu0  ;;  %v2136_v59 = vpop.f32.mrf.mxu1 }
 0x8bf   :  { %v2141_v58 = vadd.f32 %v2065_v54, %v1801_v2  ;;  %v1914_v57 = vadd.f32 %v1913_v7, %v6020_v5 }
 0x8c0   :  { %v2067_v55 = vpop.f32.mrf.mxu0  ;;  %v2138_v3 = vpop.f32.mrf.mxu1 }
 0x8c1   :  { %v3614_v20 = vmul.f32 -1.442695, %v2141_v58  ;;  %v2142_v0 = vadd.f32 %v2067_v55, %v1803_v47  ;;  %v2144_v60 = vadd.f32 %v2138_v3, %v1916_v63  ;;  %v2143_v9 = vadd.f32 %v2136_v59, %v1914_v57 }
 0x8c3   :  { %3787 = vpow2.f32 %v3614_v20  ;;  %v3615_v62 = vmul.f32 -1.442695, %v2142_v0  ;;  %v3616_v54 = vmul.f32 -1.442695, %v2144_v60  ;;  %v7247_v60 = vld [vmem:[#allocation25_spill] sm:$0xff] }
 0x8c5   :  { %3789 = vpow2.f32 %v3615_v62  ;;  %v2173_v62 = vpop.permute.xlu0 %2172 }
 0x8c6   :  { %3791 = vpow2.f32 %v3616_v54  ;;  %v7248_v54 = vld [vmem:[#allocation20_spill] sm:$0xff] }
 0x8d0   :  { %v3788_v2 = vpop.eup %3787 }
 0x8d1   :  { %v2148_v58 = vadd.f32 1.0, %v3788_v2  ;;  %v7249_v2 = vld [vmem:[#allocation8_spill] sm:$0xff] }
 0x8d2   :  { %v3790_v55 = vpop.eup %3789 }
 0x8d3   :  { %3793 = vrcp.f32 %v2148_v58  ;;  %v2154_v20 = vadd.f32 1.0, %v3790_v55  ;;  %v3792_v47 = vpop.eup %3791  ;;  %v7250_v58 = vld [vmem:[#allocation12_spill] sm:$0xff]  ;;  %v7251_v55 = vld [vmem:[#allocation27_spill] sm:$0xff] }
 0x8d4   :  { %3795 = vtanh.f32 %v2143_v9  ;;  %v2161_v8 = vadd.f32 1.0, %v3792_v47  ;;  %v7246_v9 = vld [vmem:[#allocation11_spill] sm:$0xff]  ;;  %v7253_v47 = vld [vmem:[#allocation28_spill] sm:$0xff] }
 0x8d5   :  { %3797 = vrcp.f32 %v2154_v20  ;;  %v7252_v20 = vld [vmem:[#allocation21_spill] sm:$0xff] }
 0x8d6   :  { %3799 = vrcp.f32 %v2161_v8  ;;  %v7257_v8 = vld [vmem:[#allocation30_spill] sm:$0xff] }
 0x8e0   :  { %v3794_v1 = vpop.eup %3793 }
 0x8e1   :  { %v3796_v0 = vpop.eup %3795 }
 0x8e2   :  { %v3798_v10 = vpop.eup %3797  ;;  %v2165_v61 = vmul.f32 %v3796_v0, %v3794_v1  ;;  %v7254_v1 = vld [vmem:[#allocation13_spill] sm:$0xff] }
 0x8e3   :  { %v2164_v53 = vmul.f32 0.0, %v3798_v10  ;;  %v3800_v57 = vpop.eup %3799  ;;  %v7255_v0 = vld [vmem:[#allocation29_spill] sm:$0xff]  ;;  %v7256_v10 = vld [vmem:[#allocation22_spill] sm:$0xff] }
 0x8e5   :  { %v6023_v3 = vadd.f32 %v2165_v61, %v2164_v53  ;;  %v7258_v53 = vld [vmem:[#allocation15_spill] sm:$0xff]  ;;  %v7259_v61 = vld [vmem:[#allocation16_spill] sm:$0xff] }
 0x8e7   :  { %3801 = vtanh.f32 %v6023_v3 }
 0x8f4   :  { %v3802_v59 = vpop.eup %3801 }
 0x8f5   :  { %v2168_v7 = vmul.f32 %v3802_v59, %v3800_v57  ;;  %v7260_v57 = vld [vmem:[#allocation31_spill] sm:$0xff]  ;;  %v7261_v59 = vld [vmem:[#allocation17_spill] sm:$0xff] }
 0x8f7   :  { %v2175_v63 = vmul.f32 %v2173_v62, %v2168_v7  ;;  %2249 = vmatmul.mubr.f32.vlgmr.msra.gmra.mxu0 %v2168_v7  ;;  %2320 = vmatmul.mubr.f32.vlgmr.msra.gmra.mxu1 %v2168_v7  ;;  %v7262_v7 = vld [vmem:[#allocation9_spill] sm:$0xff]  ;;  %v7263_v62 = vld [vmem:[#allocation14_spill] sm:$0xff] }
 0x8f8   :  { %2371 = vmatpush1.msra.mxu0 %v5497_v11  ;;  %2442 = vmatpush1.msra.mxu1 %v5503_v12 }
 0x8f9   :  { %2176 = vst [vmem:[%s6846_s5] sm:$0xff] %v2175_v63  ;;  %2372 = vmatprep.subr.mxu0 %v5509_v14  ;;  %2443 = vmatprep.subr.mxu1 %v5515_v16  ;;  %v7264_v63 = vld [vmem:[#allocation26_spill] sm:$0xff] }
 0x8fa   :  { %2373 = vmatpush1.msra.mxu0 %v5521_v18  ;;  %2444 = vmatpush1.msra.mxu1 %v5527_v22 }
 0x8fb   :  { %2374 = vmatprep.subr.mxu0 %v5533_v24  ;;  %2445 = vmatprep.subr.mxu1 %v5539_v25 }
 0x8fc   :  { %2375 = vmatpush1.msra.mxu0 %v5545_v26  ;;  %2446 = vmatpush1.msra.mxu1 %v5551_v27 }
 0x8fd   :  { %2376 = vmatprep.subr.mxu0 %v5557_v28  ;;  %2447 = vmatprep.subr.mxu1 %v5563_v29 }
 0x8fe   :  { %2377 = vmatpush1.msra.mxu0 %v5569_v30  ;;  %2448 = vmatpush1.msra.mxu1 %v5575_v31 }
 0x8ff   :  { %2378 = vmatprep.subr.mxu0 %v5581_v32  ;;  %2449 = vmatprep.subr.mxu1 %v5587_v33 }
 0x900   :  { %2379 = vmatpush1.msra.mxu0 %v5593_v34  ;;  %2450 = vmatpush1.msra.mxu1 %v5599_v35 }
 0x901   :  { %2380 = vmatprep.subr.mxu0 %v5605_v36  ;;  %2451 = vmatprep.subr.mxu1 %v5611_v37 }
 0x902   :  { %2381 = vmatpush1.msra.mxu0 %v5617_v38  ;;  %2452 = vmatpush1.msra.mxu1 %v5623_v39 }
 0x903   :  { %2382 = vmatprep.subr.mxu0 %v5629_v40  ;;  %2453 = vmatprep.subr.mxu1 %v5635_v41 }
 0x904   :  { %2383 = vmatpush1.msra.mxu0 %v5641_v42  ;;  %2454 = vmatpush1.msra.mxu1 %v5647_v43 }
 0x905   :  { %2384 = vmatprep.subr.mxu0 %v5653_v44  ;;  %2455 = vmatprep.subr.mxu1 %v5659_v46 }
 0x906   :  { %2385 = vmatpush1.msra.mxu0 %v5665_v48  ;;  %2456 = vmatpush1.msra.mxu1 %v5671_v50 }
 0x907   :  { %2386 = vmatprep.subr.mxu0 %v5677_v52  ;;  %2457 = vmatprep.subr.mxu1 %v5683_v45 }
 0x908   :  { %2387 = vmatpush1.msra.mxu0 %v5689_v51  ;;  %2458 = vmatpush1.msra.mxu1 %v5695_v23 }
 0x909   :  { %2388 = vmatprep.subr.mxu0 %v5701_v13  ;;  %2459 = vmatprep.subr.mxu1 %v5707_v19 }
 0x90a   :  { %2389 = vmatpush1.msra.mxu0 %v5713_v4  ;;  %2460 = vmatpush1.msra.mxu1 %v5719_v21 }
 0x90b   :  { %2390 = vmatprep.subr.mxu0 %v5725_v56  ;;  %2461 = vmatprep.subr.mxu1 %v5731_v15 }
 0x90c   :  { %2391 = vmatpush1.msra.mxu0 %v5737_v49  ;;  %2462 = vmatpush1.msra.mxu1 %v5743_v17 }
 0x90d   :  { %2392 = vmatprep.subr.mxu0 %v7246_v9  ;;  %2463 = vmatprep.subr.mxu1 %v7247_v60  ;;  %v7274_v60 = vld [vmem:[#allocation24_spill] sm:$0xff] }
 0x90e   :  { %2393 = vmatpush1.msra.mxu0 %v7248_v54  ;;  %2464 = vmatpush1.msra.mxu1 %v7249_v2 }
 0x90f   :  { %2394 = vmatprep.subr.mxu0 %v7250_v58  ;;  %2465 = vmatprep.subr.mxu1 %v7251_v55 }
 0x910   :  { %2395 = vmatpush1.msra.mxu0 %v7252_v20  ;;  %2466 = vmatpush1.msra.mxu1 %v7253_v47  ;;  %v7271_v47 = vld [vmem:[#allocation56_spill] sm:$0xff] }
 0x911   :  { %2396 = vmatprep.subr.mxu0 %v7254_v1  ;;  %2467 = vmatprep.subr.mxu1 %v7255_v0  ;;  %v7265_v1 = vmov 0.0   ;;  %v7266_v0 = vld [vmem:[#allocation7_spill] sm:$0xff] }
 0x912   :  { %2397 = vmatpush1.msra.mxu0 %v7256_v10  ;;  %2468 = vmatpush1.msra.mxu1 %v7257_v8  ;;  %v7267_v8 = vld [vmem:[#allocation23_spill] sm:$0xff] }
 0x913   :  { %2398 = vmatprep.subr.mxu0 %v7258_v53  ;;  %2469 = vmatprep.subr.mxu1 %v7259_v61  ;;  %v7268_v53 = vld [vmem:[#allocation18_spill] sm:$0xff]  ;;  %v7269_v61 = vld [vmem:[#allocation53_spill] sm:$0xff] }
 0x914   :  { %2399 = vmatpush1.msra.mxu0 %v7260_v57  ;;  %2470 = vmatpush1.msra.mxu1 %v7261_v59  ;;  %v7270_v57 = vld [vmem:[#allocation10_spill] sm:$0xff] }
 0x915   :  { %2400 = vmatprep.subr.mxu0 %v7262_v7  ;;  %2471 = vmatprep.subr.mxu1 %v7263_v62  ;;  %v1807_v10 = vadd.f32 %v7270_v57, %v7269_v61  ;;  %v7272_v7 = vld [vmem:[#allocation32_spill] sm:$0xff]  ;;  %v1920_v57 = vadd.f32 %v7274_v60, %v6020_v5 }
 0x916   :  { %2401 = vmatpush1.msra.mxu0 %v7264_v63  ;;  %2434 = vmatprep.mubr.f32.mxu0 %v7265_v1  ;;  %v1809_v20 = vadd.f32 %v7272_v7, %v7271_v47 }
 0x917   :  { %2472 = vmatpush1.msra.mxu1 %v7266_v0  ;;  %2505 = vmatprep.mubr.f32.mxu1 %v7265_v1 }
 0x918   :  { %2556 = vmatprep.subr.mxu0 %v7267_v8  ;;  %2627 = vmatprep.subr.mxu1 %v7268_v53  ;;  %v7273_v8 = vld [vmem:[#allocation33_spill] sm:$0xff] }
 0x919   :  { %v1922_v54 = vadd.f32 %v7273_v8, %v6017_v6 }
 0x9b7   :  { %v2250_v59 = vpop.f32.mrf.mxu0  ;;  %v2321_v2 = vpop.f32.mrf.mxu1 }
 0x9b8   :  { %v2326_v62 = vadd.f32 %v2250_v59, %v1807_v10  ;;  %v2328_v61 = vadd.f32 %v2321_v2, %v1920_v57 }
 0x9b9   :  { %v2252_v55 = vpop.f32.mrf.mxu0  ;;  %v2323_v1 = vpop.f32.mrf.mxu1 }
 0x9ba   :  { %v3617_v63 = vmul.f32 -1.442695, %v2326_v62  ;;  %v2327_v58 = vadd.f32 %v2252_v55, %v1809_v20  ;;  %v2329_v53 = vadd.f32 %v2323_v1, %v1922_v54 }
 0x9bc   :  { %3803 = vpow2.f32 %v3617_v63  ;;  %v3618_v0 = vmul.f32 -1.442695, %v2327_v58  ;;  %v3619_v9 = vmul.f32 -1.442695, %v2329_v53 }
 0x9be   :  { %3805 = vpow2.f32 %v3618_v0 }
 0x9bf   :  { %3807 = vtanh.f32 %v2328_v61 }
 0x9c0   :  { %3809 = vpow2.f32 %v3619_v9  ;;  %v2358_v9 = vpop.permute.xlu1 %2357 }
 0x9c9   :  { %v3804_v17 = vpop.eup %3803 }
 0x9ca   :  { %v2333_v7 = vadd.f32 1.0, %v3804_v17 }
 0x9cb   :  { %v3806_v10 = vpop.eup %3805 }
 0x9cc   :  { %3811 = vrcp.f32 %v2333_v7  ;;  %v2339_v55 = vadd.f32 1.0, %v3806_v10  ;;  %v3808_v58 = vpop.eup %3807  ;;  %v7302_v10 = vld [vmem:[#allocation37_spill] sm:$0xff] }
 0x9cd   :  { %v3810_v20 = vpop.eup %3809 }
 0x9ce   :  { %3813 = vrcp.f32 %v2339_v55  ;;  %v2346_v8 = vadd.f32 1.0, %v3810_v20  ;;  %v1928_v55 = vadd.f32 %v7302_v10, %v6017_v6  ;;  %v7303_v20 = vld [vmem:[#allocation35_spill] sm:$0xff]  ;;  %v6224_v10 = vld [vmem:[%s6843_s2 + $0x3d0] sm:$0xff] }
 0x9d0   :  { %3815 = vrcp.f32 %v2346_v8 }
 0x9d9   :  { %v3812_v0 = vpop.eup %3811 }
 0x9da   :  { %v2350_v59 = vmul.f32 %v3812_v0, %v3808_v58  ;;  %v1926_v0 = vadd.f32 %v7303_v20, %v6020_v5  ;;  %v6242_v20 = vld [vmem:[%s6843_s2 + $0x3a0] sm:$0xff] }
 0x9db   :  { %v3814_v62 = vpop.eup %3813 }
 0x9dc   :  { %v2349_v54 = vmul.f32 %v3814_v62, %v6023_v3 }
 0x9dd   :  { %v3816_v17 = vpop.eup %3815 }
 0x9de   :  { %v6104_v1 = vadd.f32 %v2350_v59, %v2349_v54 }
 0x9e0   :  { %3817 = vtanh.f32 %v6104_v1 }
 0x9ed   :  { %v3818_v60 = vpop.eup %3817 }
 0x9ee   :  { %v2353_v2 = vmul.f32 %v3818_v60, %v3816_v17 }
 0x9f0   :  { %v2360_v53 = vmul.f32 %v2358_v9, %v2353_v2  ;;  %2435 = vmatmul.mubr.f32.vlgmr.msra.gmra.mxu0 %v2353_v2  ;;  %2506 = vmatmul.mubr.f32.vlgmr.msra.gmra.mxu1 %v2353_v2 }
 0x9f1   :  { %2557 = vmatpush1.msra.mxu0 %v5497_v11  ;;  %2628 = vmatpush1.msra.mxu1 %v5503_v12  ;;  %v7275_v11 = vld [vmem:[#allocation19_spill] sm:$0xff] }
 0x9f2   :  { %3621 = vst [vmem:[%s6846_s5 + $0x8] sm:$0xff] %v2360_v53  ;;  %2558 = vmatprep.subr.mxu0 %v5509_v14  ;;  %2629 = vmatprep.subr.mxu1 %v5515_v16  ;;  %v7276_v12 = vld [vmem:[#allocation11_spill] sm:$0xff]  ;;  %v7277_v14 = vld [vmem:[#allocation25_spill] sm:$0xff]  ;;  %v7278_v16 = vld [vmem:[#allocation20_spill] sm:$0xff] }
 0x9f3   :  { %2559 = vmatpush1.msra.mxu0 %v5521_v18  ;;  %2630 = vmatpush1.msra.mxu1 %v5527_v22  ;;  %v7279_v18 = vld [vmem:[#allocation8_spill] sm:$0xff] }
 0x9f4   :  { %2560 = vmatprep.subr.mxu0 %v5533_v24  ;;  %2631 = vmatprep.subr.mxu1 %v5539_v25  ;;  %v7280_v22 = vld [vmem:[#allocation12_spill] sm:$0xff]  ;;  %v7281_v24 = vld [vmem:[#allocation27_spill] sm:$0xff]  ;;  %v7282_v25 = vld [vmem:[#allocation21_spill] sm:$0xff] }
 0x9f5   :  { %2561 = vmatpush1.msra.mxu0 %v5545_v26  ;;  %2632 = vmatpush1.msra.mxu1 %v5551_v27  ;;  %v7283_v26 = vld [vmem:[#allocation28_spill] sm:$0xff]  ;;  %v7284_v27 = vld [vmem:[#allocation13_spill] sm:$0xff] }
 0x9f6   :  { %2562 = vmatprep.subr.mxu0 %v5557_v28  ;;  %2633 = vmatprep.subr.mxu1 %v5563_v29  ;;  %v7285_v28 = vld [vmem:[#allocation29_spill] sm:$0xff]  ;;  %v7286_v29 = vld [vmem:[#allocation22_spill] sm:$0xff] }
 0x9f7   :  { %2563 = vmatpush1.msra.mxu0 %v5569_v30  ;;  %2634 = vmatpush1.msra.mxu1 %v5575_v31  ;;  %v7287_v30 = vld [vmem:[#allocation30_spill] sm:$0xff]  ;;  %v7288_v31 = vld [vmem:[#allocation15_spill] sm:$0xff] }
 0x9f8   :  { %2564 = vmatprep.subr.mxu0 %v5581_v32  ;;  %2635 = vmatprep.subr.mxu1 %v5587_v33  ;;  %v7289_v32 = vld [vmem:[#allocation16_spill] sm:$0xff]  ;;  %v7290_v33 = vld [vmem:[#allocation31_spill] sm:$0xff] }
 0x9f9   :  { %2565 = vmatpush1.msra.mxu0 %v5593_v34  ;;  %2636 = vmatpush1.msra.mxu1 %v5599_v35  ;;  %v7291_v34 = vld [vmem:[#allocation17_spill] sm:$0xff] }
 0x9fa   :  { %2566 = vmatprep.subr.mxu0 %v5605_v36  ;;  %2637 = vmatprep.subr.mxu1 %v5611_v37  ;;  %v7292_v35 = vld [vmem:[#allocation9_spill] sm:$0xff]  ;;  %v7293_v36 = vld [vmem:[#allocation14_spill] sm:$0xff] }
 0x9fb   :  { %2567 = vmatpush1.msra.mxu0 %v5617_v38  ;;  %2638 = vmatpush1.msra.mxu1 %v5623_v39  ;;  %v7294_v37 = vld [vmem:[#allocation26_spill] sm:$0xff]  ;;  %v7295_v38 = vmov 0.0   ;;  %v7296_v39 = vld [vmem:[#allocation7_spill] sm:$0xff] }
 0x9fc   :  { %2568 = vmatprep.subr.mxu0 %v5629_v40  ;;  %2639 = vmatprep.subr.mxu1 %v5635_v41  ;;  %v7297_v40 = vld [vmem:[#allocation23_spill] sm:$0xff]  ;;  %v7298_v41 = vld [vmem:[#allocation18_spill] sm:$0xff] }
 0x9fd   :  { %2569 = vmatpush1.msra.mxu0 %v5641_v42  ;;  %2640 = vmatpush1.msra.mxu1 %v5647_v43  ;;  %v7299_v42 = vld [vmem:[#allocation53_spill] sm:$0xff]  ;;  %v7300_v43 = vld [vmem:[#allocation34_spill] sm:$0xff] }
 0x9fe   :  { %2570 = vmatprep.subr.mxu0 %v5653_v44  ;;  %2641 = vmatprep.subr.mxu1 %v5659_v46  ;;  %v1813_v44 = vadd.f32 %v7300_v43, %v7299_v42 }
 0x9ff   :  { %2571 = vmatpush1.msra.mxu0 %v5665_v48  ;;  %2642 = vmatpush1.msra.mxu1 %v5671_v50  ;;  %v7301_v48 = vld [vmem:[#allocation36_spill] sm:$0xff] }
 0xa00   :  { %2572 = vmatprep.subr.mxu0 %v5677_v52  ;;  %2643 = vmatprep.subr.mxu1 %v5683_v45  ;;  %v1815_v50 = vadd.f32 %v7301_v48, %v7271_v47 }
 0xa01   :  { %2573 = vmatpush1.msra.mxu0 %v5689_v51  ;;  %2644 = vmatpush1.msra.mxu1 %v5695_v23 }
 0xa02   :  { %2574 = vmatprep.subr.mxu0 %v5701_v13  ;;  %2645 = vmatprep.subr.mxu1 %v5707_v19 }
 0xa03   :  { %2575 = vmatpush1.msra.mxu0 %v5713_v4  ;;  %2646 = vmatpush1.msra.mxu1 %v5719_v21 }
 0xa04   :  { %2576 = vmatprep.subr.mxu0 %v5725_v56  ;;  %2647 = vmatprep.subr.mxu1 %v5731_v15 }
 0xa05   :  { %2577 = vmatpush1.msra.mxu0 %v5737_v49  ;;  %2648 = vmatpush1.msra.mxu1 %v7275_v11 }
 0xa06   :  { %2578 = vmatprep.subr.mxu0 %v7276_v12  ;;  %2649 = vmatprep.subr.mxu1 %v7277_v14 }
 0xa07   :  { %2579 = vmatpush1.msra.mxu0 %v7278_v16  ;;  %2650 = vmatpush1.msra.mxu1 %v7279_v18 }
 0xa08   :  { %2580 = vmatprep.subr.mxu0 %v7280_v22  ;;  %2651 = vmatprep.subr.mxu1 %v7281_v24 }
 0xa09   :  { %2581 = vmatpush1.msra.mxu0 %v7282_v25  ;;  %2652 = vmatpush1.msra.mxu1 %v7283_v26 }
 0xa0a   :  { %2582 = vmatprep.subr.mxu0 %v7284_v27  ;;  %2653 = vmatprep.subr.mxu1 %v7285_v28 }
 0xa0b   :  { %2583 = vmatpush1.msra.mxu0 %v7286_v29  ;;  %2654 = vmatpush1.msra.mxu1 %v7287_v30 }
 0xa0c   :  { %2584 = vmatprep.subr.mxu0 %v7288_v31  ;;  %2655 = vmatprep.subr.mxu1 %v7289_v32 }
 0xa0d   :  { %2585 = vmatpush1.msra.mxu0 %v7290_v33  ;;  %2656 = vmatpush1.msra.mxu1 %v7291_v34 }
 0xa0e   :  { %2586 = vmatprep.subr.mxu0 %v7292_v35  ;;  %2657 = vmatprep.subr.mxu1 %v7293_v36 }
 0xa0f   :  { %2587 = vmatpush1.msra.mxu0 %v7294_v37  ;;  %2620 = vmatprep.mubr.f32.mxu0 %v7295_v38 }
 0xa10   :  { %2658 = vmatpush1.msra.mxu1 %v7296_v39  ;;  %2691 = vmatprep.mubr.f32.mxu1 %v7295_v38 }
 0xa11   :  { %2742 = vmatprep.subr.mxu0 %v7297_v40  ;;  %2813 = vmatprep.subr.mxu1 %v7298_v41 }
 0xab0   :  { %v2436_v46 = vpop.f32.mrf.mxu0  ;;  %v2507_v63 = vpop.f32.mrf.mxu1 }
 0xab1   :  { %v2512_v52 = vadd.f32 %v2436_v46, %v1813_v44  ;;  %v2514_v59 = vadd.f32 %v2507_v63, %v1926_v0  ;;  %v6206_v63 = vld [vmem:[%s6843_s2 + $0x3c8] sm:$0xff]  ;;  %v6248_v0 = vld [vmem:[%s6843_s2 + $0x3b0] sm:$0xff] }
 0xab2   :  { %v2438_v45 = vpop.f32.mrf.mxu0  ;;  %v2509_v7 = vpop.f32.mrf.mxu1 }
 0xab3   :  { %v3622_v3 = vmul.f32 -1.442695, %v2512_v52  ;;  %v2513_v61 = vadd.f32 %v2438_v45, %v1815_v50  ;;  %v2515_v58 = vadd.f32 %v2509_v7, %v1928_v55  ;;  %v2544_v45 = vpop.permute.xlu0 %2543  ;;  %v6218_v7 = vld [vmem:[%s6843_s2 + $0x3c0] sm:$0xff]  ;;  %v6230_v55 = vld [vmem:[%s6843_s2 + $0x3a8] sm:$0xff] }
 0xab5   :  { %3819 = vpow2.f32 %v3622_v3  ;;  %v3623_v57 = vmul.f32 -1.442695, %v2513_v61  ;;  %v3624_v62 = vmul.f32 -1.442695, %v2515_v58  ;;  %v6191_v61 = vld [vmem:[%s6843_s2 + $0x3e0] sm:$0xff]  ;;  %v6236_v58 = vld [vmem:[%s6843_s2 + $0x3b8] sm:$0xff] }
 0xab7   :  { %3821 = vpow2.f32 %v3623_v57  ;;  %v6212_v57 = vld [vmem:[%s6843_s2 + $0x3d8] sm:$0xff] }
 0xab8   :  { %3823 = vtanh.f32 %v2514_v59  ;;  %v6254_v59 = vld [vmem:[%s6843_s2 + $0x388] sm:$0xff] }
 0xab9   :  { %3825 = vpow2.f32 %v3624_v62  ;;  %v6260_v62 = vld [vmem:[%s6843_s2 + $0x398] sm:$0xff] }
 0xac2   :  { %v3820_v8 = vpop.eup %3819 }
 0xac3   :  { %v2519_v54 = vadd.f32 1.0, %v3820_v8  ;;  %v6266_v8 = vld [vmem:[%s6843_s2 + $0x380] sm:$0xff] }
 0xac4   :  { %v3822_v17 = vpop.eup %3821 }
 0xac5   :  { %3827 = vrcp.f32 %v2519_v54  ;;  %v2525_v60 = vadd.f32 1.0, %v3822_v17  ;;  %v3824_v2 = vpop.eup %3823  ;;  %v6272_v54 = vld [vmem:[%s6843_s2 + $0x390] sm:$0xff]  ;;  %v6278_v17 = vld [vmem:[%s6843_s2 + $0x368] sm:$0xff] }
 0xac6   :  { %v3826_v9 = vpop.eup %3825 }
 0xac7   :  { %3829 = vrcp.f32 %v2525_v60  ;;  %v2532_v43 = vadd.f32 1.0, %v3826_v9  ;;  %v6284_v60 = vld [vmem:[%s6843_s2 + $0x378] sm:$0xff]  ;;  %v6296_v9 = vld [vmem:[%s6843_s2 + $0x370] sm:$0xff] }
 0xac9   :  { %3831 = vrcp.f32 %v2532_v43  ;;  %v6320_v43 = vld [vmem:[%s6843_s2 + $0x350] sm:$0xff] }
 0xad2   :  { %v3828_v53 = vpop.eup %3827 }
 0xad3   :  { %v2536_v40 = vmul.f32 %v3828_v53, %v3824_v2  ;;  %v6290_v2 = vld [vmem:[%s6843_s2 + $0x360] sm:$0xff]  ;;  %v6302_v53 = vld [vmem:[%s6843_s2 + $0x348] sm:$0xff] }
 0xad4   :  { %v3830_v41 = vpop.eup %3829 }
 0xad5   :  { %v2535_v44 = vmul.f32 %v3830_v41, %v6104_v1  ;;  %v6197_v1 = vld [vmem:[%s6843_s2 + $0x3f0] sm:$0xff]  ;;  %v6314_v41 = vld [vmem:[%s6843_s2 + $0x340] sm:$0xff] }
 0xad6   :  { %v3832_v48 = vpop.eup %3831 }
 0xad7   :  { %v6185_v46 = vadd.f32 %v2536_v40, %v2535_v44  ;;  %v6308_v40 = vld [vmem:[%s6843_s2 + $0x358] sm:$0xff]  ;;  %v6326_v44 = vld [vmem:[%s6843_s2 + $0x328] sm:$0xff] }
 0xad9   :  { %3833 = vtanh.f32 %v6185_v46 }
 0xae6   :  { %v3834_v50 = vpop.eup %3833 }
 0xae7   :  { %v2539_v52 = vmul.f32 %v3834_v50, %v3832_v48  ;;  %v6332_v48 = vld [vmem:[%s6843_s2 + $0x338] sm:$0xff]  ;;  %v6338_v50 = vld [vmem:[%s6843_s2 + $0x320] sm:$0xff] }
 0xae8   :  { %7304 = vst [vmem:[#allocation10_spill] sm:$0xff] %v6338_v50 }
 0xae9   :  { %v2546_v3 = vmul.f32 %v2544_v45, %v2539_v52  ;;  %2621 = vmatmul.mubr.f32.vlgmr.msra.gmra.mxu0 %v2539_v52  ;;  %2692 = vmatmul.mubr.f32.vlgmr.msra.gmra.mxu1 %v2539_v52  ;;  %v6344_v52 = vld [vmem:[%s6843_s2 + $0x330] sm:$0xff]  ;;  %v6350_v45 = vld [vmem:[%s6843_s2 + $0x308] sm:$0xff] }
 0xaea   :  { %2743 = vmatpush1.msra.mxu0 %v6191_v61  ;;  %2814 = vmatpush1.msra.mxu1 %v6197_v1  ;;  %7305 = vst [vmem:[#allocation56_spill] sm:$0xff] %v6344_v52  ;;  %7306 = vst [vmem:[#allocation32_spill] sm:$0xff] %v6350_v45 }
 0xaeb   :  { %3626 = vst [vmem:[%s6846_s5 + $0x10] sm:$0xff] %v2546_v3  ;;  %2744 = vmatprep.subr.mxu0 %v6206_v63  ;;  %2815 = vmatprep.subr.mxu1 %v6212_v57  ;;  %v6356_v3 = vld [vmem:[%s6843_s2 + $0x318] sm:$0xff] }
 0xaec   :  { %2745 = vmatpush1.msra.mxu0 %v6218_v7  ;;  %2816 = vmatpush1.msra.mxu1 %v6224_v10  ;;  %7307 = vst [vmem:[#allocation33_spill] sm:$0xff] %v6356_v3 }
 0xaed   :  { %2746 = vmatprep.subr.mxu0 %v6230_v55  ;;  %2817 = vmatprep.subr.mxu1 %v6236_v58 }
 0xaee   :  { %2747 = vmatpush1.msra.mxu0 %v6242_v20  ;;  %2818 = vmatpush1.msra.mxu1 %v6248_v0 }
 0xaef   :  { %2748 = vmatprep.subr.mxu0 %v6254_v59  ;;  %2819 = vmatprep.subr.mxu1 %v6260_v62 }
 0xaf0   :  { %2749 = vmatpush1.msra.mxu0 %v6266_v8  ;;  %2820 = vmatpush1.msra.mxu1 %v6272_v54 }
 0xaf1   :  { %2750 = vmatprep.subr.mxu0 %v6278_v17  ;;  %2821 = vmatprep.subr.mxu1 %v6284_v60 }
 0xaf2   :  { %2751 = vmatpush1.msra.mxu0 %v6290_v2  ;;  %2822 = vmatpush1.msra.mxu1 %v6296_v9 }
 0xaf3   :  { %2752 = vmatprep.subr.mxu0 %v6302_v53  ;;  %2823 = vmatprep.subr.mxu1 %v6308_v40 }
 0xaf4   :  { %2753 = vmatpush1.msra.mxu0 %v6314_v41  ;;  %2824 = vmatpush1.msra.mxu1 %v6320_v43 }
 0xaf5   :  { %2754 = vmatprep.subr.mxu0 %v6326_v44  ;;  %2825 = vmatprep.subr.mxu1 %v6332_v48 }
 0xaf6   :  { %2755 = vmatpush1.msra.mxu0 %v6338_v50  ;;  %2826 = vmatpush1.msra.mxu1 %v6344_v52  ;;  %v6362_v50 = vld [vmem:[%s6843_s2 + $0x300] sm:$0xff]  ;;  %v6368_v52 = vld [vmem:[%s6843_s2 + $0x310] sm:$0xff] }
 0xaf7   :  { %2756 = vmatprep.subr.mxu0 %v6350_v45  ;;  %2827 = vmatprep.subr.mxu1 %v6356_v3  ;;  %v6374_v45 = vld [vmem:[%s6843_s2 + $0x2e8] sm:$0xff]  ;;  %v6380_v3 = vld [vmem:[%s6843_s2 + $0x2f8] sm:$0xff] }
 0xaf8   :  { %2757 = vmatpush1.msra.mxu0 %v6362_v50  ;;  %2828 = vmatpush1.msra.mxu1 %v6368_v52 }
 0xaf9   :  { %2758 = vmatprep.subr.mxu0 %v6374_v45  ;;  %2829 = vmatprep.subr.mxu1 %v6380_v3 }
 0xafa   :  { %2759 = vmatpush1.msra.mxu0 %v5689_v51  ;;  %2830 = vmatpush1.msra.mxu1 %v5695_v23  ;;  %v6418_v51 = vld [vmem:[%s6843_s2 + $0x3e8] sm:$0xff]  ;;  %v6424_v23 = vld [vmem:[%s6843_s2 + $0x3f8] sm:$0xff] }
 0xafb   :  { %2760 = vmatprep.subr.mxu0 %v5701_v13  ;;  %2831 = vmatprep.subr.mxu1 %v5707_v19  ;;  %7308 = vst [vmem:[#allocation24_spill] sm:$0xff] %v6418_v51  ;;  %7309 = vst [vmem:[#allocation19_spill] sm:$0xff] %v6424_v23  ;;  %v7310_v13 = vld [vmem:[#allocation38_spill] sm:$0xff] }
 0xafc   :  { %2761 = vmatpush1.msra.mxu0 %v5713_v4  ;;  %2832 = vmatpush1.msra.mxu1 %v5719_v21  ;;  %v1819_v19 = vadd.f32 %v7310_v13, %v7299_v42  ;;  %v7311_v21 = vld [vmem:[#allocation40_spill] sm:$0xff] }
 0xafd   :  { %2762 = vmatprep.subr.mxu0 %v5725_v56  ;;  %2833 = vmatprep.subr.mxu1 %v5731_v15  ;;  %v1821_v56 = vadd.f32 %v7311_v21, %v7271_v47 }
 0xafe   :  { %2763 = vmatpush1.msra.mxu0 %v5737_v49  ;;  %2834 = vmatpush1.msra.mxu1 %v7275_v11 }
 0xaff   :  { %2764 = vmatprep.subr.mxu0 %v7276_v12  ;;  %2835 = vmatprep.subr.mxu1 %v7277_v14 }
 0xb00   :  { %2765 = vmatpush1.msra.mxu0 %v7278_v16  ;;  %2836 = vmatpush1.msra.mxu1 %v7279_v18 }
 0xb01   :  { %2766 = vmatprep.subr.mxu0 %v7280_v22  ;;  %2837 = vmatprep.subr.mxu1 %v7281_v24  ;;  %v7312_v22 = vld [vmem:[#allocation41_spill] sm:$0xff] }
 0xb02   :  { %2767 = vmatpush1.msra.mxu0 %v7282_v25  ;;  %2838 = vmatpush1.msra.mxu1 %v7283_v26  ;;  %v1934_v24 = vadd.f32 %v7312_v22, %v6017_v6  ;;  %v7313_v26 = vld [vmem:[#allocation39_spill] sm:$0xff]  ;;  %v6483_v22 = vld [vmem:[%s6843_s2 + $0x2f0] sm:$0xff] }
 0xb03   :  { %2768 = vmatprep.subr.mxu0 %v7284_v27  ;;  %2839 = vmatprep.subr.mxu1 %v7285_v28  ;;  %v1932_v27 = vadd.f32 %v7313_v26, %v6020_v5  ;;  %v6501_v26 = vld [vmem:[%s6843_s2 + $0x2c0] sm:$0xff] }
 0xb04   :  { %2769 = vmatpush1.msra.mxu0 %v7286_v29  ;;  %2840 = vmatpush1.msra.mxu1 %v7287_v30 }
 0xb05   :  { %2770 = vmatprep.subr.mxu0 %v7288_v31  ;;  %2841 = vmatprep.subr.mxu1 %v7289_v32 }
 0xb06   :  { %2771 = vmatpush1.msra.mxu0 %v7290_v33  ;;  %2842 = vmatpush1.msra.mxu1 %v7291_v34 }
 0xb07   :  { %2772 = vmatprep.subr.mxu0 %v7292_v35  ;;  %2843 = vmatprep.subr.mxu1 %v7293_v36 }
 0xb08   :  { %2773 = vmatpush1.msra.mxu0 %v7294_v37  ;;  %2806 = vmatprep.mubr.f32.mxu0 %v7295_v38 }
 0xb09   :  { %2844 = vmatpush1.msra.mxu1 %v7296_v39  ;;  %2877 = vmatprep.mubr.f32.mxu1 %v7295_v38 }
 0xb0a   :  { %2928 = vmatprep.subr.mxu0 %v6418_v51  ;;  %2999 = vmatprep.subr.mxu1 %v6424_v23 }
 0xba9   :  { %v2622_v4 = vpop.f32.mrf.mxu0  ;;  %v2693_v14 = vpop.f32.mrf.mxu1 }
 0xbaa   :  { %v2698_v15 = vadd.f32 %v2622_v4, %v1819_v19  ;;  %v2700_v28 = vadd.f32 %v2693_v14, %v1932_v27  ;;  %v7316_v14 = vld [vmem:[#allocation32_spill] sm:$0xff]  ;;  %v6507_v27 = vld [vmem:[%s6843_s2 + $0x2d0] sm:$0xff] }
 0xbab   :  { %v2624_v49 = vpop.f32.mrf.mxu0  ;;  %v2695_v18 = vpop.f32.mrf.mxu1 }
 0xbac   :  { %v3627_v11 = vmul.f32 -1.442695, %v2698_v15  ;;  %v2699_v12 = vadd.f32 %v2624_v49, %v1821_v56  ;;  %v2701_v25 = vadd.f32 %v2695_v18, %v1934_v24  ;;  %v2730_v49 = vpop.permute.xlu1 %2729  ;;  %v6477_v18 = vld [vmem:[%s6843_s2 + $0x2e0] sm:$0xff]  ;;  %v6489_v24 = vld [vmem:[%s6843_s2 + $0x2c8] sm:$0xff] }
 0xbae   :  { %3835 = vpow2.f32 %v3627_v11  ;;  %v3628_v16 = vmul.f32 -1.442695, %v2699_v12  ;;  %v3629_v29 = vmul.f32 -1.442695, %v2701_v25  ;;  %v7315_v12 = vld [vmem:[#allocation56_spill] sm:$0xff]  ;;  %v6495_v25 = vld [vmem:[%s6843_s2 + $0x2d8] sm:$0xff] }
 0xbb0   :  { %3837 = vpow2.f32 %v3628_v16  ;;  %v7317_v16 = vld [vmem:[#allocation33_spill] sm:$0xff] }
 0xbb1   :  { %3839 = vtanh.f32 %v2700_v28  ;;  %v6513_v28 = vld [vmem:[%s6843_s2 + $0x2a8] sm:$0xff] }
 0xbb2   :  { %3841 = vpow2.f32 %v3629_v29  ;;  %v6519_v29 = vld [vmem:[%s6843_s2 + $0x2b8] sm:$0xff] }
 0xbbb   :  { %v3836_v30 = vpop.eup %3835 }
 0xbbc   :  { %v2705_v31 = vadd.f32 1.0, %v3836_v30  ;;  %v6525_v30 = vld [vmem:[%s6843_s2 + $0x2a0] sm:$0xff] }
 0xbbd   :  { %v3838_v32 = vpop.eup %3837 }
 0xbbe   :  { %3843 = vrcp.f32 %v2705_v31  ;;  %v2711_v33 = vadd.f32 1.0, %v3838_v32  ;;  %v3840_v34 = vpop.eup %3839  ;;  %v6531_v31 = vld [vmem:[%s6843_s2 + $0x2b0] sm:$0xff]  ;;  %v6537_v32 = vld [vmem:[%s6843_s2 + $0x288] sm:$0xff] }
 0xbbf   :  { %v3842_v35 = vpop.eup %3841  ;;  %7318 = vst [vmem:[#allocation11_spill] sm:$0xff] %v6531_v31  ;;  %7319 = vst [vmem:[#allocation25_spill] sm:$0xff] %v6537_v32 }
 0xbc0   :  { %3845 = vrcp.f32 %v2711_v33  ;;  %v2718_v13 = vadd.f32 1.0, %v3842_v35  ;;  %v6543_v33 = vld [vmem:[%s6843_s2 + $0x298] sm:$0xff]  ;;  %v6555_v35 = vld [vmem:[%s6843_s2 + $0x290] sm:$0xff] }
 0xbc1   :  { %7320 = vst [vmem:[#allocation20_spill] sm:$0xff] %v6543_v33  ;;  %7322 = vst [vmem:[#allocation12_spill] sm:$0xff] %v6555_v35 }
 0xbc2   :  { %3847 = vrcp.f32 %v2718_v13  ;;  %v6579_v13 = vld [vmem:[%s6843_s2 + $0x270] sm:$0xff] }
 0xbc3   :  { %7326 = vst [vmem:[#allocation13_spill] sm:$0xff] %v6579_v13 }
 0xbcb   :  { %v3844_v36 = vpop.eup %3843 }
 0xbcc   :  { %v2722_v37 = vmul.f32 %v3844_v36, %v3840_v34  ;;  %v6549_v34 = vld [vmem:[%s6843_s2 + $0x280] sm:$0xff]  ;;  %v6561_v36 = vld [vmem:[%s6843_s2 + $0x268] sm:$0xff] }
 0xbcd   :  { %v3846_v39 = vpop.eup %3845  ;;  %7321 = vst [vmem:[#allocation8_spill] sm:$0xff] %v6549_v34  ;;  %7323 = vst [vmem:[#allocation27_spill] sm:$0xff] %v6561_v36 }
 0xbce   :  { %v2721_v19 = vmul.f32 %v3846_v39, %v6185_v46  ;;  %v7314_v46 = vld [vmem:[#allocation10_spill] sm:$0xff]  ;;  %v6573_v39 = vld [vmem:[%s6843_s2 + $0x260] sm:$0xff] }
 0xbcf   :  { %v3848_v21 = vpop.eup %3847  ;;  %7325 = vst [vmem:[#allocation28_spill] sm:$0xff] %v6573_v39 }
 0xbd0   :  { %v6436_v4 = vadd.f32 %v2722_v37, %v2721_v19  ;;  %v6567_v37 = vld [vmem:[%s6843_s2 + $0x278] sm:$0xff]  ;;  %v6585_v19 = vld [vmem:[%s6843_s2 + $0x248] sm:$0xff] }
 0xbd1   :  { %7324 = vst [vmem:[#allocation21_spill] sm:$0xff] %v6567_v37  ;;  %7327 = vst [vmem:[#allocation29_spill] sm:$0xff] %v6585_v19 }
 0xbd2   :  { %3849 = vtanh.f32 %v6436_v4 }
 0xbdf   :  { %v3850_v56 = vpop.eup %3849 }
 0xbe0   :  { %v2725_v15 = vmul.f32 %v3850_v56, %v3848_v21  ;;  %v6591_v21 = vld [vmem:[%s6843_s2 + $0x258] sm:$0xff]  ;;  %v6597_v56 = vld [vmem:[%s6843_s2 + $0x240] sm:$0xff] }
 0xbe1   :  { %7328 = vst [vmem:[#allocation22_spill] sm:$0xff] %v6591_v21  ;;  %7329 = vst [vmem:[#allocation30_spill] sm:$0xff] %v6597_v56 }
 0xbe2   :  { %v2732_v11 = vmul.f32 %v2730_v49, %v2725_v15  ;;  %2807 = vmatmul.mubr.f32.vlgmr.msra.gmra.mxu0 %v2725_v15  ;;  %2878 = vmatmul.mubr.f32.vlgmr.msra.gmra.mxu1 %v2725_v15  ;;  %v6603_v15 = vld [vmem:[%s6843_s2 + $0x250] sm:$0xff]  ;;  %v6609_v49 = vld [vmem:[%s6843_s2 + $0x228] sm:$0xff] }
 0xbe3   :  { %2929 = vmatpush1.msra.mxu0 %v6191_v61  ;;  %3000 = vmatpush1.msra.mxu1 %v6197_v1  ;;  %7330 = vst [vmem:[#allocation15_spill] sm:$0xff] %v6603_v15  ;;  %7331 = vst [vmem:[#allocation16_spill] sm:$0xff] %v6609_v49 }
 0xbe4   :  { %3631 = vst [vmem:[%s6846_s5 + $0x18] sm:$0xff] %v2732_v11  ;;  %2930 = vmatprep.subr.mxu0 %v6206_v63  ;;  %3001 = vmatprep.subr.mxu1 %v6212_v57  ;;  %v6615_v11 = vld [vmem:[%s6843_s2 + $0x238] sm:$0xff] }
 0xbe5   :  { %2931 = vmatpush1.msra.mxu0 %v6218_v7  ;;  %3002 = vmatpush1.msra.mxu1 %v6224_v10  ;;  %7332 = vst [vmem:[#allocation31_spill] sm:$0xff] %v6615_v11 }
 0xbe6   :  { %2932 = vmatprep.subr.mxu0 %v6230_v55  ;;  %3003 = vmatprep.subr.mxu1 %v6236_v58 }
 0xbe7   :  { %2933 = vmatpush1.msra.mxu0 %v6242_v20  ;;  %3004 = vmatpush1.msra.mxu1 %v6248_v0 }
 0xbe8   :  { %2934 = vmatprep.subr.mxu0 %v6254_v59  ;;  %3005 = vmatprep.subr.mxu1 %v6260_v62 }
 0xbe9   :  { %2935 = vmatpush1.msra.mxu0 %v6266_v8  ;;  %3006 = vmatpush1.msra.mxu1 %v6272_v54 }
 0xbea   :  { %2936 = vmatprep.subr.mxu0 %v6278_v17  ;;  %3007 = vmatprep.subr.mxu1 %v6284_v60 }
 0xbeb   :  { %2937 = vmatpush1.msra.mxu0 %v6290_v2  ;;  %3008 = vmatpush1.msra.mxu1 %v6296_v9 }
 0xbec   :  { %2938 = vmatprep.subr.mxu0 %v6302_v53  ;;  %3009 = vmatprep.subr.mxu1 %v6308_v40 }
 0xbed   :  { %2939 = vmatpush1.msra.mxu0 %v6314_v41  ;;  %3010 = vmatpush1.msra.mxu1 %v6320_v43 }
 0xbee   :  { %2940 = vmatprep.subr.mxu0 %v6326_v44  ;;  %3011 = vmatprep.subr.mxu1 %v6332_v48 }
 0xbef   :  { %2941 = vmatpush1.msra.mxu0 %v7314_v46  ;;  %3012 = vmatpush1.msra.mxu1 %v7315_v12 }
 0xbf0   :  { %2942 = vmatprep.subr.mxu0 %v7316_v14  ;;  %3013 = vmatprep.subr.mxu1 %v7317_v16 }
 0xbf1   :  { %2943 = vmatpush1.msra.mxu0 %v6362_v50  ;;  %3014 = vmatpush1.msra.mxu1 %v6368_v52 }
 0xbf2   :  { %2944 = vmatprep.subr.mxu0 %v6374_v45  ;;  %3015 = vmatprep.subr.mxu1 %v6380_v3 }
 0xbf3   :  { %2945 = vmatpush1.msra.mxu0 %v6477_v18  ;;  %3016 = vmatpush1.msra.mxu1 %v6483_v22 }
 0xbf4   :  { %2946 = vmatprep.subr.mxu0 %v6489_v24  ;;  %3017 = vmatprep.subr.mxu1 %v6495_v25 }
 0xbf5   :  { %2947 = vmatpush1.msra.mxu0 %v6501_v26  ;;  %3018 = vmatpush1.msra.mxu1 %v6507_v27 }
 0xbf6   :  { %2948 = vmatprep.subr.mxu0 %v6513_v28  ;;  %3019 = vmatprep.subr.mxu1 %v6519_v29 }
 0xbf7   :  { %2949 = vmatpush1.msra.mxu0 %v6525_v30  ;;  %3020 = vmatpush1.msra.mxu1 %v6531_v31 }
 0xbf8   :  { %2950 = vmatprep.subr.mxu0 %v6537_v32  ;;  %3021 = vmatprep.subr.mxu1 %v6543_v33  ;;  %v7342_v33 = vld [vmem:[#allocation43_spill] sm:$0xff] }
 0xbf9   :  { %2951 = vmatpush1.msra.mxu0 %v6549_v34  ;;  %3022 = vmatpush1.msra.mxu1 %v6555_v35 }
 0xbfa   :  { %2952 = vmatprep.subr.mxu0 %v6561_v36  ;;  %3023 = vmatprep.subr.mxu1 %v6567_v37 }
 0xbfb   :  { %2953 = vmatpush1.msra.mxu0 %v6573_v39  ;;  %3024 = vmatpush1.msra.mxu1 %v6579_v13 }
 0xbfc   :  { %2954 = vmatprep.subr.mxu0 %v6585_v19  ;;  %3025 = vmatprep.subr.mxu1 %v6591_v21 }
 0xbfd   :  { %2955 = vmatpush1.msra.mxu0 %v6597_v56  ;;  %3026 = vmatpush1.msra.mxu1 %v6603_v15  ;;  %v6621_v56 = vld [vmem:[%s6843_s2 + $0x220] sm:$0xff]  ;;  %v6627_v15 = vld [vmem:[%s6843_s2 + $0x230] sm:$0xff] }
 0xbfe   :  { %2956 = vmatprep.subr.mxu0 %v6609_v49  ;;  %3027 = vmatprep.subr.mxu1 %v6615_v11  ;;  %7333 = vst [vmem:[#allocation17_spill] sm:$0xff] %v6621_v56  ;;  %7334 = vst [vmem:[#allocation9_spill] sm:$0xff] %v6627_v15  ;;  %v6633_v49 = vld [vmem:[%s6843_s2 + $0x208] sm:$0xff]  ;;  %v6639_v11 = vld [vmem:[%s6843_s2 + $0x218] sm:$0xff] }
 0xbff   :  { %2957 = vmatpush1.msra.mxu0 %v6621_v56  ;;  %3028 = vmatpush1.msra.mxu1 %v6627_v15  ;;  %7335 = vst [vmem:[#allocation14_spill] sm:$0xff] %v6633_v49  ;;  %7336 = vst [vmem:[#allocation26_spill] sm:$0xff] %v6639_v11  ;;  %v6645_v56 = vld [vmem:[%s6843_s2 + $0x200] sm:$0xff] }
 0xc00   :  { %2958 = vmatprep.subr.mxu0 %v6633_v49  ;;  %3029 = vmatprep.subr.mxu1 %v6639_v11  ;;  %7337 = vst [vmem:[#allocation7_spill] sm:$0xff] %v6645_v56  ;;  %v6652_v49 = vld [vmem:[%s6843_s2 + $0x210] sm:$0xff]  ;;  %v7339_v11 = vld [vmem:[#allocation42_spill] sm:$0xff] }
 0xc01   :  { %2959 = vmatpush1.msra.mxu0 %v6645_v56  ;;  %2992 = vmatprep.mubr.f32.mxu0 %v7295_v38  ;;  %7338 = vst [vmem:[#allocation23_spill] sm:$0xff] %v6652_v49  ;;  %v1825_v15 = vadd.f32 %v7339_v11, %v7299_v42  ;;  %v7340_v56 = vld [vmem:[#allocation44_spill] sm:$0xff]  ;;  %v1938_v11 = vadd.f32 %v7342_v33, %v6020_v5 }
 0xc02   :  { %3030 = vmatpush1.msra.mxu1 %v6652_v49  ;;  %3063 = vmatprep.mubr.f32.mxu1 %v7295_v38  ;;  %v1827_v19 = vadd.f32 %v7340_v56, %v7271_v47 }
 0xc03   :  { %3114 = vmatprep.subr.mxu0 %v6418_v51  ;;  %3185 = vmatprep.subr.mxu1 %v6424_v23  ;;  %v7341_v51 = vld [vmem:[#allocation45_spill] sm:$0xff] }
 0xc04   :  { %v1940_v34 = vadd.f32 %v7341_v51, %v6017_v6 }
 0xca2   :  { %v2808_v21 = vpop.f32.mrf.mxu0  ;;  %v2879_v35 = vpop.f32.mrf.mxu1 }
 0xca3   :  { %v2884_v13 = vadd.f32 %v2808_v21, %v1825_v15  ;;  %v2886_v42 = vadd.f32 %v2879_v35, %v1938_v11  ;;  %v7344_v35 = vld [vmem:[#allocation25_spill] sm:$0xff]  ;;  %v7346_v11 = vld [vmem:[#allocation8_spill] sm:$0xff] }
 0xca4   :  { %v2810_v39 = vpop.f32.mrf.mxu0  ;;  %v2881_v38 = vpop.f32.mrf.mxu1 }
 0xca5   :  { %v3632_v37 = vmul.f32 -1.442695, %v2884_v13  ;;  %v2885_v36 = vadd.f32 %v2810_v39, %v1827_v19  ;;  %v2887_v23 = vadd.f32 %v2881_v38, %v1940_v34 }
 0xca7   :  { %3851 = vpow2.f32 %v3632_v37  ;;  %v3633_v49 = vmul.f32 -1.442695, %v2885_v36  ;;  %v3634_v32 = vmul.f32 -1.442695, %v2887_v23 }
 0xca9   :  { %3853 = vpow2.f32 %v3633_v49  ;;  %v7345_v49 = vld [vmem:[#allocation20_spill] sm:$0xff] }
 0xcaa   :  { %3855 = vtanh.f32 %v2886_v42 }
 0xcab   :  { %3857 = vpow2.f32 %v3634_v32  ;;  %v2916_v32 = vpop.permute.xlu0 %2915 }
 0xcb4   :  { %v3852_v31 = vpop.eup %3851 }
 0xcb5   :  { %v2891_v56 = vadd.f32 1.0, %v3852_v31 }
 0xcb6   :  { %v3854_v21 = vpop.eup %3853 }
 0xcb7   :  { %3859 = vrcp.f32 %v2891_v56  ;;  %v2897_v37 = vadd.f32 1.0, %v3854_v21  ;;  %v3856_v36 = vpop.eup %3855  ;;  %v7347_v56 = vld [vmem:[#allocation12_spill] sm:$0xff]  ;;  %v7348_v21 = vld [vmem:[#allocation27_spill] sm:$0xff] }
 0xcb8   :  { %v3858_v39 = vpop.eup %3857 }
 0xcb9   :  { %3861 = vrcp.f32 %v2897_v37  ;;  %v2904_v51 = vadd.f32 1.0, %v3858_v39  ;;  %v7349_v37 = vld [vmem:[#allocation21_spill] sm:$0xff] }
 0xcba   :  { %v7351_v39 = vld [vmem:[#allocation13_spill] sm:$0xff] }
 0xcbb   :  { %3863 = vrcp.f32 %v2904_v51  ;;  %v7355_v51 = vld [vmem:[#allocation15_spill] sm:$0xff] }
 0xcc4   :  { %v3860_v13 = vpop.eup %3859 }
 0xcc5   :  { %v2908_v19 = vmul.f32 %v3860_v13, %v3856_v36  ;;  %v7350_v36 = vld [vmem:[#allocation28_spill] sm:$0xff]  ;;  %v7352_v13 = vld [vmem:[#allocation29_spill] sm:$0xff] }
 0xcc6   :  { %v3862_v15 = vpop.eup %3861 }
 0xcc7   :  { %v2907_v38 = vmul.f32 %v3862_v15, %v6436_v4  ;;  %v7343_v4 = vld [vmem:[#allocation11_spill] sm:$0xff]  ;;  %v7354_v15 = vld [vmem:[#allocation30_spill] sm:$0xff] }
 0xcc8   :  { %v3864_v23 = vpop.eup %3863 }
 0xcc9   :  { %v6667_v34 = vadd.f32 %v2908_v19, %v2907_v38  ;;  %v7353_v19 = vld [vmem:[#allocation22_spill] sm:$0xff]  ;;  %v7356_v38 = vld [vmem:[#allocation16_spill] sm:$0xff] }
 0xccb   :  { %3865 = vtanh.f32 %v6667_v34 }
 0xcd8   :  { %v3866_v42 = vpop.eup %3865 }
 0xcd9   :  { %v2911_v31 = vmul.f32 %v3866_v42, %v3864_v23  ;;  %v7357_v23 = vld [vmem:[#allocation31_spill] sm:$0xff]  ;;  %v7358_v42 = vld [vmem:[#allocation17_spill] sm:$0xff] }
 0xcdb   :  { %v2918_v33 = vmul.f32 %v2916_v32, %v2911_v31  ;;  %2993 = vmatmul.mubr.f32.vlgmr.msra.gmra.mxu0 %v2911_v31  ;;  %3064 = vmatmul.mubr.f32.vlgmr.msra.gmra.mxu1 %v2911_v31  ;;  %v7359_v31 = vld [vmem:[#allocation9_spill] sm:$0xff]  ;;  %v7360_v32 = vld [vmem:[#allocation14_spill] sm:$0xff] }
 0xcdc   :  { %3115 = vmatpush1.msra.mxu0 %v6191_v61  ;;  %3186 = vmatpush1.msra.mxu1 %v6197_v1 }
 0xcdd   :  { %3636 = vst [vmem:[%s6846_s5 + $0x20] sm:$0xff] %v2918_v33  ;;  %3116 = vmatprep.subr.mxu0 %v6206_v63  ;;  %3187 = vmatprep.subr.mxu1 %v6212_v57  ;;  %v7361_v33 = vld [vmem:[#allocation26_spill] sm:$0xff] }
 0xcde   :  { %3117 = vmatpush1.msra.mxu0 %v6218_v7  ;;  %3188 = vmatpush1.msra.mxu1 %v6224_v10 }
 0xcdf   :  { %3118 = vmatprep.subr.mxu0 %v6230_v55  ;;  %3189 = vmatprep.subr.mxu1 %v6236_v58 }
 0xce0   :  { %3119 = vmatpush1.msra.mxu0 %v6242_v20  ;;  %3190 = vmatpush1.msra.mxu1 %v6248_v0 }
 0xce1   :  { %3120 = vmatprep.subr.mxu0 %v6254_v59  ;;  %3191 = vmatprep.subr.mxu1 %v6260_v62 }
 0xce2   :  { %3121 = vmatpush1.msra.mxu0 %v6266_v8  ;;  %3192 = vmatpush1.msra.mxu1 %v6272_v54 }
 0xce3   :  { %3122 = vmatprep.subr.mxu0 %v6278_v17  ;;  %3193 = vmatprep.subr.mxu1 %v6284_v60 }
 0xce4   :  { %3123 = vmatpush1.msra.mxu0 %v6290_v2  ;;  %3194 = vmatpush1.msra.mxu1 %v6296_v9 }
 0xce5   :  { %3124 = vmatprep.subr.mxu0 %v6302_v53  ;;  %3195 = vmatprep.subr.mxu1 %v6308_v40 }
 0xce6   :  { %3125 = vmatpush1.msra.mxu0 %v6314_v41  ;;  %3196 = vmatpush1.msra.mxu1 %v6320_v43 }
 0xce7   :  { %3126 = vmatprep.subr.mxu0 %v6326_v44  ;;  %3197 = vmatprep.subr.mxu1 %v6332_v48 }
 0xce8   :  { %3127 = vmatpush1.msra.mxu0 %v7314_v46  ;;  %3198 = vmatpush1.msra.mxu1 %v7315_v12 }
 0xce9   :  { %3128 = vmatprep.subr.mxu0 %v7316_v14  ;;  %3199 = vmatprep.subr.mxu1 %v7317_v16 }
 0xcea   :  { %3129 = vmatpush1.msra.mxu0 %v6362_v50  ;;  %3200 = vmatpush1.msra.mxu1 %v6368_v52 }
 0xceb   :  { %3130 = vmatprep.subr.mxu0 %v6374_v45  ;;  %3201 = vmatprep.subr.mxu1 %v6380_v3 }
 0xcec   :  { %3131 = vmatpush1.msra.mxu0 %v6477_v18  ;;  %3202 = vmatpush1.msra.mxu1 %v6483_v22 }
 0xced   :  { %3132 = vmatprep.subr.mxu0 %v6489_v24  ;;  %3203 = vmatprep.subr.mxu1 %v6495_v25 }
 0xcee   :  { %3133 = vmatpush1.msra.mxu0 %v6501_v26  ;;  %3204 = vmatpush1.msra.mxu1 %v6507_v27 }
 0xcef   :  { %3134 = vmatprep.subr.mxu0 %v6513_v28  ;;  %3205 = vmatprep.subr.mxu1 %v6519_v29 }
 0xcf0   :  { %3135 = vmatpush1.msra.mxu0 %v6525_v30  ;;  %3206 = vmatpush1.msra.mxu1 %v7343_v4 }
 0xcf1   :  { %3136 = vmatprep.subr.mxu0 %v7344_v35  ;;  %3207 = vmatprep.subr.mxu1 %v7345_v49  ;;  %v7371_v49 = vld [vmem:[#allocation47_spill] sm:$0xff] }
 0xcf2   :  { %3137 = vmatpush1.msra.mxu0 %v7346_v11  ;;  %3208 = vmatpush1.msra.mxu1 %v7347_v56 }
 0xcf3   :  { %3138 = vmatprep.subr.mxu0 %v7348_v21  ;;  %3209 = vmatprep.subr.mxu1 %v7349_v37 }
 0xcf4   :  { %3139 = vmatpush1.msra.mxu0 %v7350_v36  ;;  %3210 = vmatpush1.msra.mxu1 %v7351_v39  ;;  %v7362_v39 = vld [vmem:[#allocation7_spill] sm:$0xff] }
 0xcf5   :  { %3140 = vmatprep.subr.mxu0 %v7352_v13  ;;  %3211 = vmatprep.subr.mxu1 %v7353_v19  ;;  %v7363_v13 = vmov 0.0   ;;  %v7364_v19 = vld [vmem:[#allocation23_spill] sm:$0xff] }
 0xcf6   :  { %3141 = vmatpush1.msra.mxu0 %v7354_v15  ;;  %3212 = vmatpush1.msra.mxu1 %v7355_v51  ;;  %v7365_v51 = vld [vmem:[#allocation24_spill] sm:$0xff] }
 0xcf7   :  { %3142 = vmatprep.subr.mxu0 %v7356_v38  ;;  %3213 = vmatprep.subr.mxu1 %v7357_v23  ;;  %v7366_v38 = vld [vmem:[#allocation19_spill] sm:$0xff]  ;;  %v7367_v23 = vld [vmem:[#allocation53_spill] sm:$0xff] }
 0xcf8   :  { %3143 = vmatpush1.msra.mxu0 %v7358_v42  ;;  %3214 = vmatpush1.msra.mxu1 %v7359_v31  ;;  %v7368_v42 = vld [vmem:[#allocation46_spill] sm:$0xff] }
 0xcf9   :  { %3144 = vmatprep.subr.mxu0 %v7360_v32  ;;  %3215 = vmatprep.subr.mxu1 %v7361_v33  ;;  %v1831_v15 = vadd.f32 %v7368_v42, %v7367_v23  ;;  %v7369_v32 = vld [vmem:[#allocation48_spill] sm:$0xff]  ;;  %v1944_v42 = vadd.f32 %v7371_v49, %v6020_v5 }
 0xcfa   :  { %3145 = vmatpush1.msra.mxu0 %v7362_v39  ;;  %3178 = vmatprep.mubr.f32.mxu0 %v7363_v13  ;;  %v1833_v36 = vadd.f32 %v7369_v32, %v7271_v47 }
 0xcfb   :  { %3216 = vmatpush1.msra.mxu1 %v7364_v19  ;;  %3249 = vmatprep.mubr.f32.mxu1 %v7363_v13 }
 0xcfc   :  { %3300 = vmatprep.subr.mxu0 %v7365_v51  ;;  %3371 = vmatprep.subr.mxu1 %v7366_v38  ;;  %v7370_v51 = vld [vmem:[#allocation49_spill] sm:$0xff] }
 0xcfd   :  { %v1946_v11 = vadd.f32 %v7370_v51, %v6017_v6 }
 0xd9b   :  { %v2994_v31 = vpop.f32.mrf.mxu0  ;;  %v3065_v56 = vpop.f32.mrf.mxu1 }
 0xd9c   :  { %v3070_v33 = vadd.f32 %v2994_v31, %v1831_v15  ;;  %v3072_v23 = vadd.f32 %v3065_v56, %v1944_v42 }
 0xd9d   :  { %v2996_v37 = vpop.f32.mrf.mxu0  ;;  %v3067_v13 = vpop.f32.mrf.mxu1 }
 0xd9e   :  { %v3637_v39 = vmul.f32 -1.442695, %v3070_v33  ;;  %v3071_v21 = vadd.f32 %v2996_v37, %v1833_v36  ;;  %v3073_v38 = vadd.f32 %v3067_v13, %v1946_v11 }
 0xda0   :  { %3867 = vpow2.f32 %v3637_v39  ;;  %v3638_v19 = vmul.f32 -1.442695, %v3071_v21  ;;  %v3639_v35 = vmul.f32 -1.442695, %v3073_v38 }
 0xda2   :  { %3869 = vpow2.f32 %v3638_v19 }
 0xda3   :  { %3871 = vtanh.f32 %v3072_v23 }
 0xda4   :  { %3873 = vpow2.f32 %v3639_v35  ;;  %v3102_v35 = vpop.permute.xlu1 %3101 }
 0xdad   :  { %v3868_v4 = vpop.eup %3867 }
 0xdae   :  { %v3077_v32 = vadd.f32 1.0, %v3868_v4 }
 0xdaf   :  { %v3870_v15 = vpop.eup %3869 }
 0xdb0   :  { %3875 = vrcp.f32 %v3077_v32  ;;  %v3083_v37 = vadd.f32 1.0, %v3870_v15  ;;  %v3872_v21 = vpop.eup %3871 }
 0xdb1   :  { %v3874_v36 = vpop.eup %3873 }
 0xdb2   :  { %3877 = vrcp.f32 %v3083_v37  ;;  %v3090_v33 = vadd.f32 1.0, %v3874_v36 }
 0xdb4   :  { %3879 = vrcp.f32 %v3090_v33 }
 0xdbd   :  { %v3876_v39 = vpop.eup %3875 }
 0xdbe   :  { %v3094_v19 = vmul.f32 %v3876_v39, %v3872_v21 }
 0xdbf   :  { %v3878_v31 = vpop.eup %3877 }
 0xdc0   :  { %v3093_v11 = vmul.f32 %v3878_v31, %v6667_v34 }
 0xdc1   :  { %v3880_v4 = vpop.eup %3879 }
 0xdc2   :  { %v6748_v13 = vadd.f32 %v3094_v19, %v3093_v11 }
 0xdc4   :  { %3881 = vtanh.f32 %v6748_v13 }
 0xdd1   :  { %v3882_v49 = vpop.eup %3881 }
 0xdd2   :  { %v3097_v56 = vmul.f32 %v3882_v49, %v3880_v4 }
 0xdd4   :  { %v3104_v23 = vmul.f32 %v3102_v35, %v3097_v56  ;;  %3179 = vmatmul.mubr.f32.vlgmr.msra.gmra.mxu0 %v3097_v56  ;;  %3250 = vmatmul.mubr.f32.vlgmr.msra.gmra.mxu1 %v3097_v56  ;;  %v3288_v56 = vpop.permute.xlu0 %3287 }
 0xdd5   :  { %3301 = vmatpush1.msra.mxu0 %v6191_v61  ;;  %3372 = vmatpush1.msra.mxu1 %v6197_v1  ;;  %v7372_v61 = vld [vmem:[#allocation11_spill] sm:$0xff]  ;;  %v7373_v1 = vld [vmem:[#allocation25_spill] sm:$0xff] }
 0xdd6   :  { %3641 = vst [vmem:[%s6846_s5 + $0x28] sm:$0xff] %v3104_v23  ;;  %3302 = vmatprep.subr.mxu0 %v6206_v63  ;;  %3373 = vmatprep.subr.mxu1 %v6212_v57  ;;  %v7374_v63 = vld [vmem:[#allocation20_spill] sm:$0xff]  ;;  %v7399_v23 = vld [vmem:[#allocation55_spill] sm:$0xff] }
 0xdd7   :  { %3303 = vmatpush1.msra.mxu0 %v6218_v7  ;;  %3374 = vmatpush1.msra.mxu1 %v6224_v10  ;;  %v7375_v57 = vld [vmem:[#allocation8_spill] sm:$0xff]  ;;  %v7377_v10 = vld [vmem:[#allocation27_spill] sm:$0xff] }
 0xdd8   :  { %3304 = vmatprep.subr.mxu0 %v6230_v55  ;;  %3375 = vmatprep.subr.mxu1 %v6236_v58  ;;  %v7376_v7 = vld [vmem:[#allocation12_spill] sm:$0xff]  ;;  %v7378_v55 = vld [vmem:[#allocation21_spill] sm:$0xff] }
 0xdd9   :  { %3305 = vmatpush1.msra.mxu0 %v6242_v20  ;;  %3376 = vmatpush1.msra.mxu1 %v6248_v0  ;;  %v7379_v58 = vld [vmem:[#allocation28_spill] sm:$0xff]  ;;  %v7380_v20 = vld [vmem:[#allocation13_spill] sm:$0xff] }
 0xdda   :  { %3306 = vmatprep.subr.mxu0 %v6254_v59  ;;  %3377 = vmatprep.subr.mxu1 %v6260_v62  ;;  %v7381_v0 = vld [vmem:[#allocation29_spill] sm:$0xff]  ;;  %v7382_v59 = vld [vmem:[#allocation22_spill] sm:$0xff] }
 0xddb   :  { %3307 = vmatpush1.msra.mxu0 %v6266_v8  ;;  %3378 = vmatpush1.msra.mxu1 %v6272_v54  ;;  %v7383_v62 = vld [vmem:[#allocation30_spill] sm:$0xff]  ;;  %v7384_v8 = vld [vmem:[#allocation15_spill] sm:$0xff]  ;;  %v7385_v54 = vld [vmem:[#allocation16_spill] sm:$0xff] }
 0xddc   :  { %3308 = vmatprep.subr.mxu0 %v6278_v17  ;;  %3379 = vmatprep.subr.mxu1 %v6284_v60  ;;  %v7386_v17 = vld [vmem:[#allocation31_spill] sm:$0xff]  ;;  %v7387_v60 = vld [vmem:[#allocation17_spill] sm:$0xff] }
 0xddd   :  { %3309 = vmatpush1.msra.mxu0 %v6290_v2  ;;  %3380 = vmatpush1.msra.mxu1 %v6296_v9  ;;  %v7388_v2 = vld [vmem:[#allocation9_spill] sm:$0xff]  ;;  %v7389_v9 = vld [vmem:[#allocation14_spill] sm:$0xff] }
 0xdde   :  { %3310 = vmatprep.subr.mxu0 %v6302_v53  ;;  %3381 = vmatprep.subr.mxu1 %v6308_v40  ;;  %v7390_v53 = vld [vmem:[#allocation26_spill] sm:$0xff]  ;;  %v7391_v40 = vld [vmem:[#allocation7_spill] sm:$0xff] }
 0xddf   :  { %3311 = vmatpush1.msra.mxu0 %v6314_v41  ;;  %3382 = vmatpush1.msra.mxu1 %v6320_v43  ;;  %v7392_v41 = vmov 0.0   ;;  %v7393_v43 = vld [vmem:[#allocation23_spill] sm:$0xff] }
 0xde0   :  { %3312 = vmatprep.subr.mxu0 %v6326_v44  ;;  %3383 = vmatprep.subr.mxu1 %v6332_v48  ;;  %v7394_v44 = vld [vmem:[#allocation53_spill] sm:$0xff]  ;;  %v7395_v48 = vld [vmem:[#allocation50_spill] sm:$0xff] }
 0xde1   :  { %3313 = vmatpush1.msra.mxu0 %v7314_v46  ;;  %3384 = vmatpush1.msra.mxu1 %v7315_v12 }
 0xde2   :  { %3314 = vmatprep.subr.mxu0 %v7316_v14  ;;  %3385 = vmatprep.subr.mxu1 %v7317_v16 }
 0xde3   :  { %3315 = vmatpush1.msra.mxu0 %v6362_v50  ;;  %3386 = vmatpush1.msra.mxu1 %v6368_v52  ;;  %v1837_v50 = vadd.f32 %v7395_v48, %v7394_v44 }
 0xde4   :  { %3316 = vmatprep.subr.mxu0 %v6374_v45  ;;  %3387 = vmatprep.subr.mxu1 %v6380_v3  ;;  %v7396_v45 = vld [vmem:[#allocation52_spill] sm:$0xff] }
 0xde5   :  { %3317 = vmatpush1.msra.mxu0 %v6477_v18  ;;  %3388 = vmatpush1.msra.mxu1 %v6483_v22  ;;  %v1839_v3 = vadd.f32 %v7396_v45, %v7271_v47 }
 0xde6   :  { %3318 = vmatprep.subr.mxu0 %v6489_v24  ;;  %3389 = vmatprep.subr.mxu1 %v6495_v25  ;;  %v7397_v25 = vld [vmem:[#allocation54_spill] sm:$0xff] }
 0xde7   :  { %3319 = vmatpush1.msra.mxu0 %v6501_v26  ;;  %3390 = vmatpush1.msra.mxu1 %v6507_v27  ;;  %v1952_v26 = vadd.f32 %v7397_v25, %v6017_v6 }
 0xde8   :  { %3320 = vmatprep.subr.mxu0 %v6513_v28  ;;  %3391 = vmatprep.subr.mxu1 %v6519_v29  ;;  %v7398_v28 = vld [vmem:[#allocation51_spill] sm:$0xff] }
 0xde9   :  { %3321 = vmatpush1.msra.mxu0 %v6525_v30  ;;  %3392 = vmatpush1.msra.mxu1 %v7372_v61  ;;  %v1950_v29 = vadd.f32 %v7398_v28, %v6020_v5  ;;  %v1843_v61 = vadd.f32 %v7399_v23, %v7394_v44 }
 0xdea   :  { %3322 = vmatprep.subr.mxu0 %v7373_v1  ;;  %3393 = vmatprep.subr.mxu1 %v7374_v63 }
 0xdeb   :  { %3323 = vmatpush1.msra.mxu0 %v7375_v57  ;;  %3394 = vmatpush1.msra.mxu1 %v7376_v7 }
 0xdec   :  { %3324 = vmatprep.subr.mxu0 %v7377_v10  ;;  %3395 = vmatprep.subr.mxu1 %v7378_v55 }
 0xded   :  { %3325 = vmatpush1.msra.mxu0 %v7379_v58  ;;  %3396 = vmatpush1.msra.mxu1 %v7380_v20 }
 0xdee   :  { %3326 = vmatprep.subr.mxu0 %v7381_v0  ;;  %3397 = vmatprep.subr.mxu1 %v7382_v59  ;;  %v7401_v59 = vld [vmem:[#allocation59_spill] sm:$0xff] }
 0xdef   :  { %3327 = vmatpush1.msra.mxu0 %v7383_v62  ;;  %3398 = vmatpush1.msra.mxu1 %v7384_v8  ;;  %v1958_v62 = vadd.f32 %v7401_v59, %v6017_v6 }
 0xdf0   :  { %3328 = vmatprep.subr.mxu0 %v7385_v54  ;;  %3399 = vmatprep.subr.mxu1 %v7386_v17  ;;  %v7402_v54 = vld [vmem:[#allocation57_spill] sm:$0xff] }
 0xdf1   :  { %3329 = vmatpush1.msra.mxu0 %v7387_v60  ;;  %3400 = vmatpush1.msra.mxu1 %v7388_v2  ;;  %v1956_v17 = vadd.f32 %v7402_v54, %v6020_v5 }
 0xdf2   :  { %3330 = vmatprep.subr.mxu0 %v7389_v9  ;;  %3401 = vmatprep.subr.mxu1 %v7390_v53 }
 0xdf3   :  { %3331 = vmatpush1.msra.mxu0 %v7391_v40  ;;  %3364 = vmatprep.mubr.f32.mxu0 %v7392_v41 }
 0xdf4   :  { %3402 = vmatpush1.msra.mxu1 %v7393_v43  ;;  %3435 = vmatprep.mubr.f32.mxu1 %v7392_v41 }
 0xe94   :  { %v3180_v52 = vpop.f32.mrf.mxu0  ;;  %v3251_v18 = vpop.f32.mrf.mxu1 }
 0xe95   :  { %v3256_v46 = vadd.f32 %v3180_v52, %v1837_v50  ;;  %v3258_v30 = vadd.f32 %v3251_v18, %v1950_v29 }
 0xe96   :  { %v3182_v12 = vpop.f32.mrf.mxu0  ;;  %v3253_v24 = vpop.f32.mrf.mxu1 }
 0xe97   :  { %v3642_v14 = vmul.f32 -1.442695, %v3256_v46  ;;  %v3257_v16 = vadd.f32 %v3182_v12, %v1839_v3  ;;  %v3259_v27 = vadd.f32 %v3253_v24, %v1952_v26  ;;  %v3474_v12 = vpop.permute.xlu1 %3473 }
 0xe99   :  { %3883 = vpow2.f32 %v3642_v14  ;;  %v3643_v22 = vmul.f32 -1.442695, %v3257_v16  ;;  %v3644_v34 = vmul.f32 -1.442695, %v3259_v27 }
 0xe9b   :  { %3885 = vpow2.f32 %v3643_v22 }
 0xe9c   :  { %3887 = vtanh.f32 %v3258_v30 }
 0xe9d   :  { %3889 = vpow2.f32 %v3644_v34 }
 0xea6   :  { %v3884_v51 = vpop.eup %3883 }
 0xea7   :  { %v3263_v38 = vadd.f32 1.0, %v3884_v51 }
 0xea8   :  { %v3886_v42 = vpop.eup %3885 }
 0xea9   :  { %3891 = vrcp.f32 %v3263_v38  ;;  %v3269_v32 = vadd.f32 1.0, %v3886_v42  ;;  %v3888_v15 = vpop.eup %3887 }
 0xeaa   :  { %v3890_v37 = vpop.eup %3889 }
 0xeab   :  { %3893 = vrcp.f32 %v3269_v32  ;;  %v3276_v19 = vadd.f32 1.0, %v3890_v37 }
 0xead   :  { %3895 = vrcp.f32 %v3276_v19 }
 0xeb6   :  { %v3892_v21 = vpop.eup %3891 }
 0xeb7   :  { %v3280_v36 = vmul.f32 %v3892_v21, %v3888_v15 }
 0xeb8   :  { %v3894_v39 = vpop.eup %3893 }
 0xeb9   :  { %v3279_v31 = vmul.f32 %v3894_v39, %v6748_v13  ;;  %v7400_v13 = vld [vmem:[#allocation58_spill] sm:$0xff] }
 0xeba   :  { %v3896_v11 = vpop.eup %3895  ;;  %v1845_v63 = vadd.f32 %v7400_v13, %v7271_v47 }
 0xebb   :  { %v3281_v33 = vadd.f32 %v3280_v36, %v3279_v31 }
 0xebd   :  { %3897 = vtanh.f32 %v3281_v33 }
 0xeca   :  { %v3898_v4 = vpop.eup %3897 }
 0xecb   :  { %v3283_v49 = vmul.f32 %v3898_v4, %v3896_v11 }
 0xecd   :  { %v3290_v35 = vmul.f32 %v3288_v56, %v3283_v49  ;;  %3365 = vmatmul.mubr.f32.vlgmr.msra.gmra.mxu0 %v3283_v49  ;;  %3436 = vmatmul.mubr.f32.vlgmr.msra.gmra.mxu1 %v3283_v49 }
 0xecf   :  { %3646 = vst [vmem:[%s6846_s5 + $0x30] sm:$0xff] %v3290_v35 }
 0xf8d   :  { %v3366_v1 = vpop.f32.mrf.mxu0  ;;  %v3437_v58 = vpop.f32.mrf.mxu1 }
 0xf8e   :  { %v3442_v57 = vadd.f32 %v3366_v1, %v1843_v61  ;;  %v3444_v60 = vadd.f32 %v3437_v58, %v1956_v17 }
 0xf8f   :  { %v3368_v7 = vpop.f32.mrf.mxu0  ;;  %v3439_v0 = vpop.f32.mrf.mxu1 }
 0xf90   :  { %v3647_v10 = vmul.f32 -1.442695, %v3442_v57  ;;  %v3443_v55 = vadd.f32 %v3368_v7, %v1845_v63  ;;  %v3445_v8 = vadd.f32 %v3439_v0, %v1958_v62 }
 0xf92   :  { %3899 = vpow2.f32 %v3647_v10  ;;  %v3648_v20 = vmul.f32 -1.442695, %v3443_v55  ;;  %v3649_v2 = vmul.f32 -1.442695, %v3445_v8 }
 0xf94   :  { %3901 = vpow2.f32 %v3648_v20 }
 0xf95   :  { %3903 = vtanh.f32 %v3444_v60 }
 0xf96   :  { %3905 = vpow2.f32 %v3649_v2 }
 0xf9f   :  { %v3900_v9 = vpop.eup %3899 }
 0xfa0   :  { %v3449_v47 = vadd.f32 1.0, %v3900_v9 }
 0xfa1   :  { %v3902_v53 = vpop.eup %3901 }
 0xfa2   :  { %3907 = vrcp.f32 %v3449_v47  ;;  %v3455_v40 = vadd.f32 1.0, %v3902_v53  ;;  %v3904_v41 = vpop.eup %3903 }
 0xfa3   :  { %v3906_v43 = vpop.eup %3905 }
 0xfa4   :  { %3909 = vrcp.f32 %v3455_v40  ;;  %v3462_v6 = vadd.f32 1.0, %v3906_v43 }
 0xfa6   :  { %3911 = vrcp.f32 %v3462_v6 }
 0xfaf   :  { %v3908_v44 = vpop.eup %3907 }
 0xfb0   :  { %v3466_v48 = vmul.f32 %v3908_v44, %v3904_v41 }
 0xfb1   :  { %v3910_v50 = vpop.eup %3909 }
 0xfb2   :  { %v3465_v52 = vmul.f32 %v3910_v50, %v3281_v33 }
 0xfb3   :  { %v3912_v5 = vpop.eup %3911 }
 0xfb4   :  { %v3467_v45 = vadd.f32 %v3466_v48, %v3465_v52 }
 0xfb6   :  { %3913 = vtanh.f32 %v3467_v45 }
 0xfc3   :  { %v3914_v3 = vpop.eup %3913 }
 0xfc4   :  { %v3469_v46 = vmul.f32 %v3914_v3, %v3912_v5 }
 0xfc6   :  { %v3476_v14 = vmul.f32 %v3474_v12, %v3469_v46 }
 0xfc8   :  { %3651 = vst [vmem:[%s6846_s5 + $0x38] sm:$0xff] %v3476_v14 }
 0xfc9   :  { %3483 = vsyncpa [#allocation5], 1 }

</bundles_post_ra>
